<compile_context>
chip_gen: v7x
topology: tpu7x:2x2x1
jax: 0.10.0
libtpu: 0.0.40
codegen_flags: <defaults>
</compile_context>

<pallas_src>
import functools
import math

import jax
import jax.numpy as jnp
from jax import lax
from jax.experimental import pallas as pl
from jax.experimental.pallas import tpu as pltpu


def _encoder_unit_kernel(
    x_ref, wqkv_ref, bqkv_ref, w2_ref, b2_ref, gamma_ref, beta_ref,
    o_ref, qkv_s, attn_s, *, n_heads, n_pix, b_blk, eps,
):
    # x_ref / o_ref : (C, b_blk * n_pix) lane-dense slab (channels on sublanes, batch*spatial on lanes)
    # wqkv_ref      : (3E, C)  folded  wqkv @ w1
    # bqkv_ref      : (3E, 1)  folded  wqkv @ b1 + bqkv
    # w2_ref        : (C, E)   folded  w2 @ wo
    # b2_ref        : (C, 1)   folded  w2 @ bo + b2
    # qkv_s         : (3E, b_blk * n_pix) f32 scratch
    # attn_s        : (E, n_pix)          f32 scratch (per-batch-element head outputs)
    C = x_ref.shape[0]
    E = w2_ref.shape[1]
    dh = E // n_heads
    scale = 1.0 / math.sqrt(dh)
    inv_c = 1.0 / C

    x = x_ref[...].astype(jnp.float32)                                   # (C, L) — also the residual

    # fused cnn1 + QKV in_proj:  (3E, C) @ (C, L) -> (3E, L)
    qkv_s[...] = (jnp.dot(wqkv_ref[...], x, preferred_element_type=jnp.float32)
                  + bqkv_ref[...])

    w2 = w2_ref[...]
    b2 = b2_ref[...]
    gamma = gamma_ref[...]
    beta = beta_ref[...]

    for b in range(b_blk):                                               # static, small batch block
        col = b * n_pix

        def head_body(hh, carry):
            q0 = pl.multiple_of(hh * dh, dh)
            k0 = pl.multiple_of(E + hh * dh, dh)
            v0 = pl.multiple_of(2 * E + hh * dh, dh)
            q = qkv_s[pl.ds(q0, dh), pl.ds(col, n_pix)]                  # (dh, N)
            k = qkv_s[pl.ds(k0, dh), pl.ds(col, n_pix)]                  # (dh, N)
            v = qkv_s[pl.ds(v0, dh), pl.ds(col, n_pix)]                  # (dh, N)
            # scores with KEYS on the sublane axis: s[j, i] = k_j . q_i  -> softmax stats land (1, N)
            s = lax.dot_general(k, q, (((0,), (0,)), ((), ())),
                                preferred_element_type=jnp.float32) * scale   # (Nk, Nq)
            m = jnp.max(s, axis=0, keepdims=True)                        # (1, Nq)
            p = jnp.exp(s - m)                                           # (Nk, Nq)
            l = jnp.sum(p, axis=0, keepdims=True)                        # (1, Nq) lane-dense
            o_h = jnp.dot(v, p, preferred_element_type=jnp.float32)      # (dh, Nq), unnormalized
            o_h = o_h * pl.reciprocal(l, approx=True)                    # normalize (dh,N), not (N,N)
            attn_s[pl.ds(q0, dh), :] = o_h
            return carry

        lax.fori_loop(0, n_heads, head_body, 0, unroll=True)

        # fused out_proj + cnn2:  (C, E) @ (E, N) -> (C, N)
        z = jnp.dot(w2, attn_s[...], preferred_element_type=jnp.float32) + b2
        y = z + x[:, col:col + n_pix]                                    # residual add

        # single-pass LayerNorm over the channel axis (axis 0) — per-pixel, independent per column
        mu = jnp.sum(y, axis=0, keepdims=True) * inv_c                   # (1, N)
        var = jnp.sum(y * y, axis=0, keepdims=True) * inv_c - mu * mu    # (1, N)
        yn = (y - mu) * lax.rsqrt(var + eps)
        o_ref[:, pl.ds(col, n_pix)] = (yn * gamma + beta).astype(o_ref.dtype)


def _pick_batch_block(batch, max_blk=8):
    for cand in range(min(batch, max_blk), 0, -1):
        if batch % cand == 0:
            return cand
    return 1


def encoder_unit_forward(x, params, *, n_heads, eps=1e-5, max_batch_block=8):
    """x: (B, C, H, W) NCHW.  Returns (B, C, H, W), same semantics as EncoderUnit.forward."""
    B, C, H, W = x.shape
    N = H * W

    # --- fold cnn1 into the QKV projection and the out_proj into cnn2 (pure algebra, once) ---
    wqkv_f = jnp.dot(params["wqkv"], params["w1"])                       # (3E, C)
    bqkv_f = jnp.dot(params["wqkv"], params["b1"]) + params["bqkv"]      # (3E, 1)
    w2_f = jnp.dot(params["w2"], params["wo"])                           # (C, E)
    b2_f = jnp.dot(params["w2"], params["bo"]) + params["b2"]            # (C, 1)
    gamma, beta = params["gamma"], params["beta"]
    E3 = wqkv_f.shape[0]
    E = w2_f.shape[1]

    # lane-dense slab: channels on sublanes, (batch, spatial) flattened on lanes (multiple of 128)
    x2 = x.reshape(B, C, N).transpose(1, 0, 2).reshape(C, B * N)

    b_blk = _pick_batch_block(B, max_batch_block)
    L = b_blk * N

    def full_spec(arr):
        # whole-array block, constant index map -> stays VMEM-resident across the batch-block grid
        return pl.BlockSpec(arr.shape, lambda i: (0,) * arr.ndim)

    kernel = functools.partial(_encoder_unit_kernel, n_heads=n_heads,
                               n_pix=N, b_blk=b_blk, eps=eps)
    out2 = pl.pallas_call(
        kernel,
        out_shape=jax.ShapeDtypeStruct((C, B * N), x.dtype),
        grid_spec=pltpu.PrefetchScalarGridSpec(
            num_scalar_prefetch=0,
            grid=(B // b_blk,),
            in_specs=[
                pl.BlockSpec((C, L), lambda i: (0, i)),                  # x slab per batch block
                full_spec(wqkv_f), full_spec(bqkv_f),
                full_spec(w2_f), full_spec(b2_f),
                full_spec(gamma), full_spec(beta),
            ],
            out_specs=pl.BlockSpec((C, L), lambda i: (0, i)),
            scratch_shapes=[
                pltpu.VMEM((E3, L), jnp.float32),                        # qkv
                pltpu.VMEM((E, N), jnp.float32),                         # per-element head outputs
            ],
        ),
        compiler_params=pltpu.CompilerParams(
            dimension_semantics=("parallel",),                           # batch-block axis
            vmem_limit_bytes=64 * 1024 * 1024,
        ),
    )(x2, wqkv_f, bqkv_f, w2_f, b2_f, gamma, beta)

    return out2.reshape(C, B, N).transpose(1, 0, 2).reshape(B, C, H, W)


# ---------------- pure-JAX reference (unfolded math — also validates the weight folding) ----------------

def encoder_unit_reference(x, params, *, n_heads, eps=1e-5):
    B, C, H, W = x.shape
    N = H * W
    xf = x.reshape(B, C, N).astype(jnp.float32)
    w1, b1 = params["w1"], params["b1"]
    wqkv, bqkv = params["wqkv"], params["bqkv"]
    wo, bo = params["wo"], params["bo"]
    w2, b2 = params["w2"], params["b2"]
    gamma, beta = params["gamma"], params["beta"]
    E = w1.shape[0]
    dh = E // n_heads

    h = jnp.einsum("ec,bcn->ben", w1, xf) + b1[None]
    qkv = jnp.einsum("fe,ben->bfn", wqkv, h) + bqkv[None]
    q = qkv[:, 0:E].reshape(B, n_heads, dh, N)
    k = qkv[:, E:2 * E].reshape(B, n_heads, dh, N)
    v = qkv[:, 2 * E:3 * E].reshape(B, n_heads, dh, N)
    s = jnp.einsum("bhdi,bhdj->bhij", q, k) / math.sqrt(dh)
    p = jax.nn.softmax(s, axis=-1)
    attn = jnp.einsum("bhij,bhdj->bhdi", p, v).reshape(B, E, N)
    attn = jnp.einsum("fe,ben->bfn", wo, attn) + bo[None]
    z = jnp.einsum("ce,ben->bcn", w2, attn) + b2[None]
    y = z + xf
    mu = jnp.mean(y, axis=1, keepdims=True)
    var = jnp.mean(jnp.square(y - mu), axis=1, keepdims=True)
    y = (y - mu) * jax.lax.rsqrt(var + eps)
    out = y * gamma[None] + beta[None]
    return out.reshape(B, C, H, W)


def init_params(key, in_channels, d_embed):
    C, E = in_channels, d_embed
    ks = jax.random.split(key, 10)

    def uni(k, shape, fan_in):
        bound = 1.0 / math.sqrt(fan_in)
        return jax.random.uniform(k, shape, jnp.float32, -bound, bound)

    return {
        "w1": uni(ks[0], (E, C), C),        "b1": uni(ks[1], (E, 1), C),
        "wqkv": uni(ks[2], (3 * E, E), E),  "bqkv": uni(ks[3], (3 * E, 1), E),
        "wo": uni(ks[4], (E, E), E),        "bo": uni(ks[5], (E, 1), E),
        "w2": uni(ks[6], (C, E), E),        "b2": uni(ks[7], (C, 1), E),
        "gamma": 1.0 + 0.1 * jax.random.normal(ks[8], (C, 1), jnp.float32),
        "beta": 0.1 * jax.random.normal(ks[9], (C, 1), jnp.float32),
    }


if __name__ == "__main__":
    B, C, H, W = 2, 4, 16, 16
    d_embed, n_heads = 32, 4

    key = jax.random.PRNGKey(0)
    kx, kp = jax.random.split(key)
    x = jax.random.normal(kx, (B, C, H, W), dtype=jnp.float32)
    params = init_params(kp, C, d_embed)

    out = encoder_unit_forward(x, params, n_heads=n_heads)
    out = jax.block_until_ready(out)

    ref = encoder_unit_reference(x, params, n_heads=n_heads)
    assert out.shape == x.shape
    max_err = jnp.max(jnp.abs(out - ref))
    # tolerance accounts for the EUP approximate-reciprocal softmax normalization and fold reordering
    assert jnp.allclose(out, ref, atol=5e-3, rtol=5e-3), f"mismatch vs reference, max abs err = {max_err}"
    print("KERNEL_OK")
</pallas_src>

<mosaic_0001>
module attributes {stable_mosaic.version = 11 : i64} {
  func.func @_encoder_unit_kernel(%arg0: i32, %arg1: memref<4x512xf32, #tpu.memory_space<vmem>>, %arg2: memref<96x4xf32, #tpu.memory_space<vmem>>, %arg3: memref<96x1xf32, #tpu.memory_space<vmem>>, %arg4: memref<4x32xf32, #tpu.memory_space<vmem>>, %arg5: memref<4x1xf32, #tpu.memory_space<vmem>>, %arg6: memref<4x1xf32, #tpu.memory_space<vmem>>, %arg7: memref<4x1xf32, #tpu.memory_space<vmem>>, %arg8: memref<4x512xf32, #tpu.memory_space<vmem>>, %arg9: memref<96x512xf32, #tpu.memory_space<vmem>>, %arg10: memref<32x256xf32, #tpu.memory_space<vmem>>) attributes {dimension_semantics = [#tpu.dimension_semantics<parallel>], iteration_bounds = array<i64: 1>, scalar_prefetch = 0 : i64, scratch_operands = 2 : i64, tpu.core_type = #tpu.core_type<tc>, window_params = [{transform_indices = @transform_0, window_bounds = array<i64: 4, 512>}, {pipeline_mode = #tpu.pipeline_mode<synchronous>, transform_indices = @transform_1, window_bounds = array<i64: 96, 4>}, {pipeline_mode = #tpu.pipeline_mode<synchronous>, transform_indices = @transform_2, window_bounds = array<i64: 96, 1>}, {pipeline_mode = #tpu.pipeline_mode<synchronous>, transform_indices = @transform_3, window_bounds = array<i64: 4, 32>}, {pipeline_mode = #tpu.pipeline_mode<synchronous>, transform_indices = @transform_4, window_bounds = array<i64: 4, 1>}, {pipeline_mode = #tpu.pipeline_mode<synchronous>, transform_indices = @transform_5, window_bounds = array<i64: 4, 1>}, {pipeline_mode = #tpu.pipeline_mode<synchronous>, transform_indices = @transform_6, window_bounds = array<i64: 4, 1>}, {transform_indices = @transform_7, window_bounds = array<i64: 4, 512>}]} {
    %c0 = arith.constant 0 : index
    %c0_0 = arith.constant 0 : index
    %0 = vector.load %arg1[%c0, %c0_0] : memref<4x512xf32, #tpu.memory_space<vmem>>, vector<4x512xf32>
    %c0_1 = arith.constant 0 : index
    %c0_2 = arith.constant 0 : index
    %1 = vector.load %arg2[%c0_1, %c0_2] : memref<96x4xf32, #tpu.memory_space<vmem>>, vector<96x4xf32>
    %cst = arith.constant dense<0.000000e+00> : vector<96x512xf32>
    %2 = tpu.matmul %1, %0, %cst {dimension_numbers = #tpu.dot_dimension_numbers<[1], [0], [0], [1], [0, 0, 1, 1], [], []>} : vector<96x4xf32>, vector<4x512xf32>, vector<96x512xf32> -> vector<96x512xf32>
    %c0_3 = arith.constant 0 : index
    %c0_4 = arith.constant 0 : index
    %3 = vector.load %arg3[%c0_3, %c0_4] : memref<96x1xf32, #tpu.memory_space<vmem>>, vector<96x1xf32>
    %4 = vector.broadcast %3 : vector<96x1xf32> to vector<96x512xf32>
    %5 = arith.addf %2, %4 : vector<96x512xf32>
    %c0_5 = arith.constant 0 : index
    %c0_6 = arith.constant 0 : index
    %6 = vector.load %arg9[%c0_5, %c0_6] : memref<96x512xf32, #tpu.memory_space<vmem>>, vector<96x512xf32>
    tpu.vector_store %arg9[%c0_5, %c0_6], %5 {strides = array<i32>} : memref<96x512xf32, #tpu.memory_space<vmem>>, vector<96x512xf32>,
    %c0_7 = arith.constant 0 : index
    %c0_8 = arith.constant 0 : index
    %7 = vector.load %arg4[%c0_7, %c0_8] : memref<4x32xf32, #tpu.memory_space<vmem>>, vector<4x32xf32>
    %c0_9 = arith.constant 0 : index
    %c0_10 = arith.constant 0 : index
    %8 = vector.load %arg5[%c0_9, %c0_10] : memref<4x1xf32, #tpu.memory_space<vmem>>, vector<4x1xf32>
    %c0_11 = arith.constant 0 : index
    %c0_12 = arith.constant 0 : index
    %9 = vector.load %arg6[%c0_11, %c0_12] : memref<4x1xf32, #tpu.memory_space<vmem>>, vector<4x1xf32>
    %c0_13 = arith.constant 0 : index
    %c0_14 = arith.constant 0 : index
    %10 = vector.load %arg7[%c0_13, %c0_14] : memref<4x1xf32, #tpu.memory_space<vmem>>, vector<4x1xf32>
    %c0_i32 = arith.constant 0 : i32
    %c8_i32 = arith.constant 8 : i32
    %11 = arith.muli %c0_i32, %c8_i32 : i32
    %12 = tpu.assume_multiple %11, 8 : i32
    %c8_i32_15 = arith.constant 8 : i32
    %13 = arith.muli %c0_i32, %c8_i32_15 : i32
    %c32_i32 = arith.constant 32 : i32
    %14 = arith.addi %c32_i32, %13 : i32
    %15 = tpu.assume_multiple %14, 8 : i32
    %c8_i32_16 = arith.constant 8 : i32
    %16 = arith.muli %c0_i32, %c8_i32_16 : i32
    %c64_i32 = arith.constant 64 : i32
    %17 = arith.addi %c64_i32, %16 : i32
    %18 = tpu.assume_multiple %17, 8 : i32
    %19 = arith.index_cast %12 : i32 to index
    %c0_17 = arith.constant 0 : index
    %20 = vector.load %arg9[%19, %c0_17] : memref<96x512xf32, #tpu.memory_space<vmem>>, vector<8x256xf32>
    %21 = arith.index_cast %15 : i32 to index
    %c0_18 = arith.constant 0 : index
    %22 = vector.load %arg9[%21, %c0_18] : memref<96x512xf32, #tpu.memory_space<vmem>>, vector<8x256xf32>
    %23 = arith.index_cast %18 : i32 to index
    %c0_19 = arith.constant 0 : index
    %24 = vector.load %arg9[%23, %c0_19] : memref<96x512xf32, #tpu.memory_space<vmem>>, vector<8x256xf32>
    %cst_20 = arith.constant dense<0.000000e+00> : vector<256x256xf32>
    %25 = tpu.matmul %22, %20, %cst_20 {dimension_numbers = #tpu.dot_dimension_numbers<[0], [0], [1], [1], [0, 1, 1, 1], [], []>} : vector<8x256xf32>, vector<8x256xf32>, vector<256x256xf32> -> vector<256x256xf32>
    %cst_21 = arith.constant 0.353553385 : f32
    %26 = vector.broadcast %cst_21 : f32 to vector<256x256xf32>
    %27 = arith.mulf %25, %26 : vector<256x256xf32>
    %cst_22 = arith.constant dense<0xFF800000> : vector<256xf32>
    %28 = vector.multi_reduction <maximumf>, %27, %cst_22 [0] : vector<256x256xf32> to vector<256xf32>
    %29 = vector.shape_cast %28 : vector<256xf32> to vector<1x256xf32>
    %30 = vector.broadcast %29 : vector<1x256xf32> to vector<256x256xf32>
    %31 = arith.subf %27, %30 : vector<256x256xf32>
    %32 = math.exp %31 : vector<256x256xf32>
    %cst_23 = arith.constant dense<0.000000e+00> : vector<256xf32>
    %33 = vector.multi_reduction <add>, %32, %cst_23 [0] : vector<256x256xf32> to vector<256xf32>
    %34 = vector.shape_cast %33 : vector<256xf32> to vector<1x256xf32>
    %cst_24 = arith.constant dense<0.000000e+00> : vector<8x256xf32>
    %35 = tpu.matmul %24, %32, %cst_24 {dimension_numbers = #tpu.dot_dimension_numbers<[1], [0], [0], [1], [0, 0, 1, 1], [], []>} : vector<8x256xf32>, vector<256x256xf32>, vector<8x256xf32> -> vector<8x256xf32>
    %36 = tpu.reciprocal %34 {approx = true} : vector<1x256xf32> -> vector<1x256xf32>
    %37 = vector.broadcast %36 : vector<1x256xf32> to vector<8x256xf32>
    %38 = arith.mulf %35, %37 : vector<8x256xf32>
    %39 = arith.index_cast %12 : i32 to index
    %c0_25 = arith.constant 0 : index
    %40 = vector.load %arg10[%39, %c0_25] : memref<32x256xf32, #tpu.memory_space<vmem>>, vector<8x256xf32>
    tpu.vector_store %arg10[%39, %c0_25], %38 {strides = array<i32>} : memref<32x256xf32, #tpu.memory_space<vmem>>, vector<8x256xf32>,
    %c1_i32 = arith.constant 1 : i32
    %c8_i32_26 = arith.constant 8 : i32
    %41 = arith.muli %c1_i32, %c8_i32_26 : i32
    %42 = tpu.assume_multiple %41, 8 : i32
    %c8_i32_27 = arith.constant 8 : i32
    %43 = arith.muli %c1_i32, %c8_i32_27 : i32
    %c32_i32_28 = arith.constant 32 : i32
    %44 = arith.addi %c32_i32_28, %43 : i32
    %45 = tpu.assume_multiple %44, 8 : i32
    %c8_i32_29 = arith.constant 8 : i32
    %46 = arith.muli %c1_i32, %c8_i32_29 : i32
    %c64_i32_30 = arith.constant 64 : i32
    %47 = arith.addi %c64_i32_30, %46 : i32
    %48 = tpu.assume_multiple %47, 8 : i32
    %49 = arith.index_cast %42 : i32 to index
    %c0_31 = arith.constant 0 : index
    %50 = vector.load %arg9[%49, %c0_31] : memref<96x512xf32, #tpu.memory_space<vmem>>, vector<8x256xf32>
    %51 = arith.index_cast %45 : i32 to index
    %c0_32 = arith.constant 0 : index
    %52 = vector.load %arg9[%51, %c0_32] : memref<96x512xf32, #tpu.memory_space<vmem>>, vector<8x256xf32>
    %53 = arith.index_cast %48 : i32 to index
    %c0_33 = arith.constant 0 : index
    %54 = vector.load %arg9[%53, %c0_33] : memref<96x512xf32, #tpu.memory_space<vmem>>, vector<8x256xf32>
    %cst_34 = arith.constant dense<0.000000e+00> : vector<256x256xf32>
    %55 = tpu.matmul %52, %50, %cst_34 {dimension_numbers = #tpu.dot_dimension_numbers<[0], [0], [1], [1], [0, 1, 1, 1], [], []>} : vector<8x256xf32>, vector<8x256xf32>, vector<256x256xf32> -> vector<256x256xf32>
    %cst_35 = arith.constant 0.353553385 : f32
    %56 = vector.broadcast %cst_35 : f32 to vector<256x256xf32>
    %57 = arith.mulf %55, %56 : vector<256x256xf32>
    %cst_36 = arith.constant dense<0xFF800000> : vector<256xf32>
    %58 = vector.multi_reduction <maximumf>, %57, %cst_36 [0] : vector<256x256xf32> to vector<256xf32>
    %59 = vector.shape_cast %58 : vector<256xf32> to vector<1x256xf32>
    %60 = vector.broadcast %59 : vector<1x256xf32> to vector<256x256xf32>
    %61 = arith.subf %57, %60 : vector<256x256xf32>
    %62 = math.exp %61 : vector<256x256xf32>
    %cst_37 = arith.constant dense<0.000000e+00> : vector<256xf32>
    %63 = vector.multi_reduction <add>, %62, %cst_37 [0] : vector<256x256xf32> to vector<256xf32>
    %64 = vector.shape_cast %63 : vector<256xf32> to vector<1x256xf32>
    %cst_38 = arith.constant dense<0.000000e+00> : vector<8x256xf32>
    %65 = tpu.matmul %54, %62, %cst_38 {dimension_numbers = #tpu.dot_dimension_numbers<[1], [0], [0], [1], [0, 0, 1, 1], [], []>} : vector<8x256xf32>, vector<256x256xf32>, vector<8x256xf32> -> vector<8x256xf32>
    %66 = tpu.reciprocal %64 {approx = true} : vector<1x256xf32> -> vector<1x256xf32>
    %67 = vector.broadcast %66 : vector<1x256xf32> to vector<8x256xf32>
    %68 = arith.mulf %65, %67 : vector<8x256xf32>
    %69 = arith.index_cast %42 : i32 to index
    %c0_39 = arith.constant 0 : index
    %70 = vector.load %arg10[%69, %c0_39] : memref<32x256xf32, #tpu.memory_space<vmem>>, vector<8x256xf32>
    tpu.vector_store %arg10[%69, %c0_39], %68 {strides = array<i32>} : memref<32x256xf32, #tpu.memory_space<vmem>>, vector<8x256xf32>,
    %c2_i32 = arith.constant 2 : i32
    %c8_i32_40 = arith.constant 8 : i32
    %71 = arith.muli %c2_i32, %c8_i32_40 : i32
    %72 = tpu.assume_multiple %71, 8 : i32
    %c8_i32_41 = arith.constant 8 : i32
    %73 = arith.muli %c2_i32, %c8_i32_41 : i32
    %c32_i32_42 = arith.constant 32 : i32
    %74 = arith.addi %c32_i32_42, %73 : i32
    %75 = tpu.assume_multiple %74, 8 : i32
    %c8_i32_43 = arith.constant 8 : i32
    %76 = arith.muli %c2_i32, %c8_i32_43 : i32
    %c64_i32_44 = arith.constant 64 : i32
    %77 = arith.addi %c64_i32_44, %76 : i32
    %78 = tpu.assume_multiple %77, 8 : i32
    %79 = arith.index_cast %72 : i32 to index
    %c0_45 = arith.constant 0 : index
    %80 = vector.load %arg9[%79, %c0_45] : memref<96x512xf32, #tpu.memory_space<vmem>>, vector<8x256xf32>
    %81 = arith.index_cast %75 : i32 to index
    %c0_46 = arith.constant 0 : index
    %82 = vector.load %arg9[%81, %c0_46] : memref<96x512xf32, #tpu.memory_space<vmem>>, vector<8x256xf32>
    %83 = arith.index_cast %78 : i32 to index
    %c0_47 = arith.constant 0 : index
    %84 = vector.load %arg9[%83, %c0_47] : memref<96x512xf32, #tpu.memory_space<vmem>>, vector<8x256xf32>
    %cst_48 = arith.constant dense<0.000000e+00> : vector<256x256xf32>
    %85 = tpu.matmul %82, %80, %cst_48 {dimension_numbers = #tpu.dot_dimension_numbers<[0], [0], [1], [1], [0, 1, 1, 1], [], []>} : vector<8x256xf32>, vector<8x256xf32>, vector<256x256xf32> -> vector<256x256xf32>
    %cst_49 = arith.constant 0.353553385 : f32
    %86 = vector.broadcast %cst_49 : f32 to vector<256x256xf32>
    %87 = arith.mulf %85, %86 : vector<256x256xf32>
    %cst_50 = arith.constant dense<0xFF800000> : vector<256xf32>
    %88 = vector.multi_reduction <maximumf>, %87, %cst_50 [0] : vector<256x256xf32> to vector<256xf32>
    %89 = vector.shape_cast %88 : vector<256xf32> to vector<1x256xf32>
    %90 = vector.broadcast %89 : vector<1x256xf32> to vector<256x256xf32>
    %91 = arith.subf %87, %90 : vector<256x256xf32>
    %92 = math.exp %91 : vector<256x256xf32>
    %cst_51 = arith.constant dense<0.000000e+00> : vector<256xf32>
    %93 = vector.multi_reduction <add>, %92, %cst_51 [0] : vector<256x256xf32> to vector<256xf32>
    %94 = vector.shape_cast %93 : vector<256xf32> to vector<1x256xf32>
    %cst_52 = arith.constant dense<0.000000e+00> : vector<8x256xf32>
    %95 = tpu.matmul %84, %92, %cst_52 {dimension_numbers = #tpu.dot_dimension_numbers<[1], [0], [0], [1], [0, 0, 1, 1], [], []>} : vector<8x256xf32>, vector<256x256xf32>, vector<8x256xf32> -> vector<8x256xf32>
    %96 = tpu.reciprocal %94 {approx = true} : vector<1x256xf32> -> vector<1x256xf32>
    %97 = vector.broadcast %96 : vector<1x256xf32> to vector<8x256xf32>
    %98 = arith.mulf %95, %97 : vector<8x256xf32>
    %99 = arith.index_cast %72 : i32 to index
    %c0_53 = arith.constant 0 : index
    %100 = vector.load %arg10[%99, %c0_53] : memref<32x256xf32, #tpu.memory_space<vmem>>, vector<8x256xf32>
    tpu.vector_store %arg10[%99, %c0_53], %98 {strides = array<i32>} : memref<32x256xf32, #tpu.memory_space<vmem>>, vector<8x256xf32>,
    %c3_i32 = arith.constant 3 : i32
    %c8_i32_54 = arith.constant 8 : i32
    %101 = arith.muli %c3_i32, %c8_i32_54 : i32
    %102 = tpu.assume_multiple %101, 8 : i32
    %c8_i32_55 = arith.constant 8 : i32
    %103 = arith.muli %c3_i32, %c8_i32_55 : i32
    %c32_i32_56 = arith.constant 32 : i32
    %104 = arith.addi %c32_i32_56, %103 : i32
    %105 = tpu.assume_multiple %104, 8 : i32
    %c8_i32_57 = arith.constant 8 : i32
    %106 = arith.muli %c3_i32, %c8_i32_57 : i32
    %c64_i32_58 = arith.constant 64 : i32
    %107 = arith.addi %c64_i32_58, %106 : i32
    %108 = tpu.assume_multiple %107, 8 : i32
    %109 = arith.index_cast %102 : i32 to index
    %c0_59 = arith.constant 0 : index
    %110 = vector.load %arg9[%109, %c0_59] : memref<96x512xf32, #tpu.memory_space<vmem>>, vector<8x256xf32>
    %111 = arith.index_cast %105 : i32 to index
    %c0_60 = arith.constant 0 : index
    %112 = vector.load %arg9[%111, %c0_60] : memref<96x512xf32, #tpu.memory_space<vmem>>, vector<8x256xf32>
    %113 = arith.index_cast %108 : i32 to index
    %c0_61 = arith.constant 0 : index
    %114 = vector.load %arg9[%113, %c0_61] : memref<96x512xf32, #tpu.memory_space<vmem>>, vector<8x256xf32>
    %cst_62 = arith.constant dense<0.000000e+00> : vector<256x256xf32>
    %115 = tpu.matmul %112, %110, %cst_62 {dimension_numbers = #tpu.dot_dimension_numbers<[0], [0], [1], [1], [0, 1, 1, 1], [], []>} : vector<8x256xf32>, vector<8x256xf32>, vector<256x256xf32> -> vector<256x256xf32>
    %cst_63 = arith.constant 0.353553385 : f32
    %116 = vector.broadcast %cst_63 : f32 to vector<256x256xf32>
    %117 = arith.mulf %115, %116 : vector<256x256xf32>
    %cst_64 = arith.constant dense<0xFF800000> : vector<256xf32>
    %118 = vector.multi_reduction <maximumf>, %117, %cst_64 [0] : vector<256x256xf32> to vector<256xf32>
    %119 = vector.shape_cast %118 : vector<256xf32> to vector<1x256xf32>
    %120 = vector.broadcast %119 : vector<1x256xf32> to vector<256x256xf32>
    %121 = arith.subf %117, %120 : vector<256x256xf32>
    %122 = math.exp %121 : vector<256x256xf32>
    %cst_65 = arith.constant dense<0.000000e+00> : vector<256xf32>
    %123 = vector.multi_reduction <add>, %122, %cst_65 [0] : vector<256x256xf32> to vector<256xf32>
    %124 = vector.shape_cast %123 : vector<256xf32> to vector<1x256xf32>
    %cst_66 = arith.constant dense<0.000000e+00> : vector<8x256xf32>
    %125 = tpu.matmul %114, %122, %cst_66 {dimension_numbers = #tpu.dot_dimension_numbers<[1], [0], [0], [1], [0, 0, 1, 1], [], []>} : vector<8x256xf32>, vector<256x256xf32>, vector<8x256xf32> -> vector<8x256xf32>
    %126 = tpu.reciprocal %124 {approx = true} : vector<1x256xf32> -> vector<1x256xf32>
    %127 = vector.broadcast %126 : vector<1x256xf32> to vector<8x256xf32>
    %128 = arith.mulf %125, %127 : vector<8x256xf32>
    %129 = arith.index_cast %102 : i32 to index
    %c0_67 = arith.constant 0 : index
    %130 = vector.load %arg10[%129, %c0_67] : memref<32x256xf32, #tpu.memory_space<vmem>>, vector<8x256xf32>
    tpu.vector_store %arg10[%129, %c0_67], %128 {strides = array<i32>} : memref<32x256xf32, #tpu.memory_space<vmem>>, vector<8x256xf32>,
    %c4_i32 = arith.constant 4 : i32
    %c0_68 = arith.constant 0 : index
    %c0_69 = arith.constant 0 : index
    %131 = vector.load %arg10[%c0_68, %c0_69] : memref<32x256xf32, #tpu.memory_space<vmem>>, vector<32x256xf32>
    %cst_70 = arith.constant dense<0.000000e+00> : vector<4x256xf32>
    %132 = tpu.matmul %7, %131, %cst_70 {dimension_numbers = #tpu.dot_dimension_numbers<[1], [0], [0], [1], [0, 0, 1, 1], [], []>} : vector<4x32xf32>, vector<32x256xf32>, vector<4x256xf32> -> vector<4x256xf32>
    %133 = vector.broadcast %8 : vector<4x1xf32> to vector<4x256xf32>
    %134 = arith.addf %132, %133 : vector<4x256xf32>
    %135 = vector.extract_strided_slice %0 {offsets = [0, 0], sizes = [4, 256], strides = [1, 1]} : vector<4x512xf32> to vector<4x256xf32>
    %136 = arith.addf %134, %135 : vector<4x256xf32>
    %cst_71 = arith.constant dense<0.000000e+00> : vector<256xf32>
    %137 = vector.multi_reduction <add>, %136, %cst_71 [0] : vector<4x256xf32> to vector<256xf32>
    %138 = vector.shape_cast %137 : vector<256xf32> to vector<1x256xf32>
    %cst_72 = arith.constant 2.500000e-01 : f32
    %139 = vector.broadcast %cst_72 : f32 to vector<1x256xf32>
    %140 = arith.mulf %138, %139 : vector<1x256xf32>
    %141 = arith.mulf %136, %136 : vector<4x256xf32>
    %cst_73 = arith.constant dense<0.000000e+00> : vector<256xf32>
    %142 = vector.multi_reduction <add>, %141, %cst_73 [0] : vector<4x256xf32> to vector<256xf32>
    %143 = vector.shape_cast %142 : vector<256xf32> to vector<1x256xf32>
    %cst_74 = arith.constant 2.500000e-01 : f32
    %144 = vector.broadcast %cst_74 : f32 to vector<1x256xf32>
    %145 = arith.mulf %143, %144 : vector<1x256xf32>
    %146 = arith.mulf %140, %140 : vector<1x256xf32>
    %147 = arith.subf %145, %146 : vector<1x256xf32>
    %148 = vector.broadcast %140 : vector<1x256xf32> to vector<4x256xf32>
    %149 = arith.subf %136, %148 : vector<4x256xf32>
    %cst_75 = arith.constant 9.99999974E-6 : f32
    %150 = vector.broadcast %cst_75 : f32 to vector<1x256xf32>
    %151 = arith.addf %147, %150 : vector<1x256xf32>
    %152 = math.rsqrt %151 : vector<1x256xf32>
    %153 = vector.broadcast %152 : vector<1x256xf32> to vector<4x256xf32>
    %154 = arith.mulf %149, %153 : vector<4x256xf32>
    %155 = vector.broadcast %9 : vector<4x1xf32> to vector<4x256xf32>
    %156 = arith.mulf %154, %155 : vector<4x256xf32>
    %157 = vector.broadcast %10 : vector<4x1xf32> to vector<4x256xf32>
    %158 = arith.addf %156, %157 : vector<4x256xf32>
    %c0_76 = arith.constant 0 : index
    %c0_77 = arith.constant 0 : index
    %159 = vector.load %arg8[%c0_76, %c0_77] : memref<4x512xf32, #tpu.memory_space<vmem>>, vector<4x256xf32>
    tpu.vector_store %arg8[%c0_76, %c0_77], %158 {strides = array<i32>} : memref<4x512xf32, #tpu.memory_space<vmem>>, vector<4x256xf32>,
    %c0_i32_78 = arith.constant 0 : i32
    %c8_i32_79 = arith.constant 8 : i32
    %160 = arith.muli %c0_i32_78, %c8_i32_79 : i32
    %161 = tpu.assume_multiple %160, 8 : i32
    %c8_i32_80 = arith.constant 8 : i32
    %162 = arith.muli %c0_i32_78, %c8_i32_80 : i32
    %c32_i32_81 = arith.constant 32 : i32
    %163 = arith.addi %c32_i32_81, %162 : i32
    %164 = tpu.assume_multiple %163, 8 : i32
    %c8_i32_82 = arith.constant 8 : i32
    %165 = arith.muli %c0_i32_78, %c8_i32_82 : i32
    %c64_i32_83 = arith.constant 64 : i32
    %166 = arith.addi %c64_i32_83, %165 : i32
    %167 = tpu.assume_multiple %166, 8 : i32
    %168 = arith.index_cast %161 : i32 to index
    %c256 = arith.constant 256 : index
    %169 = vector.load %arg9[%168, %c256] : memref<96x512xf32, #tpu.memory_space<vmem>>, vector<8x256xf32>
    %170 = arith.index_cast %164 : i32 to index
    %c256_84 = arith.constant 256 : index
    %171 = vector.load %arg9[%170, %c256_84] : memref<96x512xf32, #tpu.memory_space<vmem>>, vector<8x256xf32>
    %172 = arith.index_cast %167 : i32 to index
    %c256_85 = arith.constant 256 : index
    %173 = vector.load %arg9[%172, %c256_85] : memref<96x512xf32, #tpu.memory_space<vmem>>, vector<8x256xf32>
    %cst_86 = arith.constant dense<0.000000e+00> : vector<256x256xf32>
    %174 = tpu.matmul %171, %169, %cst_86 {dimension_numbers = #tpu.dot_dimension_numbers<[0], [0], [1], [1], [0, 1, 1, 1], [], []>} : vector<8x256xf32>, vector<8x256xf32>, vector<256x256xf32> -> vector<256x256xf32>
    %cst_87 = arith.constant 0.353553385 : f32
    %175 = vector.broadcast %cst_87 : f32 to vector<256x256xf32>
    %176 = arith.mulf %174, %175 : vector<256x256xf32>
    %cst_88 = arith.constant dense<0xFF800000> : vector<256xf32>
    %177 = vector.multi_reduction <maximumf>, %176, %cst_88 [0] : vector<256x256xf32> to vector<256xf32>
    %178 = vector.shape_cast %177 : vector<256xf32> to vector<1x256xf32>
    %179 = vector.broadcast %178 : vector<1x256xf32> to vector<256x256xf32>
    %180 = arith.subf %176, %179 : vector<256x256xf32>
    %181 = math.exp %180 : vector<256x256xf32>
    %cst_89 = arith.constant dense<0.000000e+00> : vector<256xf32>
    %182 = vector.multi_reduction <add>, %181, %cst_89 [0] : vector<256x256xf32> to vector<256xf32>
    %183 = vector.shape_cast %182 : vector<256xf32> to vector<1x256xf32>
    %cst_90 = arith.constant dense<0.000000e+00> : vector<8x256xf32>
    %184 = tpu.matmul %173, %181, %cst_90 {dimension_numbers = #tpu.dot_dimension_numbers<[1], [0], [0], [1], [0, 0, 1, 1], [], []>} : vector<8x256xf32>, vector<256x256xf32>, vector<8x256xf32> -> vector<8x256xf32>
    %185 = tpu.reciprocal %183 {approx = true} : vector<1x256xf32> -> vector<1x256xf32>
    %186 = vector.broadcast %185 : vector<1x256xf32> to vector<8x256xf32>
    %187 = arith.mulf %184, %186 : vector<8x256xf32>
    %188 = arith.index_cast %161 : i32 to index
    %c0_91 = arith.constant 0 : index
    %189 = vector.load %arg10[%188, %c0_91] : memref<32x256xf32, #tpu.memory_space<vmem>>, vector<8x256xf32>
    tpu.vector_store %arg10[%188, %c0_91], %187 {strides = array<i32>} : memref<32x256xf32, #tpu.memory_space<vmem>>, vector<8x256xf32>,
    %c1_i32_92 = arith.constant 1 : i32
    %c8_i32_93 = arith.constant 8 : i32
    %190 = arith.muli %c1_i32_92, %c8_i32_93 : i32
    %191 = tpu.assume_multiple %190, 8 : i32
    %c8_i32_94 = arith.constant 8 : i32
    %192 = arith.muli %c1_i32_92, %c8_i32_94 : i32
    %c32_i32_95 = arith.constant 32 : i32
    %193 = arith.addi %c32_i32_95, %192 : i32
    %194 = tpu.assume_multiple %193, 8 : i32
    %c8_i32_96 = arith.constant 8 : i32
    %195 = arith.muli %c1_i32_92, %c8_i32_96 : i32
    %c64_i32_97 = arith.constant 64 : i32
    %196 = arith.addi %c64_i32_97, %195 : i32
    %197 = tpu.assume_multiple %196, 8 : i32
    %198 = arith.index_cast %191 : i32 to index
    %c256_98 = arith.constant 256 : index
    %199 = vector.load %arg9[%198, %c256_98] : memref<96x512xf32, #tpu.memory_space<vmem>>, vector<8x256xf32>
    %200 = arith.index_cast %194 : i32 to index
    %c256_99 = arith.constant 256 : index
    %201 = vector.load %arg9[%200, %c256_99] : memref<96x512xf32, #tpu.memory_space<vmem>>, vector<8x256xf32>
    %202 = arith.index_cast %197 : i32 to index
    %c256_100 = arith.constant 256 : index
    %203 = vector.load %arg9[%202, %c256_100] : memref<96x512xf32, #tpu.memory_space<vmem>>, vector<8x256xf32>
    %cst_101 = arith.constant dense<0.000000e+00> : vector<256x256xf32>
    %204 = tpu.matmul %201, %199, %cst_101 {dimension_numbers = #tpu.dot_dimension_numbers<[0], [0], [1], [1], [0, 1, 1, 1], [], []>} : vector<8x256xf32>, vector<8x256xf32>, vector<256x256xf32> -> vector<256x256xf32>
    %cst_102 = arith.constant 0.353553385 : f32
    %205 = vector.broadcast %cst_102 : f32 to vector<256x256xf32>
    %206 = arith.mulf %204, %205 : vector<256x256xf32>
    %cst_103 = arith.constant dense<0xFF800000> : vector<256xf32>
    %207 = vector.multi_reduction <maximumf>, %206, %cst_103 [0] : vector<256x256xf32> to vector<256xf32>
    %208 = vector.shape_cast %207 : vector<256xf32> to vector<1x256xf32>
    %209 = vector.broadcast %208 : vector<1x256xf32> to vector<256x256xf32>
    %210 = arith.subf %206, %209 : vector<256x256xf32>
    %211 = math.exp %210 : vector<256x256xf32>
    %cst_104 = arith.constant dense<0.000000e+00> : vector<256xf32>
    %212 = vector.multi_reduction <add>, %211, %cst_104 [0] : vector<256x256xf32> to vector<256xf32>
    %213 = vector.shape_cast %212 : vector<256xf32> to vector<1x256xf32>
    %cst_105 = arith.constant dense<0.000000e+00> : vector<8x256xf32>
    %214 = tpu.matmul %203, %211, %cst_105 {dimension_numbers = #tpu.dot_dimension_numbers<[1], [0], [0], [1], [0, 0, 1, 1], [], []>} : vector<8x256xf32>, vector<256x256xf32>, vector<8x256xf32> -> vector<8x256xf32>
    %215 = tpu.reciprocal %213 {approx = true} : vector<1x256xf32> -> vector<1x256xf32>
    %216 = vector.broadcast %215 : vector<1x256xf32> to vector<8x256xf32>
    %217 = arith.mulf %214, %216 : vector<8x256xf32>
    %218 = arith.index_cast %191 : i32 to index
    %c0_106 = arith.constant 0 : index
    %219 = vector.load %arg10[%218, %c0_106] : memref<32x256xf32, #tpu.memory_space<vmem>>, vector<8x256xf32>
    tpu.vector_store %arg10[%218, %c0_106], %217 {strides = array<i32>} : memref<32x256xf32, #tpu.memory_space<vmem>>, vector<8x256xf32>,
    %c2_i32_107 = arith.constant 2 : i32
    %c8_i32_108 = arith.constant 8 : i32
    %220 = arith.muli %c2_i32_107, %c8_i32_108 : i32
    %221 = tpu.assume_multiple %220, 8 : i32
    %c8_i32_109 = arith.constant 8 : i32
    %222 = arith.muli %c2_i32_107, %c8_i32_109 : i32
    %c32_i32_110 = arith.constant 32 : i32
    %223 = arith.addi %c32_i32_110, %222 : i32
    %224 = tpu.assume_multiple %223, 8 : i32
    %c8_i32_111 = arith.constant 8 : i32
    %225 = arith.muli %c2_i32_107, %c8_i32_111 : i32
    %c64_i32_112 = arith.constant 64 : i32
    %226 = arith.addi %c64_i32_112, %225 : i32
    %227 = tpu.assume_multiple %226, 8 : i32
    %228 = arith.index_cast %221 : i32 to index
    %c256_113 = arith.constant 256 : index
    %229 = vector.load %arg9[%228, %c256_113] : memref<96x512xf32, #tpu.memory_space<vmem>>, vector<8x256xf32>
    %230 = arith.index_cast %224 : i32 to index
    %c256_114 = arith.constant 256 : index
    %231 = vector.load %arg9[%230, %c256_114] : memref<96x512xf32, #tpu.memory_space<vmem>>, vector<8x256xf32>
    %232 = arith.index_cast %227 : i32 to index
    %c256_115 = arith.constant 256 : index
    %233 = vector.load %arg9[%232, %c256_115] : memref<96x512xf32, #tpu.memory_space<vmem>>, vector<8x256xf32>
    %cst_116 = arith.constant dense<0.000000e+00> : vector<256x256xf32>
    %234 = tpu.matmul %231, %229, %cst_116 {dimension_numbers = #tpu.dot_dimension_numbers<[0], [0], [1], [1], [0, 1, 1, 1], [], []>} : vector<8x256xf32>, vector<8x256xf32>, vector<256x256xf32> -> vector<256x256xf32>
    %cst_117 = arith.constant 0.353553385 : f32
    %235 = vector.broadcast %cst_117 : f32 to vector<256x256xf32>
    %236 = arith.mulf %234, %235 : vector<256x256xf32>
    %cst_118 = arith.constant dense<0xFF800000> : vector<256xf32>
    %237 = vector.multi_reduction <maximumf>, %236, %cst_118 [0] : vector<256x256xf32> to vector<256xf32>
    %238 = vector.shape_cast %237 : vector<256xf32> to vector<1x256xf32>
    %239 = vector.broadcast %238 : vector<1x256xf32> to vector<256x256xf32>
    %240 = arith.subf %236, %239 : vector<256x256xf32>
    %241 = math.exp %240 : vector<256x256xf32>
    %cst_119 = arith.constant dense<0.000000e+00> : vector<256xf32>
    %242 = vector.multi_reduction <add>, %241, %cst_119 [0] : vector<256x256xf32> to vector<256xf32>
    %243 = vector.shape_cast %242 : vector<256xf32> to vector<1x256xf32>
    %cst_120 = arith.constant dense<0.000000e+00> : vector<8x256xf32>
    %244 = tpu.matmul %233, %241, %cst_120 {dimension_numbers = #tpu.dot_dimension_numbers<[1], [0], [0], [1], [0, 0, 1, 1], [], []>} : vector<8x256xf32>, vector<256x256xf32>, vector<8x256xf32> -> vector<8x256xf32>
    %245 = tpu.reciprocal %243 {approx = true} : vector<1x256xf32> -> vector<1x256xf32>
    %246 = vector.broadcast %245 : vector<1x256xf32> to vector<8x256xf32>
    %247 = arith.mulf %244, %246 : vector<8x256xf32>
    %248 = arith.index_cast %221 : i32 to index
    %c0_121 = arith.constant 0 : index
    %249 = vector.load %arg10[%248, %c0_121] : memref<32x256xf32, #tpu.memory_space<vmem>>, vector<8x256xf32>
    tpu.vector_store %arg10[%248, %c0_121], %247 {strides = array<i32>} : memref<32x256xf32, #tpu.memory_space<vmem>>, vector<8x256xf32>,
    %c3_i32_122 = arith.constant 3 : i32
    %c8_i32_123 = arith.constant 8 : i32
    %250 = arith.muli %c3_i32_122, %c8_i32_123 : i32
    %251 = tpu.assume_multiple %250, 8 : i32
    %c8_i32_124 = arith.constant 8 : i32
    %252 = arith.muli %c3_i32_122, %c8_i32_124 : i32
    %c32_i32_125 = arith.constant 32 : i32
    %253 = arith.addi %c32_i32_125, %252 : i32
    %254 = tpu.assume_multiple %253, 8 : i32
    %c8_i32_126 = arith.constant 8 : i32
    %255 = arith.muli %c3_i32_122, %c8_i32_126 : i32
    %c64_i32_127 = arith.constant 64 : i32
    %256 = arith.addi %c64_i32_127, %255 : i32
    %257 = tpu.assume_multiple %256, 8 : i32
    %258 = arith.index_cast %251 : i32 to index
    %c256_128 = arith.constant 256 : index
    %259 = vector.load %arg9[%258, %c256_128] : memref<96x512xf32, #tpu.memory_space<vmem>>, vector<8x256xf32>
    %260 = arith.index_cast %254 : i32 to index
    %c256_129 = arith.constant 256 : index
    %261 = vector.load %arg9[%260, %c256_129] : memref<96x512xf32, #tpu.memory_space<vmem>>, vector<8x256xf32>
    %262 = arith.index_cast %257 : i32 to index
    %c256_130 = arith.constant 256 : index
    %263 = vector.load %arg9[%262, %c256_130] : memref<96x512xf32, #tpu.memory_space<vmem>>, vector<8x256xf32>
    %cst_131 = arith.constant dense<0.000000e+00> : vector<256x256xf32>
    %264 = tpu.matmul %261, %259, %cst_131 {dimension_numbers = #tpu.dot_dimension_numbers<[0], [0], [1], [1], [0, 1, 1, 1], [], []>} : vector<8x256xf32>, vector<8x256xf32>, vector<256x256xf32> -> vector<256x256xf32>
    %cst_132 = arith.constant 0.353553385 : f32
    %265 = vector.broadcast %cst_132 : f32 to vector<256x256xf32>
    %266 = arith.mulf %264, %265 : vector<256x256xf32>
    %cst_133 = arith.constant dense<0xFF800000> : vector<256xf32>
    %267 = vector.multi_reduction <maximumf>, %266, %cst_133 [0] : vector<256x256xf32> to vector<256xf32>
    %268 = vector.shape_cast %267 : vector<256xf32> to vector<1x256xf32>
    %269 = vector.broadcast %268 : vector<1x256xf32> to vector<256x256xf32>
    %270 = arith.subf %266, %269 : vector<256x256xf32>
    %271 = math.exp %270 : vector<256x256xf32>
    %cst_134 = arith.constant dense<0.000000e+00> : vector<256xf32>
    %272 = vector.multi_reduction <add>, %271, %cst_134 [0] : vector<256x256xf32> to vector<256xf32>
    %273 = vector.shape_cast %272 : vector<256xf32> to vector<1x256xf32>
    %cst_135 = arith.constant dense<0.000000e+00> : vector<8x256xf32>
    %274 = tpu.matmul %263, %271, %cst_135 {dimension_numbers = #tpu.dot_dimension_numbers<[1], [0], [0], [1], [0, 0, 1, 1], [], []>} : vector<8x256xf32>, vector<256x256xf32>, vector<8x256xf32> -> vector<8x256xf32>
    %275 = tpu.reciprocal %273 {approx = true} : vector<1x256xf32> -> vector<1x256xf32>
    %276 = vector.broadcast %275 : vector<1x256xf32> to vector<8x256xf32>
    %277 = arith.mulf %274, %276 : vector<8x256xf32>
    %278 = arith.index_cast %251 : i32 to index
    %c0_136 = arith.constant 0 : index
    %279 = vector.load %arg10[%278, %c0_136] : memref<32x256xf32, #tpu.memory_space<vmem>>, vector<8x256xf32>
    tpu.vector_store %arg10[%278, %c0_136], %277 {strides = array<i32>} : memref<32x256xf32, #tpu.memory_space<vmem>>, vector<8x256xf32>,
    %c4_i32_137 = arith.constant 4 : i32
    %c0_138 = arith.constant 0 : index
    %c0_139 = arith.constant 0 : index
    %280 = vector.load %arg10[%c0_138, %c0_139] : memref<32x256xf32, #tpu.memory_space<vmem>>, vector<32x256xf32>
    %cst_140 = arith.constant dense<0.000000e+00> : vector<4x256xf32>
    %281 = tpu.matmul %7, %280, %cst_140 {dimension_numbers = #tpu.dot_dimension_numbers<[1], [0], [0], [1], [0, 0, 1, 1], [], []>} : vector<4x32xf32>, vector<32x256xf32>, vector<4x256xf32> -> vector<4x256xf32>
    %282 = vector.broadcast %8 : vector<4x1xf32> to vector<4x256xf32>
    %283 = arith.addf %281, %282 : vector<4x256xf32>
    %284 = vector.extract_strided_slice %0 {offsets = [0, 256], sizes = [4, 256], strides = [1, 1]} : vector<4x512xf32> to vector<4x256xf32>
    %285 = arith.addf %283, %284 : vector<4x256xf32>
    %cst_141 = arith.constant dense<0.000000e+00> : vector<256xf32>
    %286 = vector.multi_reduction <add>, %285, %cst_141 [0] : vector<4x256xf32> to vector<256xf32>
    %287 = vector.shape_cast %286 : vector<256xf32> to vector<1x256xf32>
    %cst_142 = arith.constant 2.500000e-01 : f32
    %288 = vector.broadcast %cst_142 : f32 to vector<1x256xf32>
    %289 = arith.mulf %287, %288 : vector<1x256xf32>
    %290 = arith.mulf %285, %285 : vector<4x256xf32>
    %cst_143 = arith.constant dense<0.000000e+00> : vector<256xf32>
    %291 = vector.multi_reduction <add>, %290, %cst_143 [0] : vector<4x256xf32> to vector<256xf32>
    %292 = vector.shape_cast %291 : vector<256xf32> to vector<1x256xf32>
    %cst_144 = arith.constant 2.500000e-01 : f32
    %293 = vector.broadcast %cst_144 : f32 to vector<1x256xf32>
    %294 = arith.mulf %292, %293 : vector<1x256xf32>
    %295 = arith.mulf %289, %289 : vector<1x256xf32>
    %296 = arith.subf %294, %295 : vector<1x256xf32>
    %297 = vector.broadcast %289 : vector<1x256xf32> to vector<4x256xf32>
    %298 = arith.subf %285, %297 : vector<4x256xf32>
    %cst_145 = arith.constant 9.99999974E-6 : f32
    %299 = vector.broadcast %cst_145 : f32 to vector<1x256xf32>
    %300 = arith.addf %296, %299 : vector<1x256xf32>
    %301 = math.rsqrt %300 : vector<1x256xf32>
    %302 = vector.broadcast %301 : vector<1x256xf32> to vector<4x256xf32>
    %303 = arith.mulf %298, %302 : vector<4x256xf32>
    %304 = vector.broadcast %9 : vector<4x1xf32> to vector<4x256xf32>
    %305 = arith.mulf %303, %304 : vector<4x256xf32>
    %306 = vector.broadcast %10 : vector<4x1xf32> to vector<4x256xf32>
    %307 = arith.addf %305, %306 : vector<4x256xf32>
    %c0_146 = arith.constant 0 : index
    %c256_147 = arith.constant 256 : index
    %308 = vector.load %arg8[%c0_146, %c256_147] : memref<4x512xf32, #tpu.memory_space<vmem>>, vector<4x256xf32>
    tpu.vector_store %arg8[%c0_146, %c256_147], %307 {strides = array<i32>} : memref<4x512xf32, #tpu.memory_space<vmem>>, vector<4x256xf32>,
    return
  }
  func.func @transform_0(%arg0: i32) -> (i32, i32) {
    %c0_i32 = arith.constant 0 : i32
    %c0_i32_0 = arith.constant 0 : i32
    return %c0_i32, %arg0 : i32, i32
  }
  func.func @transform_1(%arg0: i32) -> (i32, i32) {
    %c0_i32 = arith.constant 0 : i32
    %c0_i32_0 = arith.constant 0 : i32
    %c0_i32_1 = arith.constant 0 : i32
    return %c0_i32, %c0_i32_0 : i32, i32
  }
  func.func @transform_2(%arg0: i32) -> (i32, i32) {
    %c0_i32 = arith.constant 0 : i32
    %c0_i32_0 = arith.constant 0 : i32
    %c0_i32_1 = arith.constant 0 : i32
    return %c0_i32, %c0_i32_0 : i32, i32
  }
  func.func @transform_3(%arg0: i32) -> (i32, i32) {
    %c0_i32 = arith.constant 0 : i32
    %c0_i32_0 = arith.constant 0 : i32
    %c0_i32_1 = arith.constant 0 : i32
    return %c0_i32, %c0_i32_0 : i32, i32
  }
  func.func @transform_4(%arg0: i32) -> (i32, i32) {
    %c0_i32 = arith.constant 0 : i32
    %c0_i32_0 = arith.constant 0 : i32
    %c0_i32_1 = arith.constant 0 : i32
    return %c0_i32, %c0_i32_0 : i32, i32
  }
  func.func @transform_5(%arg0: i32) -> (i32, i32) {
    %c0_i32 = arith.constant 0 : i32
    %c0_i32_0 = arith.constant 0 : i32
    %c0_i32_1 = arith.constant 0 : i32
    return %c0_i32, %c0_i32_0 : i32, i32
  }
  func.func @transform_6(%arg0: i32) -> (i32, i32) {
    %c0_i32 = arith.constant 0 : i32
    %c0_i32_0 = arith.constant 0 : i32
    %c0_i32_1 = arith.constant 0 : i32
    return %c0_i32, %c0_i32_0 : i32, i32
  }
  func.func @transform_7(%arg0: i32) -> (i32, i32) {
    %c0_i32 = arith.constant 0 : i32
    %c0_i32_0 = arith.constant 0 : i32
    return %c0_i32, %arg0 : i32, i32
  }
}

</mosaic_0001>

<bundles_post_ra>
// kernel: tpu_custom_call.1
= control target key start
LH: loop header
LB: loop body
LE: loop exit
PB: predicated region body
PF: predicated region fallthrough
CT: control target
= control target key end

     0   :  { %12 = vsyncpa [#allocation5], 0  ;;  %s17039_s0 = inlined_call_operand.hbm [shape: f32[4,512], index: 0, kind: input, shape index: {}]   ;;  %s17040_s1 = inlined_call_operand.hbm [shape: f32[96,4], index: 1, kind: input, shape index: {}]   ;;  %s17041_s2 = inlined_call_operand.hbm [shape: f32[96,1], index: 2, kind: input, shape index: {}]   ;;  %s17042_s3 = inlined_call_operand.hbm [shape: f32[4,32], index: 3, kind: input, shape index: {}]   ;;  %s17043_s4 = inlined_call_operand.hbm [shape: f32[4,1], index: 4, kind: input, shape index: {}]   ;;  %s17044_s5 = inlined_call_operand.hbm [shape: f32[4,1], index: 5, kind: input, shape index: {}]   ;;  %s17045_s6 = inlined_call_operand.hbm [shape: f32[4,1], index: 6, kind: input, shape index: {}]   ;;  %s17046_s7 = inlined_call_operand.hbm [shape: f32[4,512], index: 7, kind: output, shape index: {}]  }
   0x1   :  { %13 = vsyncpa [#allocation8], 0 }
   0x2   :  { %14 = vsyncpa [#allocation11], 0 }
   0x3   :  { %15 = vsyncpa [#allocation14], 0 }
   0x4   :  { %16 = vsyncpa [#allocation6], 0  ;;  %s10263_s24 = smov [#allocation7]   ;;  %s10077_s28 = scalar_lea.hbm %s17040_s1, 1536 }
   0x5   :  { %s32_s25 = sshll.u32 %s10263_s24, 4  ;;  %p10078_p0 = scmp.ne.s32.totalorder %s17040_s1, %s10077_s28  ;;  %s33_s25 = int_to_ptr.vmem [resolvable:$true] %s32_s25 }
   0x6   :  { %p10081_p1 = scmp.lt.u32.totalorder %s10077_s28, %s17040_s1 }
   0x8   :  { %p10083_p2 = pnand %p10081_p1, %p10078_p0 }
   0xa   :  { %10086 = shalt.err (!%p10083_p2)
}
   0xb   :  { %s10087_s10 = scalar_lea.vmem %s33_s25, 1536  ;;  %p10092_p4 = scmp.lt.s32.totalorder %s33_s25, %s33_s25 }
   0xc   :  { %p10088_p3 = scmp.ne.s32.totalorder %s33_s25, %s10087_s10  ;;  %p10093_p5 = scmp.lt.s32.totalorder %s10087_s10, %s10087_s10 }
   0xe   :  { %p10094_p6 = por %p10093_p5, %p10092_p4 }
  0x10   :  { %p10095_p7 = pnand %p10094_p6, %p10088_p3 }
  0x12   :  { %10098 = shalt.err (!%p10095_p7)
}
  0x13   :  { %s10264_s11 = smov 128   ;;  %s10265_s12 = smov 8  }
  0x14   :  { %38 = dma.hbm_to_vmem [thread:$0]  %s17040_s1, 1536, %s33_s25, [#allocation8], %s10264_s11, %s10264_s11, %s10265_s12  }
  0x15   :  { %s10266_s15 = smov [#allocation10]   ;;  %s10267_s17 = smov [#allocation13]  }
  0x16   :  { %s57_s16 = sshll.u32 %s10266_s15, 4  ;;  %s77_s18 = sshll.u32 %s10267_s17, 4  ;;  %s58_s16 = int_to_ptr.vmem [resolvable:$true] %s57_s16  ;;  %s78_s18 = int_to_ptr.vmem [resolvable:$true] %s77_s18 }
  0x17   :  { %s10099_s21 = scalar_lea.hbm %s17042_s3, 64 }
  0x18   :  { %p10100_p8 = scmp.ne.s32.totalorder %s17042_s3, %s10099_s21  ;;  %p10103_p9 = scmp.lt.u32.totalorder %s10099_s21, %s17042_s3 }
  0x1a   :  { %p10105_p10 = pnand %p10103_p9, %p10100_p8 }
  0x1c   :  { %10108 = shalt.err (!%p10105_p10)
}
  0x1d   :  { %s10109_s1 = scalar_lea.vmem %s58_s16, 64  ;;  %p10114_p12 = scmp.lt.s32.totalorder %s58_s16, %s58_s16 }
  0x1e   :  { %p10110_p11 = scmp.ne.s32.totalorder %s58_s16, %s10109_s1  ;;  %p10115_p13 = scmp.lt.s32.totalorder %s10109_s1, %s10109_s1 }
  0x20   :  { %p10116_p0 = por %p10115_p13, %p10114_p12 }
  0x22   :  { %p10117_p1 = pnand %p10116_p0, %p10110_p11 }
  0x24   :  { %10120 = shalt.err (!%p10117_p1)
}
  0x25   :  { %60 = dma.hbm_to_vmem [thread:$0]  %s17042_s3, 64, %s58_s16, [#allocation11]  }
  0x26   :  { %s10121_s30 = scalar_lea.hbm %s17044_s5, 64 }
  0x27   :  { %p10122_p2 = scmp.ne.s32.totalorder %s17044_s5, %s10121_s30  ;;  %p10125_p3 = scmp.lt.u32.totalorder %s10121_s30, %s17044_s5 }
  0x29   :  { %p10127_p4 = pnand %p10125_p3, %p10122_p2 }
  0x2b   :  { %10130 = shalt.err (!%p10127_p4)
}
  0x2c   :  { %s10131_s14 = scalar_lea.vmem %s78_s18, 64  ;;  %p10136_p6 = scmp.lt.s32.totalorder %s78_s18, %s78_s18 }
  0x2d   :  { %p10132_p5 = scmp.ne.s32.totalorder %s78_s18, %s10131_s14  ;;  %p10137_p7 = scmp.lt.s32.totalorder %s10131_s14, %s10131_s14 }
  0x2f   :  { %p10138_p8 = por %p10137_p7, %p10136_p6 }
  0x31   :  { %p10139_p9 = pnand %p10138_p8, %p10132_p5 }
  0x33   :  { %10142 = shalt.err (!%p10139_p9)
}
  0x34   :  { %80 = dma.hbm_to_vmem [thread:$0]  %s17044_s5, 64, %s78_s18, [#allocation14]  }
  0x35   :  { %s10268_s16 = smov [#allocation4]   ;;  %s10269_s19 = smov [#allocation9]  }
  0x36   :  { %s23_s17 = sshll.u32 %s10268_s16, 4  ;;  %s44_s20 = sshll.u32 %s10269_s19, 4  ;;  %s24_s17 = int_to_ptr.vmem [resolvable:$true] %s23_s17  ;;  %s45_s20 = int_to_ptr.vmem [resolvable:$true] %s44_s20 }
  0x37   :  { %s10143_s23 = scalar_lea.hbm %s17039_s0, 256 }
  0x38   :  { %p10144_p10 = scmp.ne.s32.totalorder %s17039_s0, %s10143_s23  ;;  %p10147_p11 = scmp.lt.u32.totalorder %s10143_s23, %s17039_s0 }
  0x3a   :  { %p10149_p12 = pnand %p10147_p11, %p10144_p10 }
  0x3c   :  { %10152 = shalt.err (!%p10149_p12)
}
  0x3d   :  { %s10153_s5 = scalar_lea.vmem %s24_s17, 256  ;;  %p10158_p0 = scmp.lt.s32.totalorder %s24_s17, %s24_s17 }
  0x3e   :  { %p10154_p13 = scmp.ne.s32.totalorder %s24_s17, %s10153_s5  ;;  %p10159_p1 = scmp.lt.s32.totalorder %s10153_s5, %s10153_s5 }
  0x40   :  { %p10160_p2 = por %p10159_p1, %p10158_p0 }
  0x42   :  { %p10161_p3 = pnand %p10160_p2, %p10154_p13 }
  0x44   :  { %10164 = shalt.err (!%p10161_p3)
}
  0x45   :  { %26 = dma.hbm_to_vmem [thread:$0]  %s17039_s0, 256, %s24_s17, [#allocation5]  }
  0x46   :  { %s10165_s30 = scalar_lea.hbm %s17041_s2, 1536 }
  0x47   :  { %p10166_p4 = scmp.ne.s32.totalorder %s17041_s2, %s10165_s30  ;;  %p10169_p5 = scmp.lt.u32.totalorder %s10165_s30, %s17041_s2 }
  0x49   :  { %p10171_p6 = pnand %p10169_p5, %p10166_p4 }
  0x4b   :  { %10174 = shalt.err (!%p10171_p6)
}
  0x4c   :  { %s10175_s14 = scalar_lea.vmem %s45_s20, 1536  ;;  %p10180_p8 = scmp.lt.s32.totalorder %s45_s20, %s45_s20 }
  0x4d   :  { %p10176_p7 = scmp.ne.s32.totalorder %s45_s20, %s10175_s14  ;;  %p10181_p9 = scmp.lt.s32.totalorder %s10175_s14, %s10175_s14 }
  0x4f   :  { %p10182_p10 = por %p10181_p9, %p10180_p8 }
  0x51   :  { %p10183_p11 = pnand %p10182_p10, %p10176_p7 }
  0x53   :  { %10186 = shalt.err (!%p10183_p11)
}
  0x54   :  { %50 = dma.hbm_to_vmem [thread:$0]  %s17041_s2, 1536, %s45_s20, [#allocation8], %s10264_s11, %s10264_s11, %s10265_s12  }
  0x55   :  { %s10270_s15 = smov [#allocation12]   ;;  %s10271_s17 = smov [#allocation15]  }
  0x56   :  { %s67_s16 = sshll.u32 %s10270_s15, 4  ;;  %s87_s19 = sshll.u32 %s10271_s17, 4  ;;  %s68_s16 = int_to_ptr.vmem [resolvable:$true] %s67_s16  ;;  %s88_s19 = int_to_ptr.vmem [resolvable:$true] %s87_s19 }
  0x57   :  { %s10187_s23 = scalar_lea.hbm %s17043_s4, 64 }
  0x58   :  { %p10188_p12 = scmp.ne.s32.totalorder %s17043_s4, %s10187_s23  ;;  %p10191_p13 = scmp.lt.u32.totalorder %s10187_s23, %s17043_s4 }
  0x5a   :  { %p10193_p0 = pnand %p10191_p13, %p10188_p12 }
  0x5c   :  { %10196 = shalt.err (!%p10193_p0)
}
  0x5d   :  { %s10197_s2 = scalar_lea.vmem %s68_s16, 64  ;;  %p10202_p2 = scmp.lt.s32.totalorder %s68_s16, %s68_s16 }
  0x5e   :  { %p10198_p1 = scmp.ne.s32.totalorder %s68_s16, %s10197_s2  ;;  %p10203_p3 = scmp.lt.s32.totalorder %s10197_s2, %s10197_s2 }
  0x60   :  { %p10204_p4 = por %p10203_p3, %p10202_p2 }
  0x62   :  { %p10205_p5 = pnand %p10204_p4, %p10198_p1 }
  0x64   :  { %10208 = shalt.err (!%p10205_p5)
}
  0x65   :  { %70 = dma.hbm_to_vmem [thread:$0]  %s17043_s4, 64, %s68_s16, [#allocation11]  }
  0x66   :  { %s10209_s18 = scalar_lea.hbm %s17045_s6, 64 }
  0x67   :  { %p10210_p6 = scmp.ne.s32.totalorder %s17045_s6, %s10209_s18  ;;  %p10213_p7 = scmp.lt.u32.totalorder %s10209_s18, %s17045_s6 }
  0x69   :  { %p10215_p8 = pnand %p10213_p7, %p10210_p6 }
  0x6b   :  { %10218 = shalt.err (!%p10215_p8)
}
  0x6c   :  { %s10219_s8 = scalar_lea.vmem %s88_s19, 64  ;;  %p10224_p10 = scmp.lt.s32.totalorder %s88_s19, %s88_s19 }
  0x6d   :  { %p10220_p9 = scmp.ne.s32.totalorder %s88_s19, %s10219_s8  ;;  %p10225_p11 = scmp.lt.s32.totalorder %s10219_s8, %s10219_s8 }
  0x6f   :  { %p10226_p12 = por %p10225_p11, %p10224_p10 }
  0x71   :  { %p10227_p13 = pnand %p10226_p12, %p10220_p9 }
  0x73   :  { %10230 = shalt.err (!%p10227_p13)
}
  0x74   :  { %90 = dma.hbm_to_vmem [thread:$0]  %s17045_s6, 64, %s88_s19, [#allocation14]  }
  0x75   :  { %10253 = dma.done.wait [#allocation5], 256  }
  0x76   :  { %10254 = vsyncadd [#allocation5], 4294967040 }
  0x77   :  { %10255 = dma.done.wait [#allocation8], 3072  }
  0x78   :  { %10256 = vsyncadd [#allocation8], 4294964224 }
  0x79   :  { %10257 = dma.done.wait [#allocation11], 128  }
  0x7a   :  { %10258 = vsyncadd [#allocation11], 4294967168 }
  0x7b   :  { %10259 = dma.done.wait [#allocation14], 128  }
  0x7c   :  { %10260 = vsyncadd [#allocation14], 4294967168  ;;  %v17051_v0 = vmov 0.0   ;;  %v10273_v1 = vmov 0   ;;  %v112_v2 = vld [vmem:[#allocation4] sm:$0xff]  ;;  %vm239_vm0 = vcmask 1043456  }
  0x7d   :  { %312 = vmatprep.mubr.f32.mxu0 %v17051_v0  ;;  %449 = vmatprep.mubr.f32.mxu1 %v17051_v0  ;;  %v113_v3 = vld [vmem:[#allocation4 + $0x8] sm:$0xff]  ;;  %v10408_v4 = vcombine.high %v112_v2, %v112_v2  ;;  %v114_v6 = vld [vmem:[#allocation7] sm:$0xff]  ;;  %vm202_vm1 = vcmask 31744   ;;  %v115_v8 = vld [vmem:[#allocation7 + $0x8] sm:$0xff]  ;;  %vm653_vm2 = vcmask 64512   ;;  %vm4252_vm3 = vcmask 261120  }
  0x7e   :  { %9006 = vset.pattern.permute.xlu0 %v10273_v1  ;;  %v10410_v5 = vcombine.high %v113_v3, %v113_v3  ;;  %v130_v7 = vld [vmem:[#allocation9 + $0x20] sm:$0xff]  ;;  %v116_v10 = vld [vmem:[#allocation7 + $0x10] sm:$0xff]  ;;  %v131_v11 = vld [vmem:[#allocation9 + $0x28] sm:$0xff]  ;;  %s10274_s6 = smov [#allocation16]  }
  0x7f   :  { %17375 = vst [vmem:[#allocation22_spill] sm:$0xff] %v10408_v4  ;;  %8180 = vmatprep.subr.msk.mxu0 %vm239_vm0, %v10408_v4  ;;  %160 = vperm.xlu0 %9006, %v130_v7   ;;  %v126_v9 = vld [vmem:[#allocation9] sm:$0xff]  ;;  %v117_v12 = vld [vmem:[#allocation7 + $0x18] sm:$0xff]  ;;  %v127_v15 = vld [vmem:[#allocation9 + $0x8] sm:$0xff]  ;;  %s8154_s10 = sshll.u32 %s10274_s6, 4  ;;  %s8155_s10 = int_to_ptr.vmem [resolvable:$true] %s8154_s10 }
  0x80   :  { %17376 = vst [vmem:[#allocation23_spill] sm:$0xff] %v10410_v5  ;;  %8194 = vmatprep.subr.msk.mxu1 %vm239_vm0, %v10410_v5  ;;  %8181 = vmatpush1.msk.msra.mxu0 %vm239_vm0, %v112_v2  ;;  %v134_v13 = vld [vmem:[#allocation9 + $0x40] sm:$0xff]  ;;  %v119_v16 = vld [vmem:[#allocation7 + $0x28] sm:$0xff]  ;;  %v120_v17 = vld [vmem:[#allocation7 + $0x30] sm:$0xff]  ;;  %s10231_s13 = scalar_lea.vmem %s8155_s10, 256  ;;  %p10236_p1 = scmp.lt.s32.totalorder %s8155_s10, %s8155_s10 }
  0x81   :  { %8195 = vmatpush1.msk.msra.mxu1 %vm239_vm0, %v113_v3  ;;  %8182 = vmatmul.mubr.msk.f32.vlgmr.msra.gmra.mrb[0].mxu0 %vm202_vm1, %v114_v6  ;;  %v118_v14 = vld [vmem:[#allocation7 + $0x20] sm:$0xff]  ;;  %v121_v18 = vld [vmem:[#allocation7 + $0x38] sm:$0xff]  ;;  %v123_v20 = vld [vmem:[#allocation7 + $0x48] sm:$0xff]  ;;  %p10232_p0 = scmp.ne.s32.totalorder %s8155_s10, %s10231_s13  ;;  %p10237_p2 = scmp.lt.s32.totalorder %s10231_s13, %s10231_s13 }
  0x82   :  { %8196 = vmatmul.mubr.msk.f32.vlgmr.msra.gmra.mrb[0].mxu1 %vm202_vm1, %v114_v6  ;;  %318 = vmatprep.mubr.f32.mxu0 %v17051_v0  ;;  %v122_v19 = vld [vmem:[#allocation7 + $0x40] sm:$0xff]  ;;  %v124_v21 = vld [vmem:[#allocation7 + $0x50] sm:$0xff]  ;;  %v125_v22 = vld [vmem:[#allocation7 + $0x58] sm:$0xff] }
  0x83   :  { %455 = vmatprep.mubr.f32.mxu1 %v17051_v0  ;;  %140 = vperm.xlu0 %9006, %v126_v9   ;;  %p10238_p3 = por %p10237_p2, %p10236_p1 }
  0x85   :  { %8183 = vmatmul.mubr.msk.f32.gmra.mrb[2].mxu0 %vm202_vm1, %v115_v8  ;;  %p10239_p4 = pnand %p10238_p3, %p10232_p0 }
  0x86   :  { %8197 = vmatmul.mubr.msk.f32.gmra.mrb[2].mxu1 %vm202_vm1, %v115_v8  ;;  %324 = vmatprep.mubr.f32.mxu0 %v17051_v0 }
  0x87   :  { %461 = vmatprep.mubr.f32.mxu1 %v17051_v0  ;;  %165 = vperm.xlu0 %9006, %v131_v11  }
  0x89   :  { %8184 = vmatmul.mubr.msk.f32.gmra.mrb[4].mxu0 %vm202_vm1, %v116_v10 }
  0x8a   :  { %8198 = vmatmul.mubr.msk.f32.gmra.mrb[4].mxu1 %vm202_vm1, %v116_v10  ;;  %330 = vmatprep.mubr.f32.mxu0 %v17051_v0 }
  0x8b   :  { %467 = vmatprep.mubr.f32.mxu1 %v17051_v0  ;;  %180 = vperm.xlu0 %9006, %v134_v13  }
  0x8d   :  { %8185 = vmatmul.mubr.msk.f32.gmra.mrb[6].mxu0 %vm202_vm1, %v117_v12 }
  0x8e   :  { %8199 = vmatmul.mubr.msk.f32.gmra.mrb[6].mxu1 %vm202_vm1, %v117_v12  ;;  %336 = vmatprep.mubr.f32.mxu0 %v17051_v0 }
  0x8f   :  { %473 = vmatprep.mubr.f32.mxu1 %v17051_v0  ;;  %145 = vperm.xlu0 %9006, %v127_v15  }
  0x91   :  { %8186 = vmatmul.mubr.msk.f32.gmra.mrb[8].mxu0 %vm202_vm1, %v118_v14 }
  0x92   :  { %8200 = vmatmul.mubr.msk.f32.gmra.mrb[8].mxu1 %vm202_vm1, %v118_v14  ;;  %342 = vmatprep.mubr.f32.mxu0 %v17051_v0 }
  0x93   :  { %479 = vmatprep.mubr.f32.mxu1 %v17051_v0 }
  0x95   :  { %8187 = vmatmul.mubr.msk.f32.gmra.mrb[10].mxu0 %vm202_vm1, %v119_v16 }
  0x96   :  { %8201 = vmatmul.mubr.msk.f32.gmra.mrb[10].mxu1 %vm202_vm1, %v119_v16  ;;  %348 = vmatprep.mubr.f32.mxu0 %v17051_v0 }
  0x97   :  { %485 = vmatprep.mubr.f32.mxu1 %v17051_v0 }
  0x99   :  { %8188 = vmatmul.mubr.msk.f32.gmra.mrb[12].mxu0 %vm202_vm1, %v120_v17 }
  0x9a   :  { %8202 = vmatmul.mubr.msk.f32.gmra.mrb[12].mxu1 %vm202_vm1, %v120_v17  ;;  %354 = vmatprep.mubr.f32.mxu0 %v17051_v0 }
  0x9b   :  { %491 = vmatprep.mubr.f32.mxu1 %v17051_v0 }
  0x9d   :  { %8189 = vmatmul.mubr.msk.f32.gmra.mrb[14].mxu0 %vm202_vm1, %v121_v18 }
  0x9e   :  { %8203 = vmatmul.mubr.msk.f32.gmra.mrb[14].mxu1 %vm202_vm1, %v121_v18  ;;  %360 = vmatprep.mubr.f32.mxu0 %v17051_v0 }
  0x9f   :  { %497 = vmatprep.mubr.f32.mxu1 %v17051_v0 }
  0xa1   :  { %8190 = vmatmul.mubr.msk.f32.gmra.mrb[16].mxu0 %vm202_vm1, %v122_v19 }
  0xa2   :  { %8204 = vmatmul.mubr.msk.f32.gmra.mrb[16].mxu1 %vm202_vm1, %v122_v19  ;;  %366 = vmatprep.mubr.f32.mxu0 %v17051_v0 }
  0xa3   :  { %503 = vmatprep.mubr.f32.mxu1 %v17051_v0 }
  0xa5   :  { %8191 = vmatmul.mubr.msk.f32.gmra.mrb[18].mxu0 %vm202_vm1, %v123_v20 }
  0xa6   :  { %8205 = vmatmul.mubr.msk.f32.gmra.mrb[18].mxu1 %vm202_vm1, %v123_v20  ;;  %372 = vmatprep.mubr.f32.mxu0 %v17051_v0  ;;  %v132_v20 = vld [vmem:[#allocation9 + $0x30] sm:$0xff] }
  0xa7   :  { %509 = vmatprep.mubr.f32.mxu1 %v17051_v0 }
  0xa9   :  { %8192 = vmatmul.mubr.msk.f32.gmra.mrb[20].mxu0 %vm202_vm1, %v124_v21 }
  0xaa   :  { %8206 = vmatmul.mubr.msk.f32.gmra.mrb[20].mxu1 %vm202_vm1, %v124_v21  ;;  %378 = vmatprep.mubr.f32.mxu0 %v17051_v0 }
  0xab   :  { %515 = vmatprep.mubr.f32.mxu1 %v17051_v0 }
  0xad   :  { %8193 = vmatmul.mubr.msk.f32.gmra.mrb[22].mxu0 %vm202_vm1, %v125_v22 }
  0xae   :  { %8207 = vmatmul.mubr.msk.f32.gmra.mrb[22].mxu1 %vm202_vm1, %v125_v22  ;;  %814 = vmatprep.mubr.f32.mxu0 %v17051_v0 }
  0xfe   :  { %v10465_v23 = vpop.permute.xlu0 %160 }
 0x102   :  { %v10467_v24 = vpop.permute.xlu0 %140 }
 0x103   :  { %17377 = vst [vmem:[#allocation24_spill] sm:$0xff] %v10467_v24 }
 0x106   :  { %v10504_v48 = vpop.permute.xlu0 %165 }
 0x10a   :  { %v10527_v62 = vpop.permute.xlu0 %180 }
 0x10b   :  { %17393 = vst [vmem:[#allocation40_spill] sm:$0xff] %v10527_v62 }
 0x10e   :  { %v10539_v10 = vpop.permute.xlu0 %145 }
 0x10f   :  { %17397 = vst [vmem:[#allocation44_spill] sm:$0xff] %v10539_v10 }
 0x154   :  { %v314_v25 = vpop.f32.mrb[0].mxu0 }
 0x155   :  { %v10469_v26 = vpop.f32.mrb[0].mxu1  ;;  %v316_v27 = vpop.f32.mrb[1].mxu0  ;;  %v315_v30 = vadd.f32 %v314_v25, %v10467_v24  ;;  %v128_v25 = vld [vmem:[#allocation9 + $0x10] sm:$0xff] }
 0x156   :  { %17378 = vst [vmem:[#allocation25_spill] sm:$0xff] %v10469_v26  ;;  %v10471_v28 = vpop.f32.mrb[1].mxu1  ;;  %v317_v29 = vadd.f32 %v316_v27, %v10467_v24 }
 0x157   :  { %17379 = vst [vmem:[#allocation26_spill] sm:$0xff] %v10471_v28 }
 0x158   :  { %v10475_v31 = vpop.f32.mrb[2].mxu0  ;;  %750 = vmatprep.subr.mxu0 %v317_v29 }
 0x159   :  { %17380 = vst [vmem:[#allocation27_spill] sm:$0xff] %v10475_v31  ;;  %v10477_v32 = vpop.f32.mrb[2].mxu1  ;;  %v10479_v33 = vpop.f32.mrb[3].mxu0  ;;  %751 = vmatpush1.msra.mxu0 %v315_v30 }
 0x15a   :  { %17381 = vst [vmem:[#allocation28_spill] sm:$0xff] %v10477_v32  ;;  %17382 = vst [vmem:[#allocation29_spill] sm:$0xff] %v10479_v33  ;;  %v10481_v34 = vpop.f32.mrb[3].mxu1 }
 0x15b   :  { %17383 = vst [vmem:[#allocation30_spill] sm:$0xff] %v10481_v34 }
 0x15c   :  { %v10483_v35 = vpop.f32.mrb[4].mxu0 }
 0x15d   :  { %17384 = vst [vmem:[#allocation31_spill] sm:$0xff] %v10483_v35  ;;  %v10485_v36 = vpop.f32.mrb[4].mxu1  ;;  %v10487_v37 = vpop.f32.mrb[5].mxu0 }
 0x15e   :  { %17385 = vst [vmem:[#allocation32_spill] sm:$0xff] %v10485_v36  ;;  %17386 = vst [vmem:[#allocation33_spill] sm:$0xff] %v10487_v37  ;;  %v10489_v38 = vpop.f32.mrb[5].mxu1 }
 0x15f   :  { %17387 = vst [vmem:[#allocation34_spill] sm:$0xff] %v10489_v38 }
 0x160   :  { %v10491_v39 = vpop.f32.mrb[6].mxu0 }
 0x161   :  { %17388 = vst [vmem:[#allocation35_spill] sm:$0xff] %v10491_v39  ;;  %v10493_v40 = vpop.f32.mrb[6].mxu1  ;;  %v10495_v41 = vpop.f32.mrb[7].mxu0 }
 0x162   :  { %17389 = vst [vmem:[#allocation36_spill] sm:$0xff] %v10493_v40  ;;  %17390 = vst [vmem:[#allocation37_spill] sm:$0xff] %v10495_v41  ;;  %v10497_v42 = vpop.f32.mrb[7].mxu1 }
 0x163   :  { %17391 = vst [vmem:[#allocation38_spill] sm:$0xff] %v10497_v42 }
 0x164   :  { %v338_v43 = vpop.f32.mrb[8].mxu0 }
 0x165   :  { %v10499_v44 = vpop.f32.mrb[8].mxu1  ;;  %v340_v45 = vpop.f32.mrb[9].mxu0  ;;  %v339_v47 = vadd.f32 %v338_v43, %v10465_v23 }
 0x166   :  { %v10501_v46 = vpop.f32.mrb[9].mxu1  ;;  %v341_v8 = vadd.f32 %v340_v45, %v10465_v23 }
 0x167   :  { %589 = vxpose.xlu1.b32.start.end [1/1] (short) %v339_v47, 128 }
 0x168   :  { %v344_v49 = vpop.f32.mrb[10].mxu0 }
 0x169   :  { %v10506_v50 = vpop.f32.mrb[10].mxu1  ;;  %v345_v51 = vadd.f32 %v344_v49, %v10504_v48  ;;  %v346_v52 = vpop.f32.mrb[11].mxu0 }
 0x16a   :  { %v10509_v53 = vpop.f32.mrb[11].mxu1  ;;  %v347_v9 = vadd.f32 %v346_v52, %v10504_v48 }
 0x16b   :  { %17392 = vst [vmem:[#allocation39_spill] sm:$0xff] %v10509_v53  ;;  %1506 = vxpose.xlu0.b32.start.end [1/1] (short) %v345_v51, 128 }
 0x16c   :  { %v10511_v54 = vpop.f32.mrb[12].mxu0 }
 0x16d   :  { %v10513_v55 = vpop.f32.mrb[12].mxu1  ;;  %v10515_v56 = vpop.f32.mrb[13].mxu0 }
 0x16e   :  { %v10517_v57 = vpop.f32.mrb[13].mxu1 }
 0x170   :  { %v10519_v58 = vpop.f32.mrb[14].mxu0 }
 0x171   :  { %v10521_v59 = vpop.f32.mrb[14].mxu1  ;;  %v10523_v60 = vpop.f32.mrb[15].mxu0 }
 0x172   :  { %v10525_v61 = vpop.f32.mrb[15].mxu1 }
 0x174   :  { %v10529_v63 = vpop.f32.mrb[16].mxu0 }
 0x175   :  { %17394 = vst [vmem:[#allocation41_spill] sm:$0xff] %v10529_v63  ;;  %v10531_v2 = vpop.f32.mrb[16].mxu1  ;;  %v364_v3 = vpop.f32.mrb[17].mxu0 }
 0x176   :  { %17395 = vst [vmem:[#allocation42_spill] sm:$0xff] %v10531_v2  ;;  %v10533_v6 = vpop.f32.mrb[17].mxu1  ;;  %v365_v7 = vadd.f32 %v364_v3, %v10527_v62  ;;  %v135_v3 = vld [vmem:[#allocation9 + $0x48] sm:$0xff] }
 0x177   :  { %17396 = vst [vmem:[#allocation43_spill] sm:$0xff] %v10533_v6 }
 0x178   :  { %1475 = vmatprep.mubr.f32.mxu1 %v365_v7  ;;  %v10567_v29 = vpop.f32.mrb[18].mxu0 }
 0x179   :  { %v10569_v30 = vpop.f32.mrb[18].mxu1  ;;  %v10571_v43 = vpop.f32.mrb[19].mxu0 }
 0x17a   :  { %v10573_v45 = vpop.f32.mrb[19].mxu1 }
 0x1a4   :  { %621 = vxpose.xlu1.b32.start.end [1/1] (short) %v341_v8, 128 }
 0x1a8   :  { %1538 = vxpose.xlu0.b32.start.end [1/1] (short) %v347_v9, 128  ;;  %v133_v9 = vld [vmem:[#allocation9 + $0x38] sm:$0xff] }
 0x1c2   :  { %9007 = vset.pattern.permute.xlu1 %v10273_v1 }
 0x1e7   :  { %v605_v11 = vpop.trf.xlu1 }
 0x1e8   :  { %8208 = vmatmul.mubr.msk.f32.vlgmr.msra.gmra.mrb[24].mxu0 %vm653_vm2, %v605_v11 }
 0x1e9   :  { %820 = vmatprep.mubr.f32.mxu0 %v17051_v0 }
 0x1eb   :  { %v606_v12 = vpop.trf.xlu1  ;;  %v10543_v13 = vpop.trf.xlu0 }
 0x1ec   :  { %17398 = vst [vmem:[#allocation45_spill] sm:$0xff] %v10543_v13  ;;  %8209 = vmatmul.mubr.msk.f32.gmra.mrb[26].mxu0 %vm653_vm2, %v606_v12 }
 0x1ed   :  { %826 = vmatprep.mubr.f32.mxu0 %v17051_v0 }
 0x1ef   :  { %v607_v14 = vpop.trf.xlu1  ;;  %v10547_v15 = vpop.trf.xlu0 }
 0x1f0   :  { %17399 = vst [vmem:[#allocation46_spill] sm:$0xff] %v10547_v15  ;;  %8210 = vmatmul.mubr.msk.f32.gmra.mrb[28].mxu0 %vm653_vm2, %v607_v14  ;;  %v10591_v14 = vpop.f32.mrb[20].mxu0 }
 0x1f1   :  { %832 = vmatprep.mubr.f32.mxu0 %v17051_v0  ;;  %17408 = vst [vmem:[#allocation55_spill] sm:$0xff] %v10591_v14 }
 0x1f3   :  { %v608_v1 = vpop.trf.xlu1  ;;  %v10551_v16 = vpop.trf.xlu0 }
 0x1f4   :  { %17400 = vst [vmem:[#allocation47_spill] sm:$0xff] %v10551_v16  ;;  %8211 = vmatmul.mubr.msk.f32.gmra.mrb[30].mxu0 %vm653_vm2, %v608_v1  ;;  %v10593_v1 = vpop.f32.mrb[20].mxu1 }
 0x1f5   :  { %838 = vmatprep.mubr.f32.mxu0 %v17051_v0  ;;  %17409 = vst [vmem:[#allocation56_spill] sm:$0xff] %v10593_v1 }
 0x1f7   :  { %v609_v17 = vpop.trf.xlu1  ;;  %v10555_v18 = vpop.trf.xlu0 }
 0x1f8   :  { %17401 = vst [vmem:[#allocation48_spill] sm:$0xff] %v10555_v18  ;;  %8212 = vmatmul.mubr.msk.f32.gmra.mrb[32].mxu0 %vm653_vm2, %v609_v17  ;;  %v136_v17 = vld [vmem:[#allocation9 + $0x50] sm:$0xff] }
 0x1f9   :  { %844 = vmatprep.mubr.f32.mxu0 %v17051_v0 }
 0x1fb   :  { %v610_v19 = vpop.trf.xlu1  ;;  %v10559_v21 = vpop.trf.xlu0 }
 0x1fc   :  { %17402 = vst [vmem:[#allocation49_spill] sm:$0xff] %v10559_v21  ;;  %8213 = vmatmul.mubr.msk.f32.gmra.mrb[34].mxu0 %vm653_vm2, %v610_v19 }
 0x1fd   :  { %850 = vmatprep.mubr.f32.mxu0 %v17051_v0 }
 0x1fe   :  { %170 = vperm.xlu1 %9007, %v132_v20  }
 0x1ff   :  { %v611_v22 = vpop.trf.xlu1  ;;  %v10563_v27 = vpop.trf.xlu0 }
 0x200   :  { %17403 = vst [vmem:[#allocation50_spill] sm:$0xff] %v10563_v27  ;;  %8214 = vmatmul.mubr.msk.f32.gmra.mrb[36].mxu0 %vm653_vm2, %v611_v22  ;;  %v10598_v22 = vpop.f32.mrb[21].mxu0 }
 0x201   :  { %856 = vmatprep.mubr.f32.mxu0 %v17051_v0  ;;  %17411 = vst [vmem:[#allocation58_spill] sm:$0xff] %v10598_v22 }
 0x202   :  { %150 = vperm.xlu1 %9007, %v128_v25   ;;  %v10600_v25 = vpop.f32.mrb[21].mxu1 }
 0x203   :  { %v612_v47 = vpop.trf.xlu1  ;;  %v10575_v49 = vpop.trf.xlu0  ;;  %17412 = vst [vmem:[#allocation59_spill] sm:$0xff] %v10600_v25 }
 0x204   :  { %17404 = vst [vmem:[#allocation51_spill] sm:$0xff] %v10575_v49  ;;  %8215 = vmatmul.mubr.msk.f32.gmra.mrb[38].mxu0 %vm653_vm2, %v612_v47  ;;  %v129_v47 = vld [vmem:[#allocation9 + $0x18] sm:$0xff] }
 0x205   :  { %862 = vmatprep.mubr.f32.mxu0 %v17051_v0 }
 0x207   :  { %v613_v51 = vpop.trf.xlu1  ;;  %v10579_v52 = vpop.trf.xlu0 }
 0x208   :  { %17405 = vst [vmem:[#allocation52_spill] sm:$0xff] %v10579_v52  ;;  %8216 = vmatmul.mubr.msk.f32.gmra.mrb[40].mxu0 %vm653_vm2, %v613_v51 }
 0x209   :  { %868 = vmatprep.mubr.f32.mxu0 %v17051_v0 }
 0x20b   :  { %v614_v7 = vpop.trf.xlu1  ;;  %v10583_v8 = vpop.trf.xlu0 }
 0x20c   :  { %17406 = vst [vmem:[#allocation53_spill] sm:$0xff] %v10583_v8  ;;  %8217 = vmatmul.mubr.msk.f32.gmra.mrb[42].mxu0 %vm653_vm2, %v614_v7  ;;  %v10607_v7 = vpop.f32.mrb[22].mxu0 }
 0x20d   :  { %185 = vperm.xlu0 %9006, %v135_v3   ;;  %874 = vmatprep.mubr.f32.mxu0 %v17051_v0  ;;  %17414 = vst [vmem:[#allocation61_spill] sm:$0xff] %v10607_v7 }
 0x20f   :  { %v615_v11 = vpop.trf.xlu1  ;;  %v10587_v12 = vpop.trf.xlu0 }
 0x210   :  { %17407 = vst [vmem:[#allocation54_spill] sm:$0xff] %v10587_v12  ;;  %8218 = vmatmul.mubr.msk.f32.gmra.mrb[44].mxu0 %vm653_vm2, %v615_v11 }
 0x211   :  { %175 = vperm.xlu0 %9006, %v133_v9   ;;  %880 = vmatprep.mubr.f32.mxu0 %v17051_v0  ;;  %v10609_v9 = vpop.f32.mrb[23].mxu0 }
 0x212   :  { %17415 = vst [vmem:[#allocation62_spill] sm:$0xff] %v10609_v9 }
 0x213   :  { %v616_v19 = vpop.trf.xlu1  ;;  %v10595_v20 = vpop.trf.xlu0 }
 0x214   :  { %17410 = vst [vmem:[#allocation57_spill] sm:$0xff] %v10595_v20  ;;  %8219 = vmatmul.mubr.msk.f32.gmra.mrb[46].mxu0 %vm653_vm2, %v616_v19 }
 0x215   :  { %190 = vperm.xlu0 %9006, %v136_v17   ;;  %886 = vmatprep.mubr.f32.mxu0 %v17051_v0 }
 0x217   :  { %v617_v51 = vpop.trf.xlu1  ;;  %v10603_v3 = vpop.trf.xlu0 }
 0x218   :  { %17413 = vst [vmem:[#allocation60_spill] sm:$0xff] %v10603_v3  ;;  %8220 = vmatmul.mubr.msk.f32.gmra.mrb[48].mxu0 %vm653_vm2, %v617_v51 }
 0x219   :  { %155 = vperm.xlu0 %9006, %v129_v47   ;;  %892 = vmatprep.mubr.f32.mxu0 %v17051_v0 }
 0x21b   :  { %v618_v11 = vpop.trf.xlu1  ;;  %v10611_v19 = vpop.trf.xlu0 }
 0x21c   :  { %17416 = vst [vmem:[#allocation63_spill] sm:$0xff] %v10611_v19  ;;  %8221 = vmatmul.mubr.msk.f32.gmra.mrb[50].mxu0 %vm653_vm2, %v618_v11 }
 0x21d   :  { %898 = vmatprep.mubr.f32.mxu0 %v17051_v0 }
 0x21f   :  { %v619_v17 = vpop.trf.xlu1  ;;  %v10615_v5 = vpop.trf.xlu0 }
 0x220   :  { %17417 = vst [vmem:[#allocation64_spill] sm:$0xff] %v10615_v5  ;;  %8222 = vmatmul.mubr.msk.f32.gmra.mrb[52].mxu0 %vm653_vm2, %v619_v17 }
 0x221   :  { %904 = vmatprep.mubr.f32.mxu0 %v17051_v0 }
 0x223   :  { %v620_v47 = vpop.trf.xlu1  ;;  %v10619_v51 = vpop.trf.xlu0 }
 0x224   :  { %17418 = vst [vmem:[#allocation65_spill] sm:$0xff] %v10619_v51  ;;  %8223 = vmatmul.mubr.msk.f32.gmra.mrb[54].mxu0 %vm653_vm2, %v620_v47 }
 0x225   :  { %910 = vmatprep.mubr.f32.mxu0 %v17051_v0 }
 0x227   :  { %v637_v40 = vpop.trf.xlu1  ;;  %v10623_v1 = vpop.trf.xlu0 }
 0x228   :  { %17419 = vst [vmem:[#allocation66_spill] sm:$0xff] %v10623_v1  ;;  %8224 = vmatmul.mubr.msk.f32.gmra.mrb[56].mxu0 %vm653_vm2, %v637_v40 }
 0x229   :  { %916 = vmatprep.mubr.f32.mxu0 %v17051_v0 }
 0x22b   :  { %v638_v11 = vpop.trf.xlu1  ;;  %v10628_v17 = vpop.trf.xlu0 }
 0x22c   :  { %8225 = vmatmul.mubr.msk.f32.gmra.mrb[58].mxu0 %vm653_vm2, %v638_v11  ;;  %17420 = vst [vmem:[#allocation67_spill] sm:$0xff] %v10628_v17 }
 0x22d   :  { %922 = vmatprep.mubr.f32.mxu0 %v17051_v0 }
 0x22f   :  { %v639_v42 = vpop.trf.xlu1  ;;  %v10633_v47 = vpop.trf.xlu0 }
 0x230   :  { %8226 = vmatmul.mubr.msk.f32.gmra.mrb[60].mxu0 %vm653_vm2, %v639_v42  ;;  %17421 = vst [vmem:[#allocation68_spill] sm:$0xff] %v10633_v47 }
 0x231   :  { %928 = vmatprep.mubr.f32.mxu0 %v17051_v0 }
 0x233   :  { %v640_v36 = vpop.trf.xlu1  ;;  %v10638_v11 = vpop.trf.xlu0 }
 0x234   :  { %8227 = vmatmul.mubr.msk.f32.gmra.mrb[62].mxu0 %vm653_vm2, %v640_v36  ;;  %17422 = vst [vmem:[#allocation69_spill] sm:$0xff] %v10638_v11 }
 0x235   :  { %934 = vmatprep.mubr.f32.mxu0 %v17051_v0 }
 0x237   :  { %v641_v40 = vpop.trf.xlu1  ;;  %v10643_v42 = vpop.trf.xlu0 }
 0x238   :  { %8228 = vmatmul.mubr.msk.f32.gmra.mrb[64].mxu0 %vm653_vm2, %v641_v40  ;;  %17423 = vst [vmem:[#allocation70_spill] sm:$0xff] %v10643_v42 }
 0x239   :  { %940 = vmatprep.mubr.f32.mxu0 %v17051_v0 }
 0x23b   :  { %v642_v38 = vpop.trf.xlu1  ;;  %v10648_v40 = vpop.trf.xlu0 }
 0x23c   :  { %8229 = vmatmul.mubr.msk.f32.gmra.mrb[66].mxu0 %vm653_vm2, %v642_v38  ;;  %17424 = vst [vmem:[#allocation71_spill] sm:$0xff] %v10648_v40 }
 0x23d   :  { %946 = vmatprep.mubr.f32.mxu0 %v17051_v0 }
 0x23f   :  { %v643_v25 = vpop.trf.xlu1  ;;  %v10653_v38 = vpop.trf.xlu0 }
 0x240   :  { %8230 = vmatmul.mubr.msk.f32.gmra.mrb[68].mxu0 %vm653_vm2, %v643_v25  ;;  %17425 = vst [vmem:[#allocation72_spill] sm:$0xff] %v10653_v38 }
 0x241   :  { %952 = vmatprep.mubr.f32.mxu0 %v17051_v0 }
 0x243   :  { %v644_v36 = vpop.trf.xlu1 }
 0x244   :  { %8231 = vmatmul.mubr.msk.f32.gmra.mrb[70].mxu0 %vm653_vm2, %v644_v36  ;;  %v10658_v36 = vpop.trf.xlu0 }
 0x245   :  { %958 = vmatprep.mubr.f32.mxu0 %v17051_v0  ;;  %17426 = vst [vmem:[#allocation73_spill] sm:$0xff] %v10658_v36 }
 0x247   :  { %v645_v32 = vpop.trf.xlu1 }
 0x248   :  { %8232 = vmatmul.mubr.msk.f32.gmra.mrb[72].mxu0 %vm653_vm2, %v645_v32  ;;  %v10663_v32 = vpop.trf.xlu0 }
 0x249   :  { %964 = vmatprep.mubr.f32.mxu0 %v17051_v0  ;;  %17427 = vst [vmem:[#allocation74_spill] sm:$0xff] %v10663_v32 }
 0x24b   :  { %v646_v2 = vpop.trf.xlu1 }
 0x24c   :  { %8233 = vmatmul.mubr.msk.f32.gmra.mrb[74].mxu0 %vm653_vm2, %v646_v2 }
 0x24d   :  { %970 = vmatprep.mubr.f32.mxu0 %v17051_v0 }
 0x24f   :  { %v647_v25 = vpop.trf.xlu1 }
 0x250   :  { %8234 = vmatmul.mubr.msk.f32.gmra.mrb[76].mxu0 %vm653_vm2, %v647_v25  ;;  %v10668_v25 = vpop.trf.xlu0 }
 0x251   :  { %976 = vmatprep.mubr.f32.mxu0 %v17051_v0  ;;  %17428 = vst [vmem:[#allocation75_spill] sm:$0xff] %v10668_v25 }
 0x253   :  { %v648_v34 = vpop.trf.xlu1 }
 0x254   :  { %8235 = vmatmul.mubr.msk.f32.gmra.mrb[78].mxu0 %vm653_vm2, %v648_v34  ;;  %v10673_v34 = vpop.trf.xlu0 }
 0x255   :  { %982 = vmatprep.mubr.f32.mxu0 %v17051_v0  ;;  %17429 = vst [vmem:[#allocation76_spill] sm:$0xff] %v10673_v34 }
 0x257   :  { %v649_v4 = vpop.trf.xlu1 }
 0x258   :  { %8236 = vmatmul.mubr.msk.f32.gmra.mrb[80].mxu0 %vm653_vm2, %v649_v4  ;;  %v10676_v4 = vpop.trf.xlu0 }
 0x259   :  { %988 = vmatprep.mubr.f32.mxu0 %v17051_v0  ;;  %17430 = vst [vmem:[#allocation77_spill] sm:$0xff] %v10676_v4 }
 0x25b   :  { %v650_v2 = vpop.trf.xlu1 }
 0x25c   :  { %8237 = vmatmul.mubr.msk.f32.gmra.mrb[82].mxu0 %vm653_vm2, %v650_v2  ;;  %v10678_v24 = vpop.trf.xlu0 }
 0x25d   :  { %994 = vmatprep.mubr.f32.mxu0 %v17051_v0  ;;  %17431 = vst [vmem:[#allocation78_spill] sm:$0xff] %v10678_v24 }
 0x25f   :  { %v651_v26 = vpop.trf.xlu1 }
 0x260   :  { %8238 = vmatmul.mubr.msk.f32.gmra.mrb[84].mxu0 %vm653_vm2, %v651_v26  ;;  %v10680_v6 = vpop.trf.xlu0 }
 0x261   :  { %1000 = vmatprep.mubr.f32.mxu0 %v17051_v0  ;;  %17432 = vst [vmem:[#allocation79_spill] sm:$0xff] %v10680_v6 }
 0x263   :  { %v652_v28 = vpop.trf.xlu1 }
 0x264   :  { %8239 = vmatmul.mubr.msk.f32.gmra.mrb[86].mxu0 %vm653_vm2, %v652_v28  ;;  %v10682_v2 = vpop.trf.xlu0 }
 0x265   :  { %17433 = vst [vmem:[#allocation80_spill] sm:$0xff] %v10682_v2 }
 0x268   :  { %v10691_v41 = vpop.trf.xlu0 }
 0x269   :  { %17436 = vst [vmem:[#allocation83_spill] sm:$0xff] %v10691_v41 }
 0x26c   :  { %v10693_v28 = vpop.trf.xlu0 }
 0x26d   :  { %17437 = vst [vmem:[#allocation84_spill] sm:$0xff] %v10693_v28 }
 0x27d   :  { %v171_v39 = vpop.permute.xlu1 %170 }
 0x27e   :  { %v351_v14 = vadd.f32 %v10511_v54, %v171_v39  ;;  %v10686_v26 = vadd.f32 %v10513_v55, %v171_v39  ;;  %v10689_v0 = vadd.f32 %v10517_v57, %v171_v39  ;;  %v353_v28 = vadd.f32 %v10515_v56, %v171_v39 }
 0x280   :  { %17434 = vst [vmem:[#allocation81_spill] sm:$0xff] %v10686_v26  ;;  %17435 = vst [vmem:[#allocation82_spill] sm:$0xff] %v10689_v0  ;;  %2422 = vxpose.xlu1.b32.start.end [1/1] (short) %v351_v14, 128  ;;  %v137_v26 = vld [vmem:[#allocation9 + $0x58] sm:$0xff] }
 0x28c   :  { %v186_v35 = vpop.permute.xlu0 %185 }
 0x28d   :  { %v10696_v37 = vadd.f32 %v10567_v29, %v186_v35  ;;  %v10699_v22 = vadd.f32 %v10569_v30, %v186_v35  ;;  %v371_v54 = vadd.f32 %v10571_v43, %v186_v35  ;;  %v10711_v43 = vadd.f32 %v10573_v45, %v186_v35 }
 0x28f   :  { %17438 = vst [vmem:[#allocation85_spill] sm:$0xff] %v10696_v37  ;;  %17439 = vst [vmem:[#allocation86_spill] sm:$0xff] %v10699_v22  ;;  %2391 = vmatprep.mubr.f32.mxu0 %v371_v54 }
 0x290   :  { %v176_v55 = vpop.permute.xlu0 %175  ;;  %17442 = vst [vmem:[#allocation89_spill] sm:$0xff] %v10711_v43 }
 0x291   :  { %v357_v2 = vadd.f32 %v10519_v58, %v176_v55  ;;  %v10704_v57 = vadd.f32 %v10521_v59, %v176_v55  ;;  %v10707_v14 = vadd.f32 %v10525_v61, %v176_v55 }
 0x293   :  { %17440 = vst [vmem:[#allocation87_spill] sm:$0xff] %v10704_v57  ;;  %17441 = vst [vmem:[#allocation88_spill] sm:$0xff] %v10707_v14  ;;  %3338 = vxpose.xlu0.b32.start.end [1/1] (short) %v357_v2, 128 }
 0x2bb   :  { %v816_v29 = vpop.f32.mrb[24].mxu0 }
 0x2bc   :  { %v818_v37 = vpop.f32.mrb[25].mxu0  ;;  %v10713_v54 = vmul.f32 0.35355338, %v816_v29 }
 0x2bd   :  { %2454 = vxpose.xlu1.b32.start.end [1/1] (short) %v353_v28, 128  ;;  %v10717_v6 = vmul.f32 0.35355338, %v818_v37 }
 0x2bf   :  { %v822_v30 = vpop.f32.mrb[26].mxu0 }
 0x2c0   :  { %v824_v22 = vpop.f32.mrb[27].mxu0  ;;  %v10725_v28 = vmul.f32 0.35355338, %v822_v30  ;;  %v359_v30 = vadd.f32 %v10523_v60, %v176_v55 }
 0x2c1   :  { %v10729_v29 = vmul.f32 0.35355338, %v824_v22 }
 0x2c3   :  { %v828_v41 = vpop.f32.mrb[28].mxu0 }
 0x2c4   :  { %v10715_v58 = vmul.f32 0.35355338, %v828_v41  ;;  %v830_v59 = vpop.f32.mrb[29].mxu0 }
 0x2c5   :  { %v10719_v61 = vmul.f32 0.35355338, %v830_v59 }
 0x2c6   :  { %v1071_v39 = vmax.f32 %v10713_v54, %v10715_v58 }
 0x2c7   :  { %v1108_v56 = vmax.f32 %v10717_v6, %v10719_v61  ;;  %v834_v2 = vpop.f32.mrb[30].mxu0 }
 0x2c8   :  { %v10727_v35 = vmul.f32 0.35355338, %v834_v2  ;;  %v836_v45 = vpop.f32.mrb[31].mxu0 }
 0x2c9   :  { %v10731_v41 = vmul.f32 0.35355338, %v836_v45 }
 0x2ca   :  { %v1072_v37 = vmax.f32 %v10725_v28, %v10727_v35 }
 0x2cb   :  { %v1109_v59 = vmax.f32 %v10729_v29, %v10731_v41  ;;  %v840_v43 = vpop.f32.mrb[32].mxu0 }
 0x2cc   :  { %v10737_v24 = vmul.f32 0.35355338, %v840_v43  ;;  %v842_v4 = vpop.f32.mrb[33].mxu0 }
 0x2cd   :  { %v10739_v34 = vmul.f32 0.35355338, %v842_v4 }
 0x2ce   :  { %v1073_v2 = vmax.f32 %v1071_v39, %v10737_v24 }
 0x2cf   :  { %v846_v22 = vpop.f32.mrb[34].mxu0  ;;  %v1110_v45 = vmax.f32 %v1108_v56, %v10739_v34 }
 0x2d0   :  { %v10744_v25 = vmul.f32 0.35355338, %v846_v22  ;;  %3370 = vxpose.xlu0.b32.start.end [1/1] (short) %v359_v30, 128  ;;  %v848_v32 = vpop.f32.mrb[35].mxu0 }
 0x2d1   :  { %v10746_v36 = vmul.f32 0.35355338, %v848_v32 }
 0x2d2   :  { %v1074_v38 = vmax.f32 %v1072_v37, %v10744_v25 }
 0x2d3   :  { %v852_v43 = vpop.f32.mrb[36].mxu0  ;;  %v1111_v40 = vmax.f32 %v1109_v59, %v10746_v36 }
 0x2d4   :  { %v10750_v4 = vmul.f32 0.35355338, %v852_v43  ;;  %v854_v42 = vpop.f32.mrb[37].mxu0 }
 0x2d5   :  { %v10752_v60 = vmul.f32 0.35355338, %v854_v42 }
 0x2d6   :  { %v1075_v55 = vmax.f32 %v1073_v2, %v10750_v4 }
 0x2d7   :  { %v1112_v39 = vmax.f32 %v1110_v45, %v10752_v60  ;;  %v858_v56 = vpop.f32.mrb[38].mxu0 }
 0x2d8   :  { %v10756_v22 = vmul.f32 0.35355338, %v858_v56  ;;  %v860_v30 = vpop.f32.mrb[39].mxu0 }
 0x2d9   :  { %v10758_v32 = vmul.f32 0.35355338, %v860_v30 }
 0x2da   :  { %v1076_v37 = vmax.f32 %v1074_v38, %v10756_v22 }
 0x2db   :  { %v1113_v11 = vmax.f32 %v1111_v40, %v10758_v32  ;;  %v864_v59 = vpop.f32.mrb[40].mxu0 }
 0x2dc   :  { %v10762_v43 = vmul.f32 0.35355338, %v864_v59  ;;  %v866_v47 = vpop.f32.mrb[41].mxu0 }
 0x2dd   :  { %v10764_v42 = vmul.f32 0.35355338, %v866_v47 }
 0x2de   :  { %v1077_v2 = vmax.f32 %v1075_v55, %v10762_v43 }
 0x2df   :  { %v1114_v45 = vmax.f32 %v1112_v39, %v10764_v42  ;;  %v870_v17 = vpop.f32.mrb[42].mxu0 }
 0x2e0   :  { %v10768_v56 = vmul.f32 0.35355338, %v870_v17  ;;  %v872_v1 = vpop.f32.mrb[43].mxu0 }
 0x2e1   :  { %v10770_v30 = vmul.f32 0.35355338, %v872_v1 }
 0x2e2   :  { %v1078_v38 = vmax.f32 %v1076_v37, %v10768_v56 }
 0x2e3   :  { %v1115_v40 = vmax.f32 %v1113_v11, %v10770_v30  ;;  %v876_v51 = vpop.f32.mrb[44].mxu0 }
 0x2e4   :  { %v10774_v59 = vmul.f32 0.35355338, %v876_v51  ;;  %v878_v5 = vpop.f32.mrb[45].mxu0 }
 0x2e5   :  { %v10776_v47 = vmul.f32 0.35355338, %v878_v5 }
 0x2e6   :  { %v1079_v55 = vmax.f32 %v1077_v2, %v10774_v59 }
 0x2e7   :  { %17443 = vst [vmem:[#allocation90_spill] sm:$0xff] %v10776_v47  ;;  %v1116_v39 = vmax.f32 %v1114_v45, %v10776_v47  ;;  %v882_v14 = vpop.f32.mrb[46].mxu0 }
 0x2e8   :  { %v10780_v17 = vmul.f32 0.35355338, %v882_v14  ;;  %v884_v19 = vpop.f32.mrb[47].mxu0 }
 0x2e9   :  { %v10782_v1 = vmul.f32 0.35355338, %v884_v19 }
 0x2ea   :  { %v1080_v37 = vmax.f32 %v1078_v38, %v10780_v17 }
 0x2eb   :  { %17444 = vst [vmem:[#allocation91_spill] sm:$0xff] %v10782_v1  ;;  %v1117_v11 = vmax.f32 %v1115_v40, %v10782_v1  ;;  %v888_v3 = vpop.f32.mrb[48].mxu0 }
 0x2ec   :  { %v10786_v51 = vmul.f32 0.35355338, %v888_v3  ;;  %v890_v20 = vpop.f32.mrb[49].mxu0 }
 0x2ed   :  { %v10788_v5 = vmul.f32 0.35355338, %v890_v20 }
 0x2ee   :  { %v1081_v2 = vmax.f32 %v1079_v55, %v10786_v51 }
 0x2ef   :  { %17445 = vst [vmem:[#allocation92_spill] sm:$0xff] %v10788_v5  ;;  %v1118_v45 = vmax.f32 %v1116_v39, %v10788_v5  ;;  %v894_v12 = vpop.f32.mrb[50].mxu0 }
 0x2f0   :  { %v10792_v14 = vmul.f32 0.35355338, %v894_v12  ;;  %v896_v8 = vpop.f32.mrb[51].mxu0 }
 0x2f1   :  { %v10794_v19 = vmul.f32 0.35355338, %v896_v8 }
 0x2f2   :  { %v1082_v38 = vmax.f32 %v1080_v37, %v10792_v14 }
 0x2f3   :  { %17446 = vst [vmem:[#allocation93_spill] sm:$0xff] %v10794_v19  ;;  %v1119_v40 = vmax.f32 %v1117_v11, %v10794_v19  ;;  %v900_v52 = vpop.f32.mrb[52].mxu0 }
 0x2f4   :  { %v10798_v3 = vmul.f32 0.35355338, %v900_v52  ;;  %v902_v49 = vpop.f32.mrb[53].mxu0  ;;  %v10810_v52 = vpop.permute.xlu1 %150 }
 0x2f5   :  { %v10800_v20 = vmul.f32 0.35355338, %v902_v49  ;;  %17449 = vst [vmem:[#allocation96_spill] sm:$0xff] %v10810_v52 }
 0x2f6   :  { %v1083_v55 = vmax.f32 %v1081_v2, %v10798_v3 }
 0x2f7   :  { %17447 = vst [vmem:[#allocation94_spill] sm:$0xff] %v10800_v20  ;;  %v1120_v39 = vmax.f32 %v1118_v45, %v10800_v20  ;;  %v906_v27 = vpop.f32.mrb[54].mxu0 }
 0x2f8   :  { %v10804_v12 = vmul.f32 0.35355338, %v906_v27  ;;  %v908_v21 = vpop.f32.mrb[55].mxu0 }
 0x2f9   :  { %v10806_v8 = vmul.f32 0.35355338, %v908_v21 }
 0x2fa   :  { %v1084_v37 = vmax.f32 %v1082_v38, %v10804_v12 }
 0x2fb   :  { %17448 = vst [vmem:[#allocation95_spill] sm:$0xff] %v10806_v8  ;;  %v1121_v11 = vmax.f32 %v1119_v40, %v10806_v8  ;;  %v912_v18 = vpop.f32.mrb[56].mxu0 }
 0x2fc   :  { %v10812_v16 = vmul.f32 0.35355338, %v912_v18  ;;  %v914_v49 = vpop.f32.mrb[57].mxu0 }
 0x2fd   :  { %v10814_v57 = vmul.f32 0.35355338, %v914_v49 }
 0x2fe   :  { %v1085_v2 = vmax.f32 %v1083_v55, %v10812_v16 }
 0x2ff   :  { %17450 = vst [vmem:[#allocation97_spill] sm:$0xff] %v10814_v57  ;;  %v1122_v27 = vmax.f32 %v1120_v39, %v10814_v57  ;;  %v918_v45 = vpop.f32.mrb[58].mxu0 }
 0x300   :  { %v10818_v15 = vmul.f32 0.35355338, %v918_v45  ;;  %v920_v21 = vpop.f32.mrb[59].mxu0  ;;  %v10820_v13 = vpop.trf.xlu1 }
 0x301   :  { %17451 = vst [vmem:[#allocation98_spill] sm:$0xff] %v10820_v13  ;;  %v10822_v38 = vmul.f32 0.35355338, %v920_v21 }
 0x302   :  { %v1086_v40 = vmax.f32 %v1084_v37, %v10818_v15  ;;  %v10838_v37 = vpop.permute.xlu0 %190 }
 0x303   :  { %17452 = vst [vmem:[#allocation99_spill] sm:$0xff] %v10822_v38  ;;  %v1123_v18 = vmax.f32 %v1121_v11, %v10822_v38  ;;  %v924_v52 = vpop.f32.mrb[60].mxu0  ;;  %17456 = vst [vmem:[#allocation103_spill] sm:$0xff] %v10838_v37 }
 0x304   :  { %v10826_v31 = vmul.f32 0.35355338, %v924_v52  ;;  %v926_v49 = vpop.f32.mrb[61].mxu0  ;;  %v10828_v63 = vpop.trf.xlu1 }
 0x305   :  { %17453 = vst [vmem:[#allocation100_spill] sm:$0xff] %v10828_v63  ;;  %v10830_v55 = vmul.f32 0.35355338, %v926_v49  ;;  %v476_v49 = vadd.f32 %v10499_v44, %v10465_v23 }
 0x306   :  { %v1087_v39 = vmax.f32 %v1085_v2, %v10826_v31  ;;  %v10850_v0 = vpop.permute.xlu0 %155 }
 0x307   :  { %17454 = vst [vmem:[#allocation101_spill] sm:$0xff] %v10830_v55  ;;  %v1124_v45 = vmax.f32 %v1122_v27, %v10830_v55  ;;  %v930_v62 = vpop.f32.mrb[62].mxu0  ;;  %17460 = vst [vmem:[#allocation107_spill] sm:$0xff] %v10850_v0 }
 0x308   :  { %v10834_v13 = vmul.f32 0.35355338, %v930_v62  ;;  %v932_v21 = vpop.f32.mrb[63].mxu0  ;;  %v10836_v33 = vpop.trf.xlu1 }
 0x309   :  { %17455 = vst [vmem:[#allocation102_spill] sm:$0xff] %v10836_v33  ;;  %v10840_v11 = vmul.f32 0.35355338, %v932_v21 }
 0x30a   :  { %v1088_v52 = vmax.f32 %v1086_v40, %v10834_v13 }
 0x30b   :  { %17457 = vst [vmem:[#allocation104_spill] sm:$0xff] %v10840_v11  ;;  %v1125_v63 = vmax.f32 %v1123_v18, %v10840_v11  ;;  %v936_v2 = vpop.f32.mrb[64].mxu0 }
 0x30c   :  { %v938_v10 = vpop.f32.mrb[65].mxu0  ;;  %v10846_v27 = vpop.trf.xlu1  ;;  %v10853_v37 = vmul.f32 0.35355338, %v936_v2 }
 0x30d   :  { %17458 = vst [vmem:[#allocation105_spill] sm:$0xff] %v10846_v27  ;;  %v10848_v62 = vmul.f32 0.35355338, %v938_v10  ;;  %4401 = vxpose.xlu0.b32.start.end [1/1] (short) %v476_v49, 128 }
 0x30e   :  { %v1089_v0 = vmax.f32 %v1087_v39, %v10853_v37 }
 0x30f   :  { %17459 = vst [vmem:[#allocation106_spill] sm:$0xff] %v10848_v62  ;;  %v1126_v33 = vmax.f32 %v1124_v45, %v10848_v62  ;;  %v942_v21 = vpop.f32.mrb[66].mxu0 }
 0x310   :  { %v10855_v40 = vmul.f32 0.35355338, %v942_v21  ;;  %v944_v9 = vpop.f32.mrb[67].mxu0  ;;  %v10857_v44 = vpop.trf.xlu1 }
 0x311   :  { %17461 = vst [vmem:[#allocation108_spill] sm:$0xff] %v10857_v44  ;;  %v10859_v18 = vmul.f32 0.35355338, %v944_v9 }
 0x312   :  { %v1090_v7 = vmax.f32 %v1088_v52, %v10855_v40 }
 0x313   :  { %17462 = vst [vmem:[#allocation109_spill] sm:$0xff] %v10859_v18  ;;  %v1127_v10 = vmax.f32 %v1125_v63, %v10859_v18  ;;  %v10863_v27 = vpop.trf.xlu0  ;;  %v948_v49 = vpop.f32.mrb[68].mxu0 }
 0x314   :  { %17463 = vst [vmem:[#allocation110_spill] sm:$0xff] %v10863_v27  ;;  %v10866_v45 = vmul.f32 0.35355338, %v948_v49  ;;  %v950_v2 = vpop.f32.mrb[69].mxu0  ;;  %v10868_v21 = vpop.trf.xlu1 }
 0x315   :  { %17464 = vst [vmem:[#allocation111_spill] sm:$0xff] %v10868_v21 }
 0x316   :  { %v1091_v53 = vmax.f32 %v1089_v0, %v10866_v45 }
 0x317   :  { %v10871_v44 = vpop.trf.xlu0  ;;  %195 = vperm.xlu1 %9007, %v137_v26   ;;  %v954_v9 = vpop.f32.mrb[70].mxu0 }
 0x318   :  { %17465 = vst [vmem:[#allocation112_spill] sm:$0xff] %v10871_v44  ;;  %v10873_v52 = vmul.f32 0.35355338, %v954_v9  ;;  %v956_v63 = vpop.f32.mrb[71].mxu0  ;;  %v10875_v18 = vpop.trf.xlu1  ;;  %v10885_v44 = vmul.f32 0.35355338, %v950_v2 }
 0x319   :  { %17466 = vst [vmem:[#allocation113_spill] sm:$0xff] %v10875_v18  ;;  %v10897_v57 = vmul.f32 0.35355338, %v956_v63 }
 0x31a   :  { %v1092_v27 = vmax.f32 %v1090_v7, %v10873_v52  ;;  %17469 = vst [vmem:[#allocation116_spill] sm:$0xff] %v10885_v44 }
 0x31b   :  { %v10878_v39 = vpop.trf.xlu0  ;;  %v960_v49 = vpop.f32.mrb[72].mxu0  ;;  %17473 = vst [vmem:[#allocation120_spill] sm:$0xff] %v10897_v57 }
 0x31c   :  { %17467 = vst [vmem:[#allocation114_spill] sm:$0xff] %v10878_v39  ;;  %v10880_v62 = vmul.f32 0.35355338, %v960_v49  ;;  %v962_v11 = vpop.f32.mrb[73].mxu0  ;;  %v10882_v21 = vpop.trf.xlu1  ;;  %v1128_v39 = vmax.f32 %v1126_v33, %v10885_v44  ;;  %v1129_v33 = vmax.f32 %v1127_v10, %v10897_v57 }
 0x31d   :  { %17468 = vst [vmem:[#allocation115_spill] sm:$0xff] %v10882_v21  ;;  %v10893_v7 = vmul.f32 0.35355338, %v962_v11 }
 0x31e   :  { %v1093_v0 = vmax.f32 %v1091_v53, %v10880_v62 }
 0x31f   :  { %v10887_v26 = vpop.trf.xlu0  ;;  %v966_v9 = vpop.f32.mrb[74].mxu0  ;;  %17472 = vst [vmem:[#allocation119_spill] sm:$0xff] %v10893_v7 }
 0x320   :  { %17470 = vst [vmem:[#allocation117_spill] sm:$0xff] %v10887_v26  ;;  %v10889_v55 = vmul.f32 0.35355338, %v966_v9  ;;  %v968_v18 = vpop.f32.mrb[75].mxu0  ;;  %v10891_v38 = vpop.trf.xlu1  ;;  %v1130_v9 = vmax.f32 %v1128_v39, %v10893_v7 }
 0x321   :  { %17471 = vst [vmem:[#allocation118_spill] sm:$0xff] %v10891_v38  ;;  %v10906_v20 = vmul.f32 0.35355338, %v968_v18 }
 0x322   :  { %v1094_v49 = vmax.f32 %v1092_v27, %v10889_v55 }
 0x323   :  { %v10899_v21 = vpop.trf.xlu0  ;;  %v972_v53 = vpop.f32.mrb[76].mxu0  ;;  %17476 = vst [vmem:[#allocation123_spill] sm:$0xff] %v10906_v20  ;;  %v1131_v39 = vmax.f32 %v1129_v33, %v10906_v20 }
 0x324   :  { %17474 = vst [vmem:[#allocation121_spill] sm:$0xff] %v10899_v21  ;;  %v10901_v2 = vmul.f32 0.35355338, %v972_v53  ;;  %v974_v26 = vpop.f32.mrb[77].mxu0  ;;  %v10903_v8 = vpop.trf.xlu1 }
 0x325   :  { %17475 = vst [vmem:[#allocation122_spill] sm:$0xff] %v10903_v8  ;;  %v10908_v11 = vmul.f32 0.35355338, %v974_v26 }
 0x326   :  { %v1095_v27 = vmax.f32 %v1093_v0, %v10901_v2 }
 0x327   :  { %17477 = vst [vmem:[#allocation124_spill] sm:$0xff] %v10908_v11  ;;  %v1132_v63 = vmax.f32 %v1130_v9, %v10908_v11  ;;  %v10913_v38 = vpop.trf.xlu0  ;;  %v978_v21 = vpop.f32.mrb[78].mxu0 }
 0x328   :  { %17478 = vst [vmem:[#allocation125_spill] sm:$0xff] %v10913_v38  ;;  %v10915_v53 = vmul.f32 0.35355338, %v978_v21  ;;  %v980_v44 = vpop.f32.mrb[79].mxu0  ;;  %v10917_v19 = vpop.trf.xlu1 }
 0x329   :  { %17479 = vst [vmem:[#allocation126_spill] sm:$0xff] %v10917_v19  ;;  %v10920_v18 = vmul.f32 0.35355338, %v980_v44 }
 0x32a   :  { %v1096_v26 = vmax.f32 %v1094_v49, %v10915_v53 }
 0x32b   :  { %17480 = vst [vmem:[#allocation127_spill] sm:$0xff] %v10920_v18  ;;  %v1133_v0 = vmax.f32 %v1131_v39, %v10920_v18  ;;  %v10924_v8 = vpop.trf.xlu0  ;;  %v984_v10 = vpop.f32.mrb[80].mxu0 }
 0x32c   :  { %17481 = vst [vmem:[#allocation128_spill] sm:$0xff] %v10924_v8  ;;  %v10926_v9 = vmul.f32 0.35355338, %v984_v10  ;;  %v986_v38 = vpop.f32.mrb[81].mxu0  ;;  %v10928_v7 = vpop.trf.xlu1 }
 0x32d   :  { %17482 = vst [vmem:[#allocation129_spill] sm:$0xff] %v10928_v7  ;;  %v10930_v21 = vmul.f32 0.35355338, %v986_v38 }
 0x32e   :  { %v1097_v19 = vmax.f32 %v1095_v27, %v10926_v9 }
 0x32f   :  { %17483 = vst [vmem:[#allocation130_spill] sm:$0xff] %v10930_v21  ;;  %v1134_v33 = vmax.f32 %v1132_v63, %v10930_v21  ;;  %v10934_v44 = vpop.trf.xlu0  ;;  %v990_v20 = vpop.f32.mrb[82].mxu0 }
 0x330   :  { %17484 = vst [vmem:[#allocation131_spill] sm:$0xff] %v10934_v44  ;;  %v10936_v49 = vmul.f32 0.35355338, %v990_v20  ;;  %v992_v39 = vpop.f32.mrb[83].mxu0  ;;  %v10938_v57 = vpop.trf.xlu1 }
 0x331   :  { %17485 = vst [vmem:[#allocation132_spill] sm:$0xff] %v10938_v57  ;;  %v10940_v8 = vmul.f32 0.35355338, %v992_v39 }
 0x332   :  { %v1098_v10 = vmax.f32 %v1096_v26, %v10936_v49 }
 0x333   :  { %17486 = vst [vmem:[#allocation133_spill] sm:$0xff] %v10940_v8  ;;  %v1135_v7 = vmax.f32 %v1133_v0, %v10940_v8  ;;  %v10944_v38 = vpop.trf.xlu0  ;;  %v996_v18 = vpop.f32.mrb[84].mxu0 }
 0x334   :  { %17487 = vst [vmem:[#allocation134_spill] sm:$0xff] %v10944_v38  ;;  %v10946_v27 = vmul.f32 0.35355338, %v996_v18  ;;  %v998_v63 = vpop.f32.mrb[85].mxu0  ;;  %v10948_v21 = vpop.trf.xlu1 }
 0x335   :  { %17488 = vst [vmem:[#allocation135_spill] sm:$0xff] %v10948_v21  ;;  %v10950_v44 = vmul.f32 0.35355338, %v998_v63 }
 0x336   :  { %v1099_v20 = vmax.f32 %v1097_v19, %v10946_v27 }
 0x337   :  { %17489 = vst [vmem:[#allocation136_spill] sm:$0xff] %v10950_v44  ;;  %v1136_v57 = vmax.f32 %v1134_v33, %v10950_v44  ;;  %v10954_v39 = vpop.trf.xlu0  ;;  %v1002_v11 = vpop.f32.mrb[86].mxu0 }
 0x338   :  { %17490 = vst [vmem:[#allocation137_spill] sm:$0xff] %v10954_v39  ;;  %v10956_v26 = vmul.f32 0.35355338, %v1002_v11  ;;  %v1004_v0 = vpop.f32.mrb[87].mxu0  ;;  %v10958_v8 = vpop.trf.xlu1  ;;  %v478_v39 = vadd.f32 %v10501_v46, %v10465_v23 }
 0x339   :  { %17491 = vst [vmem:[#allocation138_spill] sm:$0xff] %v10958_v8  ;;  %v10960_v38 = vmul.f32 0.35355338, %v1004_v0 }
 0x33a   :  { %v1100_v18 = vmax.f32 %v1098_v10, %v10956_v26 }
 0x33b   :  { %17492 = vst [vmem:[#allocation139_spill] sm:$0xff] %v10960_v38  ;;  %v1137_v21 = vmax.f32 %v1135_v7, %v10960_v38  ;;  %v10964_v63 = vpop.trf.xlu0 }
 0x33c   :  { %17493 = vst [vmem:[#allocation140_spill] sm:$0xff] %v10964_v63  ;;  %v1101_v5 = vmax.f32 %v1099_v20, %v1100_v18  ;;  %v10966_v19 = vpop.trf.xlu1 }
 0x33d   :  { %17494 = vst [vmem:[#allocation141_spill] sm:$0xff] %v10966_v19  ;;  %v1138_v33 = vmax.f32 %v1136_v57, %v1137_v21 }
 0x33e   :  { %v1102_v11 = vrot.slane %v1101_v5, 4 }
 0x33f   :  { %v1139_v44 = vrot.slane %v1138_v33, 4  ;;  %v10970_v1 = vpop.trf.xlu0 }
 0x340   :  { %17495 = vst [vmem:[#allocation142_spill] sm:$0xff] %v10970_v1  ;;  %v1103_v8 = vmax.f32 %v1101_v5, %v1102_v11  ;;  %4433 = vxpose.xlu1.b32.start.end [1/1] (short) %v478_v39, 128  ;;  %v10972_v0 = vpop.trf.xlu1  ;;  %v482_v5 = vadd.f32 %v10506_v50, %v10504_v48 }
 0x341   :  { %17496 = vst [vmem:[#allocation143_spill] sm:$0xff] %v10972_v0  ;;  %v1140_v10 = vmax.f32 %v1138_v33, %v1139_v44 }
 0x342   :  { %v1104_v47 = vrot.slane %v1103_v8, 2 }
 0x343   :  { %v1141_v7 = vrot.slane %v1140_v10, 2  ;;  %v10974_v38 = vpop.trf.xlu0 }
 0x344   :  { %17497 = vst [vmem:[#allocation144_spill] sm:$0xff] %v10974_v38  ;;  %v1105_v20 = vmax.f32 %v1103_v8, %v1104_v47  ;;  %v10976_v18 = vpop.trf.xlu1  ;;  %v17523_v38 = vld [vmem:[#allocation109_spill] sm:$0xff] }
 0x345   :  { %17498 = vst [vmem:[#allocation145_spill] sm:$0xff] %v10976_v18  ;;  %v1142_v57 = vmax.f32 %v1140_v10, %v1141_v7 }
 0x346   :  { %v1106_v21 = vrot.slane %v1105_v20, 1 }
 0x347   :  { %v1143_v63 = vrot.slane %v1142_v57, 1  ;;  %v10978_v23 = vpop.trf.xlu0 }
 0x348   :  { %17499 = vst [vmem:[#allocation146_spill] sm:$0xff] %v10978_v23  ;;  %v10980_v46 = vmax.f32 %v1105_v20, %v1106_v21  ;;  %v10982_v1 = vpop.trf.xlu1  ;;  %v17522_v23 = vld [vmem:[#allocation106_spill] sm:$0xff] }
 0x349   :  { %17500 = vst [vmem:[#allocation147_spill] sm:$0xff] %v10982_v1  ;;  %v10986_v44 = vmax.f32 %v1142_v57, %v1143_v63 }
 0x34a   :  { %v1145_v39 = vsub.f32 %v10713_v54, %v10980_v46  ;;  %v1147_v47 = vsub.f32 %v10725_v28, %v10980_v46  ;;  %v1149_v8 = vsub.f32 %v10715_v58, %v10980_v46  ;;  %v1151_v33 = vsub.f32 %v10727_v35, %v10980_v46 }
 0x34b   :  { %v1153_v11 = vsub.f32 %v10737_v24, %v10980_v46  ;;  %v1155_v50 = vsub.f32 %v10744_v25, %v10980_v46  ;;  %v1157_v63 = vsub.f32 %v10750_v4, %v10980_v46  ;;  %v1159_v54 = vsub.f32 %v10756_v22, %v10980_v46  ;;  %v11004_v10 = vpop.trf.xlu0  ;;  %5305 = vxpose.xlu0.b32.start.end [1/1] (short) %v482_v5, 128 }
 0x34c   :  { %17501 = vst [vmem:[#allocation148_spill] sm:$0xff] %v11004_v10  ;;  %v1161_v58 = vsub.f32 %v10762_v43, %v10980_v46  ;;  %v1163_v28 = vsub.f32 %v10768_v56, %v10980_v46  ;;  %v1165_v24 = vsub.f32 %v10774_v59, %v10980_v46  ;;  %v1167_v25 = vsub.f32 %v10780_v17, %v10980_v46  ;;  %v11014_v35 = vpop.trf.xlu1 }
 0x34d   :  { %17502 = vst [vmem:[#allocation149_spill] sm:$0xff] %v11014_v35  ;;  %v1169_v4 = vsub.f32 %v10786_v51, %v10980_v46  ;;  %v1171_v22 = vsub.f32 %v10792_v14, %v10980_v46  ;;  %v1173_v43 = vsub.f32 %v10798_v3, %v10980_v46  ;;  %v1175_v56 = vsub.f32 %v10804_v12, %v10980_v46 }
 0x34e   :  { %v1177_v59 = vsub.f32 %v10812_v16, %v10980_v46  ;;  %v1179_v17 = vsub.f32 %v10818_v15, %v10980_v46  ;;  %v1181_v7 = vsub.f32 %v10826_v31, %v10980_v46  ;;  %v1183_v51 = vsub.f32 %v10834_v13, %v10980_v46 }
 0x34f   :  { %v11038_v20 = vpop.trf.xlu0  ;;  %v1209_v12 = vmul.f32 1.442695, %v1145_v39  ;;  %v1213_v3 = vmul.f32 1.442695, %v1147_v47  ;;  %v1217_v13 = vmul.f32 1.442695, %v1149_v8  ;;  %v1185_v8 = vsub.f32 %v10853_v37, %v10980_v46 }
 0x350   :  { %17503 = vst [vmem:[#allocation150_spill] sm:$0xff] %v11038_v20  ;;  %v11048_v57 = vpop.trf.xlu1  ;;  %v1221_v14 = vmul.f32 1.442695, %v1151_v33  ;;  %v1225_v5 = vmul.f32 1.442695, %v1153_v11  ;;  %v17536_v35 = vsub.f32 %v10880_v62, %v10980_v46  ;;  %v17537_v1 = vsub.f32 %v10889_v55, %v10980_v46 }
 0x351   :  { %17504 = vst [vmem:[#allocation151_spill] sm:$0xff] %v11048_v57  ;;  %9010 = vpow2.f32 %v1209_v12  ;;  %v1229_v15 = vmul.f32 1.442695, %v1155_v50  ;;  %v1233_v31 = vmul.f32 1.442695, %v1157_v63 }
 0x352   :  { %9012 = vpow2.f32 %v1213_v3  ;;  %v1237_v39 = vmul.f32 1.442695, %v1159_v54  ;;  %v1241_v33 = vmul.f32 1.442695, %v1161_v58  ;;  %v1245_v20 = vmul.f32 1.442695, %v1163_v28 }
 0x353   :  { %v11062_v21 = vpop.trf.xlu0  ;;  %9014 = vpow2.f32 %v1217_v13  ;;  %v1249_v16 = vmul.f32 1.442695, %v1165_v24  ;;  %v1253_v12 = vmul.f32 1.442695, %v1167_v25  ;;  %v1257_v11 = vmul.f32 1.442695, %v1169_v4 }
 0x354   :  { %17505 = vst [vmem:[#allocation152_spill] sm:$0xff] %v11062_v21  ;;  %v11064_v10 = vpop.trf.xlu1  ;;  %9016 = vpow2.f32 %v1221_v14  ;;  %v1261_v21 = vmul.f32 1.442695, %v1171_v22  ;;  %v1265_v3 = vmul.f32 1.442695, %v1173_v43  ;;  %v17517_v25 = vld [vmem:[#allocation95_spill] sm:$0xff]  ;;  %v17526_v28 = vsub.f32 %v10866_v45, %v10980_v46 }
 0x355   :  { %17506 = vst [vmem:[#allocation153_spill] sm:$0xff] %v11064_v10  ;;  %9018 = vpow2.f32 %v1225_v5  ;;  %v1269_v63 = vmul.f32 1.442695, %v1175_v56  ;;  %v1273_v54 = vmul.f32 1.442695, %v1177_v59  ;;  %v17514_v56 = vld [vmem:[#allocation93_spill] sm:$0xff] }
 0x356   :  { %9020 = vpow2.f32 %v1229_v15  ;;  %v1277_v14 = vmul.f32 1.442695, %v1179_v17  ;;  %v1281_v37 = vmul.f32 1.442695, %v1181_v7  ;;  %v1285_v5 = vmul.f32 1.442695, %v1183_v51 }
 0x357   :  { %v11066_v47 = vpop.trf.xlu0  ;;  %9022 = vpow2.f32 %v1233_v31  ;;  %v17510_v7 = vld [vmem:[#allocation90_spill] sm:$0xff]  ;;  %v17518_v24 = vld [vmem:[#allocation97_spill] sm:$0xff]  ;;  %v17519_v17 = vld [vmem:[#allocation99_spill] sm:$0xff] }
 0x358   :  { %17507 = vst [vmem:[#allocation154_spill] sm:$0xff] %v11066_v47  ;;  %v11070_v50 = vpop.trf.xlu1  ;;  %9024 = vpow2.f32 %v1237_v39  ;;  %v17516_v15 = vld [vmem:[#allocation94_spill] sm:$0xff]  ;;  %v17521_v22 = vld [vmem:[#allocation104_spill] sm:$0xff] }
 0x359   :  { %17508 = vst [vmem:[#allocation155_spill] sm:$0xff] %v11070_v50  ;;  %9026 = vpow2.f32 %v1241_v33  ;;  %v17513_v33 = vld [vmem:[#allocation92_spill] sm:$0xff] }
 0x35a   :  { %9028 = vpow2.f32 %v1245_v20  ;;  %v17511_v20 = vld [vmem:[#allocation91_spill] sm:$0xff] }
 0x35b   :  { %v11072_v13 = vpop.trf.xlu0  ;;  %v11082_v4 = vpop.eup %9010  ;;  %9030 = vpow2.f32 %v1249_v16 }
 0x35c   :  { %17509 = vst [vmem:[#allocation156_spill] sm:$0xff] %v11072_v13  ;;  %v11090_v59 = vpop.eup %9012  ;;  %9032 = vpow2.f32 %v1253_v12  ;;  %v11108_v43 = vpop.trf.xlu1  ;;  %v17520_v13 = vld [vmem:[#allocation101_spill] sm:$0xff] }
 0x35d   :  { %v11100_v16 = vpop.eup %9014  ;;  %9034 = vpow2.f32 %v1257_v11  ;;  %v1337_v39 = vadd.f32 %v11090_v59, %v11082_v4  ;;  %17515 = vst [vmem:[#allocation91_spill] sm:$0xff] %v11108_v43  ;;  %v1297_v11 = vmul.f32 1.442695, %v17526_v28 }
 0x35e   :  { %v11110_v51 = vpop.eup %9016  ;;  %9036 = vpow2.f32 %v1261_v21  ;;  %v17525_v21 = vsub.f32 %v10855_v40, %v10980_v46 }
 0x35f   :  { %v11098_v31 = vpop.trf.xlu0  ;;  %v11118_v58 = vpop.eup %9018  ;;  %9038 = vpow2.f32 %v1265_v3  ;;  %v1338_v12 = vadd.f32 %v11100_v16, %v1337_v39  ;;  %v17527_v3 = vsub.f32 %v10873_v52, %v10980_v46  ;;  %v17532_v52 = vld [vmem:[#allocation133_spill] sm:$0xff] }
 0x360   :  { %17512 = vst [vmem:[#allocation90_spill] sm:$0xff] %v11098_v31  ;;  %v11125_v47 = vpop.eup %9020  ;;  %9040 = vpow2.f32 %v1269_v63  ;;  %v1289_v31 = vmul.f32 1.442695, %v1185_v8  ;;  %v1293_v50 = vmul.f32 1.442695, %v17525_v21  ;;  %v11158_v45 = vpop.trf.xlu1  ;;  %v17533_v8 = vld [vmem:[#allocation136_spill] sm:$0xff] }
 0x361   :  { %v11135_v39 = vpop.eup %9022  ;;  %9042 = vpow2.f32 %v1273_v54  ;;  %v1339_v63 = vadd.f32 %v11110_v51, %v1338_v12  ;;  %v17528_v54 = vld [vmem:[#allocation124_spill] sm:$0xff]  ;;  %v17529_v12 = vld [vmem:[#allocation127_spill] sm:$0xff]  ;;  %17531 = vst [vmem:[#allocation93_spill] sm:$0xff] %v11158_v45  ;;  %v1305_v45 = vmul.f32 1.442695, %v17536_v35  ;;  %v17539_v35 = vsub.f32 %v10915_v53, %v10980_v46 }
 0x362   :  { %v11141_v10 = vpop.eup %9024  ;;  %9044 = vpow2.f32 %v1277_v14  ;;  %v17530_v14 = vld [vmem:[#allocation130_spill] sm:$0xff]  ;;  %v17543_v53 = vsub.f32 %v10936_v49, %v10980_v46 }
 0x363   :  { %v11133_v43 = vpop.trf.xlu0  ;;  %v11151_v57 = vpop.eup %9026  ;;  %9046 = vpow2.f32 %v1281_v37  ;;  %v1340_v40 = vadd.f32 %v11118_v58, %v1339_v63  ;;  %v17534_v37 = vld [vmem:[#allocation139_spill] sm:$0xff]  ;;  %v17538_v63 = vsub.f32 %v10901_v2, %v10980_v46 }
 0x364   :  { %17524 = vst [vmem:[#allocation92_spill] sm:$0xff] %v11133_v43  ;;  %v1301_v43 = vmul.f32 1.442695, %v17527_v3  ;;  %v11160_v28 = vpop.eup %9028  ;;  %9048 = vpow2.f32 %v1285_v5  ;;  %v1309_v3 = vmul.f32 1.442695, %v17537_v1  ;;  %v17541_v1 = vsub.f32 %v10926_v9, %v10980_v46 }
 0x365   :  { %v11170_v21 = vpop.eup %9030  ;;  %9050 = vpow2.f32 %v1289_v31  ;;  %v1341_v5 = vadd.f32 %v11125_v47, %v1340_v40  ;;  %v1313_v31 = vmul.f32 1.442695, %v17538_v63  ;;  %v11200_v63 = vpop.trf.xlu1 }
 0x366   :  { %v11176_v0 = vpop.eup %9032  ;;  %9052 = vpow2.f32 %v1293_v50  ;;  %v1317_v50 = vmul.f32 1.442695, %v17539_v35  ;;  %17542 = vst [vmem:[#allocation97_spill] sm:$0xff] %v11200_v63 }
 0x367   :  { %v11168_v18 = vpop.trf.xlu0  ;;  %v11181_v19 = vpop.eup %9034  ;;  %9054 = vpow2.f32 %v1297_v11  ;;  %v1321_v11 = vmul.f32 1.442695, %v17541_v1 }
 0x368   :  { %17535 = vst [vmem:[#allocation94_spill] sm:$0xff] %v11168_v18  ;;  %v1342_v18 = vadd.f32 %v11135_v39, %v1341_v5  ;;  %v11187_v62 = vpop.eup %9036  ;;  %9056 = vpow2.f32 %v1301_v43  ;;  %v1325_v43 = vmul.f32 1.442695, %v17543_v53 }
 0x369   :  { %v11194_v55 = vpop.eup %9038  ;;  %9058 = vpow2.f32 %v1305_v45  ;;  %v17544_v45 = vsub.f32 %v10946_v27, %v10980_v46  ;;  %v17547_v27 = vsub.f32 %v10717_v6, %v10986_v44  ;;  %v17550_v6 = vsub.f32 %v10731_v41, %v10986_v44 }
 0x36a   :  { %v1343_v2 = vadd.f32 %v11141_v10, %v1342_v18  ;;  %v11202_v5 = vpop.eup %9040  ;;  %9060 = vpow2.f32 %v1309_v3  ;;  %v17545_v18 = vsub.f32 %v10956_v26, %v10980_v46  ;;  %v17549_v26 = vsub.f32 %v10719_v61, %v10986_v44 }
 0x36b   :  { %v11192_v40 = vpop.trf.xlu0  ;;  %v11207_v35 = vpop.eup %9042  ;;  %9062 = vpow2.f32 %v1313_v31  ;;  %v1211_v53 = vmul.f32 1.442695, %v17547_v27  ;;  %v17553_v61 = vsub.f32 %v10746_v36, %v10986_v44  ;;  %v17555_v41 = vsub.f32 %v10758_v32, %v10986_v44 }
 0x36c   :  { %17540 = vst [vmem:[#allocation95_spill] sm:$0xff] %v11192_v40  ;;  %v1329_v40 = vmul.f32 1.442695, %v17544_v45  ;;  %v1344_v9 = vadd.f32 %v11151_v57, %v1343_v2  ;;  %v11213_v1 = vpop.eup %9044  ;;  %9064 = vpow2.f32 %v1317_v50  ;;  %v1333_v3 = vmul.f32 1.442695, %v17545_v18 }
 0x36d   :  { %v11220_v49 = vpop.eup %9046  ;;  %9066 = vpow2.f32 %v1321_v11  ;;  %v17548_v50 = vsub.f32 %v10729_v29, %v10986_v44  ;;  %v1219_v46 = vmul.f32 1.442695, %v17549_v26  ;;  %v1239_v26 = vmul.f32 1.442695, %v17555_v41 }
 0x36e   :  { %v1345_v31 = vadd.f32 %v11160_v28, %v1344_v9  ;;  %v11226_v45 = vpop.eup %9048  ;;  %9068 = vpow2.f32 %v1325_v43  ;;  %v1223_v9 = vmul.f32 1.442695, %v17550_v6  ;;  %v17551_v43 = vsub.f32 %v10739_v34, %v10986_v44 }
 0x36f   :  { %v11218_v63 = vpop.trf.xlu0  ;;  %v1215_v2 = vmul.f32 1.442695, %v17548_v50  ;;  %v11234_v18 = vpop.eup %9050  ;;  %9070 = vpow2.f32 %v1329_v40  ;;  %v1231_v50 = vmul.f32 1.442695, %v17553_v61  ;;  %v17554_v40 = vsub.f32 %v10752_v60, %v10986_v44 }
 0x370   :  { %17546 = vst [vmem:[#allocation99_spill] sm:$0xff] %v11218_v63  ;;  %v1346_v11 = vadd.f32 %v11170_v21, %v1345_v31  ;;  %v1227_v27 = vmul.f32 1.442695, %v17551_v43  ;;  %v11243_v63 = vpop.trf.xlu1  ;;  %v11245_v29 = vpop.eup %9052  ;;  %9072 = vpow2.f32 %v1333_v3  ;;  %v17557_v3 = vsub.f32 %v10764_v42, %v10986_v44 }
 0x371   :  { %17552 = vst [vmem:[#allocation101_spill] sm:$0xff] %v11243_v63  ;;  %v1235_v31 = vmul.f32 1.442695, %v17554_v40  ;;  %v11258_v34 = vpop.eup %9054  ;;  %9074 = vpow2.f32 %v1211_v53  ;;  %v17558_v61 = vsub.f32 %v10770_v30, %v10986_v44  ;;  %v17562_v53 = vld [vmem:[#allocation39_spill] sm:$0xff] }
 0x372   :  { %v1347_v43 = vadd.f32 %v11176_v0, %v1346_v11  ;;  %v1243_v36 = vmul.f32 1.442695, %v17557_v3  ;;  %v11267_v40 = vpop.eup %9056  ;;  %9076 = vpow2.f32 %v1215_v2 }
 0x373   :  { %v11256_v6 = vpop.trf.xlu0  ;;  %v1247_v60 = vmul.f32 1.442695, %v17558_v61  ;;  %v11275_v11 = vpop.eup %9058  ;;  %9078 = vpow2.f32 %v1219_v46  ;;  %v484_v46 = vadd.f32 %v17562_v53, %v10504_v48 }
 0x374   :  { %17556 = vst [vmem:[#allocation104_spill] sm:$0xff] %v11256_v6  ;;  %v1348_v42 = vadd.f32 %v11181_v19, %v1347_v43  ;;  %v11282_v3 = vpop.eup %9060  ;;  %9080 = vpow2.f32 %v1223_v9  ;;  %v11299_v61 = vpop.trf.xlu1  ;;  %v17561_v9 = vsub.f32 %v17510_v7, %v10986_v44 }
 0x375   :  { %v11292_v43 = vpop.eup %9062  ;;  %9082 = vpow2.f32 %v1227_v27  ;;  %17560 = vst [vmem:[#allocation109_spill] sm:$0xff] %v11299_v61  ;;  %v17563_v27 = vsub.f32 %v17511_v20, %v10986_v44  ;;  %v17566_v20 = vsub.f32 %v17514_v56, %v10986_v44  ;;  %v17569_v56 = vsub.f32 %v17517_v25, %v10986_v44 }
 0x376   :  { %v1349_v30 = vadd.f32 %v11187_v62, %v1348_v42  ;;  %v11301_v32 = vpop.eup %9064  ;;  %9084 = vpow2.f32 %v1231_v50  ;;  %v17573_v25 = vsub.f32 %v17520_v13, %v10986_v44  ;;  %v17576_v13 = vpack.c.bf16 %v11090_v59, %v11082_v4 }
 0x377   :  { %v11288_v41 = vpop.trf.xlu0  ;;  %v11309_v42 = vpop.eup %9066  ;;  %9086 = vpow2.f32 %v1235_v31  ;;  %v1255_v61 = vmul.f32 1.442695, %v17563_v27 }
 0x378   :  { %17559 = vst [vmem:[#allocation106_spill] sm:$0xff] %v11288_v41  ;;  %v1350_v2 = vadd.f32 %v11194_v55, %v1349_v30  ;;  %v1251_v41 = vmul.f32 1.442695, %v17561_v9  ;;  %v11317_v6 = vpop.eup %9068  ;;  %9088 = vpow2.f32 %v1239_v26  ;;  %v17565_v30 = vsub.f32 %v17513_v33, %v10986_v44 }
 0x379   :  { %v11326_v31 = vpop.eup %9070  ;;  %9090 = vpow2.f32 %v1243_v36  ;;  %v1263_v26 = vmul.f32 1.442695, %v17566_v20  ;;  %v17567_v36 = vsub.f32 %v17516_v15, %v10986_v44 }
 0x37a   :  { %v1351_v7 = vadd.f32 %v11202_v5, %v1350_v2  ;;  %v1259_v9 = vmul.f32 1.442695, %v17565_v30  ;;  %v11334_v48 = vpop.eup %9072  ;;  %9092 = vpow2.f32 %v1247_v60  ;;  %v11343_v2 = vpop.trf.xlu1  ;;  %v1271_v60 = vmul.f32 1.442695, %v17569_v56 }
 0x37b   :  { %v11324_v63 = vpop.trf.xlu0  ;;  %v9075_v53 = vpop.eup %9074  ;;  %9094 = vpow2.f32 %v1251_v41  ;;  %v1267_v33 = vmul.f32 1.442695, %v17567_v36  ;;  %17568 = vst [vmem:[#allocation127_spill] sm:$0xff] %v11343_v2  ;;  %v1283_v56 = vmul.f32 1.442695, %v17573_v25 }
 0x37c   :  { %17564 = vst [vmem:[#allocation124_spill] sm:$0xff] %v11324_v63  ;;  %v1352_v27 = vadd.f32 %v11207_v35, %v1351_v7  ;;  %v9077_v50 = vpop.eup %9076  ;;  %9096 = vpow2.f32 %v1255_v61  ;;  %v17572_v61 = vsub.f32 %v17519_v17, %v10986_v44  ;;  %v17575_v17 = vsub.f32 %v17522_v23, %v10986_v44 }
 0x37d   :  { %5337 = vxpose.xlu1.b32.start.end [1/1] (short) %v484_v46, 128  ;;  %v17570_v46 = vsub.f32 %v17518_v24, %v10986_v44  ;;  %v9079_v20 = vpop.eup %9078  ;;  %9098 = vpow2.f32 %v1259_v9  ;;  %v1374_v36 = vadd.f32 %v9077_v50, %v9075_v53  ;;  %v8466_v63 = vpack.c.bf16 %v9077_v50, %v9075_v53 }
 0x37e   :  { %v1353_v15 = vadd.f32 %v11213_v1, %v1352_v27  ;;  %v9081_v2 = vpop.eup %9080  ;;  %9100 = vpow2.f32 %v1263_v26  ;;  %v1279_v30 = vmul.f32 1.442695, %v17572_v61  ;;  %v17574_v50 = vsub.f32 %v17521_v22, %v10986_v44 }
 0x37f   :  { %v1275_v7 = vmul.f32 1.442695, %v17570_v46  ;;  %v11353_v41 = vpop.trf.xlu0  ;;  %v9083_v24 = vpop.eup %9082  ;;  %9102 = vpow2.f32 %v1267_v33  ;;  %8467 = vmatprep.subr.bf16.mxu1 %v8466_v63  ;;  %v8470_v27 = vpack.c.bf16 %v9081_v2, %v9079_v20  ;;  %v1291_v53 = vmul.f32 1.442695, %v17575_v17 }
 0x380   :  { %17571 = vst [vmem:[#allocation130_spill] sm:$0xff] %v11353_v41  ;;  %v1354_v46 = vadd.f32 %v11220_v49, %v1353_v15  ;;  %v1375_v41 = vadd.f32 %v9079_v20, %v1374_v36  ;;  %v9085_v9 = vpop.eup %9084  ;;  %9104 = vpow2.f32 %v1271_v60  ;;  %v1287_v26 = vmul.f32 1.442695, %v17574_v50  ;;  %8469 = vmatpush1.bf16.msra.mxu1 %v17576_v13  ;;  %v11375_v15 = vpop.trf.xlu1 }
 0x381   :  { %v9087_v33 = vpop.eup %9086  ;;  %9106 = vpow2.f32 %v1275_v7  ;;  %8471 = vmatprep.subr.bf16.mxu1 %v8470_v27  ;;  %v8474_v60 = vpack.c.bf16 %v9085_v9, %v9083_v24  ;;  %17578 = vst [vmem:[#allocation136_spill] sm:$0xff] %v11375_v15  ;;  %v17579_v23 = vsub.f32 %v17523_v38, %v10986_v44 }
 0x382   :  { %v1355_v63 = vadd.f32 %v11226_v45, %v1354_v46  ;;  %v1376_v20 = vadd.f32 %v9081_v2, %v1375_v41  ;;  %v9089_v22 = vpop.eup %9088  ;;  %9108 = vpow2.f32 %v1279_v30  ;;  %v17580_v2 = vpack.c.bf16 %v11110_v51, %v11100_v16 }
 0x383   :  { %v11372_v61 = vpop.trf.xlu0  ;;  %v1295_v36 = vmul.f32 1.442695, %v17579_v23  ;;  %v9091_v25 = vpop.eup %9090  ;;  %9110 = vpow2.f32 %v1283_v56  ;;  %v8478_v50 = vpack.c.bf16 %v9089_v22, %v9087_v33 }
 0x384   :  { %17577 = vst [vmem:[#allocation133_spill] sm:$0xff] %v11372_v61  ;;  %v1356_v4 = vadd.f32 %v11234_v18, %v1355_v63  ;;  %v1377_v59 = vadd.f32 %v9083_v24, %v1376_v20  ;;  %v9093_v17 = vpop.eup %9092  ;;  %9112 = vpow2.f32 %v1287_v26  ;;  %8473 = vmatpush1.bf16.msra.mxu1 %v17580_v2  ;;  %v17582_v26 = vsub.f32 %v17528_v54, %v10986_v44  ;;  %v11393_v63 = vpop.trf.xlu1 }
 0x385   :  { %v9095_v41 = vpop.eup %9094  ;;  %9114 = vpow2.f32 %v1291_v53  ;;  %8475 = vmatprep.subr.bf16.mxu1 %v8474_v60  ;;  %v8482_v46 = vpack.c.bf16 %v9093_v17, %v9091_v25  ;;  %17583 = vst [vmem:[#allocation39_spill] sm:$0xff] %v11393_v63  ;;  %v17585_v60 = vpack.c.bf16 %v11125_v47, %v11118_v58  ;;  %v17589_v47 = vsub.f32 %v17532_v52, %v10986_v44 }
 0x386   :  { %v1357_v30 = vadd.f32 %v11245_v29, %v1356_v4  ;;  %v1378_v38 = vadd.f32 %v9085_v9, %v1377_v59  ;;  %v9097_v27 = vpop.eup %9096  ;;  %9116 = vpow2.f32 %v1295_v36  ;;  %v1315_v51 = vmul.f32 1.442695, %v17582_v26  ;;  %v17587_v36 = vld [vmem:[#allocation81_spill] sm:$0xff] }
 0x387   :  { %v11384_v7 = vpop.trf.xlu0  ;;  %v11387_v56 = vpop.eup %9098  ;;  %v8486_v13 = vpack.c.bf16 %v9097_v27, %v9095_v41  ;;  %v17584_v9 = vsub.f32 %v17529_v12, %v10986_v44  ;;  %v1327_v58 = vmul.f32 1.442695, %v17589_v47  ;;  %v17591_v52 = vsub.f32 %v17534_v37, %v10986_v44 }
 0x388   :  { %17581 = vst [vmem:[#allocation139_spill] sm:$0xff] %v11384_v7  ;;  %v1358_v24 = vadd.f32 %v11258_v34, %v1357_v30  ;;  %v1379_v16 = vadd.f32 %v9087_v33, %v1378_v38  ;;  %v9101_v20 = vpop.eup %9100  ;;  %8477 = vmatpush1.bf16.msra.mxu1 %v17585_v60  ;;  %v17588_v33 = vsub.f32 %v17530_v14, %v10986_v44  ;;  %9118 = vpow2.f32 %v1315_v51 }
 0x389   :  { %v1319_v53 = vmul.f32 1.442695, %v17584_v9  ;;  %v11404_v4 = vpop.eup %9102  ;;  %8479 = vmatprep.subr.bf16.mxu1 %v8478_v50  ;;  %v8490_v12 = vpack.c.bf16 %v9101_v20, %v11387_v56  ;;  %v17590_v38 = vsub.f32 %v17533_v8, %v10986_v44  ;;  %v17592_v8 = vpack.c.bf16 %v11141_v10, %v11135_v39 }
 0x38a   :  { %v1359_v54 = vadd.f32 %v11267_v40, %v1358_v24  ;;  %v1323_v59 = vmul.f32 1.442695, %v17588_v33  ;;  %v1380_v2 = vadd.f32 %v9089_v22, %v1379_v16  ;;  %v11411_v30 = vpop.eup %9104  ;;  %v1335_v16 = vmul.f32 1.442695, %v17591_v52 }
 0x38b   :  { %v11401_v23 = vpop.trf.xlu0  ;;  %6209 = vxpose.xlu0.b32.start.end [1/1] (short) %v17587_v36, 128  ;;  %v1331_v26 = vmul.f32 1.442695, %v17590_v38  ;;  %v11419_v9 = vpop.eup %9106  ;;  %v8494_v22 = vpack.c.bf16 %v11411_v30, %v11404_v4  ;;  %9120 = vpow2.f32 %v1319_v53 }
 0x38c   :  { %17586 = vst [vmem:[#allocation157_spill] sm:$0xff] %v11401_v23  ;;  %v1360_v24 = vadd.f32 %v11275_v11, %v1359_v54  ;;  %v1381_v14 = vadd.f32 %v9091_v25, %v1380_v2  ;;  %v11424_v50 = vpop.eup %9108  ;;  %8481 = vmatpush1.bf16.msra.mxu1 %v17592_v8  ;;  %9122 = vpow2.f32 %v1323_v59  ;;  %v11439_v54 = vpop.trf.xlu1 }
 0x38d   :  { %v11434_v36 = vpop.eup %9110  ;;  %8483 = vmatprep.subr.bf16.mxu1 %v8482_v46  ;;  %v8498_v53 = vpack.c.bf16 %v11424_v50, %v11419_v9  ;;  %17594 = vst [vmem:[#allocation158_spill] sm:$0xff] %v11439_v54  ;;  %9124 = vpow2.f32 %v1327_v58  ;;  %v17597_v58 = vld [vmem:[#allocation116_spill] sm:$0xff] }
 0x38e   :  { %v1361_v25 = vadd.f32 %v11282_v3, %v1360_v24  ;;  %v1382_v51 = vadd.f32 %v9093_v17, %v1381_v14  ;;  %v9113_v37 = vpop.eup %9112  ;;  %9126 = vpow2.f32 %v1331_v26  ;;  %v17595_v17 = vpack.c.bf16 %v11160_v28, %v11151_v57  ;;  %v17599_v28 = vld [vmem:[#allocation119_spill] sm:$0xff] }
 0x38f   :  { %v11432_v60 = vpop.trf.xlu0  ;;  %v11441_v33 = vpop.eup %9114  ;;  %v8502_v2 = vpack.c.bf16 %v9113_v37, %v11434_v36  ;;  %9128 = vpow2.f32 %v1335_v16  ;;  %v1190_v38 = vsub.f32 %v17597_v58, %v10986_v44  ;;  %v1194_v8 = vsub.f32 %v17599_v28, %v10986_v44 }
 0x390   :  { %17593 = vst [vmem:[#allocation81_spill] sm:$0xff] %v11432_v60  ;;  %v1362_v10 = vadd.f32 %v11292_v43, %v1361_v25  ;;  %v1383_v39 = vadd.f32 %v9095_v41, %v1382_v51  ;;  %v9117_v47 = vpop.eup %9116  ;;  %8485 = vmatpush1.bf16.msra.mxu1 %v17595_v17  ;;  %v17598_v41 = vld [vmem:[#allocation120_spill] sm:$0xff]  ;;  %v17600_v25 = vpack.c.bf16 %v11176_v0, %v11170_v21  ;;  %v17606_v0 = vld [vmem:[#allocation123_spill] sm:$0xff] }
 0x391   :  { %8487 = vmatprep.subr.bf16.mxu1 %v8486_v13  ;;  %v8506_v26 = vpack.c.bf16 %v9117_v47, %v11441_v33  ;;  %v1192_v14 = vsub.f32 %v17598_v41, %v10986_v44  ;;  %v1196_v21 = vsub.f32 %v17606_v0, %v10986_v44 }
 0x392   :  { %v1363_v59 = vadd.f32 %v11301_v32, %v1362_v10  ;;  %v1384_v24 = vadd.f32 %v9097_v27, %v1383_v39  ;;  %v17601_v27 = vld [vmem:[#allocation61_spill] sm:$0xff]  ;;  %v17604_v10 = vld [vmem:[#allocation62_spill] sm:$0xff] }
 0x393   :  { %v11448_v46 = vpop.trf.xlu0  ;;  %v1303_v41 = vmul.f32 1.442695, %v1192_v14 }
 0x394   :  { %17596 = vst [vmem:[#allocation159_spill] sm:$0xff] %v11448_v46  ;;  %v1364_v52 = vadd.f32 %v11309_v42, %v1363_v59  ;;  %v1385_v16 = vadd.f32 %v11387_v56, %v1384_v24  ;;  %8489 = vmatpush1.bf16.msra.mxu1 %v17600_v25  ;;  %v11475_v56 = vpop.eup %9118  ;;  %v1299_v59 = vmul.f32 1.442695, %v1190_v38  ;;  %v1307_v46 = vmul.f32 1.442695, %v1194_v8 }
 0x395   :  { %8491 = vmatprep.subr.bf16.mxu1 %v8490_v12  ;;  %v9121_v24 = vpop.eup %9120 }
 0x396   :  { %v11458_v57 = vpop.permute.xlu1 %195  ;;  %v1365_v17 = vadd.f32 %v11317_v6, %v1364_v52  ;;  %v1386_v58 = vadd.f32 %v9101_v20, %v1385_v16  ;;  %v9123_v28 = vpop.eup %9122  ;;  %v17607_v52 = vpack.c.bf16 %v11187_v62, %v11181_v19  ;;  %9130 = vpow2.f32 %v1299_v59 }
 0x397   :  { %v11467_v13 = vadd.f32 %v17601_v27, %v11458_v57  ;;  %v11469_v51 = vpop.trf.xlu0  ;;  %v11473_v39 = vadd.f32 %v17604_v10, %v11458_v57  ;;  %v8518_v10 = vpack.c.bf16 %v9121_v24, %v11475_v56  ;;  %9132 = vpow2.f32 %v1303_v41 }
 0x398   :  { %17603 = vst [vmem:[#allocation120_spill] sm:$0xff] %v11469_v51  ;;  %v1366_v25 = vadd.f32 %v11326_v31, %v1365_v17  ;;  %v1387_v27 = vadd.f32 %v11404_v4, %v1386_v58  ;;  %v9125_v51 = vpop.eup %9124  ;;  %8493 = vmatpush1.bf16.msra.mxu1 %v17607_v52  ;;  %v1311_v16 = vmul.f32 1.442695, %v1196_v21  ;;  %v17609_v19 = vpack.c.bf16 %v11202_v5, %v11194_v55 }
 0x399   :  { %17602 = vst [vmem:[#allocation116_spill] sm:$0xff] %v11467_v13  ;;  %17605 = vst [vmem:[#allocation119_spill] sm:$0xff] %v11473_v39  ;;  %v9127_v12 = vpop.eup %9126  ;;  %8495 = vmatprep.subr.bf16.mxu1 %v8494_v22  ;;  %v8522_v14 = vpack.c.bf16 %v9125_v51, %v9123_v28  ;;  %9134 = vpow2.f32 %v1307_v46  ;;  %v17611_v22 = vpack.c.bf16 %v11213_v1, %v11207_v35 }
 0x39a   :  { %v11489_v38 = vadd.f32 %v11334_v48, %v1366_v25  ;;  %v1388_v44 = vadd.f32 %v11411_v30, %v1387_v27  ;;  %v9129_v4 = vpop.eup %9128  ;;  %9136 = vpow2.f32 %v1311_v16  ;;  %v17613_v46 = vpack.c.bf16 %v11226_v45, %v11220_v49 }
 0x39b   :  { %v11486_v20 = vpop.trf.xlu0  ;;  %v8526_v17 = vpack.c.bf16 %v9129_v4, %v9127_v12  ;;  %v17617_v49 = vpack.c.bf16 %v11267_v40, %v11258_v34 }
 0x39c   :  { %17608 = vst [vmem:[#allocation61_spill] sm:$0xff] %v11486_v20  ;;  %v1389_v8 = vadd.f32 %v11419_v9, %v1388_v44  ;;  %8497 = vmatpush1.bf16.msra.mxu1 %v17609_v19  ;;  %v17621_v44 = vpack.c.bf16 %v11301_v32, %v11292_v43  ;;  %v17628_v43 = vpack.c.bf16 %v11334_v48, %v11326_v31  ;;  %v17637_v31 = vld [vmem:[#allocation45_spill] sm:$0xff] }
 0x39d   :  { %8499 = vmatprep.subr.bf16.mxu1 %v8498_v53 }
 0x39e   :  { %v1390_v58 = vadd.f32 %v11424_v50, %v1389_v8  ;;  %v17623_v8 = vld [vmem:[#allocation82_spill] sm:$0xff] }
 0x39f   :  { %v11496_v62 = vpop.trf.xlu0 }
 0x3a0   :  { %17610 = vst [vmem:[#allocation62_spill] sm:$0xff] %v11496_v62  ;;  %v1391_v30 = vadd.f32 %v11434_v36, %v1390_v58  ;;  %8501 = vmatpush1.bf16.msra.mxu1 %v17611_v22  ;;  %v9131_v0 = vpop.eup %9130  ;;  %v17640_v22 = vld [vmem:[#allocation46_spill] sm:$0xff] }
 0x3a1   :  { %8503 = vmatprep.subr.bf16.mxu1 %v8502_v2  ;;  %v9133_v5 = vpop.eup %9132 }
 0x3a2   :  { %v1392_v9 = vadd.f32 %v9113_v37, %v1391_v30  ;;  %v8510_v35 = vpack.c.bf16 %v9133_v5, %v9131_v0  ;;  %v17615_v37 = vpack.c.bf16 %v11245_v29, %v11234_v18  ;;  %v17619_v18 = vpack.c.bf16 %v11282_v3, %v11275_v11 }
 0x3a3   :  { %v11503_v59 = vpop.trf.xlu0  ;;  %v9135_v36 = vpop.eup %9134  ;;  %v17624_v11 = vpack.c.bf16 %v11317_v6, %v11309_v42  ;;  %v17633_v42 = vld [vmem:[#allocation27_spill] sm:$0xff] }
 0x3a4   :  { %17612 = vst [vmem:[#allocation123_spill] sm:$0xff] %v11503_v59  ;;  %v1393_v55 = vadd.f32 %v11441_v33, %v1392_v9  ;;  %8505 = vmatpush1.bf16.msra.mxu1 %v17613_v46  ;;  %v9137_v1 = vpop.eup %9136 }
 0x3a5   :  { %8507 = vmatprep.subr.bf16.mxu1 %v8506_v26  ;;  %v8514_v25 = vpack.c.bf16 %v9137_v1, %v9135_v36 }
 0x3a6   :  { %v1394_v53 = vadd.f32 %v9117_v47, %v1393_v55 }
 0x3a7   :  { %v11509_v50 = vpop.trf.xlu0 }
 0x3a8   :  { %17614 = vst [vmem:[#allocation160_spill] sm:$0xff] %v11509_v50  ;;  %v1395_v21 = vadd.f32 %v9131_v0, %v1394_v53  ;;  %8509 = vmatpush1.bf16.msra.mxu1 %v17615_v37  ;;  %v17642_v0 = vld [vmem:[#allocation87_spill] sm:$0xff]  ;;  %v17646_v53 = vld [vmem:[#allocation48_spill] sm:$0xff]  ;;  %v17649_v37 = vld [vmem:[#allocation49_spill] sm:$0xff] }
 0x3a9   :  { %8511 = vmatprep.subr.bf16.mxu1 %v8510_v35 }
 0x3aa   :  { %v1396_v33 = vadd.f32 %v9133_v5, %v1395_v21  ;;  %v17644_v5 = vld [vmem:[#allocation47_spill] sm:$0xff]  ;;  %v517_v21 = vpop.f32.mrb[22].mxu1 }
 0x3ab   :  { %v11514_v2 = vpop.trf.xlu0  ;;  %v11584_v35 = vadd.f32 %v517_v21, %v11458_v57  ;;  %v17677_v21 = vld [vmem:[#allocation72_spill] sm:$0xff] }
 0x3ac   :  { %17616 = vst [vmem:[#allocation161_spill] sm:$0xff] %v11514_v2  ;;  %v1397_v41 = vadd.f32 %v9135_v36, %v1396_v33  ;;  %8513 = vmatpush1.bf16.msra.mxu1 %v17617_v49 }
 0x3ad   :  { %8515 = vmatprep.subr.bf16.mxu1 %v8514_v25  ;;  %17648 = vst [vmem:[#allocation167_spill] sm:$0xff] %v11584_v35  ;;  %v17652_v25 = vld [vmem:[#allocation50_spill] sm:$0xff] }
 0x3ae   :  { %v1398_v47 = vadd.f32 %v9137_v1, %v1397_v41  ;;  %v519_v1 = vpop.f32.mrb[23].mxu1 }
 0x3af   :  { %v11519_v45 = vpop.trf.xlu0  ;;  %v11589_v33 = vadd.f32 %v519_v1, %v11458_v57  ;;  %v17656_v57 = vld [vmem:[#allocation52_spill] sm:$0xff]  ;;  %v17678_v1 = vld [vmem:[#allocation73_spill] sm:$0xff] }
 0x3b0   :  { %17618 = vst [vmem:[#allocation162_spill] sm:$0xff] %v11519_v45  ;;  %v1399_v26 = vadd.f32 %v11475_v56, %v1398_v47  ;;  %8517 = vmatpush1.bf16.msra.mxu1 %v17619_v18  ;;  %v17654_v47 = vld [vmem:[#allocation51_spill] sm:$0xff] }
 0x3b1   :  { %8519 = vmatprep.subr.bf16.mxu1 %v8518_v10  ;;  %v17630_v10 = vld [vmem:[#allocation40_spill] sm:$0xff]  ;;  %17650 = vst [vmem:[#allocation49_spill] sm:$0xff] %v11589_v33 }
 0x3b2   :  { %v1400_v27 = vadd.f32 %v9121_v24, %v1399_v26  ;;  %v17626_v24 = vld [vmem:[#allocation44_spill] sm:$0xff] }
 0x3b3   :  { %v11525_v29 = vpop.trf.xlu0 }
 0x3b4   :  { %17620 = vst [vmem:[#allocation163_spill] sm:$0xff] %v11525_v29  ;;  %v1401_v52 = vadd.f32 %v9123_v28, %v1400_v27  ;;  %8521 = vmatpush1.bf16.msra.mxu1 %v17621_v44  ;;  %v17627_v28 = vld [vmem:[#allocation29_spill] sm:$0xff]  ;;  %v17660_v44 = vld [vmem:[#allocation54_spill] sm:$0xff] }
 0x3b5   :  { %8523 = vmatprep.subr.bf16.mxu1 %v8522_v14  ;;  %v323_v32 = vadd.f32 %v17627_v28, %v17626_v24  ;;  %v17658_v27 = vld [vmem:[#allocation53_spill] sm:$0xff] }
 0x3b6   :  { %v1402_v40 = vadd.f32 %v9125_v51, %v1401_v52 }
 0x3b7   :  { %v11530_v34 = vpop.trf.xlu0 }
 0x3b8   :  { %17622 = vst [vmem:[#allocation164_spill] sm:$0xff] %v11530_v34  ;;  %v1403_v16 = vadd.f32 %v9127_v12, %v1402_v40  ;;  %8525 = vmatpush1.bf16.msra.mxu1 %v17624_v11  ;;  %v17631_v12 = vld [vmem:[#allocation41_spill] sm:$0xff]  ;;  %v17664_v11 = vld [vmem:[#allocation60_spill] sm:$0xff] }
 0x3b9   :  { %8527 = vmatprep.subr.bf16.mxu1 %v8526_v17  ;;  %v363_v14 = vadd.f32 %v17631_v12, %v17630_v10  ;;  %v17634_v17 = vmov 0.0   ;;  %v17668_v12 = vld [vmem:[#allocation88_spill] sm:$0xff] }
 0x3ba   :  { %6241 = vxpose.xlu1.b32.start.end [1/1] (short) %v17623_v8, 128  ;;  %v11538_v56 = vadd.f32 %v9129_v4, %v1403_v16  ;;  %v321_v4 = vadd.f32 %v17633_v42, %v17626_v24  ;;  %v17662_v16 = vld [vmem:[#allocation57_spill] sm:$0xff] }
 0x3bb   :  { %v11536_v3 = vpop.trf.xlu0  ;;  %v17670_v42 = vld [vmem:[#allocation65_spill] sm:$0xff] }
 0x3bc   :  { %17625 = vst [vmem:[#allocation82_spill] sm:$0xff] %v11536_v3  ;;  %8529 = vmatpush1.bf16.msra.mxu1 %v17628_v43 }
 0x3bd   :  { %1666 = vmatprep.subr.mxu1 %v323_v32  ;;  %v17666_v32 = vld [vmem:[#allocation63_spill] sm:$0xff] }
 0x3bf   :  { %v11545_v51 = vpop.trf.xlu0  ;;  %1476 = vmatmul.mubr.f32.vlgmr.msra.gmra.mrb[24].mxu1 %v363_v14  ;;  %v17669_v14 = vld [vmem:[#allocation64_spill] sm:$0xff] }
 0x3c0   :  { %17629 = vst [vmem:[#allocation29_spill] sm:$0xff] %v11545_v51  ;;  %v11549_v6 = vpop.trf.xlu1  ;;  %1667 = vmatpush1.msra.mxu1 %v321_v4  ;;  %1730 = vmatprep.mubr.f32.mxu1 %v17634_v17  ;;  %v17671_v4 = vld [vmem:[#allocation66_spill] sm:$0xff] }
 0x3c1   :  { %17632 = vst [vmem:[#allocation41_spill] sm:$0xff] %v11549_v6 }
 0x3c3   :  { %v11554_v19 = vpop.trf.xlu0  ;;  %8240 = vmatmul.mubr.msk.f32.vlgmr.msra.gmra.mrb[26].mxu1 %vm653_vm2, %v17637_v31  ;;  %v17672_v31 = vld [vmem:[#allocation67_spill] sm:$0xff] }
 0x3c4   :  { %17635 = vst [vmem:[#allocation27_spill] sm:$0xff] %v11554_v19  ;;  %v11556_v58 = vpop.trf.xlu1  ;;  %1736 = vmatprep.mubr.f32.mxu1 %v17634_v17 }
 0x3c5   :  { %17636 = vst [vmem:[#allocation165_spill] sm:$0xff] %v11556_v58 }
 0x3c7   :  { %v11561_v48 = vpop.trf.xlu0  ;;  %8241 = vmatmul.mubr.msk.f32.gmra.mrb[28].mxu1 %vm653_vm2, %v17640_v22  ;;  %v17673_v22 = vld [vmem:[#allocation68_spill] sm:$0xff] }
 0x3c8   :  { %17638 = vst [vmem:[#allocation45_spill] sm:$0xff] %v11561_v48  ;;  %v11563_v30 = vpop.trf.xlu1  ;;  %1742 = vmatprep.mubr.f32.mxu1 %v17634_v17 }
 0x3c9   :  { %17639 = vst [vmem:[#allocation166_spill] sm:$0xff] %v11563_v30 }
 0x3cb   :  { %v11568_v9 = vpop.trf.xlu0  ;;  %7113 = vxpose.xlu0.b32.start.end [1/1] (short) %v17642_v0, 128  ;;  %8242 = vmatmul.mubr.msk.f32.gmra.mrb[30].mxu1 %vm653_vm2, %v17644_v5  ;;  %v17674_v0 = vld [vmem:[#allocation69_spill] sm:$0xff]  ;;  %v17675_v5 = vld [vmem:[#allocation70_spill] sm:$0xff] }
 0x3cc   :  { %17641 = vst [vmem:[#allocation46_spill] sm:$0xff] %v11568_v9  ;;  %v11571_v55 = vpop.trf.xlu1  ;;  %1748 = vmatprep.mubr.f32.mxu1 %v17634_v17 }
 0x3cd   :  { %17643 = vst [vmem:[#allocation87_spill] sm:$0xff] %v11571_v55 }
 0x3cf   :  { %8243 = vmatmul.mubr.msk.f32.gmra.mrb[32].mxu1 %vm653_vm2, %v17646_v53  ;;  %v17676_v53 = vld [vmem:[#allocation71_spill] sm:$0xff] }
 0x3d0   :  { %v11576_v46 = vpop.trf.xlu1  ;;  %1754 = vmatprep.mubr.f32.mxu1 %v17634_v17 }
 0x3d1   :  { %17645 = vst [vmem:[#allocation47_spill] sm:$0xff] %v11576_v46 }
 0x3d3   :  { %8244 = vmatmul.mubr.msk.f32.gmra.mrb[34].mxu1 %vm653_vm2, %v17649_v37  ;;  %v17679_v37 = vld [vmem:[#allocation74_spill] sm:$0xff] }
 0x3d4   :  { %v11581_v36 = vpop.trf.xlu1  ;;  %1760 = vmatprep.mubr.f32.mxu1 %v17634_v17 }
 0x3d5   :  { %17647 = vst [vmem:[#allocation48_spill] sm:$0xff] %v11581_v36 }
 0x3d7   :  { %8245 = vmatmul.mubr.msk.f32.gmra.mrb[36].mxu1 %vm653_vm2, %v17652_v25  ;;  %v17680_v25 = vld [vmem:[#allocation75_spill] sm:$0xff] }
 0x3d8   :  { %v11592_v41 = vpop.trf.xlu1  ;;  %1766 = vmatprep.mubr.f32.mxu1 %v17634_v17 }
 0x3d9   :  { %17651 = vst [vmem:[#allocation168_spill] sm:$0xff] %v11592_v41 }
 0x3db   :  { %8246 = vmatmul.mubr.msk.f32.gmra.mrb[38].mxu1 %vm653_vm2, %v17654_v47  ;;  %v17681_v47 = vld [vmem:[#allocation76_spill] sm:$0xff] }
 0x3dc   :  { %v11597_v49 = vpop.trf.xlu1  ;;  %1772 = vmatprep.mubr.f32.mxu1 %v17634_v17 }
 0x3dd   :  { %17653 = vst [vmem:[#allocation50_spill] sm:$0xff] %v11597_v49 }
 0x3df   :  { %8247 = vmatmul.mubr.msk.f32.gmra.mrb[40].mxu1 %vm653_vm2, %v17656_v57  ;;  %v571_v57 = vld [vmem:[#allocation12] sm:$0xf] }
 0x3e0   :  { %v11602_v26 = vpop.trf.xlu1  ;;  %1778 = vmatprep.mubr.f32.mxu1 %v17634_v17 }
 0x3e1   :  { %17655 = vst [vmem:[#allocation51_spill] sm:$0xff] %v11602_v26 }
 0x3e3   :  { %8248 = vmatmul.mubr.msk.f32.gmra.mrb[42].mxu1 %vm653_vm2, %v17658_v27  ;;  %v11674_v27 = vpop.trf.xlu0 }
 0x3e4   :  { %v11607_v18 = vpop.trf.xlu1  ;;  %1784 = vmatprep.mubr.f32.mxu1 %v17634_v17  ;;  %17682 = vst [vmem:[#allocation88_spill] sm:$0xff] %v11674_v27 }
 0x3e5   :  { %17657 = vst [vmem:[#allocation52_spill] sm:$0xff] %v11607_v18 }
 0x3e7   :  { %8249 = vmatmul.mubr.msk.f32.gmra.mrb[44].mxu1 %vm653_vm2, %v17660_v44  ;;  %v17683_v44 = vld [vmem:[#allocation77_spill] sm:$0xff] }
 0x3e8   :  { %v11612_v52 = vpop.trf.xlu1  ;;  %1790 = vmatprep.mubr.f32.mxu1 %v17634_v17 }
 0x3e9   :  { %17659 = vst [vmem:[#allocation53_spill] sm:$0xff] %v11612_v52 }
 0x3eb   :  { %8250 = vmatmul.mubr.msk.f32.gmra.mrb[46].mxu1 %vm653_vm2, %v17662_v16  ;;  %v573_v16 = vld [vmem:[#allocation15] sm:$0xf] }
 0x3ec   :  { %v11617_v40 = vpop.trf.xlu1  ;;  %1796 = vmatprep.mubr.f32.mxu1 %v17634_v17 }
 0x3ed   :  { %17661 = vst [vmem:[#allocation54_spill] sm:$0xff] %v11617_v40 }
 0x3ef   :  { %8251 = vmatmul.mubr.msk.f32.gmra.mrb[48].mxu1 %vm653_vm2, %v17664_v11  ;;  %v17684_v11 = vld [vmem:[#allocation78_spill] sm:$0xff] }
 0x3f0   :  { %v11622_v8 = vpop.trf.xlu1  ;;  %1802 = vmatprep.mubr.f32.mxu1 %v17634_v17 }
 0x3f1   :  { %17663 = vst [vmem:[#allocation57_spill] sm:$0xff] %v11622_v8 }
 0x3f3   :  { %8252 = vmatmul.mubr.msk.f32.gmra.mrb[50].mxu1 %vm653_vm2, %v17666_v32  ;;  %v11682_v32 = vpop.trf.xlu0 }
 0x3f4   :  { %v11627_v28 = vpop.trf.xlu1  ;;  %1808 = vmatprep.mubr.f32.mxu1 %v17634_v17  ;;  %17685 = vst [vmem:[#allocation64_spill] sm:$0xff] %v11682_v32 }
 0x3f5   :  { %17665 = vst [vmem:[#allocation60_spill] sm:$0xff] %v11627_v28 }
 0x3f7   :  { %8253 = vmatmul.mubr.msk.f32.gmra.mrb[52].mxu1 %vm653_vm2, %v17669_v14  ;;  %v17687_v14 = vld [vmem:[#allocation80_spill] sm:$0xff] }
 0x3f8   :  { %v11632_v43 = vpop.trf.xlu1  ;;  %7145 = vxpose.xlu1.b32.start.end [1/1] (short) %v17668_v12, 128  ;;  %1814 = vmatprep.mubr.f32.mxu1 %v17634_v17  ;;  %v17686_v12 = vld [vmem:[#allocation79_spill] sm:$0xff] }
 0x3f9   :  { %17667 = vst [vmem:[#allocation63_spill] sm:$0xff] %v11632_v43 }
 0x3fb   :  { %8254 = vmatmul.mubr.msk.f32.gmra.mrb[54].mxu1 %vm653_vm2, %v17670_v42  ;;  %v17688_v42 = vld [vmem:[#allocation83_spill] sm:$0xff] }
 0x3fc   :  { %1820 = vmatprep.mubr.f32.mxu1 %v17634_v17 }
 0x3ff   :  { %8255 = vmatmul.mubr.msk.f32.gmra.mrb[56].mxu1 %vm653_vm2, %v17671_v4  ;;  %v17689_v4 = vld [vmem:[#allocation103_spill] sm:$0xff] }
 0x400   :  { %1826 = vmatprep.mubr.f32.mxu1 %v17634_v17 }
 0x403   :  { %8256 = vmatmul.mubr.msk.f32.gmra.mrb[58].mxu1 %vm653_vm2, %v17672_v31  ;;  %v17690_v31 = vld [vmem:[#allocation58_spill] sm:$0xff] }
 0x404   :  { %1832 = vmatprep.mubr.f32.mxu1 %v17634_v17 }
 0x407   :  { %8257 = vmatmul.mubr.msk.f32.gmra.mrb[60].mxu1 %vm653_vm2, %v17673_v22  ;;  %v377_v22 = vadd.f32 %v17690_v31, %v17689_v4 }
 0x408   :  { %1838 = vmatprep.mubr.f32.mxu1 %v17634_v17 }
 0x40b   :  { %8258 = vmatmul.mubr.msk.f32.gmra.mrb[62].mxu1 %vm653_vm2, %v17674_v0  ;;  %v17691_v0 = vld [vmem:[#allocation84_spill] sm:$0xff] }
 0x40c   :  { %1844 = vmatprep.mubr.f32.mxu1 %v17634_v17 }
 0x40f   :  { %8259 = vmatmul.mubr.msk.f32.gmra.mrb[64].mxu1 %vm653_vm2, %v17675_v5  ;;  %v572_v5 = vld [vmem:[#allocation13] sm:$0xf] }
 0x410   :  { %1850 = vmatprep.mubr.f32.mxu1 %v17634_v17 }
 0x413   :  { %8260 = vmatmul.mubr.msk.f32.gmra.mrb[66].mxu1 %vm653_vm2, %v17676_v53  ;;  %v11697_v53 = vpop.trf.xlu1 }
 0x414   :  { %1856 = vmatprep.mubr.f32.mxu1 %v17634_v17  ;;  %17692 = vst [vmem:[#allocation65_spill] sm:$0xff] %v11697_v53 }
 0x417   :  { %8261 = vmatmul.mubr.msk.f32.gmra.mrb[68].mxu1 %vm653_vm2, %v17677_v21  ;;  %v1368_v21 = vrot.slane %v11489_v38, 4 }
 0x418   :  { %1862 = vmatprep.mubr.f32.mxu1 %v17634_v17 }
 0x41b   :  { %8262 = vmatmul.mubr.msk.f32.gmra.mrb[70].mxu1 %vm653_vm2, %v17678_v1  ;;  %v1405_v1 = vrot.slane %v11538_v56, 4 }
 0x41c   :  { %1868 = vmatprep.mubr.f32.mxu1 %v17634_v17 }
 0x41f   :  { %8263 = vmatmul.mubr.msk.f32.gmra.mrb[72].mxu1 %vm653_vm2, %v17679_v37  ;;  %v1369_v37 = vadd.f32 %v1368_v21, %v11489_v38 }
 0x420   :  { %1874 = vmatprep.mubr.f32.mxu1 %v17634_v17 }
 0x423   :  { %8264 = vmatmul.mubr.msk.f32.gmra.mrb[74].mxu1 %vm653_vm2, %v17680_v25  ;;  %v1406_v25 = vadd.f32 %v1405_v1, %v11538_v56 }
 0x424   :  { %1880 = vmatprep.mubr.f32.mxu1 %v17634_v17 }
 0x427   :  { %8265 = vmatmul.mubr.msk.f32.gmra.mrb[76].mxu1 %vm653_vm2, %v17681_v47  ;;  %v1370_v47 = vrot.slane %v1369_v37, 2 }
 0x428   :  { %1886 = vmatprep.mubr.f32.mxu1 %v17634_v17 }
 0x42b   :  { %8266 = vmatmul.mubr.msk.f32.gmra.mrb[78].mxu1 %vm653_vm2, %v17683_v44  ;;  %v1371_v44 = vadd.f32 %v1370_v47, %v1369_v37 }
 0x42c   :  { %1892 = vmatprep.mubr.f32.mxu1 %v17634_v17 }
 0x42f   :  { %8267 = vmatmul.mubr.msk.f32.gmra.mrb[80].mxu1 %vm653_vm2, %v17684_v11  ;;  %v1372_v11 = vrot.slane %v1371_v44, 1 }
 0x430   :  { %4249 = vperm.xlu0 %9006, %v571_v57   ;;  %1898 = vmatprep.mubr.f32.mxu1 %v17634_v17  ;;  %v1407_v57 = vrot.slane %v1406_v25, 2 }
 0x433   :  { %8268 = vmatmul.mubr.msk.f32.gmra.mrb[82].mxu1 %vm653_vm2, %v17686_v12 }
 0x434   :  { %4385 = vperm.xlu0 %9006, %v573_v16   ;;  %1904 = vmatprep.mubr.f32.mxu1 %v17634_v17  ;;  %v1408_v16 = vadd.f32 %v1407_v57, %v1406_v25 }
 0x436   :  { %v1409_v12 = vrot.slane %v1408_v16, 1 }
 0x437   :  { %8269 = vmatmul.mubr.msk.f32.gmra.mrb[84].mxu1 %vm653_vm2, %v17687_v14  ;;  %v1373_v14 = vadd.f32 %v1372_v11, %v1371_v44 }
 0x438   :  { %1910 = vmatprep.mubr.f32.mxu1 %v17634_v17 }
 0x439   :  { %9138 = vrcp.f32 %v1373_v14 }
 0x43b   :  { %8270 = vmatmul.mubr.msk.f32.gmra.mrb[86].mxu1 %vm653_vm2, %v17688_v42  ;;  %v1410_v42 = vadd.f32 %v1409_v12, %v1408_v16 }
 0x43c   :  { %1916 = vmatprep.mubr.f32.mxu1 %v17634_v17 }
 0x43d   :  { %9140 = vrcp.f32 %v1410_v42 }
 0x43f   :  { %8271 = vmatmul.mubr.msk.f32.gmra.mrb[88].mxu1 %vm653_vm2, %v17691_v0 }
 0x440   :  { %3307 = vmatprep.mubr.f32.mxu1 %v377_v22 }
 0x443   :  { %v9139_v31 = vpop.eup %9138 }
 0x447   :  { %v9141_v0 = vpop.eup %9140 }
 0x452   :  { %4378 = vperm.xlu1 %9007, %v572_v5  }
 0x492   :  { %v1477_v22 = vpop.f32.mrb[24].mxu1 }
 0x493   :  { %v11703_v5 = vmul.f32 %v9139_v31, %v1477_v22  ;;  %v1479_v35 = vpop.f32.mrb[25].mxu1 }
 0x494   :  { %v11705_v33 = vmul.f32 %v9141_v0, %v1479_v35 }
 0x495   :  { %17693 = vst [vmem:[#allocation66_spill] sm:$0xff] %v11703_v5 }
 0x496   :  { %17694 = vst [vmem:[#allocation67_spill] sm:$0xff] %v11705_v33  ;;  %v1732_v38 = vpop.f32.mrb[26].mxu1 }
 0x497   :  { %v1734_v56 = vpop.f32.mrb[27].mxu1  ;;  %v11707_v25 = vmul.f32 0.35355338, %v1732_v38 }
 0x498   :  { %v11711_v44 = vmul.f32 0.35355338, %v1734_v56 }
 0x49a   :  { %v1738_v21 = vpop.f32.mrb[28].mxu1 }
 0x49b   :  { %v1740_v1 = vpop.f32.mrb[29].mxu1  ;;  %v11719_v14 = vmul.f32 0.35355338, %v1738_v21 }
 0x49c   :  { %v11723_v22 = vmul.f32 0.35355338, %v1740_v1 }
 0x49e   :  { %v1744_v37 = vpop.f32.mrb[30].mxu1 }
 0x49f   :  { %v11709_v47 = vmul.f32 0.35355338, %v1744_v37  ;;  %v1746_v57 = vpop.f32.mrb[31].mxu1 }
 0x4a0   :  { %v11713_v16 = vmul.f32 0.35355338, %v1746_v57 }
 0x4a1   :  { %v1987_v11 = vmax.f32 %v11707_v25, %v11709_v47 }
 0x4a2   :  { %v1750_v12 = vpop.f32.mrb[32].mxu1  ;;  %v2024_v35 = vmax.f32 %v11711_v44, %v11713_v16 }
 0x4a3   :  { %v11721_v42 = vmul.f32 0.35355338, %v1750_v12  ;;  %v1752_v31 = vpop.f32.mrb[33].mxu1 }
 0x4a4   :  { %v11725_v0 = vmul.f32 0.35355338, %v1752_v31 }
 0x4a5   :  { %v1988_v38 = vmax.f32 %v11719_v14, %v11721_v42 }
 0x4a6   :  { %v2025_v56 = vmax.f32 %v11723_v22, %v11725_v0  ;;  %v1756_v37 = vpop.f32.mrb[34].mxu1 }
 0x4a7   :  { %v11731_v57 = vmul.f32 0.35355338, %v1756_v37  ;;  %v1758_v32 = vpop.f32.mrb[35].mxu1 }
 0x4a8   :  { %v11733_v24 = vmul.f32 0.35355338, %v1758_v32 }
 0x4a9   :  { %v1989_v21 = vmax.f32 %v1987_v11, %v11731_v57 }
 0x4aa   :  { %v2026_v12 = vmax.f32 %v2024_v35, %v11733_v24  ;;  %v1762_v1 = vpop.f32.mrb[36].mxu1 }
 0x4ab   :  { %v11737_v53 = vmul.f32 0.35355338, %v1762_v1  ;;  %v1764_v31 = vpop.f32.mrb[37].mxu1 }
 0x4ac   :  { %v11739_v43 = vmul.f32 0.35355338, %v1764_v31 }
 0x4ad   :  { %v1990_v28 = vmax.f32 %v1988_v38, %v11737_v53 }
 0x4ae   :  { %v2027_v8 = vmax.f32 %v2025_v56, %v11739_v43  ;;  %v1768_v40 = vpop.f32.mrb[38].mxu1 }
 0x4af   :  { %v11743_v37 = vmul.f32 0.35355338, %v1768_v40  ;;  %v1770_v52 = vpop.f32.mrb[39].mxu1 }
 0x4b0   :  { %v11745_v32 = vmul.f32 0.35355338, %v1770_v52 }
 0x4b1   :  { %v1991_v11 = vmax.f32 %v1989_v21, %v11743_v37 }
 0x4b2   :  { %v2028_v35 = vmax.f32 %v2026_v12, %v11745_v32  ;;  %v1774_v18 = vpop.f32.mrb[40].mxu1 }
 0x4b3   :  { %v11749_v1 = vmul.f32 0.35355338, %v1774_v18  ;;  %v1776_v26 = vpop.f32.mrb[41].mxu1 }
 0x4b4   :  { %v11751_v31 = vmul.f32 0.35355338, %v1776_v26 }
 0x4b5   :  { %v1992_v38 = vmax.f32 %v1990_v28, %v11749_v1 }
 0x4b6   :  { %v2029_v56 = vmax.f32 %v2027_v8, %v11751_v31  ;;  %v1780_v49 = vpop.f32.mrb[42].mxu1 }
 0x4b7   :  { %v11755_v40 = vmul.f32 0.35355338, %v1780_v49  ;;  %v1782_v41 = vpop.f32.mrb[43].mxu1 }
 0x4b8   :  { %v11757_v52 = vmul.f32 0.35355338, %v1782_v41 }
 0x4b9   :  { %v1993_v21 = vmax.f32 %v1991_v11, %v11755_v40 }
 0x4ba   :  { %v2030_v12 = vmax.f32 %v2028_v35, %v11757_v52  ;;  %v1786_v36 = vpop.f32.mrb[44].mxu1 }
 0x4bb   :  { %v11761_v18 = vmul.f32 0.35355338, %v1786_v36  ;;  %v1788_v46 = vpop.f32.mrb[45].mxu1 }
 0x4bc   :  { %v11763_v26 = vmul.f32 0.35355338, %v1788_v46 }
 0x4bd   :  { %v1994_v28 = vmax.f32 %v1992_v38, %v11761_v18 }
 0x4be   :  { %v2031_v8 = vmax.f32 %v2029_v56, %v11763_v26  ;;  %v1792_v55 = vpop.f32.mrb[46].mxu1 }
 0x4bf   :  { %v11767_v49 = vmul.f32 0.35355338, %v1792_v55  ;;  %v1794_v30 = vpop.f32.mrb[47].mxu1 }
 0x4c0   :  { %v11769_v41 = vmul.f32 0.35355338, %v1794_v30 }
 0x4c1   :  { %v1995_v11 = vmax.f32 %v1993_v21, %v11767_v49 }
 0x4c2   :  { %v2032_v35 = vmax.f32 %v2030_v12, %v11769_v41  ;;  %v1798_v58 = vpop.f32.mrb[48].mxu1 }
 0x4c3   :  { %v11773_v36 = vmul.f32 0.35355338, %v1798_v58  ;;  %v1800_v6 = vpop.f32.mrb[49].mxu1 }
 0x4c4   :  { %v11775_v46 = vmul.f32 0.35355338, %v1800_v6 }
 0x4c5   :  { %v1996_v38 = vmax.f32 %v1994_v28, %v11773_v36 }
 0x4c6   :  { %17695 = vst [vmem:[#allocation68_spill] sm:$0xff] %v11775_v46  ;;  %v2033_v56 = vmax.f32 %v2031_v8, %v11775_v46  ;;  %v1804_v27 = vpop.f32.mrb[50].mxu1 }
 0x4c7   :  { %v11779_v55 = vmul.f32 0.35355338, %v1804_v27  ;;  %v1806_v9 = vpop.f32.mrb[51].mxu1 }
 0x4c8   :  { %v11781_v30 = vmul.f32 0.35355338, %v1806_v9 }
 0x4c9   :  { %v1997_v21 = vmax.f32 %v1995_v11, %v11779_v55 }
 0x4ca   :  { %17696 = vst [vmem:[#allocation69_spill] sm:$0xff] %v11781_v30  ;;  %v2034_v12 = vmax.f32 %v2032_v35, %v11781_v30  ;;  %v1810_v48 = vpop.f32.mrb[52].mxu1 }
 0x4cb   :  { %v11785_v58 = vmul.f32 0.35355338, %v1810_v48  ;;  %v1812_v19 = vpop.f32.mrb[53].mxu1 }
 0x4cc   :  { %v11787_v6 = vmul.f32 0.35355338, %v1812_v19 }
 0x4cd   :  { %v1998_v28 = vmax.f32 %v1996_v38, %v11785_v58 }
 0x4ce   :  { %17697 = vst [vmem:[#allocation70_spill] sm:$0xff] %v11787_v6  ;;  %v2035_v8 = vmax.f32 %v2033_v56, %v11787_v6  ;;  %v1816_v51 = vpop.f32.mrb[54].mxu1 }
 0x4cf   :  { %v11791_v27 = vmul.f32 0.35355338, %v1816_v51  ;;  %v1818_v3 = vpop.f32.mrb[55].mxu1 }
 0x4d0   :  { %v11793_v9 = vmul.f32 0.35355338, %v1818_v3 }
 0x4d1   :  { %v1999_v11 = vmax.f32 %v1997_v21, %v11791_v27 }
 0x4d2   :  { %17698 = vst [vmem:[#allocation71_spill] sm:$0xff] %v11793_v9  ;;  %v2036_v35 = vmax.f32 %v2034_v12, %v11793_v9  ;;  %v1822_v34 = vpop.f32.mrb[56].mxu1 }
 0x4d3   :  { %v11797_v48 = vmul.f32 0.35355338, %v1822_v34  ;;  %v1824_v29 = vpop.f32.mrb[57].mxu1 }
 0x4d4   :  { %v11799_v19 = vmul.f32 0.35355338, %v1824_v29 }
 0x4d5   :  { %v2000_v38 = vmax.f32 %v1998_v28, %v11797_v48 }
 0x4d6   :  { %17699 = vst [vmem:[#allocation72_spill] sm:$0xff] %v11799_v19  ;;  %v2037_v56 = vmax.f32 %v2035_v8, %v11799_v19  ;;  %v1828_v45 = vpop.f32.mrb[58].mxu1 }
 0x4d7   :  { %v11803_v51 = vmul.f32 0.35355338, %v1828_v45  ;;  %v1830_v2 = vpop.f32.mrb[59].mxu1 }
 0x4d8   :  { %v11805_v3 = vmul.f32 0.35355338, %v1830_v2 }
 0x4d9   :  { %v2001_v21 = vmax.f32 %v1999_v11, %v11803_v51 }
 0x4da   :  { %17700 = vst [vmem:[#allocation73_spill] sm:$0xff] %v11805_v3  ;;  %v2038_v12 = vmax.f32 %v2036_v35, %v11805_v3  ;;  %v1834_v50 = vpop.f32.mrb[60].mxu1 }
 0x4db   :  { %v11809_v34 = vmul.f32 0.35355338, %v1834_v50  ;;  %v1836_v59 = vpop.f32.mrb[61].mxu1 }
 0x4dc   :  { %v11811_v29 = vmul.f32 0.35355338, %v1836_v59 }
 0x4dd   :  { %v2002_v28 = vmax.f32 %v2000_v38, %v11809_v34 }
 0x4de   :  { %17701 = vst [vmem:[#allocation74_spill] sm:$0xff] %v11811_v29  ;;  %v2039_v8 = vmax.f32 %v2037_v56, %v11811_v29  ;;  %v1840_v62 = vpop.f32.mrb[62].mxu1 }
 0x4df   :  { %v11815_v45 = vmul.f32 0.35355338, %v1840_v62  ;;  %v1842_v20 = vpop.f32.mrb[63].mxu1 }
 0x4e0   :  { %v11817_v2 = vmul.f32 0.35355338, %v1842_v20 }
 0x4e1   :  { %v2003_v11 = vmax.f32 %v2001_v21, %v11815_v45 }
 0x4e2   :  { %17702 = vst [vmem:[#allocation75_spill] sm:$0xff] %v11817_v2  ;;  %v2040_v35 = vmax.f32 %v2038_v12, %v11817_v2  ;;  %v1846_v13 = vpop.f32.mrb[64].mxu1 }
 0x4e3   :  { %v11821_v50 = vmul.f32 0.35355338, %v1846_v13  ;;  %v1848_v60 = vpop.f32.mrb[65].mxu1 }
 0x4e4   :  { %v11823_v59 = vmul.f32 0.35355338, %v1848_v60 }
 0x4e5   :  { %v2004_v38 = vmax.f32 %v2002_v28, %v11821_v50 }
 0x4e6   :  { %17703 = vst [vmem:[#allocation76_spill] sm:$0xff] %v11823_v59  ;;  %v2041_v56 = vmax.f32 %v2039_v8, %v11823_v59  ;;  %v1852_v10 = vpop.f32.mrb[66].mxu1 }
 0x4e7   :  { %v1854_v62 = vpop.f32.mrb[67].mxu1  ;;  %v11830_v21 = vmul.f32 0.35355338, %v1852_v10 }
 0x4e8   :  { %v11827_v23 = vmul.f32 0.35355338, %v1854_v62 }
 0x4e9   :  { %v2005_v8 = vmax.f32 %v2003_v11, %v11830_v21 }
 0x4ea   :  { %17704 = vst [vmem:[#allocation77_spill] sm:$0xff] %v11827_v23  ;;  %v2042_v20 = vmax.f32 %v2040_v35, %v11827_v23  ;;  %v1858_v7 = vpop.f32.mrb[68].mxu1 }
 0x4eb   :  { %v11832_v12 = vmul.f32 0.35355338, %v1858_v7  ;;  %v1860_v13 = vpop.f32.mrb[69].mxu1 }
 0x4ec   :  { %v11834_v61 = vmul.f32 0.35355338, %v1860_v13 }
 0x4ed   :  { %v2006_v60 = vmax.f32 %v2004_v38, %v11832_v12 }
 0x4ee   :  { %17705 = vst [vmem:[#allocation78_spill] sm:$0xff] %v11834_v61  ;;  %v2043_v28 = vmax.f32 %v2041_v56, %v11834_v61  ;;  %v1864_v4 = vpop.f32.mrb[70].mxu1 }
 0x4ef   :  { %v11839_v33 = vmul.f32 0.35355338, %v1864_v4  ;;  %v1866_v62 = vpop.f32.mrb[71].mxu1 }
 0x4f0   :  { %v11848_v63 = vmul.f32 0.35355338, %v1866_v62 }
 0x4f1   :  { %v2007_v35 = vmax.f32 %v2005_v8, %v11839_v33 }
 0x4f2   :  { %v1870_v5 = vpop.f32.mrb[72].mxu1  ;;  %17706 = vst [vmem:[#allocation79_spill] sm:$0xff] %v11848_v63  ;;  %v2044_v8 = vmax.f32 %v2042_v20, %v11848_v63 }
 0x4f3   :  { %v11842_v10 = vmul.f32 0.35355338, %v1870_v5  ;;  %v1872_v7 = vpop.f32.mrb[73].mxu1 }
 0x4f4   :  { %v11856_v61 = vmul.f32 0.35355338, %v1872_v7 }
 0x4f5   :  { %v2008_v39 = vmax.f32 %v2006_v60, %v11842_v10 }
 0x4f6   :  { %v1876_v13 = vpop.f32.mrb[74].mxu1  ;;  %17708 = vst [vmem:[#allocation83_spill] sm:$0xff] %v11856_v61 }
 0x4f7   :  { %v11845_v54 = vmul.f32 0.35355338, %v1876_v13  ;;  %v1878_v38 = vpop.f32.mrb[75].mxu1 }
 0x4f8   :  { %v11852_v17 = vmul.f32 0.35355338, %v1878_v38  ;;  %v2045_v38 = vmax.f32 %v2043_v28, %v11856_v61 }
 0x4f9   :  { %v2009_v56 = vmax.f32 %v2007_v35, %v11845_v54 }
 0x4fa   :  { %v1882_v11 = vpop.f32.mrb[76].mxu1  ;;  %17707 = vst [vmem:[#allocation80_spill] sm:$0xff] %v11852_v17  ;;  %v2046_v35 = vmax.f32 %v2044_v8, %v11852_v17 }
 0x4fb   :  { %v11850_v4 = vmul.f32 0.35355338, %v1882_v11  ;;  %v1884_v15 = vpop.f32.mrb[77].mxu1 }
 0x4fc   :  { %v11861_v62 = vmul.f32 0.35355338, %v1884_v15 }
 0x4fd   :  { %v2010_v5 = vmax.f32 %v2008_v39, %v11850_v4 }
 0x4fe   :  { %v1888_v60 = vpop.f32.mrb[78].mxu1  ;;  %17709 = vst [vmem:[#allocation58_spill] sm:$0xff] %v11861_v62 }
 0x4ff   :  { %v11858_v13 = vmul.f32 0.35355338, %v1888_v60  ;;  %v1890_v23 = vpop.f32.mrb[79].mxu1  ;;  %v2047_v60 = vmax.f32 %v2045_v38, %v11861_v62 }
 0x500   :  { %v11863_v59 = vmul.f32 0.35355338, %v1890_v23 }
 0x501   :  { %v2011_v11 = vmax.f32 %v2009_v56, %v11858_v13 }
 0x502   :  { %17710 = vst [vmem:[#allocation84_spill] sm:$0xff] %v11863_v59  ;;  %v2048_v39 = vmax.f32 %v2046_v35, %v11863_v59  ;;  %v1894_v2 = vpop.f32.mrb[80].mxu1 }
 0x503   :  { %v11868_v20 = vmul.f32 0.35355338, %v1894_v2  ;;  %v1896_v7 = vpop.f32.mrb[81].mxu1 }
 0x504   :  { %v11871_v63 = vmul.f32 0.35355338, %v1896_v7 }
 0x505   :  { %v2012_v8 = vmax.f32 %v2010_v5, %v11868_v20 }
 0x506   :  { %17711 = vst [vmem:[#allocation169_spill] sm:$0xff] %v11871_v63  ;;  %v2049_v15 = vmax.f32 %v2047_v60, %v11871_v63  ;;  %v1900_v23 = vpop.f32.mrb[82].mxu1 }
 0x507   :  { %v11875_v17 = vmul.f32 0.35355338, %v1900_v23  ;;  %v1902_v56 = vpop.f32.mrb[83].mxu1 }
 0x508   :  { %v11877_v29 = vmul.f32 0.35355338, %v1902_v56 }
 0x509   :  { %v2013_v28 = vmax.f32 %v2011_v11, %v11875_v17 }
 0x50a   :  { %17712 = vst [vmem:[#allocation170_spill] sm:$0xff] %v11877_v29  ;;  %v2050_v2 = vmax.f32 %v2048_v39, %v11877_v29  ;;  %v1906_v35 = vpop.f32.mrb[84].mxu1 }
 0x50b   :  { %v11881_v61 = vmul.f32 0.35355338, %v1906_v35  ;;  %v1908_v38 = vpop.f32.mrb[85].mxu1 }
 0x50c   :  { %v11883_v7 = vmul.f32 0.35355338, %v1908_v38 }
 0x50d   :  { %v2014_v5 = vmax.f32 %v2012_v8, %v11881_v61 }
 0x50e   :  { %17713 = vst [vmem:[#allocation171_spill] sm:$0xff] %v11883_v7  ;;  %v2051_v60 = vmax.f32 %v2049_v15, %v11883_v7  ;;  %v1912_v62 = vpop.f32.mrb[86].mxu1 }
 0x50f   :  { %v11887_v23 = vmul.f32 0.35355338, %v1912_v62  ;;  %v1914_v63 = vpop.f32.mrb[87].mxu1 }
 0x510   :  { %v11889_v56 = vmul.f32 0.35355338, %v1914_v63 }
 0x511   :  { %v2015_v11 = vmax.f32 %v2013_v28, %v11887_v23 }
 0x512   :  { %17714 = vst [vmem:[#allocation172_spill] sm:$0xff] %v11889_v56  ;;  %v2052_v39 = vmax.f32 %v2050_v2, %v11889_v56  ;;  %v1918_v29 = vpop.f32.mrb[88].mxu1 }
 0x513   :  { %v11893_v35 = vmul.f32 0.35355338, %v1918_v29  ;;  %v1920_v59 = vpop.f32.mrb[89].mxu1 }
 0x514   :  { %v11895_v38 = vmul.f32 0.35355338, %v1920_v59 }
 0x515   :  { %v2016_v8 = vmax.f32 %v2014_v5, %v11893_v35 }
 0x516   :  { %v2053_v15 = vmax.f32 %v2051_v60, %v11895_v38 }
 0x517   :  { %v2017_v7 = vmax.f32 %v2015_v11, %v2016_v8 }
 0x518   :  { %v2054_v62 = vmax.f32 %v2052_v39, %v2053_v15 }
 0x519   :  { %v2018_v3 = vrot.slane %v2017_v7, 4 }
 0x51a   :  { %v2055_v19 = vrot.slane %v2054_v62, 4 }
 0x51b   :  { %v2019_v63 = vmax.f32 %v2017_v7, %v2018_v3 }
 0x51c   :  { %v2056_v9 = vmax.f32 %v2054_v62, %v2055_v19 }
 0x51d   :  { %v2020_v6 = vrot.slane %v2019_v63, 2 }
 0x51e   :  { %v2057_v28 = vrot.slane %v2056_v9, 2 }
 0x51f   :  { %v2021_v30 = vmax.f32 %v2019_v63, %v2020_v6 }
 0x520   :  { %v2058_v2 = vmax.f32 %v2056_v9, %v2057_v28 }
 0x521   :  { %v2022_v56 = vrot.slane %v2021_v30, 1 }
 0x522   :  { %v2059_v29 = vrot.slane %v2058_v2, 1 }
 0x523   :  { %v11899_v46 = vmax.f32 %v2021_v30, %v2022_v56 }
 0x524   :  { %v11901_v59 = vmax.f32 %v2058_v2, %v2059_v29 }
 0x525   :  { %v2061_v5 = vsub.f32 %v11707_v25, %v11899_v46  ;;  %v2063_v60 = vsub.f32 %v11719_v14, %v11899_v46  ;;  %v2065_v3 = vsub.f32 %v11709_v47, %v11899_v46  ;;  %v2067_v19 = vsub.f32 %v11721_v42, %v11899_v46 }
 0x526   :  { %v2069_v6 = vsub.f32 %v11731_v57, %v11899_v46  ;;  %v2071_v30 = vsub.f32 %v11737_v53, %v11899_v46  ;;  %v2073_v9 = vsub.f32 %v11743_v37, %v11899_v46  ;;  %v2075_v25 = vsub.f32 %v11749_v1, %v11899_v46 }
 0x527   :  { %v2077_v14 = vsub.f32 %v11755_v40, %v11899_v46  ;;  %v2079_v47 = vsub.f32 %v11761_v18, %v11899_v46  ;;  %v2081_v42 = vsub.f32 %v11767_v49, %v11899_v46  ;;  %v2083_v57 = vsub.f32 %v11773_v36, %v11899_v46 }
 0x528   :  { %v2085_v53 = vsub.f32 %v11779_v55, %v11899_v46  ;;  %v2087_v37 = vsub.f32 %v11785_v58, %v11899_v46  ;;  %v2089_v1 = vsub.f32 %v11791_v27, %v11899_v46  ;;  %v2091_v40 = vsub.f32 %v11797_v48, %v11899_v46 }
 0x529   :  { %v2093_v18 = vsub.f32 %v11803_v51, %v11899_v46  ;;  %v2095_v49 = vsub.f32 %v11809_v34, %v11899_v46  ;;  %v2097_v36 = vsub.f32 %v11815_v45, %v11899_v46  ;;  %v2099_v55 = vsub.f32 %v11821_v50, %v11899_v46 }
 0x52a   :  { %v2103_v58 = vsub.f32 %v11832_v12, %v11899_v46  ;;  %v2105_v27 = vsub.f32 %v11839_v33, %v11899_v46  ;;  %v2107_v48 = vsub.f32 %v11842_v10, %v11899_v46  ;;  %v2109_v51 = vsub.f32 %v11845_v54, %v11899_v46  ;;  %v17729_v10 = vld [vmem:[#allocation171_spill] sm:$0xff] }
 0x52b   :  { %v2111_v34 = vsub.f32 %v11850_v4, %v11899_v46  ;;  %v2113_v45 = vsub.f32 %v11858_v13, %v11899_v46  ;;  %v2125_v8 = vmul.f32 1.442695, %v2061_v5  ;;  %v2129_v15 = vmul.f32 1.442695, %v2063_v60 }
 0x52c   :  { %v2133_v62 = vmul.f32 1.442695, %v2065_v3  ;;  %v2137_v28 = vmul.f32 1.442695, %v2067_v19  ;;  %v2141_v29 = vmul.f32 1.442695, %v2069_v6  ;;  %v2101_v5 = vsub.f32 %v11830_v21, %v11899_v46 }
 0x52d   :  { %9142 = vpow2.f32 %v2125_v8  ;;  %v2145_v56 = vmul.f32 1.442695, %v2071_v30  ;;  %v2149_v7 = vmul.f32 1.442695, %v2073_v9  ;;  %v2153_v11 = vmul.f32 1.442695, %v2075_v25 }
 0x52e   :  { %9144 = vpow2.f32 %v2129_v15  ;;  %v2157_v60 = vmul.f32 1.442695, %v2077_v14  ;;  %v2161_v3 = vmul.f32 1.442695, %v2079_v47  ;;  %v2165_v63 = vmul.f32 1.442695, %v2081_v42 }
 0x52f   :  { %9146 = vpow2.f32 %v2133_v62  ;;  %v2169_v19 = vmul.f32 1.442695, %v2083_v57  ;;  %v2173_v39 = vmul.f32 1.442695, %v2085_v53  ;;  %v2177_v2 = vmul.f32 1.442695, %v2087_v37 }
 0x530   :  { %9148 = vpow2.f32 %v2137_v28  ;;  %v2181_v8 = vmul.f32 1.442695, %v2089_v1  ;;  %v2185_v6 = vmul.f32 1.442695, %v2091_v40  ;;  %v2189_v30 = vmul.f32 1.442695, %v2093_v18 }
 0x531   :  { %9150 = vpow2.f32 %v2141_v29  ;;  %v2193_v15 = vmul.f32 1.442695, %v2095_v49  ;;  %v2197_v9 = vmul.f32 1.442695, %v2097_v36  ;;  %v2201_v25 = vmul.f32 1.442695, %v2099_v55 }
 0x532   :  { %9152 = vpow2.f32 %v2145_v56  ;;  %v17715_v36 = vld [vmem:[#allocation68_spill] sm:$0xff]  ;;  %v17721_v1 = vld [vmem:[#allocation74_spill] sm:$0xff]  ;;  %v17722_v37 = vld [vmem:[#allocation75_spill] sm:$0xff]  ;;  %v2213_v49 = vmul.f32 1.442695, %v2105_v27  ;;  %v17732_v4 = vsub.f32 %v11875_v17, %v11899_v46 }
 0x533   :  { %9154 = vpow2.f32 %v2149_v7  ;;  %v17724_v42 = vld [vmem:[#allocation77_spill] sm:$0xff]  ;;  %v17725_v47 = vld [vmem:[#allocation78_spill] sm:$0xff] }
 0x534   :  { %9156 = vpow2.f32 %v2153_v11  ;;  %v17716_v11 = vld [vmem:[#allocation69_spill] sm:$0xff] }
 0x535   :  { %9158 = vpow2.f32 %v2157_v60  ;;  %v17718_v60 = vld [vmem:[#allocation71_spill] sm:$0xff] }
 0x536   :  { %9160 = vpow2.f32 %v2161_v3  ;;  %v17723_v3 = vld [vmem:[#allocation76_spill] sm:$0xff] }
 0x537   :  { %v11979_v57 = vpop.eup %9142  ;;  %9162 = vpow2.f32 %v2165_v63  ;;  %v17717_v63 = vld [vmem:[#allocation70_spill] sm:$0xff] }
 0x538   :  { %v11987_v40 = vpop.eup %9144  ;;  %9164 = vpow2.f32 %v2169_v19  ;;  %v17719_v19 = vld [vmem:[#allocation72_spill] sm:$0xff] }
 0x539   :  { %v11995_v7 = vpop.eup %9146  ;;  %9166 = vpow2.f32 %v2173_v39  ;;  %v2253_v56 = vadd.f32 %v11987_v40, %v11979_v57  ;;  %v17720_v39 = vld [vmem:[#allocation73_spill] sm:$0xff] }
 0x53a   :  { %v12003_v29 = vpop.eup %9148  ;;  %9168 = vpow2.f32 %v2177_v2  ;;  %v2209_v2 = vmul.f32 1.442695, %v2103_v58  ;;  %v17727_v58 = vld [vmem:[#allocation169_spill] sm:$0xff] }
 0x53b   :  { %v12011_v18 = vpop.eup %9150  ;;  %9170 = vpow2.f32 %v2181_v8  ;;  %v2254_v62 = vadd.f32 %v11995_v7, %v2253_v56  ;;  %v2205_v56 = vmul.f32 1.442695, %v2101_v5  ;;  %v2217_v8 = vmul.f32 1.442695, %v2107_v48  ;;  %v17730_v48 = vld [vmem:[#allocation172_spill] sm:$0xff] }
 0x53c   :  { %v12018_v53 = vpop.eup %9152  ;;  %9172 = vpow2.f32 %v2185_v6 }
 0x53d   :  { %v12026_v14 = vpop.eup %9154  ;;  %9174 = vpow2.f32 %v2189_v30  ;;  %v2255_v28 = vadd.f32 %v12003_v29, %v2254_v62  ;;  %v17726_v30 = vld [vmem:[#allocation84_spill] sm:$0xff] }
 0x53e   :  { %v12032_v6 = vpop.eup %9156  ;;  %9176 = vpow2.f32 %v2193_v15  ;;  %v17728_v15 = vld [vmem:[#allocation170_spill] sm:$0xff] }
 0x53f   :  { %v12042_v55 = vpop.eup %9158  ;;  %9178 = vpow2.f32 %v2197_v9  ;;  %v2256_v12 = vadd.f32 %v12011_v18, %v2255_v28  ;;  %v2221_v28 = vmul.f32 1.442695, %v2109_v51  ;;  %v17731_v51 = vsub.f32 %v11868_v20, %v11899_v46 }
 0x540   :  { %v12049_v33 = vpop.eup %9160  ;;  %9180 = vpow2.f32 %v2201_v25  ;;  %v2225_v25 = vmul.f32 1.442695, %v2111_v34  ;;  %v2237_v34 = vmul.f32 1.442695, %v17732_v4  ;;  %v17734_v20 = vsub.f32 %v11887_v23, %v11899_v46 }
 0x541   :  { %v12057_v50 = vpop.eup %9162  ;;  %9182 = vpow2.f32 %v2205_v56  ;;  %v2257_v21 = vadd.f32 %v12018_v53, %v2256_v12  ;;  %v2229_v56 = vmul.f32 1.442695, %v2113_v45  ;;  %v17733_v45 = vsub.f32 %v11881_v61, %v11899_v46 }
 0x542   :  { %v12063_v62 = vpop.eup %9164  ;;  %9184 = vpow2.f32 %v2209_v2  ;;  %v2233_v2 = vmul.f32 1.442695, %v17731_v51 }
 0x543   :  { %v12068_v5 = vpop.eup %9166  ;;  %9186 = vpow2.f32 %v2213_v49  ;;  %v2258_v9 = vadd.f32 %v12026_v14, %v2257_v21  ;;  %v2241_v21 = vmul.f32 1.442695, %v17733_v45 }
 0x544   :  { %v12074_v54 = vpop.eup %9168  ;;  %9188 = vpow2.f32 %v2217_v8 }
 0x545   :  { %v12079_v12 = vpop.eup %9170  ;;  %9190 = vpow2.f32 %v2221_v28  ;;  %v2259_v49 = vadd.f32 %v12032_v6, %v2258_v9  ;;  %v2245_v28 = vmul.f32 1.442695, %v17734_v20  ;;  %v17735_v9 = vsub.f32 %v11893_v35, %v11899_v46 }
 0x546   :  { %v12085_v13 = vpop.eup %9172  ;;  %9192 = vpow2.f32 %v2225_v25  ;;  %v17738_v46 = vsub.f32 %v11713_v16, %v11901_v59  ;;  %v17741_v16 = vsub.f32 %v11739_v43, %v11901_v59  ;;  %v17745_v43 = vsub.f32 %v11763_v26, %v11901_v59 }
 0x547   :  { %v12090_v8 = vpop.eup %9174  ;;  %9194 = vpow2.f32 %v2229_v56  ;;  %v2260_v51 = vadd.f32 %v12042_v55, %v2259_v49  ;;  %v2249_v25 = vmul.f32 1.442695, %v17735_v9  ;;  %v17736_v56 = vsub.f32 %v11711_v44, %v11901_v59 }
 0x548   :  { %v12096_v17 = vpop.eup %9176  ;;  %9196 = vpow2.f32 %v2233_v2  ;;  %v17737_v49 = vsub.f32 %v11723_v22, %v11901_v59  ;;  %v2135_v35 = vmul.f32 1.442695, %v17738_v46  ;;  %v17739_v44 = vsub.f32 %v11725_v0, %v11901_v59 }
 0x549   :  { %v12101_v4 = vpop.eup %9178  ;;  %9198 = vpow2.f32 %v2237_v34  ;;  %v2261_v61 = vadd.f32 %v12049_v33, %v2260_v51  ;;  %v2127_v45 = vmul.f32 1.442695, %v17736_v56  ;;  %v2147_v22 = vmul.f32 1.442695, %v17741_v16 }
 0x54a   :  { %v12107_v23 = vpop.eup %9180  ;;  %9200 = vpow2.f32 %v2241_v21  ;;  %v2131_v2 = vmul.f32 1.442695, %v17737_v49  ;;  %v2139_v51 = vmul.f32 1.442695, %v17739_v44  ;;  %v17740_v21 = vsub.f32 %v11733_v24, %v11901_v59 }
 0x54b   :  { %v12115_v20 = vpop.eup %9182  ;;  %9202 = vpow2.f32 %v2245_v28  ;;  %v2262_v34 = vadd.f32 %v12057_v50, %v2261_v61  ;;  %v17742_v28 = vsub.f32 %v11745_v32, %v11901_v59  ;;  %v17743_v61 = vsub.f32 %v11751_v31, %v11901_v59 }
 0x54c   :  { %v2143_v9 = vmul.f32 1.442695, %v17740_v21  ;;  %v12124_v56 = vpop.eup %9184  ;;  %9204 = vpow2.f32 %v2249_v25  ;;  %v17744_v25 = vsub.f32 %v11757_v52, %v11901_v59  ;;  %v2163_v21 = vmul.f32 1.442695, %v17745_v43 }
 0x54d   :  { %v2151_v49 = vmul.f32 1.442695, %v17742_v28  ;;  %v2155_v0 = vmul.f32 1.442695, %v17743_v61  ;;  %v12135_v46 = vpop.eup %9186  ;;  %v2263_v24 = vadd.f32 %v12063_v62, %v2262_v34  ;;  %9206 = vpow2.f32 %v2127_v45 }
 0x54e   :  { %v2159_v44 = vmul.f32 1.442695, %v17744_v25  ;;  %v12144_v16 = vpop.eup %9188  ;;  %9208 = vpow2.f32 %v2131_v2  ;;  %v17747_v43 = vsub.f32 %v17715_v36, %v11901_v59 }
 0x54f   :  { %v12152_v34 = vpop.eup %9190  ;;  %v2264_v52 = vadd.f32 %v12068_v5, %v2263_v24  ;;  %9210 = vpow2.f32 %v2135_v35 }
 0x550   :  { %v12159_v28 = vpop.eup %9192  ;;  %9212 = vpow2.f32 %v2139_v51  ;;  %v17746_v51 = vsub.f32 %v11769_v41, %v11901_v59  ;;  %v2171_v25 = vmul.f32 1.442695, %v17747_v43 }
 0x551   :  { %v12167_v24 = vpop.eup %9194  ;;  %v2265_v35 = vadd.f32 %v12074_v54, %v2264_v52  ;;  %9214 = vpow2.f32 %v2143_v9 }
 0x552   :  { %v12174_v26 = vpop.eup %9196  ;;  %9216 = vpow2.f32 %v2147_v22  ;;  %v2167_v2 = vmul.f32 1.442695, %v17746_v51 }
 0x553   :  { %v12182_v52 = vpop.eup %9198  ;;  %v2266_v9 = vadd.f32 %v12079_v12, %v2265_v35  ;;  %9218 = vpow2.f32 %v2151_v49  ;;  %v17748_v49 = vsub.f32 %v17716_v11, %v11901_v59  ;;  %v17753_v11 = vsub.f32 %v17721_v1, %v11901_v59 }
 0x554   :  { %v12190_v27 = vpop.eup %9200  ;;  %9220 = vpow2.f32 %v2155_v0  ;;  %v17749_v0 = vsub.f32 %v17717_v63, %v11901_v59  ;;  %v17752_v63 = vsub.f32 %v17720_v39, %v11901_v59  ;;  %v17756_v1 = vsub.f32 %v17724_v42, %v11901_v59 }
 0x555   :  { %v12195_v61 = vpop.eup %9202  ;;  %v2267_v45 = vadd.f32 %v12085_v13, %v2266_v9  ;;  %9222 = vpow2.f32 %v2159_v44  ;;  %v2175_v41 = vmul.f32 1.442695, %v17748_v49  ;;  %v17750_v44 = vsub.f32 %v17718_v60, %v11901_v59 }
 0x556   :  { %v12203_v51 = vpop.eup %9204  ;;  %9224 = vpow2.f32 %v2163_v21  ;;  %v2179_v36 = vmul.f32 1.442695, %v17749_v0  ;;  %v17751_v21 = vsub.f32 %v17719_v19, %v11901_v59  ;;  %v2191_v0 = vmul.f32 1.442695, %v17752_v63 }
 0x557   :  { %v9207_v43 = vpop.eup %9206  ;;  %v2268_v22 = vadd.f32 %v12090_v8, %v2267_v45  ;;  %9226 = vpow2.f32 %v2167_v2  ;;  %v2183_v9 = vmul.f32 1.442695, %v17750_v44  ;;  %v17754_v19 = vsub.f32 %v17722_v37, %v11901_v59 }
 0x558   :  { %v9209_v49 = vpop.eup %9208  ;;  %9228 = vpow2.f32 %v2171_v25  ;;  %v2187_v35 = vmul.f32 1.442695, %v17751_v21  ;;  %v2195_v25 = vmul.f32 1.442695, %v17753_v11  ;;  %v2207_v11 = vmul.f32 1.442695, %v17756_v1 }
 0x559   :  { %v9211_v31 = vpop.eup %9210  ;;  %v2269_v45 = vadd.f32 %v12096_v17, %v2268_v22  ;;  %9230 = vpow2.f32 %v2175_v41  ;;  %v2290_v2 = vadd.f32 %v9209_v49, %v9207_v43  ;;  %v8530_v60 = vpack.c.bf16 %v9209_v49, %v9207_v43 }
 0x55a   :  { %v9213_v44 = vpop.eup %9212  ;;  %9232 = vpow2.f32 %v2179_v36  ;;  %v2199_v21 = vmul.f32 1.442695, %v17754_v19  ;;  %v17755_v36 = vsub.f32 %v17723_v3, %v11901_v59  ;;  %v17757_v37 = vpack.c.bf16 %v11987_v40, %v11979_v57 }
 0x55b   :  { %v9215_v32 = vpop.eup %9214  ;;  %v2270_v39 = vadd.f32 %v12101_v4, %v2269_v45  ;;  %9234 = vpow2.f32 %v2183_v9  ;;  %v2291_v63 = vadd.f32 %v9211_v31, %v2290_v2  ;;  %8531 = vmatprep.subr.bf16.mxu0 %v8530_v60  ;;  %v8534_v22 = vpack.c.bf16 %v9213_v44, %v9211_v31 }
 0x55c   :  { %v9217_v41 = vpop.eup %9216  ;;  %9236 = vpow2.f32 %v2187_v35  ;;  %v2203_v43 = vmul.f32 1.442695, %v17755_v36  ;;  %8533 = vmatpush1.bf16.msra.mxu0 %v17757_v37  ;;  %v17758_v3 = vsub.f32 %v17725_v47, %v11901_v59 }
 0x55d   :  { %v9219_v49 = vpop.eup %9218  ;;  %v2271_v9 = vadd.f32 %v12107_v23, %v2270_v39  ;;  %9238 = vpow2.f32 %v2191_v0  ;;  %v2292_v45 = vadd.f32 %v9213_v44, %v2291_v63  ;;  %8535 = vmatprep.subr.bf16.mxu0 %v8534_v22  ;;  %v8538_v31 = vpack.c.bf16 %v9217_v41, %v9215_v32 }
 0x55e   :  { %v9221_v35 = vpop.eup %9220  ;;  %9240 = vpow2.f32 %v2195_v25  ;;  %v2211_v2 = vmul.f32 1.442695, %v17758_v3  ;;  %v17759_v0 = vpack.c.bf16 %v12003_v29, %v11995_v7  ;;  %v17761_v29 = vsub.f32 %v17727_v58, %v11901_v59 }
 0x55f   :  { %v9223_v60 = vpop.eup %9222  ;;  %v2272_v42 = vadd.f32 %v12115_v20, %v2271_v9  ;;  %9242 = vpow2.f32 %v2199_v21  ;;  %v2293_v19 = vadd.f32 %v9215_v32, %v2292_v45  ;;  %v8542_v57 = vpack.c.bf16 %v9221_v35, %v9219_v49 }
 0x560   :  { %v9225_v40 = vpop.eup %9224  ;;  %9244 = vpow2.f32 %v2203_v43  ;;  %8537 = vmatpush1.bf16.msra.mxu0 %v17759_v0  ;;  %v17760_v32 = vsub.f32 %v17726_v30, %v11901_v59  ;;  %v2235_v37 = vmul.f32 1.442695, %v17761_v29  ;;  %v17763_v45 = vsub.f32 %v17728_v15, %v11901_v59 }
 0x561   :  { %v9227_v44 = vpop.eup %9226  ;;  %v2273_v39 = vadd.f32 %v12124_v56, %v2272_v42  ;;  %9246 = vpow2.f32 %v2207_v11  ;;  %v2294_v25 = vadd.f32 %v9217_v41, %v2293_v19  ;;  %8539 = vmatprep.subr.bf16.mxu0 %v8538_v31  ;;  %v8546_v47 = vpack.c.bf16 %v9225_v40, %v9223_v60 }
 0x562   :  { %v9229_v63 = vpop.eup %9228  ;;  %9248 = vpow2.f32 %v2211_v2  ;;  %v2231_v36 = vmul.f32 1.442695, %v17760_v32  ;;  %v17762_v41 = vpack.c.bf16 %v12018_v53, %v12011_v18  ;;  %v2239_v30 = vmul.f32 1.442695, %v17763_v45  ;;  %v17770_v45 = vld [vmem:[#allocation83_spill] sm:$0xff] }
 0x563   :  { %v9231_v22 = vpop.eup %9230  ;;  %v2274_v21 = vadd.f32 %v12135_v46, %v2273_v39  ;;  %v2295_v43 = vadd.f32 %v9219_v49, %v2294_v25  ;;  %v8550_v1 = vpack.c.bf16 %v9229_v63, %v9227_v44  ;;  %v17764_v58 = vsub.f32 %v17729_v10, %v11901_v59 }
 0x564   :  { %v9233_v7 = vpop.eup %9232  ;;  %8541 = vmatpush1.bf16.msra.mxu0 %v17762_v41  ;;  %v17765_v53 = vsub.f32 %v17730_v48, %v11901_v59  ;;  %9250 = vpow2.f32 %v2231_v36  ;;  %v17767_v10 = vpack.c.bf16 %v12032_v6, %v12026_v14  ;;  %v17768_v14 = vpack.c.bf16 %v12049_v33, %v12042_v55 }
 0x565   :  { %v12256_v11 = vpop.eup %9234  ;;  %v2275_v9 = vadd.f32 %v12144_v16, %v2274_v21  ;;  %v2296_v31 = vadd.f32 %v9221_v35, %v2295_v43  ;;  %8543 = vmatprep.subr.bf16.mxu0 %v8542_v57  ;;  %v8554_v49 = vpack.c.bf16 %v9233_v7, %v9231_v22  ;;  %v2243_v2 = vmul.f32 1.442695, %v17764_v58  ;;  %v17771_v58 = vld [vmem:[#allocation80_spill] sm:$0xff] }
 0x566   :  { %v9237_v3 = vpop.eup %9236  ;;  %v2247_v18 = vmul.f32 1.442695, %v17765_v53  ;;  %9252 = vpow2.f32 %v2235_v37  ;;  %v17766_v57 = vsub.f32 %v11895_v38, %v11901_v59  ;;  %v17772_v55 = vpack.c.bf16 %v12063_v62, %v12057_v50 }
 0x567   :  { %v12268_v42 = vpop.eup %9238  ;;  %v2276_v19 = vadd.f32 %v12152_v34, %v2275_v9  ;;  %v2297_v0 = vadd.f32 %v9223_v60, %v2296_v31  ;;  %v8558_v15 = vpack.c.bf16 %v9237_v3, %v12256_v11  ;;  %9254 = vpow2.f32 %v2239_v30 }
 0x568   :  { %v9241_v35 = vpop.eup %9240  ;;  %v2251_v39 = vmul.f32 1.442695, %v17766_v57  ;;  %8545 = vmatpush1.bf16.msra.mxu0 %v17767_v10  ;;  %9256 = vpow2.f32 %v2243_v2  ;;  %v2108_v30 = vsub.f32 %v17770_v45, %v11901_v59  ;;  %v2110_v2 = vsub.f32 %v17771_v58, %v11901_v59 }
 0x569   :  { %v9243_v48 = vpop.eup %9242  ;;  %v2277_v25 = vadd.f32 %v12159_v28, %v2276_v19  ;;  %v2298_v21 = vadd.f32 %v9225_v40, %v2297_v0  ;;  %8547 = vmatprep.subr.bf16.mxu0 %v8546_v47  ;;  %v8562_v60 = vpack.c.bf16 %v9241_v35, %v12268_v42  ;;  %9258 = vpow2.f32 %v2247_v18  ;;  %v17769_v40 = vld [vmem:[#allocation79_spill] sm:$0xff]  ;;  %v17773_v19 = vld [vmem:[#allocation58_spill] sm:$0xff] }
 0x56a   :  { %v9245_v32 = vpop.eup %9244  ;;  %9260 = vpow2.f32 %v2251_v39  ;;  %v2106_v47 = vsub.f32 %v17769_v40, %v11901_v59  ;;  %v2112_v0 = vsub.f32 %v17773_v19, %v11901_v59  ;;  %v2219_v57 = vmul.f32 1.442695, %v2108_v30  ;;  %v17798_v19 = vld [vmem:[#allocation122_spill] sm:$0xff] }
 0x56b   :  { %v9247_v36 = vpop.eup %9246  ;;  %v2278_v43 = vadd.f32 %v12167_v24, %v2277_v25  ;;  %v2299_v38 = vadd.f32 %v9227_v44, %v2298_v21  ;;  %v8566_v29 = vpack.c.bf16 %v9245_v32, %v9243_v48  ;;  %v2223_v50 = vmul.f32 1.442695, %v2110_v2  ;;  %v17787_v2 = vld [vmem:[#allocation85_spill] sm:$0xff] }
 0x56c   :  { %v9249_v37 = vpop.eup %9248  ;;  %8549 = vmatpush1.bf16.msra.mxu0 %v17768_v14  ;;  %v2215_v18 = vmul.f32 1.442695, %v2106_v47  ;;  %v17774_v62 = vpack.c.bf16 %v12074_v54, %v12068_v5  ;;  %v2227_v14 = vmul.f32 1.442695, %v2112_v0  ;;  %v17775_v40 = vpack.c.bf16 %v12085_v13, %v12079_v12  ;;  %v17799_v0 = vld [vmem:[#allocation126_spill] sm:$0xff] }
 0x56d   :  { %v2279_v6 = vadd.f32 %v12174_v26, %v2278_v43  ;;  %v2300_v41 = vadd.f32 %v9229_v63, %v2299_v38  ;;  %8551 = vmatprep.subr.bf16.mxu0 %v8550_v1  ;;  %v8570_v9 = vpack.c.bf16 %v9249_v37, %v9247_v36  ;;  %v17785_v58 = vpack.c.bf16 %v12203_v51, %v12195_v61 }
 0x56e   :  { %v9251_v33 = vpop.eup %9250  ;;  %9262 = vpow2.f32 %v2215_v18  ;;  %v17795_v18 = vld [vmem:[#allocation113_spill] sm:$0xff] }
 0x56f   :  { %v2280_v44 = vadd.f32 %v12182_v52, %v2279_v6  ;;  %v2301_v31 = vadd.f32 %v9231_v22, %v2300_v41  ;;  %9264 = vpow2.f32 %v2219_v57  ;;  %v17800_v57 = vld [vmem:[#allocation129_spill] sm:$0xff] }
 0x570   :  { %8553 = vmatpush1.bf16.msra.mxu0 %v17772_v55  ;;  %v9253_v1 = vpop.eup %9252  ;;  %9266 = vpow2.f32 %v2223_v50  ;;  %v17788_v55 = vmov 0.0   ;;  %v17806_v50 = vld [vmem:[#allocation145_spill] sm:$0xff] }
 0x571   :  { %v2281_v53 = vadd.f32 %v12190_v27, %v2280_v44  ;;  %v2302_v63 = vadd.f32 %v9233_v7, %v2301_v31  ;;  %8555 = vmatprep.subr.bf16.mxu0 %v8554_v49  ;;  %v9255_v39 = vpop.eup %9254  ;;  %v8582_v25 = vpack.c.bf16 %v9253_v1, %v9251_v33  ;;  %9268 = vpow2.f32 %v2227_v14  ;;  %v17783_v31 = vld [vmem:[#allocation96_spill] sm:$0xff]  ;;  %v17812_v14 = vld [vmem:[#allocation91_spill] sm:$0xff] }
 0x572   :  { %v9257_v21 = vpop.eup %9256 }
 0x573   :  { %v2282_v22 = vadd.f32 %v12195_v61, %v2281_v53  ;;  %v2303_v10 = vadd.f32 %v12256_v11, %v2302_v63  ;;  %v9259_v43 = vpop.eup %9258  ;;  %v8586_v59 = vpack.c.bf16 %v9257_v21, %v9255_v39  ;;  %v17791_v61 = vld [vmem:[#allocation102_spill] sm:$0xff]  ;;  %v17794_v53 = vld [vmem:[#allocation111_spill] sm:$0xff] }
 0x574   :  { %8557 = vmatpush1.bf16.msra.mxu0 %v17774_v62  ;;  %v9261_v38 = vpop.eup %9260  ;;  %v17796_v63 = vld [vmem:[#allocation115_spill] sm:$0xff] }
 0x575   :  { %v12304_v7 = vadd.f32 %v12203_v51, %v2282_v22  ;;  %v2304_v49 = vadd.f32 %v9237_v3, %v2303_v10  ;;  %8559 = vmatprep.subr.bf16.mxu0 %v8558_v15  ;;  %v8590_v6 = vpack.c.bf16 %v9261_v38, %v9259_v43  ;;  %v17776_v3 = vpack.c.bf16 %v12096_v17, %v12090_v8  ;;  %v17792_v51 = vld [vmem:[#allocation105_spill] sm:$0xff]  ;;  %v17802_v22 = vld [vmem:[#allocation135_spill] sm:$0xff]  ;;  %v17803_v10 = vld [vmem:[#allocation138_spill] sm:$0xff] }
 0x576   :  { %v17807_v62 = vld [vmem:[#allocation147_spill] sm:$0xff] }
 0x577   :  { %v2305_v11 = vadd.f32 %v12268_v42, %v2304_v49  ;;  %v17777_v42 = vpack.c.bf16 %v12107_v23, %v12101_v4  ;;  %v17809_v49 = vld [vmem:[#allocation151_spill] sm:$0xff] }
 0x578   :  { %8561 = vmatpush1.bf16.msra.mxu0 %v17775_v40  ;;  %v9263_v47 = vpop.eup %9262  ;;  %v17815_v40 = vld [vmem:[#allocation101_spill] sm:$0xff] }
 0x579   :  { %v2306_v5 = vadd.f32 %v9241_v35, %v2305_v11  ;;  %8563 = vmatprep.subr.bf16.mxu0 %v8562_v60  ;;  %v9265_v45 = vpop.eup %9264  ;;  %v17813_v11 = vld [vmem:[#allocation93_spill] sm:$0xff] }
 0x57a   :  { %v9267_v13 = vpop.eup %9266  ;;  %v8574_v60 = vpack.c.bf16 %v9265_v45, %v9263_v47 }
 0x57b   :  { %v2307_v54 = vadd.f32 %v9243_v48, %v2306_v5  ;;  %v9269_v30 = vpop.eup %9268  ;;  %v17778_v48 = vpack.c.bf16 %v12124_v56, %v12115_v20  ;;  %v17781_v20 = vpack.c.bf16 %v12174_v26, %v12167_v24  ;;  %v17786_v26 = vld [vmem:[#allocation31_spill] sm:$0xff]  ;;  %v17816_v5 = vld [vmem:[#allocation109_spill] sm:$0xff] }
 0x57c   :  { %8565 = vmatpush1.bf16.msra.mxu0 %v17776_v3  ;;  %v327_v24 = vadd.f32 %v17786_v26, %v17783_v31  ;;  %v17818_v3 = vld [vmem:[#allocation136_spill] sm:$0xff] }
 0x57d   :  { %v2308_v15 = vadd.f32 %v9245_v32, %v2307_v54  ;;  %8567 = vmatprep.subr.bf16.mxu0 %v8566_v29  ;;  %v8578_v32 = vpack.c.bf16 %v9269_v30, %v9267_v13  ;;  %v17780_v29 = vpack.c.bf16 %v12159_v28, %v12152_v34  ;;  %v17784_v34 = vld [vmem:[#allocation33_spill] sm:$0xff]  ;;  %v17817_v54 = vld [vmem:[#allocation127_spill] sm:$0xff] }
 0x57e   :  { %v329_v28 = vadd.f32 %v17784_v34, %v17783_v31 }
 0x57f   :  { %v2309_v41 = vadd.f32 %v9247_v36, %v2308_v15  ;;  %v17779_v36 = vpack.c.bf16 %v12144_v16, %v12135_v46  ;;  %v17782_v46 = vpack.c.bf16 %v12190_v27, %v12182_v52  ;;  %v17789_v27 = vld [vmem:[#allocation98_spill] sm:$0xff]  ;;  %v17790_v52 = vld [vmem:[#allocation100_spill] sm:$0xff]  ;;  %v17819_v15 = vld [vmem:[#allocation39_spill] sm:$0xff] }
 0x580   :  { %8569 = vmatpush1.bf16.msra.mxu0 %v17777_v42 }
 0x581   :  { %v2310_v12 = vadd.f32 %v9249_v37, %v2309_v41  ;;  %8571 = vmatprep.subr.bf16.mxu0 %v8570_v9  ;;  %v17821_v41 = vld [vmem:[#allocation119_spill] sm:$0xff] }
 0x583   :  { %v2311_v35 = vadd.f32 %v9263_v47, %v2310_v12  ;;  %v17820_v47 = vld [vmem:[#allocation158_spill] sm:$0xff] }
 0x584   :  { %8573 = vmatpush1.bf16.msra.mxu0 %v17778_v48 }
 0x585   :  { %v2312_v8 = vadd.f32 %v9265_v45, %v2311_v35  ;;  %8575 = vmatprep.subr.bf16.mxu0 %v8574_v60  ;;  %v2284_v45 = vrot.slane %v12304_v7, 4 }
 0x587   :  { %v2313_v17 = vadd.f32 %v9267_v13, %v2312_v8  ;;  %v2285_v12 = vadd.f32 %v2284_v45, %v12304_v7 }
 0x588   :  { %8577 = vmatpush1.bf16.msra.mxu0 %v17779_v36 }
 0x589   :  { %v2314_v4 = vadd.f32 %v9269_v30, %v2313_v17  ;;  %8579 = vmatprep.subr.bf16.mxu0 %v8578_v32  ;;  %v2286_v35 = vrot.slane %v2285_v12, 2 }
 0x58b   :  { %v2315_v23 = vadd.f32 %v9251_v33, %v2314_v4  ;;  %v17793_v33 = vld [vmem:[#allocation108_spill] sm:$0xff]  ;;  %v2287_v30 = vadd.f32 %v2286_v35, %v2285_v12 }
 0x58c   :  { %8581 = vmatpush1.bf16.msra.mxu0 %v17780_v29 }
 0x58d   :  { %v2316_v37 = vadd.f32 %v9253_v1, %v2315_v23  ;;  %8583 = vmatprep.subr.bf16.mxu0 %v8582_v25  ;;  %v17797_v1 = vld [vmem:[#allocation118_spill] sm:$0xff]  ;;  %v17804_v25 = vld [vmem:[#allocation141_spill] sm:$0xff]  ;;  %v2288_v8 = vrot.slane %v2287_v30, 1 }
 0x58f   :  { %v2317_v9 = vadd.f32 %v9255_v39, %v2316_v37  ;;  %v17801_v39 = vld [vmem:[#allocation132_spill] sm:$0xff]  ;;  %v2289_v32 = vadd.f32 %v2288_v8, %v2287_v30 }
 0x590   :  { %8585 = vmatpush1.bf16.msra.mxu0 %v17781_v20 }
 0x591   :  { %v2318_v56 = vadd.f32 %v9257_v21, %v2317_v9  ;;  %8587 = vmatprep.subr.bf16.mxu0 %v8586_v59  ;;  %v17805_v21 = vld [vmem:[#allocation143_spill] sm:$0xff]  ;;  %v17810_v59 = vld [vmem:[#allocation153_spill] sm:$0xff]  ;;  %9270 = vrcp.f32 %v2289_v32 }
 0x593   :  { %v2319_v44 = vadd.f32 %v9259_v43, %v2318_v56  ;;  %v17808_v43 = vld [vmem:[#allocation149_spill] sm:$0xff] }
 0x594   :  { %8589 = vmatpush1.bf16.msra.mxu0 %v17782_v46 }
 0x595   :  { %v12331_v16 = vadd.f32 %v9261_v38, %v2319_v44  ;;  %8591 = vmatprep.subr.bf16.mxu0 %v8590_v6  ;;  %v17811_v38 = vld [vmem:[#allocation155_spill] sm:$0xff]  ;;  %v17814_v6 = vld [vmem:[#allocation97_spill] sm:$0xff] }
 0x597   :  { %v2321_v42 = vrot.slane %v12331_v16, 4 }
 0x598   :  { %8593 = vmatpush1.bf16.msra.mxu0 %v17785_v58 }
 0x599   :  { %2582 = vmatprep.subr.mxu0 %v329_v28  ;;  %v2322_v13 = vadd.f32 %v2321_v42, %v12331_v16 }
 0x59b   :  { %2392 = vmatmul.mubr.f32.vlgmr.msra.gmra.mrb[88].mxu0 %v17787_v2  ;;  %v2323_v60 = vrot.slane %v2322_v13, 2  ;;  %v9271_v4 = vpop.eup %9270 }
 0x59c   :  { %2583 = vmatpush1.msra.mxu0 %v327_v24  ;;  %2646 = vmatprep.mubr.f32.mxu0 %v17788_v55 }
 0x59d   :  { %v2324_v48 = vadd.f32 %v2323_v60, %v2322_v13 }
 0x59f   :  { %8272 = vmatmul.mubr.msk.f32.vlgmr.msra.gmra.mrb[90].mxu0 %vm653_vm2, %v17789_v27  ;;  %v2325_v17 = vrot.slane %v2324_v48, 1 }
 0x5a0   :  { %2652 = vmatprep.mubr.f32.mxu0 %v17788_v55 }
 0x5a1   :  { %v2326_v36 = vadd.f32 %v2325_v17, %v2324_v48 }
 0x5a3   :  { %8273 = vmatmul.mubr.msk.f32.gmra.mrb[92].mxu0 %vm653_vm2, %v17790_v52  ;;  %9272 = vrcp.f32 %v2326_v36 }
 0x5a4   :  { %2658 = vmatprep.mubr.f32.mxu0 %v17788_v55 }
 0x5a7   :  { %8274 = vmatmul.mubr.msk.f32.gmra.mrb[94].mxu0 %vm653_vm2, %v17791_v61 }
 0x5a8   :  { %2664 = vmatprep.mubr.f32.mxu0 %v17788_v55 }
 0x5ab   :  { %8275 = vmatmul.mubr.msk.f32.gmra.mrb[96].mxu0 %vm653_vm2, %v17792_v51 }
 0x5ac   :  { %2670 = vmatprep.mubr.f32.mxu0 %v17788_v55 }
 0x5ad   :  { %v9273_v29 = vpop.eup %9272 }
 0x5af   :  { %8276 = vmatmul.mubr.msk.f32.gmra.mrb[98].mxu0 %vm653_vm2, %v17793_v33 }
 0x5b0   :  { %2676 = vmatprep.mubr.f32.mxu0 %v17788_v55 }
 0x5b3   :  { %8277 = vmatmul.mubr.msk.f32.gmra.mrb[100].mxu0 %vm653_vm2, %v17794_v53 }
 0x5b4   :  { %2682 = vmatprep.mubr.f32.mxu0 %v17788_v55 }
 0x5b7   :  { %8278 = vmatmul.mubr.msk.f32.gmra.mrb[102].mxu0 %vm653_vm2, %v17795_v18 }
 0x5b8   :  { %2688 = vmatprep.mubr.f32.mxu0 %v17788_v55 }
 0x5bb   :  { %8279 = vmatmul.mubr.msk.f32.gmra.mrb[104].mxu0 %vm653_vm2, %v17796_v63 }
 0x5bc   :  { %2694 = vmatprep.mubr.f32.mxu0 %v17788_v55 }
 0x5bf   :  { %8280 = vmatmul.mubr.msk.f32.gmra.mrb[106].mxu0 %vm653_vm2, %v17797_v1 }
 0x5c0   :  { %2700 = vmatprep.mubr.f32.mxu0 %v17788_v55 }
 0x5c3   :  { %8281 = vmatmul.mubr.msk.f32.gmra.mrb[108].mxu0 %vm653_vm2, %v17798_v19 }
 0x5c4   :  { %2706 = vmatprep.mubr.f32.mxu0 %v17788_v55 }
 0x5c7   :  { %8282 = vmatmul.mubr.msk.f32.gmra.mrb[110].mxu0 %vm653_vm2, %v17799_v0 }
 0x5c8   :  { %2712 = vmatprep.mubr.f32.mxu0 %v17788_v55 }
 0x5cb   :  { %8283 = vmatmul.mubr.msk.f32.gmra.mrb[112].mxu0 %vm653_vm2, %v17800_v57 }
 0x5cc   :  { %2718 = vmatprep.mubr.f32.mxu0 %v17788_v55 }
 0x5cf   :  { %8284 = vmatmul.mubr.msk.f32.gmra.mrb[114].mxu0 %vm653_vm2, %v17801_v39 }
 0x5d0   :  { %2724 = vmatprep.mubr.f32.mxu0 %v17788_v55 }
 0x5d3   :  { %8285 = vmatmul.mubr.msk.f32.gmra.mrb[116].mxu0 %vm653_vm2, %v17802_v22 }
 0x5d4   :  { %2730 = vmatprep.mubr.f32.mxu0 %v17788_v55 }
 0x5d7   :  { %8286 = vmatmul.mubr.msk.f32.gmra.mrb[118].mxu0 %vm653_vm2, %v17803_v10 }
 0x5d8   :  { %2736 = vmatprep.mubr.f32.mxu0 %v17788_v55 }
 0x5db   :  { %8287 = vmatmul.mubr.msk.f32.gmra.mrb[120].mxu0 %vm653_vm2, %v17804_v25 }
 0x5dc   :  { %2742 = vmatprep.mubr.f32.mxu0 %v17788_v55 }
 0x5df   :  { %8288 = vmatmul.mubr.msk.f32.gmra.mrb[122].mxu0 %vm653_vm2, %v17805_v21 }
 0x5e0   :  { %2748 = vmatprep.mubr.f32.mxu0 %v17788_v55 }
 0x5e3   :  { %8289 = vmatmul.mubr.msk.f32.gmra.mrb[124].mxu0 %vm653_vm2, %v17806_v50 }
 0x5e4   :  { %2754 = vmatprep.mubr.f32.mxu0 %v17788_v55 }
 0x5e7   :  { %8290 = vmatmul.mubr.msk.f32.gmra.mrb[126].mxu0 %vm653_vm2, %v17807_v62 }
 0x5e8   :  { %2760 = vmatprep.mubr.f32.mxu0 %v17788_v55 }
 0x5eb   :  { %8291 = vmatmul.mubr.msk.f32.gmra.mrb[128].mxu0 %vm653_vm2, %v17808_v43 }
 0x5ec   :  { %2766 = vmatprep.mubr.f32.mxu0 %v17788_v55 }
 0x5ef   :  { %8292 = vmatmul.mubr.msk.f32.gmra.mrb[130].mxu0 %vm653_vm2, %v17809_v49 }
 0x5f0   :  { %2772 = vmatprep.mubr.f32.mxu0 %v17788_v55 }
 0x5f3   :  { %8293 = vmatmul.mubr.msk.f32.gmra.mrb[132].mxu0 %vm653_vm2, %v17810_v59 }
 0x5f4   :  { %2778 = vmatprep.mubr.f32.mxu0 %v17788_v55 }
 0x5f7   :  { %8294 = vmatmul.mubr.msk.f32.gmra.mrb[134].mxu0 %vm653_vm2, %v17811_v38 }
 0x5f8   :  { %2784 = vmatprep.mubr.f32.mxu0 %v17788_v55 }
 0x5fb   :  { %8295 = vmatmul.mubr.msk.f32.gmra.mrb[136].mxu0 %vm653_vm2, %v17812_v14 }
 0x5fc   :  { %2790 = vmatprep.mubr.f32.mxu0 %v17788_v55 }
 0x5ff   :  { %8296 = vmatmul.mubr.msk.f32.gmra.mrb[138].mxu0 %vm653_vm2, %v17813_v11 }
 0x600   :  { %2796 = vmatprep.mubr.f32.mxu0 %v17788_v55 }
 0x603   :  { %8297 = vmatmul.mubr.msk.f32.gmra.mrb[140].mxu0 %vm653_vm2, %v17814_v6 }
 0x604   :  { %2802 = vmatprep.mubr.f32.mxu0 %v17788_v55 }
 0x607   :  { %8298 = vmatmul.mubr.msk.f32.gmra.mrb[142].mxu0 %vm653_vm2, %v17815_v40 }
 0x608   :  { %2808 = vmatprep.mubr.f32.mxu0 %v17788_v55 }
 0x60b   :  { %8299 = vmatmul.mubr.msk.f32.gmra.mrb[144].mxu0 %vm653_vm2, %v17816_v5 }
 0x60c   :  { %2814 = vmatprep.mubr.f32.mxu0 %v17788_v55 }
 0x60f   :  { %8300 = vmatmul.mubr.msk.f32.gmra.mrb[146].mxu0 %vm653_vm2, %v17817_v54 }
 0x610   :  { %2820 = vmatprep.mubr.f32.mxu0 %v17788_v55 }
 0x613   :  { %8301 = vmatmul.mubr.msk.f32.gmra.mrb[148].mxu0 %vm653_vm2, %v17818_v3 }
 0x614   :  { %2826 = vmatprep.mubr.f32.mxu0 %v17788_v55 }
 0x617   :  { %8302 = vmatmul.mubr.msk.f32.gmra.mrb[150].mxu0 %vm653_vm2, %v17819_v15 }
 0x618   :  { %2832 = vmatprep.mubr.f32.mxu0 %v17788_v55 }
 0x61b   :  { %8303 = vmatmul.mubr.msk.f32.gmra.mrb[152].mxu0 %vm653_vm2, %v17820_v47 }
 0x61c   :  { %4223 = vmatprep.mubr.f32.mxu0 %v17821_v41 }
 0x66e   :  { %v2393_v23 = vpop.f32.mrb[88].mxu0 }
 0x66f   :  { %v12442_v37 = vmul.f32 %v9271_v4, %v2393_v23  ;;  %v2395_v9 = vpop.f32.mrb[89].mxu0 }
 0x670   :  { %v12444_v20 = vmul.f32 %v9273_v29, %v2395_v9 }
 0x671   :  { %17822 = vst [vmem:[#allocation68_spill] sm:$0xff] %v12442_v37 }
 0x672   :  { %17823 = vst [vmem:[#allocation69_spill] sm:$0xff] %v12444_v20  ;;  %v2648_v16 = vpop.f32.mrb[90].mxu0 }
 0x673   :  { %v2650_v34 = vpop.f32.mrb[91].mxu0  ;;  %v12450_v24 = vmul.f32 0.35355338, %v2648_v16 }
 0x674   :  { %v12454_v52 = vmul.f32 0.35355338, %v2650_v34 }
 0x676   :  { %v2654_v28 = vpop.f32.mrb[92].mxu0 }
 0x677   :  { %v2656_v58 = vpop.f32.mrb[93].mxu0  ;;  %v12462_v18 = vmul.f32 0.35355338, %v2654_v28 }
 0x678   :  { %v12466_v19 = vmul.f32 0.35355338, %v2656_v58 }
 0x67a   :  { %v2660_v26 = vpop.f32.mrb[94].mxu0 }
 0x67b   :  { %v12452_v2 = vmul.f32 0.35355338, %v2660_v26  ;;  %v2662_v27 = vpop.f32.mrb[95].mxu0 }
 0x67c   :  { %v12456_v61 = vmul.f32 0.35355338, %v2662_v27 }
 0x67d   :  { %v2903_v51 = vmax.f32 %v12450_v24, %v12452_v2 }
 0x67e   :  { %v2940_v33 = vmax.f32 %v12454_v52, %v12456_v61  ;;  %v2666_v53 = vpop.f32.mrb[96].mxu0 }
 0x67f   :  { %v12464_v63 = vmul.f32 0.35355338, %v2666_v53  ;;  %v2668_v1 = vpop.f32.mrb[97].mxu0 }
 0x680   :  { %v12468_v0 = vmul.f32 0.35355338, %v2668_v1 }
 0x681   :  { %v2904_v57 = vmax.f32 %v12462_v18, %v12464_v63 }
 0x682   :  { %v2941_v39 = vmax.f32 %v12466_v19, %v12468_v0  ;;  %v2672_v22 = vpop.f32.mrb[98].mxu0 }
 0x683   :  { %v12474_v10 = vmul.f32 0.35355338, %v2672_v22  ;;  %v2674_v25 = vpop.f32.mrb[99].mxu0 }
 0x684   :  { %v12476_v21 = vmul.f32 0.35355338, %v2674_v25 }
 0x685   :  { %v2905_v50 = vmax.f32 %v2903_v51, %v12474_v10 }
 0x686   :  { %v2942_v62 = vmax.f32 %v2940_v33, %v12476_v21  ;;  %v2678_v43 = vpop.f32.mrb[100].mxu0 }
 0x687   :  { %v12480_v49 = vmul.f32 0.35355338, %v2678_v43  ;;  %v2680_v59 = vpop.f32.mrb[101].mxu0 }
 0x688   :  { %v12482_v38 = vmul.f32 0.35355338, %v2680_v59 }
 0x689   :  { %v2906_v14 = vmax.f32 %v2904_v57, %v12480_v49 }
 0x68a   :  { %v2943_v11 = vmax.f32 %v2941_v39, %v12482_v38  ;;  %v2684_v6 = vpop.f32.mrb[102].mxu0 }
 0x68b   :  { %v12486_v40 = vmul.f32 0.35355338, %v2684_v6  ;;  %v2686_v5 = vpop.f32.mrb[103].mxu0 }
 0x68c   :  { %v12488_v54 = vmul.f32 0.35355338, %v2686_v5 }
 0x68d   :  { %v2907_v3 = vmax.f32 %v2905_v50, %v12486_v40 }
 0x68e   :  { %v2944_v15 = vmax.f32 %v2942_v62, %v12488_v54  ;;  %v2690_v47 = vpop.f32.mrb[104].mxu0 }
 0x68f   :  { %v12492_v41 = vmul.f32 0.35355338, %v2690_v47  ;;  %v2692_v45 = vpop.f32.mrb[105].mxu0 }
 0x690   :  { %v12494_v42 = vmul.f32 0.35355338, %v2692_v45 }
 0x691   :  { %v2908_v12 = vmax.f32 %v2906_v14, %v12492_v41 }
 0x692   :  { %v2945_v13 = vmax.f32 %v2943_v11, %v12494_v42  ;;  %v2696_v35 = vpop.f32.mrb[106].mxu0 }
 0x693   :  { %v12498_v60 = vmul.f32 0.35355338, %v2696_v35  ;;  %v2698_v30 = vpop.f32.mrb[107].mxu0 }
 0x694   :  { %v12500_v48 = vmul.f32 0.35355338, %v2698_v30 }
 0x695   :  { %v2909_v8 = vmax.f32 %v2907_v3, %v12498_v60 }
 0x696   :  { %v2946_v17 = vmax.f32 %v2944_v15, %v12500_v48  ;;  %v2702_v32 = vpop.f32.mrb[108].mxu0 }
 0x697   :  { %v12504_v36 = vmul.f32 0.35355338, %v2702_v32  ;;  %v2704_v4 = vpop.f32.mrb[109].mxu0 }
 0x698   :  { %v12506_v23 = vmul.f32 0.35355338, %v2704_v4 }
 0x699   :  { %v2910_v29 = vmax.f32 %v2908_v12, %v12504_v36 }
 0x69a   :  { %v2947_v9 = vmax.f32 %v2945_v13, %v12506_v23  ;;  %v2708_v16 = vpop.f32.mrb[110].mxu0 }
 0x69b   :  { %v12510_v34 = vmul.f32 0.35355338, %v2708_v16  ;;  %v2710_v28 = vpop.f32.mrb[111].mxu0 }
 0x69c   :  { %v12512_v58 = vmul.f32 0.35355338, %v2710_v28 }
 0x69d   :  { %v2911_v26 = vmax.f32 %v2909_v8, %v12510_v34 }
 0x69e   :  { %v2948_v27 = vmax.f32 %v2946_v17, %v12512_v58  ;;  %v2714_v51 = vpop.f32.mrb[112].mxu0 }
 0x69f   :  { %v12516_v33 = vmul.f32 0.35355338, %v2714_v51  ;;  %v2716_v53 = vpop.f32.mrb[113].mxu0 }
 0x6a0   :  { %v12518_v1 = vmul.f32 0.35355338, %v2716_v53 }
 0x6a1   :  { %v2912_v57 = vmax.f32 %v2910_v29, %v12516_v33 }
 0x6a2   :  { %17826 = vst [vmem:[#allocation70_spill] sm:$0xff] %v12518_v1  ;;  %v2949_v39 = vmax.f32 %v2947_v9, %v12518_v1  ;;  %v2720_v22 = vpop.f32.mrb[114].mxu0 }
 0x6a3   :  { %v12522_v25 = vmul.f32 0.35355338, %v2720_v22  ;;  %v2722_v50 = vpop.f32.mrb[115].mxu0 }
 0x6a4   :  { %v12524_v62 = vmul.f32 0.35355338, %v2722_v50 }
 0x6a5   :  { %v2913_v43 = vmax.f32 %v2911_v26, %v12522_v25 }
 0x6a6   :  { %17827 = vst [vmem:[#allocation71_spill] sm:$0xff] %v12524_v62  ;;  %v2950_v59 = vmax.f32 %v2948_v27, %v12524_v62  ;;  %v2726_v14 = vpop.f32.mrb[116].mxu0 }
 0x6a7   :  { %v12528_v11 = vmul.f32 0.35355338, %v2726_v14  ;;  %v2728_v6 = vpop.f32.mrb[117].mxu0 }
 0x6a8   :  { %v12530_v5 = vmul.f32 0.35355338, %v2728_v6 }
 0x6a9   :  { %v2914_v3 = vmax.f32 %v2912_v57, %v12528_v11 }
 0x6aa   :  { %17828 = vst [vmem:[#allocation72_spill] sm:$0xff] %v12530_v5  ;;  %v2951_v15 = vmax.f32 %v2949_v39, %v12530_v5  ;;  %v2732_v47 = vpop.f32.mrb[118].mxu0 }
 0x6ab   :  { %v12534_v45 = vmul.f32 0.35355338, %v2732_v47  ;;  %v2734_v12 = vpop.f32.mrb[119].mxu0 }
 0x6ac   :  { %v12536_v13 = vmul.f32 0.35355338, %v2734_v12 }
 0x6ad   :  { %v2915_v35 = vmax.f32 %v2913_v43, %v12534_v45 }
 0x6ae   :  { %17829 = vst [vmem:[#allocation73_spill] sm:$0xff] %v12536_v13  ;;  %v2952_v30 = vmax.f32 %v2950_v59, %v12536_v13  ;;  %v2738_v8 = vpop.f32.mrb[120].mxu0 }
 0x6af   :  { %v12540_v17 = vmul.f32 0.35355338, %v2738_v8  ;;  %v2740_v32 = vpop.f32.mrb[121].mxu0 }
 0x6b0   :  { %v12542_v4 = vmul.f32 0.35355338, %v2740_v32 }
 0x6b1   :  { %v2916_v29 = vmax.f32 %v2914_v3, %v12540_v17 }
 0x6b2   :  { %17830 = vst [vmem:[#allocation74_spill] sm:$0xff] %v12542_v4  ;;  %v2953_v9 = vmax.f32 %v2951_v15, %v12542_v4  ;;  %v2744_v16 = vpop.f32.mrb[122].mxu0 }
 0x6b3   :  { %v12546_v28 = vmul.f32 0.35355338, %v2744_v16  ;;  %v2746_v26 = vpop.f32.mrb[123].mxu0 }
 0x6b4   :  { %v12548_v27 = vmul.f32 0.35355338, %v2746_v26 }
 0x6b5   :  { %v2917_v51 = vmax.f32 %v2915_v35, %v12546_v28 }
 0x6b6   :  { %17831 = vst [vmem:[#allocation75_spill] sm:$0xff] %v12548_v27  ;;  %v2954_v53 = vmax.f32 %v2952_v30, %v12548_v27  ;;  %v2750_v57 = vpop.f32.mrb[124].mxu0 }
 0x6b7   :  { %v12552_v39 = vmul.f32 0.35355338, %v2750_v57  ;;  %v2752_v22 = vpop.f32.mrb[125].mxu0 }
 0x6b8   :  { %v12554_v50 = vmul.f32 0.35355338, %v2752_v22 }
 0x6b9   :  { %v2918_v43 = vmax.f32 %v2916_v29, %v12552_v39 }
 0x6ba   :  { %17832 = vst [vmem:[#allocation76_spill] sm:$0xff] %v12554_v50  ;;  %v2955_v59 = vmax.f32 %v2953_v9, %v12554_v50  ;;  %v2756_v14 = vpop.f32.mrb[126].mxu0 }
 0x6bb   :  { %v12558_v6 = vmul.f32 0.35355338, %v2756_v14  ;;  %v2758_v3 = vpop.f32.mrb[127].mxu0 }
 0x6bc   :  { %v12560_v15 = vmul.f32 0.35355338, %v2758_v3 }
 0x6bd   :  { %v2919_v47 = vmax.f32 %v2917_v51, %v12558_v6 }
 0x6be   :  { %17833 = vst [vmem:[#allocation77_spill] sm:$0xff] %v12560_v15  ;;  %v2956_v12 = vmax.f32 %v2954_v53, %v12560_v15  ;;  %v2762_v35 = vpop.f32.mrb[128].mxu0 }
 0x6bf   :  { %v12564_v30 = vmul.f32 0.35355338, %v2762_v35  ;;  %v2764_v8 = vpop.f32.mrb[129].mxu0 }
 0x6c0   :  { %v12566_v32 = vmul.f32 0.35355338, %v2764_v8 }
 0x6c1   :  { %v2920_v29 = vmax.f32 %v2918_v43, %v12564_v30 }
 0x6c2   :  { %17834 = vst [vmem:[#allocation78_spill] sm:$0xff] %v12566_v32  ;;  %v2957_v9 = vmax.f32 %v2955_v59, %v12566_v32  ;;  %v2768_v16 = vpop.f32.mrb[130].mxu0 }
 0x6c3   :  { %v2770_v26 = vpop.f32.mrb[131].mxu0  ;;  %v12573_v51 = vmul.f32 0.35355338, %v2768_v16 }
 0x6c4   :  { %v12570_v57 = vmul.f32 0.35355338, %v2770_v26 }
 0x6c5   :  { %v2921_v59 = vmax.f32 %v2919_v47, %v12573_v51 }
 0x6c6   :  { %17835 = vst [vmem:[#allocation84_spill] sm:$0xff] %v12570_v57  ;;  %v2958_v22 = vmax.f32 %v2956_v12, %v12570_v57  ;;  %v2774_v14 = vpop.f32.mrb[132].mxu0 }
 0x6c7   :  { %v12575_v53 = vmul.f32 0.35355338, %v2774_v14  ;;  %v2776_v3 = vpop.f32.mrb[133].mxu0 }
 0x6c8   :  { %v12577_v35 = vmul.f32 0.35355338, %v2776_v3 }
 0x6c9   :  { %v2922_v8 = vmax.f32 %v2920_v29, %v12575_v53 }
 0x6ca   :  { %17836 = vst [vmem:[#allocation169_spill] sm:$0xff] %v12577_v35  ;;  %v2959_v43 = vmax.f32 %v2957_v9, %v12577_v35  ;;  %v2780_v56 = vpop.f32.mrb[134].mxu0 }
 0x6cb   :  { %v12582_v46 = vmul.f32 0.35355338, %v2780_v56  ;;  %v2782_v26 = vpop.f32.mrb[135].mxu0 }
 0x6cc   :  { %v12591_v44 = vmul.f32 0.35355338, %v2782_v26 }
 0x6cd   :  { %v2923_v12 = vmax.f32 %v2921_v59, %v12582_v46 }
 0x6ce   :  { %v2786_v31 = vpop.f32.mrb[136].mxu0  ;;  %17837 = vst [vmem:[#allocation170_spill] sm:$0xff] %v12591_v44  ;;  %v2960_v59 = vmax.f32 %v2958_v22, %v12591_v44 }
 0x6cf   :  { %v12585_v16 = vmul.f32 0.35355338, %v2786_v31  ;;  %v2788_v14 = vpop.f32.mrb[137].mxu0 }
 0x6d0   :  { %v12599_v35 = vmul.f32 0.35355338, %v2788_v14 }
 0x6d1   :  { %v2924_v7 = vmax.f32 %v2922_v8, %v12585_v16 }
 0x6d2   :  { %v2792_v3 = vpop.f32.mrb[138].mxu0  ;;  %17839 = vst [vmem:[#allocation172_spill] sm:$0xff] %v12599_v35 }
 0x6d3   :  { %v12588_v37 = vmul.f32 0.35355338, %v2792_v3  ;;  %v2794_v29 = vpop.f32.mrb[139].mxu0 }
 0x6d4   :  { %v12595_v55 = vmul.f32 0.35355338, %v2794_v29  ;;  %v2961_v29 = vmax.f32 %v2959_v43, %v12599_v35 }
 0x6d5   :  { %v2925_v9 = vmax.f32 %v2923_v12, %v12588_v37 }
 0x6d6   :  { %v2798_v47 = vpop.f32.mrb[140].mxu0  ;;  %17838 = vst [vmem:[#allocation171_spill] sm:$0xff] %v12595_v55  ;;  %v2962_v12 = vmax.f32 %v2960_v59, %v12595_v55 }
 0x6d7   :  { %v12593_v56 = vmul.f32 0.35355338, %v2798_v47  ;;  %v2800_v20 = vpop.f32.mrb[141].mxu0 }
 0x6d8   :  { %v12604_v26 = vmul.f32 0.35355338, %v2800_v20 }
 0x6d9   :  { %v2926_v31 = vmax.f32 %v2924_v7, %v12593_v56 }
 0x6da   :  { %v2804_v8 = vpop.f32.mrb[142].mxu0  ;;  %17840 = vst [vmem:[#allocation79_spill] sm:$0xff] %v12604_v26 }
 0x6db   :  { %v12601_v3 = vmul.f32 0.35355338, %v2804_v8  ;;  %v2806_v57 = vpop.f32.mrb[143].mxu0  ;;  %v2963_v8 = vmax.f32 %v2961_v29, %v12604_v26 }
 0x6dc   :  { %v12606_v32 = vmul.f32 0.35355338, %v2806_v57 }
 0x6dd   :  { %v2927_v47 = vmax.f32 %v2925_v9, %v12601_v3 }
 0x6de   :  { %17841 = vst [vmem:[#allocation83_spill] sm:$0xff] %v12606_v32  ;;  %v2964_v7 = vmax.f32 %v2962_v12, %v12606_v32  ;;  %v2810_v15 = vpop.f32.mrb[144].mxu0 }
 0x6df   :  { %v12611_v22 = vmul.f32 0.35355338, %v2810_v15  ;;  %v2812_v14 = vpop.f32.mrb[145].mxu0 }
 0x6e0   :  { %v12614_v44 = vmul.f32 0.35355338, %v2812_v14 }
 0x6e1   :  { %v2928_v59 = vmax.f32 %v2926_v31, %v12611_v22 }
 0x6e2   :  { %17842 = vst [vmem:[#allocation80_spill] sm:$0xff] %v12614_v44  ;;  %v2965_v20 = vmax.f32 %v2963_v8, %v12614_v44  ;;  %v2816_v57 = vpop.f32.mrb[146].mxu0 }
 0x6e3   :  { %v12618_v55 = vmul.f32 0.35355338, %v2816_v57  ;;  %v2818_v9 = vpop.f32.mrb[147].mxu0 }
 0x6e4   :  { %v12620_v50 = vmul.f32 0.35355338, %v2818_v9 }
 0x6e5   :  { %v2929_v43 = vmax.f32 %v2927_v47, %v12618_v55 }
 0x6e6   :  { %17843 = vst [vmem:[#allocation58_spill] sm:$0xff] %v12620_v50  ;;  %v2966_v15 = vmax.f32 %v2964_v7, %v12620_v50  ;;  %v2822_v12 = vpop.f32.mrb[148].mxu0 }
 0x6e7   :  { %v12624_v35 = vmul.f32 0.35355338, %v2822_v12  ;;  %v2824_v29 = vpop.f32.mrb[149].mxu0 }
 0x6e8   :  { %v12626_v14 = vmul.f32 0.35355338, %v2824_v29 }
 0x6e9   :  { %v2930_v31 = vmax.f32 %v2928_v59, %v12624_v35 }
 0x6ea   :  { %17844 = vst [vmem:[#allocation33_spill] sm:$0xff] %v12626_v14  ;;  %v2967_v8 = vmax.f32 %v2965_v20, %v12626_v14  ;;  %v2828_v26 = vpop.f32.mrb[150].mxu0 }
 0x6eb   :  { %v12630_v57 = vmul.f32 0.35355338, %v2828_v26  ;;  %v2830_v44 = vpop.f32.mrb[151].mxu0 }
 0x6ec   :  { %v12632_v9 = vmul.f32 0.35355338, %v2830_v44 }
 0x6ed   :  { %v2931_v47 = vmax.f32 %v2929_v43, %v12630_v57 }
 0x6ee   :  { %17845 = vst [vmem:[#allocation31_spill] sm:$0xff] %v12632_v9  ;;  %v2968_v7 = vmax.f32 %v2966_v15, %v12632_v9  ;;  %v2834_v50 = vpop.f32.mrb[152].mxu0 }
 0x6ef   :  { %v12636_v12 = vmul.f32 0.35355338, %v2834_v50  ;;  %v2836_v32 = vpop.f32.mrb[153].mxu0 }
 0x6f0   :  { %v12638_v29 = vmul.f32 0.35355338, %v2836_v32 }
 0x6f1   :  { %v2932_v59 = vmax.f32 %v2930_v31, %v12636_v12 }
 0x6f2   :  { %v2969_v20 = vmax.f32 %v2967_v8, %v12638_v29 }
 0x6f3   :  { %v2933_v14 = vmax.f32 %v2931_v47, %v2932_v59 }
 0x6f4   :  { %v2970_v26 = vmax.f32 %v2968_v7, %v2969_v20 }
 0x6f5   :  { %v2934_v27 = vrot.slane %v2933_v14, 4 }
 0x6f6   :  { %v2971_v4 = vrot.slane %v2970_v26, 4 }
 0x6f7   :  { %v2935_v44 = vmax.f32 %v2933_v14, %v2934_v27 }
 0x6f8   :  { %v2972_v13 = vmax.f32 %v2970_v26, %v2971_v4 }
 0x6f9   :  { %v2936_v5 = vrot.slane %v2935_v44, 2 }
 0x6fa   :  { %v2973_v43 = vrot.slane %v2972_v13, 2 }
 0x6fb   :  { %v2937_v62 = vmax.f32 %v2935_v44, %v2936_v5 }
 0x6fc   :  { %v2974_v15 = vmax.f32 %v2972_v13, %v2973_v43 }
 0x6fd   :  { %v2938_v9 = vrot.slane %v2937_v62, 1 }
 0x6fe   :  { %v2975_v50 = vrot.slane %v2974_v15, 1 }
 0x6ff   :  { %v12642_v1 = vmax.f32 %v2937_v62, %v2938_v9 }
 0x700   :  { %v12644_v32 = vmax.f32 %v2974_v15, %v2975_v50 }
 0x701   :  { %v2977_v31 = vsub.f32 %v12450_v24, %v12642_v1  ;;  %v2979_v8 = vsub.f32 %v12462_v18, %v12642_v1  ;;  %v2981_v27 = vsub.f32 %v12452_v2, %v12642_v1  ;;  %v2983_v4 = vsub.f32 %v12464_v63, %v12642_v1 }
 0x702   :  { %v2985_v5 = vsub.f32 %v12474_v10, %v12642_v1  ;;  %v2987_v62 = vsub.f32 %v12480_v49, %v12642_v1  ;;  %v2989_v13 = vsub.f32 %v12486_v40, %v12642_v1  ;;  %v2991_v24 = vsub.f32 %v12492_v41, %v12642_v1 }
 0x703   :  { %v2993_v18 = vsub.f32 %v12498_v60, %v12642_v1  ;;  %v2995_v2 = vsub.f32 %v12504_v36, %v12642_v1  ;;  %v2997_v63 = vsub.f32 %v12510_v34, %v12642_v1  ;;  %v2999_v10 = vsub.f32 %v12516_v33, %v12642_v1 }
 0x704   :  { %v3001_v49 = vsub.f32 %v12522_v25, %v12642_v1  ;;  %v3003_v40 = vsub.f32 %v12528_v11, %v12642_v1  ;;  %v3005_v41 = vsub.f32 %v12534_v45, %v12642_v1  ;;  %v3007_v60 = vsub.f32 %v12540_v17, %v12642_v1 }
 0x705   :  { %v3009_v36 = vsub.f32 %v12546_v28, %v12642_v1  ;;  %v3011_v34 = vsub.f32 %v12552_v39, %v12642_v1  ;;  %v3013_v33 = vsub.f32 %v12558_v6, %v12642_v1  ;;  %v3015_v25 = vsub.f32 %v12564_v30, %v12642_v1 }
 0x706   :  { %v3019_v11 = vsub.f32 %v12575_v53, %v12642_v1  ;;  %v3021_v45 = vsub.f32 %v12582_v46, %v12642_v1  ;;  %v3023_v17 = vsub.f32 %v12585_v16, %v12642_v1  ;;  %v3025_v28 = vsub.f32 %v12588_v37, %v12642_v1  ;;  %v17860_v16 = vld [vmem:[#allocation33_spill] sm:$0xff] }
 0x707   :  { %v3027_v39 = vsub.f32 %v12593_v56, %v12642_v1  ;;  %v3029_v6 = vsub.f32 %v12601_v3, %v12642_v1  ;;  %v3041_v59 = vmul.f32 1.442695, %v2977_v31  ;;  %v3045_v20 = vmul.f32 1.442695, %v2979_v8 }
 0x708   :  { %v3049_v26 = vmul.f32 1.442695, %v2981_v27  ;;  %v3053_v43 = vmul.f32 1.442695, %v2983_v4  ;;  %v3057_v50 = vmul.f32 1.442695, %v2985_v5  ;;  %v3017_v31 = vsub.f32 %v12573_v51, %v12642_v1 }
 0x709   :  { %9274 = vpow2.f32 %v3041_v59  ;;  %v3061_v9 = vmul.f32 1.442695, %v2987_v62  ;;  %v3065_v14 = vmul.f32 1.442695, %v2989_v13  ;;  %v3069_v47 = vmul.f32 1.442695, %v2991_v24 }
 0x70a   :  { %9276 = vpow2.f32 %v3045_v20  ;;  %v3073_v8 = vmul.f32 1.442695, %v2993_v18  ;;  %v3077_v27 = vmul.f32 1.442695, %v2995_v2  ;;  %v3081_v44 = vmul.f32 1.442695, %v2997_v63 }
 0x70b   :  { %9278 = vpow2.f32 %v3049_v26  ;;  %v3085_v4 = vmul.f32 1.442695, %v2999_v10  ;;  %v3089_v7 = vmul.f32 1.442695, %v3001_v49  ;;  %v3093_v15 = vmul.f32 1.442695, %v3003_v40 }
 0x70c   :  { %9280 = vpow2.f32 %v3053_v43  ;;  %v3097_v59 = vmul.f32 1.442695, %v3005_v41  ;;  %v3101_v5 = vmul.f32 1.442695, %v3007_v60  ;;  %v3105_v62 = vmul.f32 1.442695, %v3009_v36 }
 0x70d   :  { %9282 = vpow2.f32 %v3057_v50  ;;  %v3109_v20 = vmul.f32 1.442695, %v3011_v34  ;;  %v3113_v13 = vmul.f32 1.442695, %v3013_v33  ;;  %v3117_v24 = vmul.f32 1.442695, %v3015_v25 }
 0x70e   :  { %9284 = vpow2.f32 %v3061_v9  ;;  %v17846_v33 = vld [vmem:[#allocation70_spill] sm:$0xff]  ;;  %v17852_v41 = vld [vmem:[#allocation76_spill] sm:$0xff]  ;;  %v17853_v40 = vld [vmem:[#allocation77_spill] sm:$0xff]  ;;  %v3129_v34 = vmul.f32 1.442695, %v3021_v45  ;;  %v17863_v56 = vsub.f32 %v12618_v55, %v12642_v1 }
 0x70f   :  { %9286 = vpow2.f32 %v3065_v14  ;;  %v17855_v63 = vld [vmem:[#allocation84_spill] sm:$0xff]  ;;  %v17856_v2 = vld [vmem:[#allocation169_spill] sm:$0xff] }
 0x710   :  { %9288 = vpow2.f32 %v3069_v47  ;;  %v17847_v47 = vld [vmem:[#allocation71_spill] sm:$0xff] }
 0x711   :  { %9290 = vpow2.f32 %v3073_v8  ;;  %v17849_v8 = vld [vmem:[#allocation73_spill] sm:$0xff] }
 0x712   :  { %9292 = vpow2.f32 %v3077_v27  ;;  %v17854_v27 = vld [vmem:[#allocation78_spill] sm:$0xff] }
 0x713   :  { %v12722_v10 = vpop.eup %9274  ;;  %9294 = vpow2.f32 %v3081_v44  ;;  %v17848_v44 = vld [vmem:[#allocation72_spill] sm:$0xff] }
 0x714   :  { %v12730_v60 = vpop.eup %9276  ;;  %9296 = vpow2.f32 %v3085_v4  ;;  %v17850_v4 = vld [vmem:[#allocation74_spill] sm:$0xff] }
 0x715   :  { %v12738_v14 = vpop.eup %9278  ;;  %9298 = vpow2.f32 %v3089_v7  ;;  %v3169_v9 = vadd.f32 %v12730_v60, %v12722_v10  ;;  %v17851_v7 = vld [vmem:[#allocation75_spill] sm:$0xff] }
 0x716   :  { %v12746_v50 = vpop.eup %9280  ;;  %9300 = vpow2.f32 %v3093_v15  ;;  %v3125_v15 = vmul.f32 1.442695, %v3019_v11  ;;  %v17858_v11 = vld [vmem:[#allocation80_spill] sm:$0xff] }
 0x717   :  { %v12754_v36 = vpop.eup %9282  ;;  %9302 = vpow2.f32 %v3097_v59  ;;  %v3170_v26 = vadd.f32 %v12738_v14, %v3169_v9  ;;  %v3121_v9 = vmul.f32 1.442695, %v3017_v31  ;;  %v3133_v59 = vmul.f32 1.442695, %v3023_v17  ;;  %v17861_v17 = vld [vmem:[#allocation31_spill] sm:$0xff] }
 0x718   :  { %v12761_v49 = vpop.eup %9284  ;;  %9304 = vpow2.f32 %v3101_v5 }
 0x719   :  { %v12769_v18 = vpop.eup %9286  ;;  %9306 = vpow2.f32 %v3105_v62  ;;  %v3171_v43 = vadd.f32 %v12746_v50, %v3170_v26  ;;  %v17857_v62 = vld [vmem:[#allocation83_spill] sm:$0xff] }
 0x71a   :  { %v12775_v5 = vpop.eup %9288  ;;  %9308 = vpow2.f32 %v3109_v20  ;;  %v17859_v20 = vld [vmem:[#allocation58_spill] sm:$0xff] }
 0x71b   :  { %v12785_v25 = vpop.eup %9290  ;;  %9310 = vpow2.f32 %v3113_v13  ;;  %v3172_v53 = vadd.f32 %v12754_v36, %v3171_v43  ;;  %v3137_v43 = vmul.f32 1.442695, %v3025_v28  ;;  %v17862_v28 = vsub.f32 %v12611_v22, %v12642_v1 }
 0x71c   :  { %v12792_v46 = vpop.eup %9292  ;;  %9312 = vpow2.f32 %v3117_v24  ;;  %v3141_v24 = vmul.f32 1.442695, %v3027_v39  ;;  %v3153_v39 = vmul.f32 1.442695, %v17863_v56  ;;  %v17865_v22 = vsub.f32 %v12630_v57, %v12642_v1 }
 0x71d   :  { %v12800_v30 = vpop.eup %9294  ;;  %9314 = vpow2.f32 %v3121_v9  ;;  %v3173_v51 = vadd.f32 %v12761_v49, %v3172_v53  ;;  %v3145_v9 = vmul.f32 1.442695, %v3029_v6  ;;  %v17864_v6 = vsub.f32 %v12624_v35, %v12642_v1 }
 0x71e   :  { %v12806_v26 = vpop.eup %9296  ;;  %9316 = vpow2.f32 %v3125_v15  ;;  %v3149_v15 = vmul.f32 1.442695, %v17862_v28 }
 0x71f   :  { %v12811_v31 = vpop.eup %9298  ;;  %9318 = vpow2.f32 %v3129_v34  ;;  %v3174_v13 = vadd.f32 %v12769_v18, %v3173_v51  ;;  %v3157_v51 = vmul.f32 1.442695, %v17864_v6 }
 0x720   :  { %v12817_v37 = vpop.eup %9300  ;;  %9320 = vpow2.f32 %v3133_v59 }
 0x721   :  { %v12822_v53 = vpop.eup %9302  ;;  %9322 = vpow2.f32 %v3137_v43  ;;  %v3175_v34 = vadd.f32 %v12775_v5, %v3174_v13  ;;  %v3161_v43 = vmul.f32 1.442695, %v17865_v22  ;;  %v17866_v13 = vsub.f32 %v12636_v12, %v12642_v1 }
 0x722   :  { %v12828_v3 = vpop.eup %9304  ;;  %9324 = vpow2.f32 %v3141_v24  ;;  %v17869_v1 = vsub.f32 %v12456_v61, %v12644_v32  ;;  %v17872_v61 = vsub.f32 %v12482_v38, %v12644_v32  ;;  %v17876_v38 = vsub.f32 %v12506_v23, %v12644_v32 }
 0x723   :  { %v12833_v59 = vpop.eup %9306  ;;  %9326 = vpow2.f32 %v3145_v9  ;;  %v3176_v28 = vadd.f32 %v12785_v25, %v3175_v34  ;;  %v3165_v24 = vmul.f32 1.442695, %v17866_v13  ;;  %v17867_v9 = vsub.f32 %v12454_v52, %v12644_v32 }
 0x724   :  { %v12839_v55 = vpop.eup %9308  ;;  %9328 = vpow2.f32 %v3149_v15  ;;  %v17868_v34 = vsub.f32 %v12466_v19, %v12644_v32  ;;  %v3051_v12 = vmul.f32 1.442695, %v17869_v1  ;;  %v17870_v52 = vsub.f32 %v12468_v0, %v12644_v32 }
 0x725   :  { %v12844_v56 = vpop.eup %9310  ;;  %9330 = vpow2.f32 %v3153_v39  ;;  %v3177_v35 = vadd.f32 %v12792_v46, %v3176_v28  ;;  %v3043_v6 = vmul.f32 1.442695, %v17867_v9  ;;  %v3063_v19 = vmul.f32 1.442695, %v17872_v61 }
 0x726   :  { %v12850_v57 = vpop.eup %9312  ;;  %9332 = vpow2.f32 %v3157_v51  ;;  %v3047_v15 = vmul.f32 1.442695, %v17868_v34  ;;  %v3055_v28 = vmul.f32 1.442695, %v17870_v52  ;;  %v17871_v51 = vsub.f32 %v12476_v21, %v12644_v32 }
 0x727   :  { %v12858_v22 = vpop.eup %9314  ;;  %9334 = vpow2.f32 %v3161_v43  ;;  %v3178_v39 = vadd.f32 %v12800_v30, %v3177_v35  ;;  %v17873_v43 = vsub.f32 %v12488_v54, %v12644_v32  ;;  %v17874_v35 = vsub.f32 %v12494_v42, %v12644_v32 }
 0x728   :  { %v3059_v13 = vmul.f32 1.442695, %v17871_v51  ;;  %v12867_v9 = vpop.eup %9316  ;;  %9336 = vpow2.f32 %v3165_v24  ;;  %v17875_v24 = vsub.f32 %v12500_v48, %v12644_v32  ;;  %v3079_v51 = vmul.f32 1.442695, %v17876_v38 }
 0x729   :  { %v3067_v34 = vmul.f32 1.442695, %v17873_v43  ;;  %v3071_v0 = vmul.f32 1.442695, %v17874_v35  ;;  %v12878_v1 = vpop.eup %9318  ;;  %v3179_v21 = vadd.f32 %v12806_v26, %v3178_v39  ;;  %9338 = vpow2.f32 %v3043_v6 }
 0x72a   :  { %v3075_v52 = vmul.f32 1.442695, %v17875_v24  ;;  %v12887_v61 = vpop.eup %9320  ;;  %9340 = vpow2.f32 %v3047_v15  ;;  %v17878_v38 = vsub.f32 %v17846_v33, %v12644_v32 }
 0x72b   :  { %v12895_v39 = vpop.eup %9322  ;;  %v3180_v48 = vadd.f32 %v12811_v31, %v3179_v21  ;;  %9342 = vpow2.f32 %v3051_v12 }
 0x72c   :  { %v12902_v43 = vpop.eup %9324  ;;  %9344 = vpow2.f32 %v3055_v28  ;;  %v17877_v28 = vsub.f32 %v12512_v58, %v12644_v32  ;;  %v3087_v24 = vmul.f32 1.442695, %v17878_v38 }
 0x72d   :  { %v12910_v21 = vpop.eup %9326  ;;  %v3181_v12 = vadd.f32 %v12817_v37, %v3180_v48  ;;  %9346 = vpow2.f32 %v3059_v13 }
 0x72e   :  { %v12917_v23 = vpop.eup %9328  ;;  %9348 = vpow2.f32 %v3063_v19  ;;  %v3083_v15 = vmul.f32 1.442695, %v17877_v28 }
 0x72f   :  { %v12925_v48 = vpop.eup %9330  ;;  %v3182_v13 = vadd.f32 %v12822_v53, %v3181_v12  ;;  %9350 = vpow2.f32 %v3067_v34  ;;  %v17879_v34 = vsub.f32 %v17847_v47, %v12644_v32  ;;  %v17884_v47 = vsub.f32 %v17852_v41, %v12644_v32 }
 0x730   :  { %v12933_v45 = vpop.eup %9332  ;;  %9352 = vpow2.f32 %v3071_v0  ;;  %v17880_v0 = vsub.f32 %v17848_v44, %v12644_v32  ;;  %v17883_v44 = vsub.f32 %v17851_v7, %v12644_v32  ;;  %v17887_v41 = vsub.f32 %v17855_v63, %v12644_v32 }
 0x731   :  { %v12938_v35 = vpop.eup %9334  ;;  %v3183_v6 = vadd.f32 %v12828_v3, %v3182_v13  ;;  %9354 = vpow2.f32 %v3075_v52  ;;  %v3091_v58 = vmul.f32 1.442695, %v17879_v34  ;;  %v17881_v52 = vsub.f32 %v17849_v8, %v12644_v32 }
 0x732   :  { %v12946_v28 = vpop.eup %9336  ;;  %9356 = vpow2.f32 %v3079_v51  ;;  %v3095_v33 = vmul.f32 1.442695, %v17880_v0  ;;  %v17882_v51 = vsub.f32 %v17850_v4, %v12644_v32  ;;  %v3107_v0 = vmul.f32 1.442695, %v17883_v44 }
 0x733   :  { %v9339_v38 = vpop.eup %9338  ;;  %v3184_v19 = vadd.f32 %v12833_v59, %v3183_v6  ;;  %9358 = vpow2.f32 %v3083_v15  ;;  %v3099_v13 = vmul.f32 1.442695, %v17881_v52  ;;  %v17885_v4 = vsub.f32 %v17853_v40, %v12644_v32 }
 0x734   :  { %v9341_v34 = vpop.eup %9340  ;;  %9360 = vpow2.f32 %v3087_v24  ;;  %v3103_v12 = vmul.f32 1.442695, %v17882_v51  ;;  %v3111_v24 = vmul.f32 1.442695, %v17884_v47  ;;  %v3123_v47 = vmul.f32 1.442695, %v17887_v41 }
 0x735   :  { %v9343_v42 = vpop.eup %9342  ;;  %v3185_v6 = vadd.f32 %v12839_v55, %v3184_v19  ;;  %9362 = vpow2.f32 %v3091_v58  ;;  %v3206_v15 = vadd.f32 %v9341_v34, %v9339_v38  ;;  %v8594_v8 = vpack.c.bf16 %v9341_v34, %v9339_v38 }
 0x736   :  { %v9345_v52 = vpop.eup %9344  ;;  %9364 = vpow2.f32 %v3095_v33  ;;  %v3115_v51 = vmul.f32 1.442695, %v17885_v4  ;;  %v17886_v33 = vsub.f32 %v17854_v27, %v12644_v32  ;;  %v17888_v40 = vpack.c.bf16 %v12730_v60, %v12722_v10 }
 0x737   :  { %v9347_v54 = vpop.eup %9346  ;;  %v3186_v7 = vadd.f32 %v12844_v56, %v3185_v6  ;;  %9366 = vpow2.f32 %v3099_v13  ;;  %v3207_v44 = vadd.f32 %v9343_v42, %v3206_v15  ;;  %8595 = vmatprep.subr.bf16.mxu1 %v8594_v8  ;;  %v8598_v19 = vpack.c.bf16 %v9345_v52, %v9343_v42 }
 0x738   :  { %v9349_v58 = vpop.eup %9348  ;;  %9368 = vpow2.f32 %v3103_v12  ;;  %v3119_v38 = vmul.f32 1.442695, %v17886_v33  ;;  %8597 = vmatpush1.bf16.msra.mxu1 %v17888_v40  ;;  %v17889_v27 = vsub.f32 %v17856_v2, %v12644_v32 }
 0x739   :  { %v9351_v34 = vpop.eup %9350  ;;  %v3187_v13 = vadd.f32 %v12850_v57, %v3186_v7  ;;  %9370 = vpow2.f32 %v3107_v0  ;;  %v3208_v6 = vadd.f32 %v9345_v52, %v3207_v44  ;;  %8599 = vmatprep.subr.bf16.mxu1 %v8598_v19  ;;  %v8602_v42 = vpack.c.bf16 %v9349_v58, %v9347_v54 }
 0x73a   :  { %v9353_v12 = vpop.eup %9352  ;;  %9372 = vpow2.f32 %v3111_v24  ;;  %v3127_v15 = vmul.f32 1.442695, %v17889_v27  ;;  %v17890_v0 = vpack.c.bf16 %v12746_v50, %v12738_v14  ;;  %v17892_v50 = vsub.f32 %v17858_v11, %v12644_v32 }
 0x73b   :  { %v9355_v8 = vpop.eup %9354  ;;  %v3188_v63 = vadd.f32 %v12858_v22, %v3187_v13  ;;  %9374 = vpow2.f32 %v3115_v51  ;;  %v3209_v4 = vadd.f32 %v9347_v54, %v3208_v6  ;;  %v8606_v10 = vpack.c.bf16 %v9353_v12, %v9351_v34 }
 0x73c   :  { %v9357_v60 = vpop.eup %9356  ;;  %9376 = vpow2.f32 %v3119_v38  ;;  %8601 = vmatpush1.bf16.msra.mxu1 %v17890_v0  ;;  %v17891_v54 = vsub.f32 %v17857_v62, %v12644_v32  ;;  %v3151_v40 = vmul.f32 1.442695, %v17892_v50  ;;  %v17894_v6 = vsub.f32 %v17859_v20, %v12644_v32 }
 0x73d   :  { %v9359_v52 = vpop.eup %9358  ;;  %v3189_v7 = vadd.f32 %v12867_v9, %v3188_v63  ;;  %9378 = vpow2.f32 %v3123_v47  ;;  %v3210_v24 = vadd.f32 %v9349_v58, %v3209_v4  ;;  %8603 = vmatprep.subr.bf16.mxu1 %v8602_v42  ;;  %v8610_v2 = vpack.c.bf16 %v9357_v60, %v9355_v8 }
 0x73e   :  { %v9361_v44 = vpop.eup %9360  ;;  %9380 = vpow2.f32 %v3127_v15  ;;  %v3147_v33 = vmul.f32 1.442695, %v17891_v54  ;;  %v17893_v58 = vpack.c.bf16 %v12761_v49, %v12754_v36  ;;  %v3155_v62 = vmul.f32 1.442695, %v17894_v6  ;;  %v17901_v6 = vld [vmem:[#allocation172_spill] sm:$0xff] }
 0x73f   :  { %v9363_v19 = vpop.eup %9362  ;;  %v3190_v51 = vadd.f32 %v12878_v1, %v3189_v7  ;;  %v3211_v38 = vadd.f32 %v9351_v34, %v3210_v24  ;;  %v8614_v41 = vpack.c.bf16 %v9361_v44, %v9359_v52  ;;  %v17895_v11 = vsub.f32 %v17860_v16, %v12644_v32 }
 0x740   :  { %v9365_v14 = vpop.eup %9364  ;;  %8605 = vmatpush1.bf16.msra.mxu1 %v17893_v58  ;;  %v17896_v49 = vsub.f32 %v17861_v17, %v12644_v32  ;;  %9382 = vpow2.f32 %v3147_v33  ;;  %v17898_v16 = vpack.c.bf16 %v12775_v5, %v12769_v18  ;;  %v17899_v18 = vpack.c.bf16 %v12792_v46, %v12785_v25 }
 0x741   :  { %v12999_v47 = vpop.eup %9366  ;;  %v3191_v13 = vadd.f32 %v12887_v61, %v3190_v51  ;;  %v3212_v42 = vadd.f32 %v9353_v12, %v3211_v38  ;;  %8607 = vmatprep.subr.bf16.mxu1 %v8606_v10  ;;  %v8618_v34 = vpack.c.bf16 %v9365_v14, %v9363_v19  ;;  %v3159_v15 = vmul.f32 1.442695, %v17895_v11  ;;  %v17902_v11 = vld [vmem:[#allocation171_spill] sm:$0xff] }
 0x742   :  { %v9369_v27 = vpop.eup %9368  ;;  %v3163_v36 = vmul.f32 1.442695, %v17896_v49  ;;  %9384 = vpow2.f32 %v3151_v40  ;;  %v17897_v10 = vsub.f32 %v12638_v29, %v12644_v32  ;;  %v17903_v25 = vpack.c.bf16 %v12806_v26, %v12800_v30 }
 0x743   :  { %v13011_v63 = vpop.eup %9370  ;;  %v3192_v4 = vadd.f32 %v12895_v39, %v3191_v13  ;;  %v3213_v0 = vadd.f32 %v9355_v8, %v3212_v42  ;;  %v8622_v20 = vpack.c.bf16 %v9369_v27, %v12999_v47  ;;  %9386 = vpow2.f32 %v3155_v62 }
 0x744   :  { %v9373_v12 = vpop.eup %9372  ;;  %v3167_v7 = vmul.f32 1.442695, %v17897_v10  ;;  %8609 = vmatpush1.bf16.msra.mxu1 %v17898_v16  ;;  %9388 = vpow2.f32 %v3159_v15  ;;  %v3024_v62 = vsub.f32 %v17901_v6, %v12644_v32  ;;  %v3026_v15 = vsub.f32 %v17902_v11, %v12644_v32 }
 0x745   :  { %v9375_v17 = vpop.eup %9374  ;;  %v3193_v24 = vadd.f32 %v12902_v43, %v3192_v4  ;;  %v3214_v51 = vadd.f32 %v9357_v60, %v3213_v0  ;;  %8611 = vmatprep.subr.bf16.mxu1 %v8610_v2  ;;  %v8626_v8 = vpack.c.bf16 %v9373_v12, %v13011_v63  ;;  %9390 = vpow2.f32 %v3163_v36  ;;  %v17900_v60 = vld [vmem:[#allocation170_spill] sm:$0xff]  ;;  %v17904_v4 = vld [vmem:[#allocation79_spill] sm:$0xff] }
 0x746   :  { %v9377_v54 = vpop.eup %9376  ;;  %9392 = vpow2.f32 %v3167_v7  ;;  %v3022_v2 = vsub.f32 %v17900_v60, %v12644_v32  ;;  %v3028_v0 = vsub.f32 %v17904_v4, %v12644_v32  ;;  %v3135_v10 = vmul.f32 1.442695, %v3024_v62  ;;  %v17928_v4 = vld [vmem:[#allocation131_spill] sm:$0xff] }
 0x747   :  { %v9379_v33 = vpop.eup %9378  ;;  %v3194_v38 = vadd.f32 %v12910_v21, %v3193_v24  ;;  %v3215_v29 = vadd.f32 %v9359_v52, %v3214_v51  ;;  %v8630_v50 = vpack.c.bf16 %v9377_v54, %v9375_v17  ;;  %v3139_v30 = vmul.f32 1.442695, %v3026_v15  ;;  %v17917_v15 = vld [vmem:[#allocation103_spill] sm:$0xff] }
 0x748   :  { %v9381_v40 = vpop.eup %9380  ;;  %8613 = vmatpush1.bf16.msra.mxu1 %v17899_v18  ;;  %v3131_v36 = vmul.f32 1.442695, %v3022_v2  ;;  %v17905_v26 = vpack.c.bf16 %v12817_v37, %v12811_v31  ;;  %v3143_v18 = vmul.f32 1.442695, %v3028_v0  ;;  %v17906_v60 = vpack.c.bf16 %v12828_v3, %v12822_v53  ;;  %v17929_v0 = vld [vmem:[#allocation134_spill] sm:$0xff] }
 0x749   :  { %v3195_v5 = vadd.f32 %v12917_v23, %v3194_v38  ;;  %v3216_v58 = vadd.f32 %v9361_v44, %v3215_v29  ;;  %8615 = vmatprep.subr.bf16.mxu1 %v8614_v41  ;;  %v8634_v13 = vpack.c.bf16 %v9381_v40, %v9379_v33  ;;  %v17916_v11 = vpack.c.bf16 %v12946_v28, %v12938_v35 }
 0x74a   :  { %v9383_v46 = vpop.eup %9382  ;;  %9394 = vpow2.f32 %v3131_v36  ;;  %v17925_v36 = vld [vmem:[#allocation121_spill] sm:$0xff] }
 0x74b   :  { %v3196_v52 = vadd.f32 %v12925_v48, %v3195_v5  ;;  %v3217_v42 = vadd.f32 %v9363_v19, %v3216_v58  ;;  %9396 = vpow2.f32 %v3135_v10  ;;  %v17930_v10 = vld [vmem:[#allocation137_spill] sm:$0xff] }
 0x74c   :  { %8617 = vmatpush1.bf16.msra.mxu1 %v17903_v25  ;;  %v9385_v41 = vpop.eup %9384  ;;  %9398 = vpow2.f32 %v3139_v30  ;;  %v17919_v25 = vld [vmem:[#allocation35_spill] sm:$0xff]  ;;  %v17936_v30 = vld [vmem:[#allocation150_spill] sm:$0xff] }
 0x74d   :  { %v3197_v49 = vadd.f32 %v12933_v45, %v3196_v52  ;;  %v3218_v44 = vadd.f32 %v9365_v14, %v3217_v42  ;;  %8619 = vmatprep.subr.bf16.mxu1 %v8618_v34  ;;  %v9387_v7 = vpop.eup %9386  ;;  %v8646_v24 = vpack.c.bf16 %v9385_v41, %v9383_v46  ;;  %9400 = vpow2.f32 %v3143_v18  ;;  %v17914_v42 = vld [vmem:[#allocation107_spill] sm:$0xff]  ;;  %v17942_v18 = vld [vmem:[#allocation94_spill] sm:$0xff] }
 0x74e   :  { %v9389_v51 = vpop.eup %9388 }
 0x74f   :  { %v3198_v19 = vadd.f32 %v12938_v35, %v3197_v49  ;;  %v3219_v16 = vadd.f32 %v12999_v47, %v3218_v44  ;;  %v9391_v38 = vpop.eup %9390  ;;  %v8650_v32 = vpack.c.bf16 %v9389_v51, %v9387_v7  ;;  %v17922_v49 = vld [vmem:[#allocation112_spill] sm:$0xff]  ;;  %v17923_v35 = vld [vmem:[#allocation114_spill] sm:$0xff]  ;;  %v17926_v44 = vld [vmem:[#allocation125_spill] sm:$0xff] }
 0x750   :  { %8621 = vmatpush1.bf16.msra.mxu1 %v17905_v26  ;;  %v9393_v29 = vpop.eup %9392  ;;  %v17937_v26 = vld [vmem:[#allocation152_spill] sm:$0xff] }
 0x751   :  { %v13047_v14 = vadd.f32 %v12946_v28, %v3198_v19  ;;  %v3220_v34 = vadd.f32 %v9369_v27, %v3219_v16  ;;  %8623 = vmatprep.subr.bf16.mxu1 %v8622_v20  ;;  %v8654_v5 = vpack.c.bf16 %v9393_v29, %v9391_v38  ;;  %v17907_v27 = vpack.c.bf16 %v12839_v55, %v12833_v59  ;;  %v17924_v28 = vld [vmem:[#allocation117_spill] sm:$0xff]  ;;  %v17932_v19 = vld [vmem:[#allocation142_spill] sm:$0xff]  ;;  %v17933_v16 = vld [vmem:[#allocation144_spill] sm:$0xff] }
 0x753   :  { %v3221_v47 = vadd.f32 %v13011_v63, %v3220_v34  ;;  %v17908_v63 = vpack.c.bf16 %v12850_v57, %v12844_v56  ;;  %v17939_v34 = vld [vmem:[#allocation156_spill] sm:$0xff] }
 0x754   :  { %8625 = vmatpush1.bf16.msra.mxu1 %v17906_v60  ;;  %v9395_v2 = vpop.eup %9394  ;;  %v17945_v60 = vld [vmem:[#allocation104_spill] sm:$0xff] }
 0x755   :  { %v3222_v31 = vadd.f32 %v9373_v12, %v3221_v47  ;;  %8627 = vmatprep.subr.bf16.mxu1 %v8626_v8  ;;  %v9397_v6 = vpop.eup %9396  ;;  %v17943_v47 = vld [vmem:[#allocation95_spill] sm:$0xff] }
 0x756   :  { %v9399_v3 = vpop.eup %9398  ;;  %v8638_v8 = vpack.c.bf16 %v9397_v6, %v9395_v2 }
 0x757   :  { %v3223_v37 = vadd.f32 %v9375_v17, %v3222_v31  ;;  %v9401_v62 = vpop.eup %9400  ;;  %v17909_v17 = vpack.c.bf16 %v12867_v9, %v12858_v22  ;;  %v17912_v22 = vpack.c.bf16 %v12917_v23, %v12910_v21  ;;  %v17918_v23 = vld [vmem:[#allocation55_spill] sm:$0xff]  ;;  %v17946_v31 = vld [vmem:[#allocation106_spill] sm:$0xff] }
 0x758   :  { %8629 = vmatpush1.bf16.msra.mxu1 %v17907_v27  ;;  %v375_v21 = vadd.f32 %v17918_v23, %v17917_v15  ;;  %v17948_v27 = vld [vmem:[#allocation130_spill] sm:$0xff] }
 0x759   :  { %v3224_v20 = vadd.f32 %v9377_v54, %v3223_v37  ;;  %8631 = vmatprep.subr.bf16.mxu1 %v8630_v50  ;;  %v8642_v54 = vpack.c.bf16 %v9401_v62, %v9399_v3  ;;  %v17911_v50 = vpack.c.bf16 %v12902_v43, %v12895_v39  ;;  %v17915_v39 = vld [vmem:[#allocation37_spill] sm:$0xff]  ;;  %v17947_v37 = vld [vmem:[#allocation124_spill] sm:$0xff] }
 0x75a   :  { %v335_v43 = vadd.f32 %v17915_v39, %v17914_v42 }
 0x75b   :  { %v3225_v58 = vadd.f32 %v9379_v33, %v3224_v20  ;;  %v17910_v33 = vpack.c.bf16 %v12887_v61, %v12878_v1  ;;  %v17913_v1 = vpack.c.bf16 %v12933_v45, %v12925_v48  ;;  %v17920_v45 = vmov 0.0   ;;  %v17921_v48 = vld [vmem:[#allocation110_spill] sm:$0xff]  ;;  %v17949_v20 = vld [vmem:[#allocation133_spill] sm:$0xff] }
 0x75c   :  { %8633 = vmatpush1.bf16.msra.mxu1 %v17908_v63  ;;  %v17953_v63 = vld [vmem:[#allocation43_spill] sm:$0xff] }
 0x75d   :  { %v3226_v53 = vadd.f32 %v9381_v40, %v3225_v58  ;;  %8635 = vmatprep.subr.bf16.mxu1 %v8634_v13  ;;  %v17951_v58 = vld [vmem:[#allocation157_spill] sm:$0xff] }
 0x75f   :  { %v3227_v12 = vadd.f32 %v9395_v2, %v3226_v53  ;;  %v17950_v2 = vld [vmem:[#allocation139_spill] sm:$0xff] }
 0x760   :  { %8637 = vmatpush1.bf16.msra.mxu1 %v17909_v17 }
 0x761   :  { %v3228_v59 = vadd.f32 %v9397_v6, %v3227_v12  ;;  %8639 = vmatprep.subr.bf16.mxu1 %v8638_v8  ;;  %v17952_v6 = vld [vmem:[#allocation40_spill] sm:$0xff]  ;;  %v3200_v12 = vrot.slane %v13047_v14, 4 }
 0x762   :  { %v502_v53 = vadd.f32 %v17953_v63, %v17952_v6 }
 0x763   :  { %v3229_v55 = vadd.f32 %v9399_v3, %v3228_v59  ;;  %v17954_v3 = vld [vmem:[#allocation81_spill] sm:$0xff] }
 0x764   :  { %8641 = vmatpush1.bf16.msra.mxu1 %v17910_v33 }
 0x765   :  { %v3230_v56 = vadd.f32 %v9401_v62, %v3229_v55  ;;  %8643 = vmatprep.subr.bf16.mxu1 %v8642_v54  ;;  %v3201_v62 = vadd.f32 %v3200_v12, %v13047_v14 }
 0x767   :  { %v3231_v57 = vadd.f32 %v9383_v46, %v3230_v56  ;;  %v333_v46 = vadd.f32 %v17919_v25, %v17914_v42  ;;  %v3202_v59 = vrot.slane %v3201_v62, 2 }
 0x768   :  { %8645 = vmatpush1.bf16.msra.mxu1 %v17911_v50 }
 0x769   :  { %v3232_v40 = vadd.f32 %v9385_v41, %v3231_v57  ;;  %8647 = vmatprep.subr.bf16.mxu1 %v8646_v24  ;;  %v17927_v41 = vld [vmem:[#allocation128_spill] sm:$0xff]  ;;  %v17934_v24 = vld [vmem:[#allocation146_spill] sm:$0xff]  ;;  %v3203_v54 = vadd.f32 %v3202_v59, %v3201_v62 }
 0x76b   :  { %v3233_v13 = vadd.f32 %v9387_v7, %v3232_v40  ;;  %v17931_v7 = vld [vmem:[#allocation140_spill] sm:$0xff]  ;;  %v3204_v56 = vrot.slane %v3203_v54, 1 }
 0x76c   :  { %8649 = vmatpush1.bf16.msra.mxu1 %v17912_v22 }
 0x76d   :  { %v3234_v9 = vadd.f32 %v9389_v51, %v3233_v13  ;;  %8651 = vmatprep.subr.bf16.mxu1 %v8650_v32  ;;  %v17935_v51 = vld [vmem:[#allocation148_spill] sm:$0xff]  ;;  %v17940_v32 = vld [vmem:[#allocation90_spill] sm:$0xff]  ;;  %v3205_v50 = vadd.f32 %v3204_v56, %v3203_v54 }
 0x76f   :  { %v3235_v52 = vadd.f32 %v9391_v38, %v3234_v9  ;;  %v17938_v38 = vld [vmem:[#allocation154_spill] sm:$0xff]  ;;  %9402 = vrcp.f32 %v3205_v50 }
 0x770   :  { %8653 = vmatpush1.bf16.msra.mxu1 %v17913_v1 }
 0x771   :  { %v13074_v61 = vadd.f32 %v9393_v29, %v3235_v52  ;;  %8655 = vmatprep.subr.bf16.mxu1 %v8654_v5  ;;  %v17941_v29 = vld [vmem:[#allocation92_spill] sm:$0xff]  ;;  %v17944_v5 = vld [vmem:[#allocation99_spill] sm:$0xff] }
 0x773   :  { %v3237_v8 = vrot.slane %v13074_v61, 4 }
 0x774   :  { %8657 = vmatpush1.bf16.msra.mxu1 %v17916_v11 }
 0x775   :  { %3498 = vmatprep.subr.mxu1 %v335_v43  ;;  %v3238_v17 = vadd.f32 %v3237_v8, %v13074_v61 }
 0x777   :  { %3308 = vmatmul.mubr.f32.vlgmr.msra.gmra.mrb[90].mxu1 %v375_v21  ;;  %v3239_v55 = vrot.slane %v3238_v17, 2 }
 0x778   :  { %3499 = vmatpush1.msra.mxu1 %v333_v46  ;;  %3562 = vmatprep.mubr.f32.mxu1 %v17920_v45 }
 0x779   :  { %v3240_v33 = vadd.f32 %v3239_v55, %v3238_v17  ;;  %v9403_v13 = vpop.eup %9402 }
 0x77b   :  { %8304 = vmatmul.mubr.msk.f32.vlgmr.msra.gmra.mrb[92].mxu1 %vm653_vm2, %v17921_v48  ;;  %v3241_v57 = vrot.slane %v3240_v33, 1 }
 0x77c   :  { %3568 = vmatprep.mubr.f32.mxu1 %v17920_v45 }
 0x77d   :  { %v3242_v40 = vadd.f32 %v3241_v57, %v3240_v33 }
 0x77f   :  { %8305 = vmatmul.mubr.msk.f32.gmra.mrb[94].mxu1 %vm653_vm2, %v17922_v49  ;;  %9404 = vrcp.f32 %v3242_v40 }
 0x780   :  { %3574 = vmatprep.mubr.f32.mxu1 %v17920_v45 }
 0x783   :  { %8306 = vmatmul.mubr.msk.f32.gmra.mrb[96].mxu1 %vm653_vm2, %v17923_v35 }
 0x784   :  { %3580 = vmatprep.mubr.f32.mxu1 %v17920_v45 }
 0x787   :  { %8307 = vmatmul.mubr.msk.f32.gmra.mrb[98].mxu1 %vm653_vm2, %v17924_v28 }
 0x788   :  { %3586 = vmatprep.mubr.f32.mxu1 %v17920_v45 }
 0x789   :  { %v9405_v9 = vpop.eup %9404 }
 0x78b   :  { %8308 = vmatmul.mubr.msk.f32.gmra.mrb[100].mxu1 %vm653_vm2, %v17925_v36 }
 0x78c   :  { %3592 = vmatprep.mubr.f32.mxu1 %v17920_v45 }
 0x78f   :  { %8309 = vmatmul.mubr.msk.f32.gmra.mrb[102].mxu1 %vm653_vm2, %v17926_v44 }
 0x790   :  { %3598 = vmatprep.mubr.f32.mxu1 %v17920_v45 }
 0x793   :  { %8310 = vmatmul.mubr.msk.f32.gmra.mrb[104].mxu1 %vm653_vm2, %v17927_v41 }
 0x794   :  { %3604 = vmatprep.mubr.f32.mxu1 %v17920_v45 }
 0x797   :  { %8311 = vmatmul.mubr.msk.f32.gmra.mrb[106].mxu1 %vm653_vm2, %v17928_v4 }
 0x798   :  { %3610 = vmatprep.mubr.f32.mxu1 %v17920_v45 }
 0x79b   :  { %8312 = vmatmul.mubr.msk.f32.gmra.mrb[108].mxu1 %vm653_vm2, %v17929_v0 }
 0x79c   :  { %3616 = vmatprep.mubr.f32.mxu1 %v17920_v45 }
 0x79f   :  { %8313 = vmatmul.mubr.msk.f32.gmra.mrb[110].mxu1 %vm653_vm2, %v17930_v10 }
 0x7a0   :  { %3622 = vmatprep.mubr.f32.mxu1 %v17920_v45 }
 0x7a3   :  { %8314 = vmatmul.mubr.msk.f32.gmra.mrb[112].mxu1 %vm653_vm2, %v17931_v7 }
 0x7a4   :  { %3628 = vmatprep.mubr.f32.mxu1 %v17920_v45 }
 0x7a7   :  { %8315 = vmatmul.mubr.msk.f32.gmra.mrb[114].mxu1 %vm653_vm2, %v17932_v19 }
 0x7a8   :  { %3634 = vmatprep.mubr.f32.mxu1 %v17920_v45 }
 0x7ab   :  { %8316 = vmatmul.mubr.msk.f32.gmra.mrb[116].mxu1 %vm653_vm2, %v17933_v16 }
 0x7ac   :  { %3640 = vmatprep.mubr.f32.mxu1 %v17920_v45 }
 0x7af   :  { %8317 = vmatmul.mubr.msk.f32.gmra.mrb[118].mxu1 %vm653_vm2, %v17934_v24 }
 0x7b0   :  { %3646 = vmatprep.mubr.f32.mxu1 %v17920_v45 }
 0x7b3   :  { %8318 = vmatmul.mubr.msk.f32.gmra.mrb[120].mxu1 %vm653_vm2, %v17935_v51 }
 0x7b4   :  { %3652 = vmatprep.mubr.f32.mxu1 %v17920_v45 }
 0x7b7   :  { %8319 = vmatmul.mubr.msk.f32.gmra.mrb[122].mxu1 %vm653_vm2, %v17936_v30 }
 0x7b8   :  { %3658 = vmatprep.mubr.f32.mxu1 %v17920_v45 }
 0x7bb   :  { %8320 = vmatmul.mubr.msk.f32.gmra.mrb[124].mxu1 %vm653_vm2, %v17937_v26 }
 0x7bc   :  { %3664 = vmatprep.mubr.f32.mxu1 %v17920_v45 }
 0x7bf   :  { %8321 = vmatmul.mubr.msk.f32.gmra.mrb[126].mxu1 %vm653_vm2, %v17938_v38 }
 0x7c0   :  { %3670 = vmatprep.mubr.f32.mxu1 %v17920_v45 }
 0x7c3   :  { %8322 = vmatmul.mubr.msk.f32.gmra.mrb[128].mxu1 %vm653_vm2, %v17939_v34 }
 0x7c4   :  { %3676 = vmatprep.mubr.f32.mxu1 %v17920_v45 }
 0x7c7   :  { %8323 = vmatmul.mubr.msk.f32.gmra.mrb[130].mxu1 %vm653_vm2, %v17940_v32 }
 0x7c8   :  { %3682 = vmatprep.mubr.f32.mxu1 %v17920_v45 }
 0x7cb   :  { %8324 = vmatmul.mubr.msk.f32.gmra.mrb[132].mxu1 %vm653_vm2, %v17941_v29 }
 0x7cc   :  { %3688 = vmatprep.mubr.f32.mxu1 %v17920_v45 }
 0x7cf   :  { %8325 = vmatmul.mubr.msk.f32.gmra.mrb[134].mxu1 %vm653_vm2, %v17942_v18 }
 0x7d0   :  { %3694 = vmatprep.mubr.f32.mxu1 %v17920_v45 }
 0x7d3   :  { %8326 = vmatmul.mubr.msk.f32.gmra.mrb[136].mxu1 %vm653_vm2, %v17943_v47 }
 0x7d4   :  { %3700 = vmatprep.mubr.f32.mxu1 %v17920_v45 }
 0x7d7   :  { %8327 = vmatmul.mubr.msk.f32.gmra.mrb[138].mxu1 %vm653_vm2, %v17944_v5 }
 0x7d8   :  { %3706 = vmatprep.mubr.f32.mxu1 %v17920_v45 }
 0x7db   :  { %8328 = vmatmul.mubr.msk.f32.gmra.mrb[140].mxu1 %vm653_vm2, %v17945_v60 }
 0x7dc   :  { %3712 = vmatprep.mubr.f32.mxu1 %v17920_v45 }
 0x7df   :  { %8329 = vmatmul.mubr.msk.f32.gmra.mrb[142].mxu1 %vm653_vm2, %v17946_v31 }
 0x7e0   :  { %3718 = vmatprep.mubr.f32.mxu1 %v17920_v45 }
 0x7e3   :  { %8330 = vmatmul.mubr.msk.f32.gmra.mrb[144].mxu1 %vm653_vm2, %v17947_v37 }
 0x7e4   :  { %3724 = vmatprep.mubr.f32.mxu1 %v17920_v45 }
 0x7e7   :  { %8331 = vmatmul.mubr.msk.f32.gmra.mrb[146].mxu1 %vm653_vm2, %v17948_v27 }
 0x7e8   :  { %3730 = vmatprep.mubr.f32.mxu1 %v17920_v45 }
 0x7eb   :  { %8332 = vmatmul.mubr.msk.f32.gmra.mrb[148].mxu1 %vm653_vm2, %v17949_v20 }
 0x7ec   :  { %3736 = vmatprep.mubr.f32.mxu1 %v17920_v45 }
 0x7ef   :  { %8333 = vmatmul.mubr.msk.f32.gmra.mrb[150].mxu1 %vm653_vm2, %v17950_v2 }
 0x7f0   :  { %3742 = vmatprep.mubr.f32.mxu1 %v17920_v45 }
 0x7f3   :  { %8334 = vmatmul.mubr.msk.f32.gmra.mrb[152].mxu1 %vm653_vm2, %v17951_v58 }
 0x7f4   :  { %3748 = vmatprep.mubr.f32.mxu1 %v17920_v45 }
 0x7f7   :  { %8335 = vmatmul.mubr.msk.f32.gmra.mrb[154].mxu1 %vm653_vm2, %v17954_v3 }
 0x7f8   :  { %5286 = vmatprep.mubr.f32.mxu1 %v502_v53 }
 0x84a   :  { %v3309_v22 = vpop.f32.mrb[90].mxu1 }
 0x84b   :  { %v13187_v52 = vmul.f32 %v9403_v13, %v3309_v22  ;;  %v3311_v1 = vpop.f32.mrb[91].mxu1 }
 0x84c   :  { %v13189_v39 = vmul.f32 %v9405_v9, %v3311_v1 }
 0x84d   :  { %17955 = vst [vmem:[#allocation85_spill] sm:$0xff] %v13187_v52 }
 0x84e   :  { %17956 = vst [vmem:[#allocation98_spill] sm:$0xff] %v13189_v39  ;;  %v3564_v14 = vpop.f32.mrb[92].mxu1 }
 0x84f   :  { %v3566_v61 = vpop.f32.mrb[93].mxu1  ;;  %v13191_v21 = vmul.f32 0.35355338, %v3564_v14 }
 0x850   :  { %v13195_v48 = vmul.f32 0.35355338, %v3566_v61 }
 0x852   :  { %v3570_v43 = vpop.f32.mrb[94].mxu1 }
 0x853   :  { %v3572_v11 = vpop.f32.mrb[95].mxu1  ;;  %v13203_v44 = vmul.f32 0.35355338, %v3570_v43 }
 0x854   :  { %v13207_v0 = vmul.f32 0.35355338, %v3572_v11 }
 0x856   :  { %v3576_v23 = vpop.f32.mrb[96].mxu1 }
 0x857   :  { %v13193_v25 = vmul.f32 0.35355338, %v3576_v23  ;;  %v3578_v46 = vpop.f32.mrb[97].mxu1 }
 0x858   :  { %v13197_v49 = vmul.f32 0.35355338, %v3578_v46 }
 0x859   :  { %v3819_v35 = vmax.f32 %v13191_v21, %v13193_v25 }
 0x85a   :  { %v3856_v28 = vmax.f32 %v13195_v48, %v13197_v49  ;;  %v3582_v36 = vpop.f32.mrb[98].mxu1 }
 0x85b   :  { %v13205_v41 = vmul.f32 0.35355338, %v3582_v36  ;;  %v3584_v4 = vpop.f32.mrb[99].mxu1 }
 0x85c   :  { %v13209_v10 = vmul.f32 0.35355338, %v3584_v4 }
 0x85d   :  { %v3820_v7 = vmax.f32 %v13203_v44, %v13205_v41 }
 0x85e   :  { %v3857_v19 = vmax.f32 %v13207_v0, %v13209_v10  ;;  %v3588_v16 = vpop.f32.mrb[100].mxu1 }
 0x85f   :  { %v13215_v24 = vmul.f32 0.35355338, %v3588_v16  ;;  %v3590_v51 = vpop.f32.mrb[101].mxu1 }
 0x860   :  { %v13217_v30 = vmul.f32 0.35355338, %v3590_v51 }
 0x861   :  { %v3821_v26 = vmax.f32 %v3819_v35, %v13215_v24 }
 0x862   :  { %v3858_v38 = vmax.f32 %v3856_v28, %v13217_v30  ;;  %v3594_v34 = vpop.f32.mrb[102].mxu1 }
 0x863   :  { %v13221_v32 = vmul.f32 0.35355338, %v3594_v34  ;;  %v3596_v29 = vpop.f32.mrb[103].mxu1 }
 0x864   :  { %v13223_v18 = vmul.f32 0.35355338, %v3596_v29 }
 0x865   :  { %v3822_v47 = vmax.f32 %v3820_v7, %v13221_v32 }
 0x866   :  { %v3859_v5 = vmax.f32 %v3857_v19, %v13223_v18  ;;  %v3600_v60 = vpop.f32.mrb[104].mxu1 }
 0x867   :  { %v13227_v31 = vmul.f32 0.35355338, %v3600_v60  ;;  %v3602_v37 = vpop.f32.mrb[105].mxu1 }
 0x868   :  { %v13229_v27 = vmul.f32 0.35355338, %v3602_v37 }
 0x869   :  { %v3823_v20 = vmax.f32 %v3821_v26, %v13227_v31 }
 0x86a   :  { %v3860_v2 = vmax.f32 %v3858_v38, %v13229_v27  ;;  %v3606_v58 = vpop.f32.mrb[106].mxu1 }
 0x86b   :  { %v13233_v63 = vmul.f32 0.35355338, %v3606_v58  ;;  %v3608_v53 = vpop.f32.mrb[107].mxu1 }
 0x86c   :  { %v13235_v3 = vmul.f32 0.35355338, %v3608_v53 }
 0x86d   :  { %v3824_v12 = vmax.f32 %v3822_v47, %v13233_v63 }
 0x86e   :  { %v3861_v8 = vmax.f32 %v3859_v5, %v13235_v3  ;;  %v3612_v62 = vpop.f32.mrb[108].mxu1 }
 0x86f   :  { %v13239_v17 = vmul.f32 0.35355338, %v3612_v62  ;;  %v3614_v59 = vpop.f32.mrb[109].mxu1 }
 0x870   :  { %v13241_v55 = vmul.f32 0.35355338, %v3614_v59 }
 0x871   :  { %v3825_v54 = vmax.f32 %v3823_v20, %v13239_v17 }
 0x872   :  { %v3862_v33 = vmax.f32 %v3860_v2, %v13241_v55  ;;  %v3618_v56 = vpop.f32.mrb[110].mxu1 }
 0x873   :  { %v13245_v57 = vmul.f32 0.35355338, %v3618_v56  ;;  %v3620_v50 = vpop.f32.mrb[111].mxu1 }
 0x874   :  { %v13247_v40 = vmul.f32 0.35355338, %v3620_v50 }
 0x875   :  { %v3826_v13 = vmax.f32 %v3824_v12, %v13245_v57 }
 0x876   :  { %v3863_v22 = vmax.f32 %v3861_v8, %v13247_v40  ;;  %v3624_v9 = vpop.f32.mrb[112].mxu1 }
 0x877   :  { %v13251_v1 = vmul.f32 0.35355338, %v3624_v9  ;;  %v3626_v14 = vpop.f32.mrb[113].mxu1 }
 0x878   :  { %v13253_v61 = vmul.f32 0.35355338, %v3626_v14 }
 0x879   :  { %v3827_v43 = vmax.f32 %v3825_v54, %v13251_v1 }
 0x87a   :  { %v3864_v11 = vmax.f32 %v3862_v33, %v13253_v61  ;;  %v3630_v23 = vpop.f32.mrb[114].mxu1 }
 0x87b   :  { %v13257_v46 = vmul.f32 0.35355338, %v3630_v23  ;;  %v3632_v35 = vpop.f32.mrb[115].mxu1 }
 0x87c   :  { %v13259_v28 = vmul.f32 0.35355338, %v3632_v35 }
 0x87d   :  { %v3828_v36 = vmax.f32 %v3826_v13, %v13257_v46 }
 0x87e   :  { %17957 = vst [vmem:[#allocation100_spill] sm:$0xff] %v13259_v28  ;;  %v3865_v4 = vmax.f32 %v3863_v22, %v13259_v28  ;;  %v3636_v7 = vpop.f32.mrb[116].mxu1 }
 0x87f   :  { %v13263_v19 = vmul.f32 0.35355338, %v3636_v7  ;;  %v3638_v16 = vpop.f32.mrb[117].mxu1 }
 0x880   :  { %v13265_v51 = vmul.f32 0.35355338, %v3638_v16 }
 0x881   :  { %v3829_v26 = vmax.f32 %v3827_v43, %v13263_v19 }
 0x882   :  { %17958 = vst [vmem:[#allocation102_spill] sm:$0xff] %v13265_v51  ;;  %v3866_v38 = vmax.f32 %v3864_v11, %v13265_v51  ;;  %v3642_v34 = vpop.f32.mrb[118].mxu1 }
 0x883   :  { %v13269_v29 = vmul.f32 0.35355338, %v3642_v34  ;;  %v3644_v47 = vpop.f32.mrb[119].mxu1 }
 0x884   :  { %v13271_v5 = vmul.f32 0.35355338, %v3644_v47 }
 0x885   :  { %v3830_v60 = vmax.f32 %v3828_v36, %v13269_v29 }
 0x886   :  { %17959 = vst [vmem:[#allocation105_spill] sm:$0xff] %v13271_v5  ;;  %v3867_v37 = vmax.f32 %v3865_v4, %v13271_v5  ;;  %v3648_v20 = vpop.f32.mrb[120].mxu1 }
 0x887   :  { %v13275_v2 = vmul.f32 0.35355338, %v3648_v20  ;;  %v3650_v58 = vpop.f32.mrb[121].mxu1 }
 0x888   :  { %v13277_v53 = vmul.f32 0.35355338, %v3650_v58 }
 0x889   :  { %v3831_v12 = vmax.f32 %v3829_v26, %v13275_v2 }
 0x88a   :  { %17960 = vst [vmem:[#allocation108_spill] sm:$0xff] %v13277_v53  ;;  %v3868_v8 = vmax.f32 %v3866_v38, %v13277_v53  ;;  %v3654_v62 = vpop.f32.mrb[122].mxu1 }
 0x88b   :  { %v13281_v59 = vmul.f32 0.35355338, %v3654_v62  ;;  %v3656_v54 = vpop.f32.mrb[123].mxu1 }
 0x88c   :  { %v13283_v33 = vmul.f32 0.35355338, %v3656_v54 }
 0x88d   :  { %v3832_v56 = vmax.f32 %v3830_v60, %v13281_v59 }
 0x88e   :  { %17961 = vst [vmem:[#allocation111_spill] sm:$0xff] %v13283_v33  ;;  %v3869_v50 = vmax.f32 %v3867_v37, %v13283_v33  ;;  %v3660_v13 = vpop.f32.mrb[124].mxu1 }
 0x88f   :  { %v13287_v22 = vmul.f32 0.35355338, %v3660_v13  ;;  %v3662_v9 = vpop.f32.mrb[125].mxu1 }
 0x890   :  { %v13289_v14 = vmul.f32 0.35355338, %v3662_v9 }
 0x891   :  { %v3833_v43 = vmax.f32 %v3831_v12, %v13287_v22 }
 0x892   :  { %17962 = vst [vmem:[#allocation113_spill] sm:$0xff] %v13289_v14  ;;  %v3870_v11 = vmax.f32 %v3868_v8, %v13289_v14  ;;  %v3666_v23 = vpop.f32.mrb[126].mxu1 }
 0x893   :  { %v13293_v35 = vmul.f32 0.35355338, %v3666_v23  ;;  %v3668_v36 = vpop.f32.mrb[127].mxu1 }
 0x894   :  { %v13295_v4 = vmul.f32 0.35355338, %v3668_v36 }
 0x895   :  { %v3834_v7 = vmax.f32 %v3832_v56, %v13293_v35 }
 0x896   :  { %17963 = vst [vmem:[#allocation115_spill] sm:$0xff] %v13295_v4  ;;  %v3871_v16 = vmax.f32 %v3869_v50, %v13295_v4  ;;  %v3672_v26 = vpop.f32.mrb[128].mxu1 }
 0x897   :  { %v13299_v38 = vmul.f32 0.35355338, %v3672_v26  ;;  %v3674_v34 = vpop.f32.mrb[129].mxu1 }
 0x898   :  { %v13301_v47 = vmul.f32 0.35355338, %v3674_v34 }
 0x899   :  { %v3835_v60 = vmax.f32 %v3833_v43, %v13299_v38 }
 0x89a   :  { %17964 = vst [vmem:[#allocation118_spill] sm:$0xff] %v13301_v47  ;;  %v3872_v37 = vmax.f32 %v3870_v11, %v13301_v47  ;;  %v3678_v20 = vpop.f32.mrb[130].mxu1 }
 0x89b   :  { %v13305_v58 = vmul.f32 0.35355338, %v3678_v20  ;;  %v3680_v12 = vpop.f32.mrb[131].mxu1 }
 0x89c   :  { %v13307_v8 = vmul.f32 0.35355338, %v3680_v12 }
 0x89d   :  { %v3836_v62 = vmax.f32 %v3834_v7, %v13305_v58 }
 0x89e   :  { %17965 = vst [vmem:[#allocation122_spill] sm:$0xff] %v13307_v8  ;;  %v3873_v54 = vmax.f32 %v3871_v16, %v13307_v8  ;;  %v3684_v56 = vpop.f32.mrb[132].mxu1 }
 0x89f   :  { %v3686_v50 = vpop.f32.mrb[133].mxu1  ;;  %v13314_v43 = vmul.f32 0.35355338, %v3684_v56 }
 0x8a0   :  { %v13311_v13 = vmul.f32 0.35355338, %v3686_v50 }
 0x8a1   :  { %v3837_v16 = vmax.f32 %v3835_v60, %v13314_v43 }
 0x8a2   :  { %17966 = vst [vmem:[#allocation126_spill] sm:$0xff] %v13311_v13  ;;  %v3874_v9 = vmax.f32 %v3872_v37, %v13311_v13  ;;  %v3690_v23 = vpop.f32.mrb[134].mxu1 }
 0x8a3   :  { %v13316_v11 = vmul.f32 0.35355338, %v3690_v23  ;;  %v3692_v36 = vpop.f32.mrb[135].mxu1 }
 0x8a4   :  { %v13318_v26 = vmul.f32 0.35355338, %v3692_v36 }
 0x8a5   :  { %v3838_v34 = vmax.f32 %v3836_v62, %v13316_v11 }
 0x8a6   :  { %17967 = vst [vmem:[#allocation129_spill] sm:$0xff] %v13318_v26  ;;  %v3875_v7 = vmax.f32 %v3873_v54, %v13318_v26  ;;  %v3696_v20 = vpop.f32.mrb[136].mxu1 }
 0x8a7   :  { %v13323_v12 = vmul.f32 0.35355338, %v3696_v20  ;;  %v3698_v50 = vpop.f32.mrb[137].mxu1 }
 0x8a8   :  { %v13332_v39 = vmul.f32 0.35355338, %v3698_v50 }
 0x8a9   :  { %v3839_v37 = vmax.f32 %v3837_v16, %v13323_v12 }
 0x8aa   :  { %v3702_v42 = vpop.f32.mrb[138].mxu1  ;;  %17968 = vst [vmem:[#allocation132_spill] sm:$0xff] %v13332_v39  ;;  %v3876_v16 = vmax.f32 %v3874_v9, %v13332_v39 }
 0x8ab   :  { %v13326_v56 = vmul.f32 0.35355338, %v3702_v42  ;;  %v3704_v23 = vpop.f32.mrb[139].mxu1 }
 0x8ac   :  { %v13340_v26 = vmul.f32 0.35355338, %v3704_v23 }
 0x8ad   :  { %v3840_v15 = vmax.f32 %v3838_v34, %v13326_v56 }
 0x8ae   :  { %v3708_v36 = vpop.f32.mrb[140].mxu1  ;;  %17970 = vst [vmem:[#allocation138_spill] sm:$0xff] %v13340_v26 }
 0x8af   :  { %v13329_v6 = vmul.f32 0.35355338, %v3708_v36  ;;  %v3710_v62 = vpop.f32.mrb[141].mxu1 }
 0x8b0   :  { %v13336_v45 = vmul.f32 0.35355338, %v3710_v62  ;;  %v3877_v62 = vmax.f32 %v3875_v7, %v13340_v26 }
 0x8b1   :  { %v3841_v54 = vmax.f32 %v3839_v37, %v13329_v6 }
 0x8b2   :  { %v3714_v60 = vpop.f32.mrb[142].mxu1  ;;  %17969 = vst [vmem:[#allocation135_spill] sm:$0xff] %v13336_v45  ;;  %v3878_v37 = vmax.f32 %v3876_v16, %v13336_v45 }
 0x8b3   :  { %v13334_v20 = vmul.f32 0.35355338, %v3714_v60  ;;  %v3716_v52 = vpop.f32.mrb[143].mxu1 }
 0x8b4   :  { %v13345_v50 = vmul.f32 0.35355338, %v3716_v52 }
 0x8b5   :  { %v3842_v42 = vmax.f32 %v3840_v15, %v13334_v20 }
 0x8b6   :  { %v3720_v34 = vpop.f32.mrb[144].mxu1  ;;  %17971 = vst [vmem:[#allocation141_spill] sm:$0xff] %v13345_v50 }
 0x8b7   :  { %v13342_v36 = vmul.f32 0.35355338, %v3720_v34  ;;  %v3722_v13 = vpop.f32.mrb[145].mxu1  ;;  %v3879_v34 = vmax.f32 %v3877_v62, %v13345_v50 }
 0x8b8   :  { %v13347_v8 = vmul.f32 0.35355338, %v3722_v13 }
 0x8b9   :  { %v3843_v60 = vmax.f32 %v3841_v54, %v13342_v36 }
 0x8ba   :  { %17972 = vst [vmem:[#allocation143_spill] sm:$0xff] %v13347_v8  ;;  %v3880_v15 = vmax.f32 %v3878_v37, %v13347_v8  ;;  %v3726_v47 = vpop.f32.mrb[146].mxu1 }
 0x8bb   :  { %v13352_v9 = vmul.f32 0.35355338, %v3726_v47  ;;  %v3728_v23 = vpop.f32.mrb[147].mxu1 }
 0x8bc   :  { %v13355_v39 = vmul.f32 0.35355338, %v3728_v23 }
 0x8bd   :  { %v3844_v16 = vmax.f32 %v3842_v42, %v13352_v9 }
 0x8be   :  { %17973 = vst [vmem:[#allocation145_spill] sm:$0xff] %v13355_v39  ;;  %v3881_v52 = vmax.f32 %v3879_v34, %v13355_v39  ;;  %v3732_v13 = vpop.f32.mrb[148].mxu1 }
 0x8bf   :  { %v13359_v45 = vmul.f32 0.35355338, %v3732_v13  ;;  %v3734_v54 = vpop.f32.mrb[149].mxu1 }
 0x8c0   :  { %v13361_v4 = vmul.f32 0.35355338, %v3734_v54 }
 0x8c1   :  { %v3845_v7 = vmax.f32 %v3843_v60, %v13359_v45 }
 0x8c2   :  { %17974 = vst [vmem:[#allocation147_spill] sm:$0xff] %v13361_v4  ;;  %v3882_v47 = vmax.f32 %v3880_v15, %v13361_v4  ;;  %v3738_v37 = vpop.f32.mrb[150].mxu1 }
 0x8c3   :  { %v13365_v26 = vmul.f32 0.35355338, %v3738_v37  ;;  %v3740_v62 = vpop.f32.mrb[151].mxu1 }
 0x8c4   :  { %v13367_v23 = vmul.f32 0.35355338, %v3740_v62 }
 0x8c5   :  { %v3846_v42 = vmax.f32 %v3844_v16, %v13365_v26 }
 0x8c6   :  { %17975 = vst [vmem:[#allocation149_spill] sm:$0xff] %v13367_v23  ;;  %v3883_v34 = vmax.f32 %v3881_v52, %v13367_v23  ;;  %v3744_v50 = vpop.f32.mrb[152].mxu1 }
 0x8c7   :  { %v13371_v13 = vmul.f32 0.35355338, %v3744_v50  ;;  %v3746_v39 = vpop.f32.mrb[153].mxu1 }
 0x8c8   :  { %v13373_v54 = vmul.f32 0.35355338, %v3746_v39 }
 0x8c9   :  { %v3847_v60 = vmax.f32 %v3845_v7, %v13371_v13 }
 0x8ca   :  { %17976 = vst [vmem:[#allocation151_spill] sm:$0xff] %v13373_v54  ;;  %v3884_v15 = vmax.f32 %v3882_v47, %v13373_v54  ;;  %v3750_v4 = vpop.f32.mrb[154].mxu1 }
 0x8cb   :  { %v13377_v37 = vmul.f32 0.35355338, %v3750_v4  ;;  %v3752_v8 = vpop.f32.mrb[155].mxu1 }
 0x8cc   :  { %v13379_v62 = vmul.f32 0.35355338, %v3752_v8 }
 0x8cd   :  { %v3848_v16 = vmax.f32 %v3846_v42, %v13377_v37 }
 0x8ce   :  { %v3885_v52 = vmax.f32 %v3883_v34, %v13379_v62 }
 0x8cf   :  { %v3849_v23 = vmax.f32 %v3847_v60, %v3848_v16 }
 0x8d0   :  { %v3886_v50 = vmax.f32 %v3884_v15, %v3885_v52 }
 0x8d1   :  { %v3850_v14 = vrot.slane %v3849_v23, 4 }
 0x8d2   :  { %v3887_v33 = vrot.slane %v3886_v50, 4 }
 0x8d3   :  { %v3851_v39 = vmax.f32 %v3849_v23, %v3850_v14 }
 0x8d4   :  { %v3888_v53 = vmax.f32 %v3886_v50, %v3887_v33 }
 0x8d5   :  { %v3852_v5 = vrot.slane %v3851_v39, 2 }
 0x8d6   :  { %v3889_v7 = vrot.slane %v3888_v53, 2 }
 0x8d7   :  { %v3853_v51 = vmax.f32 %v3851_v39, %v3852_v5 }
 0x8d8   :  { %v3890_v47 = vmax.f32 %v3888_v53, %v3889_v7 }
 0x8d9   :  { %v3854_v54 = vrot.slane %v3853_v51, 1 }
 0x8da   :  { %v3891_v4 = vrot.slane %v3890_v47, 1 }
 0x8db   :  { %v13383_v28 = vmax.f32 %v3853_v51, %v3854_v54 }
 0x8dc   :  { %v13385_v8 = vmax.f32 %v3890_v47, %v3891_v4 }
 0x8dd   :  { %v3893_v42 = vsub.f32 %v13191_v21, %v13383_v28  ;;  %v3895_v34 = vsub.f32 %v13203_v44, %v13383_v28  ;;  %v3897_v14 = vsub.f32 %v13193_v25, %v13383_v28  ;;  %v3899_v33 = vsub.f32 %v13205_v41, %v13383_v28 }
 0x8de   :  { %v3901_v5 = vsub.f32 %v13215_v24, %v13383_v28  ;;  %v3903_v51 = vsub.f32 %v13221_v32, %v13383_v28  ;;  %v3905_v53 = vsub.f32 %v13227_v31, %v13383_v28  ;;  %v3907_v21 = vsub.f32 %v13233_v63, %v13383_v28 }
 0x8df   :  { %v3909_v44 = vsub.f32 %v13239_v17, %v13383_v28  ;;  %v3911_v25 = vsub.f32 %v13245_v57, %v13383_v28  ;;  %v3913_v41 = vsub.f32 %v13251_v1, %v13383_v28  ;;  %v3915_v24 = vsub.f32 %v13257_v46, %v13383_v28 }
 0x8e0   :  { %v3917_v32 = vsub.f32 %v13263_v19, %v13383_v28  ;;  %v3919_v31 = vsub.f32 %v13269_v29, %v13383_v28  ;;  %v3921_v63 = vsub.f32 %v13275_v2, %v13383_v28  ;;  %v3923_v17 = vsub.f32 %v13281_v59, %v13383_v28 }
 0x8e1   :  { %v3925_v57 = vsub.f32 %v13287_v22, %v13383_v28  ;;  %v3927_v1 = vsub.f32 %v13293_v35, %v13383_v28  ;;  %v3929_v46 = vsub.f32 %v13299_v38, %v13383_v28  ;;  %v3931_v19 = vsub.f32 %v13305_v58, %v13383_v28 }
 0x8e2   :  { %v3935_v29 = vsub.f32 %v13316_v11, %v13383_v28  ;;  %v3937_v2 = vsub.f32 %v13323_v12, %v13383_v28  ;;  %v3939_v59 = vsub.f32 %v13326_v56, %v13383_v28  ;;  %v3941_v22 = vsub.f32 %v13329_v6, %v13383_v28  ;;  %v17991_v56 = vld [vmem:[#allocation149_spill] sm:$0xff] }
 0x8e3   :  { %v3943_v35 = vsub.f32 %v13334_v20, %v13383_v28  ;;  %v3945_v38 = vsub.f32 %v13342_v36, %v13383_v28  ;;  %v3957_v16 = vmul.f32 1.442695, %v3893_v42  ;;  %v3961_v52 = vmul.f32 1.442695, %v3895_v34 }
 0x8e4   :  { %v3965_v50 = vmul.f32 1.442695, %v3897_v14  ;;  %v3969_v7 = vmul.f32 1.442695, %v3899_v33  ;;  %v3973_v4 = vmul.f32 1.442695, %v3901_v5  ;;  %v3933_v42 = vsub.f32 %v13314_v43, %v13383_v28 }
 0x8e5   :  { %9406 = vpow2.f32 %v3957_v16  ;;  %v3977_v54 = vmul.f32 1.442695, %v3903_v51  ;;  %v3981_v23 = vmul.f32 1.442695, %v3905_v53  ;;  %v3985_v60 = vmul.f32 1.442695, %v3907_v21 }
 0x8e6   :  { %9408 = vpow2.f32 %v3961_v52  ;;  %v3989_v34 = vmul.f32 1.442695, %v3909_v44  ;;  %v3993_v14 = vmul.f32 1.442695, %v3911_v25  ;;  %v3997_v39 = vmul.f32 1.442695, %v3913_v41 }
 0x8e7   :  { %9410 = vpow2.f32 %v3965_v50  ;;  %v4001_v33 = vmul.f32 1.442695, %v3915_v24  ;;  %v4005_v15 = vmul.f32 1.442695, %v3917_v32  ;;  %v4009_v47 = vmul.f32 1.442695, %v3919_v31 }
 0x8e8   :  { %9412 = vpow2.f32 %v3969_v7  ;;  %v4013_v16 = vmul.f32 1.442695, %v3921_v63  ;;  %v4017_v5 = vmul.f32 1.442695, %v3923_v17  ;;  %v4021_v51 = vmul.f32 1.442695, %v3925_v57 }
 0x8e9   :  { %9414 = vpow2.f32 %v3973_v4  ;;  %v4025_v52 = vmul.f32 1.442695, %v3927_v1  ;;  %v4029_v53 = vmul.f32 1.442695, %v3929_v46  ;;  %v4033_v21 = vmul.f32 1.442695, %v3931_v19 }
 0x8ea   :  { %9416 = vpow2.f32 %v3977_v54  ;;  %v17977_v46 = vld [vmem:[#allocation100_spill] sm:$0xff]  ;;  %v17983_v63 = vld [vmem:[#allocation115_spill] sm:$0xff]  ;;  %v17984_v31 = vld [vmem:[#allocation118_spill] sm:$0xff]  ;;  %v4045_v1 = vmul.f32 1.442695, %v3937_v2  ;;  %v17994_v20 = vsub.f32 %v13359_v45, %v13383_v28 }
 0x8eb   :  { %9418 = vpow2.f32 %v3981_v23  ;;  %v17986_v41 = vld [vmem:[#allocation126_spill] sm:$0xff]  ;;  %v17987_v25 = vld [vmem:[#allocation129_spill] sm:$0xff] }
 0x8ec   :  { %9420 = vpow2.f32 %v3985_v60  ;;  %v17978_v60 = vld [vmem:[#allocation102_spill] sm:$0xff] }
 0x8ed   :  { %9422 = vpow2.f32 %v3989_v34  ;;  %v17980_v34 = vld [vmem:[#allocation108_spill] sm:$0xff] }
 0x8ee   :  { %9424 = vpow2.f32 %v3993_v14  ;;  %v17985_v14 = vld [vmem:[#allocation122_spill] sm:$0xff] }
 0x8ef   :  { %v13463_v24 = vpop.eup %9406  ;;  %9426 = vpow2.f32 %v3997_v39  ;;  %v17979_v39 = vld [vmem:[#allocation105_spill] sm:$0xff] }
 0x8f0   :  { %v13471_v17 = vpop.eup %9408  ;;  %9428 = vpow2.f32 %v4001_v33  ;;  %v17981_v33 = vld [vmem:[#allocation111_spill] sm:$0xff] }
 0x8f1   :  { %v13479_v23 = vpop.eup %9410  ;;  %9430 = vpow2.f32 %v4005_v15  ;;  %v4085_v54 = vadd.f32 %v13471_v17, %v13463_v24  ;;  %v17982_v15 = vld [vmem:[#allocation113_spill] sm:$0xff] }
 0x8f2   :  { %v13487_v4 = vpop.eup %9412  ;;  %9432 = vpow2.f32 %v4009_v47  ;;  %v4041_v47 = vmul.f32 1.442695, %v3935_v29  ;;  %v17989_v29 = vld [vmem:[#allocation145_spill] sm:$0xff] }
 0x8f3   :  { %v13495_v57 = vpop.eup %9414  ;;  %9434 = vpow2.f32 %v4013_v16  ;;  %v4086_v50 = vadd.f32 %v13479_v23, %v4085_v54  ;;  %v4037_v54 = vmul.f32 1.442695, %v3933_v42  ;;  %v4049_v16 = vmul.f32 1.442695, %v3939_v59  ;;  %v17992_v59 = vld [vmem:[#allocation151_spill] sm:$0xff] }
 0x8f4   :  { %v13502_v32 = vpop.eup %9416  ;;  %9436 = vpow2.f32 %v4017_v5 }
 0x8f5   :  { %v13510_v44 = vpop.eup %9418  ;;  %9438 = vpow2.f32 %v4021_v51  ;;  %v4087_v7 = vadd.f32 %v13487_v4, %v4086_v50  ;;  %v17988_v51 = vld [vmem:[#allocation143_spill] sm:$0xff] }
 0x8f6   :  { %v13516_v5 = vpop.eup %9420  ;;  %9440 = vpow2.f32 %v4025_v52  ;;  %v17990_v52 = vld [vmem:[#allocation147_spill] sm:$0xff] }
 0x8f7   :  { %v13526_v19 = vpop.eup %9422  ;;  %9442 = vpow2.f32 %v4029_v53  ;;  %v4088_v11 = vadd.f32 %v13495_v57, %v4087_v7  ;;  %v4053_v7 = vmul.f32 1.442695, %v3941_v22  ;;  %v17993_v22 = vsub.f32 %v13352_v9, %v13383_v28 }
 0x8f8   :  { %v13533_v12 = vpop.eup %9424  ;;  %9444 = vpow2.f32 %v4033_v21  ;;  %v4057_v21 = vmul.f32 1.442695, %v3943_v35  ;;  %v4069_v35 = vmul.f32 1.442695, %v17994_v20  ;;  %v17996_v9 = vsub.f32 %v13371_v13, %v13383_v28 }
 0x8f9   :  { %v13541_v58 = vpop.eup %9426  ;;  %9446 = vpow2.f32 %v4037_v54  ;;  %v4089_v43 = vadd.f32 %v13502_v32, %v4088_v11  ;;  %v4061_v54 = vmul.f32 1.442695, %v3945_v38  ;;  %v17995_v38 = vsub.f32 %v13365_v26, %v13383_v28 }
 0x8fa   :  { %v13547_v50 = vpop.eup %9428  ;;  %9448 = vpow2.f32 %v4041_v47  ;;  %v4065_v47 = vmul.f32 1.442695, %v17993_v22 }
 0x8fb   :  { %v13552_v42 = vpop.eup %9430  ;;  %9450 = vpow2.f32 %v4045_v1  ;;  %v4090_v53 = vadd.f32 %v13510_v44, %v4089_v43  ;;  %v4073_v43 = vmul.f32 1.442695, %v17995_v38 }
 0x8fc   :  { %v13558_v6 = vpop.eup %9432  ;;  %9452 = vpow2.f32 %v4049_v16 }
 0x8fd   :  { %v13563_v11 = vpop.eup %9434  ;;  %9454 = vpow2.f32 %v4053_v7  ;;  %v4091_v1 = vadd.f32 %v13516_v5, %v4090_v53  ;;  %v4077_v7 = vmul.f32 1.442695, %v17996_v9  ;;  %v17997_v53 = vsub.f32 %v13377_v37, %v13383_v28 }
 0x8fe   :  { %v13569_v36 = vpop.eup %9436  ;;  %9456 = vpow2.f32 %v4057_v21  ;;  %v18000_v28 = vsub.f32 %v13197_v49, %v13385_v8  ;;  %v18003_v49 = vsub.f32 %v13223_v18, %v13385_v8  ;;  %v18007_v18 = vsub.f32 %v13247_v40, %v13385_v8 }
 0x8ff   :  { %v13574_v16 = vpop.eup %9438  ;;  %9458 = vpow2.f32 %v4061_v54  ;;  %v4092_v22 = vadd.f32 %v13526_v19, %v4091_v1  ;;  %v4081_v21 = vmul.f32 1.442695, %v17997_v53  ;;  %v17998_v54 = vsub.f32 %v13195_v48, %v13385_v8 }
 0x900   :  { %v13580_v45 = vpop.eup %9440  ;;  %9460 = vpow2.f32 %v4065_v47  ;;  %v17999_v1 = vsub.f32 %v13207_v0, %v13385_v8  ;;  %v3967_v37 = vmul.f32 1.442695, %v18000_v28  ;;  %v18001_v48 = vsub.f32 %v13209_v10, %v13385_v8 }
 0x901   :  { %v13585_v20 = vpop.eup %9442  ;;  %9462 = vpow2.f32 %v4069_v35  ;;  %v4093_v26 = vadd.f32 %v13533_v12, %v4092_v22  ;;  %v3959_v38 = vmul.f32 1.442695, %v17998_v54  ;;  %v3979_v0 = vmul.f32 1.442695, %v18003_v49 }
 0x902   :  { %v13591_v13 = vpop.eup %9444  ;;  %9464 = vpow2.f32 %v4073_v43  ;;  %v3963_v47 = vmul.f32 1.442695, %v17999_v1  ;;  %v3971_v22 = vmul.f32 1.442695, %v18001_v48  ;;  %v18002_v43 = vsub.f32 %v13217_v30, %v13385_v8 }
 0x903   :  { %v13599_v9 = vpop.eup %9446  ;;  %9466 = vpow2.f32 %v4077_v7  ;;  %v4094_v35 = vadd.f32 %v13541_v58, %v4093_v26  ;;  %v18004_v7 = vsub.f32 %v13229_v27, %v13385_v8  ;;  %v18005_v26 = vsub.f32 %v13235_v3, %v13385_v8 }
 0x904   :  { %v3975_v53 = vmul.f32 1.442695, %v18002_v43  ;;  %v13608_v54 = vpop.eup %9448  ;;  %9468 = vpow2.f32 %v4081_v21  ;;  %v18006_v21 = vsub.f32 %v13241_v55, %v13385_v8  ;;  %v3995_v43 = vmul.f32 1.442695, %v18007_v18 }
 0x905   :  { %v3983_v1 = vmul.f32 1.442695, %v18004_v7  ;;  %v3987_v10 = vmul.f32 1.442695, %v18005_v26  ;;  %v13619_v28 = vpop.eup %9450  ;;  %v4095_v30 = vadd.f32 %v13547_v50, %v4094_v35  ;;  %9470 = vpow2.f32 %v3959_v38 }
 0x906   :  { %v3991_v48 = vmul.f32 1.442695, %v18006_v21  ;;  %v13628_v49 = vpop.eup %9452  ;;  %9472 = vpow2.f32 %v3963_v47  ;;  %v18009_v18 = vsub.f32 %v17977_v46, %v13385_v8 }
 0x907   :  { %v13636_v35 = vpop.eup %9454  ;;  %v4096_v55 = vadd.f32 %v13552_v42, %v4095_v30  ;;  %9474 = vpow2.f32 %v3967_v37 }
 0x908   :  { %v13643_v7 = vpop.eup %9456  ;;  %9476 = vpow2.f32 %v3971_v22  ;;  %v18008_v22 = vsub.f32 %v13253_v61, %v13385_v8  ;;  %v4003_v21 = vmul.f32 1.442695, %v18009_v18 }
 0x909   :  { %v13651_v30 = vpop.eup %9458  ;;  %v4097_v37 = vadd.f32 %v13558_v6, %v4096_v55  ;;  %9478 = vpow2.f32 %v3975_v53 }
 0x90a   :  { %v13658_v40 = vpop.eup %9460  ;;  %9480 = vpow2.f32 %v3979_v0  ;;  %v3999_v47 = vmul.f32 1.442695, %v18008_v22 }
 0x90b   :  { %v13666_v55 = vpop.eup %9462  ;;  %v4098_v53 = vadd.f32 %v13563_v11, %v4097_v37  ;;  %9482 = vpow2.f32 %v3983_v1  ;;  %v18010_v1 = vsub.f32 %v17978_v60, %v13385_v8  ;;  %v18015_v60 = vsub.f32 %v17983_v63, %v13385_v8 }
 0x90c   :  { %v13674_v2 = vpop.eup %9464  ;;  %9484 = vpow2.f32 %v3987_v10  ;;  %v18011_v10 = vsub.f32 %v17979_v39, %v13385_v8  ;;  %v18014_v39 = vsub.f32 %v17982_v15, %v13385_v8  ;;  %v18018_v63 = vsub.f32 %v17986_v41, %v13385_v8 }
 0x90d   :  { %v13679_v26 = vpop.eup %9466  ;;  %v4099_v38 = vadd.f32 %v13569_v36, %v4098_v53  ;;  %9486 = vpow2.f32 %v3991_v48  ;;  %v4007_v61 = vmul.f32 1.442695, %v18010_v1  ;;  %v18012_v48 = vsub.f32 %v17980_v34, %v13385_v8 }
 0x90e   :  { %v13687_v22 = vpop.eup %9468  ;;  %9488 = vpow2.f32 %v3995_v43  ;;  %v4011_v46 = vmul.f32 1.442695, %v18011_v10  ;;  %v18013_v43 = vsub.f32 %v17981_v33, %v13385_v8  ;;  %v4023_v10 = vmul.f32 1.442695, %v18014_v39 }
 0x90f   :  { %v9471_v18 = vpop.eup %9470  ;;  %v4100_v0 = vadd.f32 %v13574_v16, %v4099_v38  ;;  %9490 = vpow2.f32 %v3999_v47  ;;  %v4015_v53 = vmul.f32 1.442695, %v18012_v48  ;;  %v18016_v33 = vsub.f32 %v17984_v31, %v13385_v8 }
 0x910   :  { %v9473_v1 = vpop.eup %9472  ;;  %9492 = vpow2.f32 %v4003_v21  ;;  %v4019_v37 = vmul.f32 1.442695, %v18013_v43  ;;  %v4027_v21 = vmul.f32 1.442695, %v18015_v60  ;;  %v4039_v60 = vmul.f32 1.442695, %v18018_v63 }
 0x911   :  { %v9475_v3 = vpop.eup %9474  ;;  %v4101_v38 = vadd.f32 %v13580_v45, %v4100_v0  ;;  %9494 = vpow2.f32 %v4007_v61  ;;  %v4122_v47 = vadd.f32 %v9473_v1, %v9471_v18  ;;  %v8658_v34 = vpack.c.bf16 %v9473_v1, %v9471_v18 }
 0x912   :  { %v9477_v48 = vpop.eup %9476  ;;  %9496 = vpow2.f32 %v4011_v46  ;;  %v4031_v43 = vmul.f32 1.442695, %v18016_v33  ;;  %v18017_v46 = vsub.f32 %v17985_v14, %v13385_v8  ;;  %v18019_v31 = vpack.c.bf16 %v13471_v17, %v13463_v24 }
 0x913   :  { %v9479_v27 = vpop.eup %9478  ;;  %v4102_v15 = vadd.f32 %v13585_v20, %v4101_v38  ;;  %9498 = vpow2.f32 %v4015_v53  ;;  %v4123_v39 = vadd.f32 %v9475_v3, %v4122_v47  ;;  %8659 = vmatprep.subr.bf16.mxu0 %v8658_v34  ;;  %v8662_v0 = vpack.c.bf16 %v9477_v48, %v9475_v3 }
 0x914   :  { %v9481_v61 = vpop.eup %9480  ;;  %9500 = vpow2.f32 %v4019_v37  ;;  %v4035_v18 = vmul.f32 1.442695, %v18017_v46  ;;  %8661 = vmatpush1.bf16.msra.mxu0 %v18019_v31  ;;  %v18020_v14 = vsub.f32 %v17987_v25, %v13385_v8 }
 0x915   :  { %v9483_v1 = vpop.eup %9482  ;;  %v4103_v53 = vadd.f32 %v13591_v13, %v4102_v15  ;;  %9502 = vpow2.f32 %v4023_v10  ;;  %v4124_v38 = vadd.f32 %v9477_v48, %v4123_v39  ;;  %8663 = vmatprep.subr.bf16.mxu0 %v8662_v0  ;;  %v8666_v3 = vpack.c.bf16 %v9481_v61, %v9479_v27 }
 0x916   :  { %v9485_v37 = vpop.eup %9484  ;;  %9504 = vpow2.f32 %v4027_v21  ;;  %v4043_v47 = vmul.f32 1.442695, %v18020_v14  ;;  %v18021_v10 = vpack.c.bf16 %v13487_v4, %v13479_v23  ;;  %v18023_v4 = vsub.f32 %v17989_v29, %v13385_v8 }
 0x917   :  { %v9487_v34 = vpop.eup %9486  ;;  %v4104_v41 = vadd.f32 %v13599_v9, %v4103_v53  ;;  %9506 = vpow2.f32 %v4031_v43  ;;  %v4125_v33 = vadd.f32 %v9479_v27, %v4124_v38  ;;  %v8670_v24 = vpack.c.bf16 %v9485_v37, %v9483_v1 }
 0x918   :  { %v9489_v17 = vpop.eup %9488  ;;  %9508 = vpow2.f32 %v4035_v18  ;;  %8665 = vmatpush1.bf16.msra.mxu0 %v18021_v10  ;;  %v18022_v27 = vsub.f32 %v17988_v51, %v13385_v8  ;;  %v4067_v31 = vmul.f32 1.442695, %v18023_v4  ;;  %v18025_v38 = vsub.f32 %v17990_v52, %v13385_v8 }
 0x919   :  { %v9491_v48 = vpop.eup %9490  ;;  %v4105_v15 = vadd.f32 %v13608_v54, %v4104_v41  ;;  %9510 = vpow2.f32 %v4039_v60  ;;  %v4126_v21 = vadd.f32 %v9481_v61, %v4125_v33  ;;  %8667 = vmatprep.subr.bf16.mxu0 %v8666_v3  ;;  %v8674_v25 = vpack.c.bf16 %v9489_v17, %v9487_v34 }
 0x91a   :  { %v9493_v39 = vpop.eup %9492  ;;  %9512 = vpow2.f32 %v4043_v47  ;;  %v4063_v46 = vmul.f32 1.442695, %v18022_v27  ;;  %v18024_v61 = vpack.c.bf16 %v13502_v32, %v13495_v57  ;;  %v4071_v51 = vmul.f32 1.442695, %v18025_v38  ;;  %v18032_v38 = vld [vmem:[#allocation138_spill] sm:$0xff] }
 0x91b   :  { %v9495_v0 = vpop.eup %9494  ;;  %v4106_v43 = vadd.f32 %v13619_v28, %v4105_v15  ;;  %v4127_v18 = vadd.f32 %v9483_v1, %v4126_v21  ;;  %v8678_v63 = vpack.c.bf16 %v9493_v39, %v9491_v48  ;;  %v18026_v29 = vsub.f32 %v17991_v56, %v13385_v8 }
 0x91c   :  { %v9497_v23 = vpop.eup %9496  ;;  %8669 = vmatpush1.bf16.msra.mxu0 %v18024_v61  ;;  %v18027_v32 = vsub.f32 %v17992_v59, %v13385_v8  ;;  %9514 = vpow2.f32 %v4063_v46  ;;  %v18029_v56 = vpack.c.bf16 %v13516_v5, %v13510_v44  ;;  %v18030_v44 = vpack.c.bf16 %v13533_v12, %v13526_v19 }
 0x91d   :  { %v13740_v60 = vpop.eup %9498  ;;  %v4107_v53 = vadd.f32 %v13628_v49, %v4106_v43  ;;  %v4128_v3 = vadd.f32 %v9485_v37, %v4127_v18  ;;  %8671 = vmatprep.subr.bf16.mxu0 %v8670_v24  ;;  %v8682_v1 = vpack.c.bf16 %v9497_v23, %v9495_v0  ;;  %v4075_v47 = vmul.f32 1.442695, %v18026_v29  ;;  %v18033_v29 = vld [vmem:[#allocation135_spill] sm:$0xff] }
 0x91e   :  { %v9501_v14 = vpop.eup %9500  ;;  %v4079_v57 = vmul.f32 1.442695, %v18027_v32  ;;  %9516 = vpow2.f32 %v4067_v31  ;;  %v18028_v24 = vsub.f32 %v13379_v62, %v13385_v8  ;;  %v18034_v19 = vpack.c.bf16 %v13547_v50, %v13541_v58 }
 0x91f   :  { %v13752_v41 = vpop.eup %9502  ;;  %v4108_v33 = vadd.f32 %v13636_v35, %v4107_v53  ;;  %v4129_v10 = vadd.f32 %v9487_v34, %v4128_v3  ;;  %v8686_v52 = vpack.c.bf16 %v9501_v14, %v13740_v60  ;;  %9518 = vpow2.f32 %v4071_v51 }
 0x920   :  { %v9505_v37 = vpop.eup %9504  ;;  %v4083_v15 = vmul.f32 1.442695, %v18028_v24  ;;  %8673 = vmatpush1.bf16.msra.mxu0 %v18029_v56  ;;  %9520 = vpow2.f32 %v4075_v47  ;;  %v3940_v51 = vsub.f32 %v18032_v38, %v13385_v8  ;;  %v3942_v47 = vsub.f32 %v18033_v29, %v13385_v8 }
 0x921   :  { %v9507_v59 = vpop.eup %9506  ;;  %v4109_v21 = vadd.f32 %v13643_v7, %v4108_v33  ;;  %v4130_v43 = vadd.f32 %v9489_v17, %v4129_v10  ;;  %8675 = vmatprep.subr.bf16.mxu0 %v8674_v25  ;;  %v8690_v34 = vpack.c.bf16 %v9505_v37, %v13752_v41  ;;  %9522 = vpow2.f32 %v4079_v57  ;;  %v18031_v17 = vld [vmem:[#allocation132_spill] sm:$0xff]  ;;  %v18035_v33 = vld [vmem:[#allocation141_spill] sm:$0xff] }
 0x922   :  { %v9509_v27 = vpop.eup %9508  ;;  %9524 = vpow2.f32 %v4083_v15  ;;  %v3938_v25 = vsub.f32 %v18031_v17, %v13385_v8  ;;  %v3944_v10 = vsub.f32 %v18035_v33, %v13385_v8  ;;  %v4051_v24 = vmul.f32 1.442695, %v3940_v51 }
 0x923   :  { %v9511_v46 = vpop.eup %9510  ;;  %v4110_v18 = vadd.f32 %v13651_v30, %v4109_v21  ;;  %v4131_v62 = vadd.f32 %v9491_v48, %v4130_v43  ;;  %v8694_v4 = vpack.c.bf16 %v9509_v27, %v9507_v59  ;;  %v4055_v58 = vmul.f32 1.442695, %v3942_v47  ;;  %v18049_v47 = vld [vmem:[#allocation116_spill] sm:$0xff] }
 0x924   :  { %v9513_v31 = vpop.eup %9512  ;;  %8677 = vmatpush1.bf16.msra.mxu0 %v18030_v44  ;;  %v4047_v57 = vmul.f32 1.442695, %v3938_v25  ;;  %v18036_v50 = vpack.c.bf16 %v13558_v6, %v13552_v42  ;;  %v4059_v44 = vmul.f32 1.442695, %v3944_v10  ;;  %v18037_v17 = vpack.c.bf16 %v13569_v36, %v13563_v11 }
 0x925   :  { %v4111_v5 = vadd.f32 %v13658_v40, %v4110_v18  ;;  %v4132_v61 = vadd.f32 %v9493_v39, %v4131_v62  ;;  %8679 = vmatprep.subr.bf16.mxu0 %v8678_v63  ;;  %v8698_v53 = vpack.c.bf16 %v9513_v31, %v9511_v46 }
 0x926   :  { %v9515_v12 = vpop.eup %9514  ;;  %9526 = vpow2.f32 %v4047_v57 }
 0x927   :  { %v4112_v48 = vadd.f32 %v13666_v55, %v4111_v5  ;;  %v4133_v3 = vadd.f32 %v9495_v0, %v4132_v61  ;;  %9528 = vpow2.f32 %v4051_v24 }
 0x928   :  { %8681 = vmatpush1.bf16.msra.mxu0 %v18034_v19  ;;  %v9517_v63 = vpop.eup %9516  ;;  %9530 = vpow2.f32 %v4055_v58 }
 0x929   :  { %v4113_v32 = vadd.f32 %v13674_v2, %v4112_v48  ;;  %v4134_v39 = vadd.f32 %v9497_v23, %v4133_v3  ;;  %8683 = vmatprep.subr.bf16.mxu0 %v8682_v1  ;;  %v9519_v15 = vpop.eup %9518  ;;  %v8710_v21 = vpack.c.bf16 %v9517_v63, %v9515_v12  ;;  %9532 = vpow2.f32 %v4059_v44  ;;  %v18047_v3 = vld [vmem:[#allocation67_spill] sm:$0xff] }
 0x92a   :  { %v9521_v43 = vpop.eup %9520 }
 0x92b   :  { %v4114_v0 = vadd.f32 %v13679_v26, %v4113_v32  ;;  %v4135_v56 = vadd.f32 %v13740_v60, %v4134_v39  ;;  %v9523_v18 = vpop.eup %9522  ;;  %v8714_v8 = vpack.c.bf16 %v9521_v43, %v9519_v15 }
 0x92c   :  { %8685 = vmatpush1.bf16.msra.mxu0 %v18036_v50  ;;  %v9525_v62 = vpop.eup %9524 }
 0x92d   :  { %v4115_v23 = vadd.f32 %v13687_v22, %v4114_v0  ;;  %v4136_v1 = vadd.f32 %v9501_v14, %v4135_v56  ;;  %8687 = vmatprep.subr.bf16.mxu0 %v8686_v52  ;;  %v8718_v60 = vpack.c.bf16 %v9525_v62, %v9523_v18  ;;  %v18038_v14 = vpack.c.bf16 %v13580_v45, %v13574_v16 }
 0x92f   :  { %v4137_v5 = vadd.f32 %v13752_v41, %v4136_v1  ;;  %v18039_v41 = vpack.c.bf16 %v13591_v13, %v13585_v20 }
 0x930   :  { %8689 = vmatpush1.bf16.msra.mxu0 %v18037_v17  ;;  %v9527_v25 = vpop.eup %9526 }
 0x931   :  { %v4138_v42 = vadd.f32 %v9505_v37, %v4137_v5  ;;  %8691 = vmatprep.subr.bf16.mxu0 %v8690_v34  ;;  %v9529_v38 = vpop.eup %9528 }
 0x932   :  { %v9531_v36 = vpop.eup %9530  ;;  %v8702_v34 = vpack.c.bf16 %v9529_v38, %v9527_v25 }
 0x933   :  { %v4139_v6 = vadd.f32 %v9507_v59, %v4138_v42  ;;  %v9533_v51 = vpop.eup %9532  ;;  %v18040_v59 = vpack.c.bf16 %v13608_v54, %v13599_v9  ;;  %v18043_v9 = vpack.c.bf16 %v13658_v40, %v13651_v30  ;;  %v18050_v40 = vld [vmem:[#allocation68_spill] sm:$0xff]  ;;  %v18051_v30 = vld [vmem:[#allocation66_spill] sm:$0xff] }
 0x934   :  { %8693 = vmatpush1.bf16.msra.mxu0 %v18038_v14  ;;  %v18052_v19 = vpack.c.bf16 %v18050_v40, %v18051_v30  ;;  %v18062_v42 = vld [vmem:[#allocation98_spill] sm:$0xff]  ;;  %v18092_v30 = vld [vmem:[#allocation29_spill] sm:$0xff] }
 0x935   :  { %v4140_v52 = vadd.f32 %v9509_v27, %v4139_v6  ;;  %8695 = vmatprep.subr.bf16.mxu0 %v8694_v4  ;;  %v8706_v27 = vpack.c.bf16 %v9533_v51, %v9531_v36  ;;  %v18042_v4 = vpack.c.bf16 %v13643_v7, %v13636_v35  ;;  %v18045_v35 = vpack.c.bf16 %v13687_v22, %v13679_v26  ;;  %v18046_v7 = vld [vmem:[#allocation69_spill] sm:$0xff] }
 0x936   :  { %v18048_v29 = vpack.c.bf16 %v18046_v7, %v18047_v3  ;;  %v18088_v3 = vld [vmem:[#allocation164_spill] sm:$0xff] }
 0x937   :  { %v4141_v61 = vadd.f32 %v9511_v46, %v4140_v52  ;;  %v18041_v46 = vpack.c.bf16 %v13628_v49, %v13619_v28  ;;  %v18044_v28 = vpack.c.bf16 %v13674_v2, %v13666_v55  ;;  %v13824_v2 = vpop.trf.xlu0  ;;  %v4116_v55 = vrot.slane %v4115_v23, 4  ;;  %v18064_v52 = vld [vmem:[#allocation24_spill] sm:$0xff] }
 0x938   :  { %8697 = vmatpush1.bf16.msra.mxu0 %v18039_v41  ;;  %18054 = vst [vmem:[#allocation153_spill] sm:$0xff] %v13824_v2  ;;  %v18066_v41 = vld [vmem:[#allocation25_spill] sm:$0xff] }
 0x939   :  { %v4142_v11 = vadd.f32 %v9513_v31, %v4141_v61  ;;  %8699 = vmatprep.subr.bf16.mxu0 %v8698_v53  ;;  %v4117_v26 = vadd.f32 %v4116_v55, %v4115_v23 }
 0x93b   :  { %v4143_v37 = vadd.f32 %v9527_v25, %v4142_v11  ;;  %v13826_v57 = vpop.trf.xlu0  ;;  %v4118_v39 = vrot.slane %v4117_v26, 2  ;;  %v18065_v25 = vld [vmem:[#allocation26_spill] sm:$0xff]  ;;  %v452_v11 = vadd.f32 %v18066_v41, %v18064_v52 }
 0x93c   :  { %8701 = vmatpush1.bf16.msra.mxu0 %v18040_v59  ;;  %18055 = vst [vmem:[#allocation155_spill] sm:$0xff] %v13826_v57  ;;  %v454_v61 = vadd.f32 %v18065_v25, %v18064_v52  ;;  %v18071_v59 = vld [vmem:[#allocation61_spill] sm:$0xff]  ;;  %v18116_v52 = vld [vmem:[#allocation48_spill] sm:$0xff]  ;;  %v18120_v41 = vld [vmem:[#allocation50_spill] sm:$0xff] }
 0x93d   :  { %v4144_v16 = vadd.f32 %v9529_v38, %v4143_v37  ;;  %8703 = vmatprep.subr.bf16.mxu0 %v8702_v34  ;;  %v4119_v10 = vadd.f32 %v4118_v39, %v4117_v26  ;;  %v570_v38 = vld [vmem:[#allocation10] sm:$0xf]  ;;  %v18068_v37 = vld [vmem:[#allocation159_spill] sm:$0xff] }
 0x93f   :  { %v4145_v45 = vadd.f32 %v9531_v36, %v4144_v16  ;;  %v4120_v0 = vrot.slane %v4119_v10, 1 }
 0x940   :  { %8705 = vmatpush1.bf16.msra.mxu0 %v18041_v46 }
 0x941   :  { %v4146_v20 = vadd.f32 %v9533_v51, %v4145_v45  ;;  %8707 = vmatprep.subr.bf16.mxu0 %v8706_v27  ;;  %v18070_v51 = vld [vmem:[#allocation120_spill] sm:$0xff]  ;;  %v13863_v45 = vpop.trf.xlu1  ;;  %v18074_v27 = vld [vmem:[#allocation62_spill] sm:$0xff] }
 0x942   :  { %18073 = vst [vmem:[#allocation119_spill] sm:$0xff] %v13863_v45 }
 0x943   :  { %v4147_v13 = vadd.f32 %v9515_v12, %v4146_v20  ;;  %v18053_v12 = vmov 0.0   ;;  %v18076_v20 = vld [vmem:[#allocation123_spill] sm:$0xff] }
 0x944   :  { %8709 = vmatpush1.bf16.msra.mxu0 %v18042_v4  ;;  %v18078_v4 = vld [vmem:[#allocation160_spill] sm:$0xff] }
 0x945   :  { %v4148_v31 = vadd.f32 %v9517_v63, %v4147_v13  ;;  %8711 = vmatprep.subr.bf16.mxu0 %v8710_v21  ;;  %v13828_v63 = vpop.trf.xlu0  ;;  %v4121_v21 = vadd.f32 %v4120_v0, %v4119_v10  ;;  %v13872_v13 = vpop.trf.xlu1  ;;  %v18102_v0 = vld [vmem:[#allocation88_spill] sm:$0xff] }
 0x946   :  { %18056 = vst [vmem:[#allocation91_spill] sm:$0xff] %v13828_v63  ;;  %18077 = vst [vmem:[#allocation71_spill] sm:$0xff] %v13872_v13 }
 0x947   :  { %v4149_v53 = vadd.f32 %v9519_v15, %v4148_v31  ;;  %9534 = vrcp.f32 %v4121_v21  ;;  %v18104_v21 = vld [vmem:[#allocation41_spill] sm:$0xff] }
 0x948   :  { %8713 = vmatpush1.bf16.msra.mxu0 %v18043_v9  ;;  %v18081_v9 = vld [vmem:[#allocation161_spill] sm:$0xff] }
 0x949   :  { %v4150_v54 = vadd.f32 %v9521_v43, %v4149_v53  ;;  %8715 = vmatprep.subr.bf16.mxu0 %v8714_v8  ;;  %v13830_v15 = vpop.trf.xlu0  ;;  %v13880_v53 = vpop.trf.xlu1 }
 0x94a   :  { %18057 = vst [vmem:[#allocation93_spill] sm:$0xff] %v13830_v15  ;;  %18080 = vst [vmem:[#allocation73_spill] sm:$0xff] %v13880_v53 }
 0x94b   :  { %v4151_v48 = vadd.f32 %v9523_v18, %v4150_v54 }
 0x94c   :  { %8717 = vmatpush1.bf16.msra.mxu0 %v18044_v28 }
 0x94d   :  { %v4152_v49 = vadd.f32 %v9525_v62, %v4151_v48  ;;  %8719 = vmatprep.subr.bf16.mxu0 %v8718_v60  ;;  %v13832_v43 = vpop.trf.xlu0  ;;  %v18061_v60 = vld [vmem:[#allocation85_spill] sm:$0xff]  ;;  %v18083_v48 = vld [vmem:[#allocation162_spill] sm:$0xff]  ;;  %v13889_v28 = vpop.trf.xlu1 }
 0x94e   :  { %18058 = vst [vmem:[#allocation97_spill] sm:$0xff] %v13832_v43  ;;  %18084 = vst [vmem:[#allocation75_spill] sm:$0xff] %v13889_v28 }
 0x94f   :  { %v4153_v32 = vrot.slane %v4152_v49, 4 }
 0x950   :  { %8721 = vmatpush1.bf16.msra.mxu0 %v18045_v35 }
 0x951   :  { %8723 = vmatprep.subr.bf16.mxu0 %v18048_v29  ;;  %v4154_v22 = vadd.f32 %v4153_v32, %v4152_v49  ;;  %v13834_v50 = vpop.trf.xlu0  ;;  %v9535_v23 = vpop.eup %9534  ;;  %v18085_v49 = vld [vmem:[#allocation163_spill] sm:$0xff] }
 0x952   :  { %18059 = vst [vmem:[#allocation101_spill] sm:$0xff] %v13834_v50  ;;  %v13897_v7 = vpop.trf.xlu1  ;;  %v18095_v32 = vld [vmem:[#allocation27_spill] sm:$0xff] }
 0x953   :  { %4224 = vmatmul.mubr.f32.vlgmr.msra.gmra.mrb[154].mxu0 %v18049_v47  ;;  %v4155_v33 = vrot.slane %v4154_v22, 2  ;;  %18087 = vst [vmem:[#allocation77_spill] sm:$0xff] %v13897_v7  ;;  %v18090_v47 = vld [vmem:[#allocation82_spill] sm:$0xff] }
 0x954   :  { %8725 = vmatpush1.bf16.msra.mxu0 %v18052_v19  ;;  %4320 = vmatprep.mubr.f32.mxu0 %v18053_v12 }
 0x955   :  { %v4156_v24 = vadd.f32 %v4155_v33, %v4154_v22  ;;  %v13836_v18 = vpop.trf.xlu0  ;;  %v18097_v22 = vld [vmem:[#allocation45_spill] sm:$0xff]  ;;  %v18099_v33 = vld [vmem:[#allocation46_spill] sm:$0xff] }
 0x956   :  { %18060 = vst [vmem:[#allocation109_spill] sm:$0xff] %v13836_v18  ;;  %v13906_v40 = vpop.trf.xlu1 }
 0x957   :  { %v4157_v56 = vrot.slane %v4156_v24, 1  ;;  %18091 = vst [vmem:[#allocation84_spill] sm:$0xff] %v13906_v40 }
 0x959   :  { %v4158_v58 = vadd.f32 %v4157_v56, %v4156_v24  ;;  %v13840_v14 = vpop.trf.xlu0 }
 0x95a   :  { %18063 = vst [vmem:[#allocation127_spill] sm:$0xff] %v13840_v14  ;;  %v13914_v55 = vpop.trf.xlu1 }
 0x95b   :  { %9536 = vrcp.f32 %v4158_v58  ;;  %18094 = vst [vmem:[#allocation83_spill] sm:$0xff] %v13914_v55 }
 0x95d   :  { %v13847_v36 = vpop.trf.xlu0 }
 0x95e   :  { %18067 = vst [vmem:[#allocation136_spill] sm:$0xff] %v13847_v36  ;;  %v13923_v39 = vpop.trf.xlu1 }
 0x95f   :  { %18098 = vst [vmem:[#allocation58_spill] sm:$0xff] %v13923_v39 }
 0x961   :  { %v13853_v34 = vpop.trf.xlu0 }
 0x962   :  { %18069 = vst [vmem:[#allocation39_spill] sm:$0xff] %v13853_v34  ;;  %v13931_v24 = vpop.trf.xlu1 }
 0x963   :  { %18101 = vst [vmem:[#allocation31_spill] sm:$0xff] %v13931_v24 }
 0x965   :  { %v9537_v8 = vpop.eup %9536  ;;  %v13860_v16 = vpop.trf.xlu0 }
 0x966   :  { %18072 = vst [vmem:[#allocation158_spill] sm:$0xff] %v13860_v16  ;;  %v13940_v58 = vpop.trf.xlu1 }
 0x967   :  { %18105 = vst [vmem:[#allocation172_spill] sm:$0xff] %v13940_v58 }
 0x969   :  { %v13868_v46 = vpop.trf.xlu0 }
 0x96a   :  { %18075 = vst [vmem:[#allocation70_spill] sm:$0xff] %v13868_v46 }
 0x96d   :  { %v13877_v31 = vpop.trf.xlu0 }
 0x96e   :  { %18079 = vst [vmem:[#allocation72_spill] sm:$0xff] %v13877_v31 }
 0x971   :  { %v13885_v54 = vpop.trf.xlu0 }
 0x972   :  { %18082 = vst [vmem:[#allocation74_spill] sm:$0xff] %v13885_v54 }
 0x975   :  { %v13894_v35 = vpop.trf.xlu0 }
 0x976   :  { %18086 = vst [vmem:[#allocation76_spill] sm:$0xff] %v13894_v35 }
 0x979   :  { %v13902_v29 = vpop.trf.xlu0 }
 0x97a   :  { %18089 = vst [vmem:[#allocation78_spill] sm:$0xff] %v13902_v29 }
 0x97d   :  { %v13911_v19 = vpop.trf.xlu0 }
 0x97e   :  { %18093 = vst [vmem:[#allocation169_spill] sm:$0xff] %v13911_v19 }
 0x981   :  { %v13919_v26 = vpop.trf.xlu0 }
 0x982   :  { %18096 = vst [vmem:[#allocation80_spill] sm:$0xff] %v13919_v26 }
 0x985   :  { %v13928_v10 = vpop.trf.xlu0 }
 0x986   :  { %18100 = vst [vmem:[#allocation33_spill] sm:$0xff] %v13928_v10  ;;  %v10074_v10 = vld [vmem:[#allocation4] sm:$0xff] }
 0x989   :  { %v13936_v56 = vpop.trf.xlu0 }
 0x98a   :  { %18103 = vst [vmem:[#allocation170_spill] sm:$0xff] %v13936_v56 }
 0xa26   :  { %v4225_v1 = vpop.f32.mrb[154].mxu0 }
 0xa27   :  { %v4232_v62 = vmul.f32 %v9535_v23, %v4225_v1  ;;  %v4227_v44 = vpop.f32.mrb[155].mxu0  ;;  %v18106_v23 = vld [vmem:[#allocation165_spill] sm:$0xff]  ;;  %v13945_v1 = vpop.trf.xlu0 }
 0xa28   :  { %v4233_v5 = vmul.f32 %v9537_v8, %v4227_v44  ;;  %18107 = vst [vmem:[#allocation171_spill] sm:$0xff] %v13945_v1  ;;  %v13948_v8 = vpop.trf.xlu1 }
 0xa29   :  { %v8728_v17 = vpack.c.bf16 %v4232_v62, %v18061_v60  ;;  %18108 = vst [vmem:[#allocation79_spill] sm:$0xff] %v13948_v8  ;;  %v18109_v62 = vld [vmem:[#allocation166_spill] sm:$0xff] }
 0xa2a   :  { %v8726_v6 = vpack.c.bf16 %v4233_v5, %v18062_v42  ;;  %v18111_v5 = vld [vmem:[#allocation87_spill] sm:$0xff] }
 0xa2b   :  { %v13953_v44 = vpop.trf.xlu0 }
 0xa2c   :  { %8727 = vmatprep.subr.bf16.mxu0 %v8726_v6  ;;  %18110 = vst [vmem:[#allocation37_spill] sm:$0xff] %v13953_v44  ;;  %v13957_v60 = vpop.trf.xlu1 }
 0xa2d   :  { %8729 = vmatpush1.bf16.msra.mxu0 %v8728_v17  ;;  %18112 = vst [vmem:[#allocation55_spill] sm:$0xff] %v13957_v60  ;;  %v18113_v17 = vld [vmem:[#allocation47_spill] sm:$0xff] }
 0xa2e   :  { %4561 = vmatprep.subr.mxu0 %v454_v61  ;;  %v18118_v61 = vld [vmem:[#allocation168_spill] sm:$0xff] }
 0xa2f   :  { %v13962_v42 = vpop.trf.xlu0 }
 0xa30   :  { %8336 = vmatmul.mubr.msk.f32.vlgmr.msra.gmra.mrb[156].mxu0 %vm4252_vm3, %v570_v38  ;;  %18114 = vst [vmem:[#allocation35_spill] sm:$0xff] %v13962_v42  ;;  %v13965_v6 = vpop.trf.xlu1 }
 0xa31   :  { %4562 = vmatpush1.msra.mxu0 %v452_v11  ;;  %4625 = vmatprep.mubr.f32.mxu0 %v18053_v12  ;;  %18115 = vst [vmem:[#allocation110_spill] sm:$0xff] %v13965_v6 }
 0xa33   :  { %v13970_v25 = vpop.trf.xlu0 }
 0xa34   :  { %8337 = vmatmul.mubr.msk.f32.vlgmr.msra.gmra.mrb[158].mxu0 %vm653_vm2, %v18068_v37  ;;  %18117 = vst [vmem:[#allocation112_spill] sm:$0xff] %v13970_v25  ;;  %v13974_v38 = vpop.trf.xlu1 }
 0xa35   :  { %4631 = vmatprep.mubr.f32.mxu0 %v18053_v12  ;;  %18119 = vst [vmem:[#allocation114_spill] sm:$0xff] %v13974_v38 }
 0xa37   :  { %v13979_v11 = vpop.trf.xlu0 }
 0xa38   :  { %8338 = vmatmul.mubr.msk.f32.gmra.mrb[160].mxu0 %vm653_vm2, %v18070_v51  ;;  %18121 = vst [vmem:[#allocation117_spill] sm:$0xff] %v13979_v11  ;;  %v13982_v37 = vpop.trf.xlu1  ;;  %v18123_v51 = vld [vmem:[#allocation51_spill] sm:$0xff] }
 0xa39   :  { %4637 = vmatprep.mubr.f32.mxu0 %v18053_v12  ;;  %18122 = vst [vmem:[#allocation121_spill] sm:$0xff] %v13982_v37 }
 0xa3c   :  { %8339 = vmatmul.mubr.msk.f32.gmra.mrb[162].mxu0 %vm653_vm2, %v18071_v59  ;;  %v13987_v59 = vpop.trf.xlu0 }
 0xa3d   :  { %4643 = vmatprep.mubr.f32.mxu0 %v18053_v12  ;;  %18124 = vst [vmem:[#allocation125_spill] sm:$0xff] %v13987_v59 }
 0xa40   :  { %8340 = vmatmul.mubr.msk.f32.gmra.mrb[164].mxu0 %vm653_vm2, %v18074_v27  ;;  %v18125_v27 = vld [vmem:[#allocation52_spill] sm:$0xff] }
 0xa41   :  { %4649 = vmatprep.mubr.f32.mxu0 %v18053_v12 }
 0xa44   :  { %8341 = vmatmul.mubr.msk.f32.gmra.mrb[166].mxu0 %vm653_vm2, %v18076_v20  ;;  %v13991_v20 = vpop.trf.xlu1 }
 0xa45   :  { %4655 = vmatprep.mubr.f32.mxu0 %v18053_v12  ;;  %18126 = vst [vmem:[#allocation128_spill] sm:$0xff] %v13991_v20 }
 0xa48   :  { %8342 = vmatmul.mubr.msk.f32.gmra.mrb[168].mxu0 %vm653_vm2, %v18078_v4  ;;  %v18127_v4 = vld [vmem:[#allocation53_spill] sm:$0xff] }
 0xa49   :  { %4661 = vmatprep.mubr.f32.mxu0 %v18053_v12 }
 0xa4c   :  { %8343 = vmatmul.mubr.msk.f32.gmra.mrb[170].mxu0 %vm653_vm2, %v18081_v9  ;;  %v13996_v9 = vpop.trf.xlu0 }
 0xa4d   :  { %4667 = vmatprep.mubr.f32.mxu0 %v18053_v12  ;;  %18128 = vst [vmem:[#allocation131_spill] sm:$0xff] %v13996_v9 }
 0xa50   :  { %8344 = vmatmul.mubr.msk.f32.gmra.mrb[172].mxu0 %vm653_vm2, %v18083_v48  ;;  %v13999_v48 = vpop.trf.xlu1 }
 0xa51   :  { %4673 = vmatprep.mubr.f32.mxu0 %v18053_v12  ;;  %18129 = vst [vmem:[#allocation134_spill] sm:$0xff] %v13999_v48 }
 0xa54   :  { %8345 = vmatmul.mubr.msk.f32.gmra.mrb[174].mxu0 %vm653_vm2, %v18085_v49  ;;  %v18130_v49 = vld [vmem:[#allocation54_spill] sm:$0xff] }
 0xa55   :  { %4679 = vmatprep.mubr.f32.mxu0 %v18053_v12 }
 0xa58   :  { %8346 = vmatmul.mubr.msk.f32.gmra.mrb[176].mxu0 %vm653_vm2, %v18088_v3  ;;  %v14004_v3 = vpop.trf.xlu0 }
 0xa59   :  { %4685 = vmatprep.mubr.f32.mxu0 %v18053_v12  ;;  %18131 = vst [vmem:[#allocation137_spill] sm:$0xff] %v14004_v3 }
 0xa5c   :  { %8347 = vmatmul.mubr.msk.f32.gmra.mrb[178].mxu0 %vm653_vm2, %v18090_v47  ;;  %v18132_v47 = vld [vmem:[#allocation57_spill] sm:$0xff] }
 0xa5d   :  { %4691 = vmatprep.mubr.f32.mxu0 %v18053_v12 }
 0xa60   :  { %8348 = vmatmul.mubr.msk.f32.gmra.mrb[180].mxu0 %vm653_vm2, %v18092_v30  ;;  %v14008_v30 = vpop.trf.xlu1 }
 0xa61   :  { %4697 = vmatprep.mubr.f32.mxu0 %v18053_v12  ;;  %18133 = vst [vmem:[#allocation140_spill] sm:$0xff] %v14008_v30 }
 0xa64   :  { %8349 = vmatmul.mubr.msk.f32.gmra.mrb[182].mxu0 %vm653_vm2, %v18095_v32  ;;  %v18134_v32 = vld [vmem:[#allocation60_spill] sm:$0xff] }
 0xa65   :  { %4703 = vmatprep.mubr.f32.mxu0 %v18053_v12 }
 0xa68   :  { %8350 = vmatmul.mubr.msk.f32.gmra.mrb[184].mxu0 %vm653_vm2, %v18097_v22  ;;  %v14013_v22 = vpop.trf.xlu0 }
 0xa69   :  { %4709 = vmatprep.mubr.f32.mxu0 %v18053_v12  ;;  %18135 = vst [vmem:[#allocation142_spill] sm:$0xff] %v14013_v22 }
 0xa6c   :  { %8351 = vmatmul.mubr.msk.f32.gmra.mrb[186].mxu0 %vm653_vm2, %v18099_v33  ;;  %v14016_v33 = vpop.trf.xlu1 }
 0xa6d   :  { %4715 = vmatprep.mubr.f32.mxu0 %v18053_v12  ;;  %18136 = vst [vmem:[#allocation144_spill] sm:$0xff] %v14016_v33 }
 0xa70   :  { %8352 = vmatmul.mubr.msk.f32.gmra.mrb[188].mxu0 %vm653_vm2, %v18102_v0  ;;  %v18137_v0 = vld [vmem:[#allocation63_spill] sm:$0xff] }
 0xa71   :  { %4721 = vmatprep.mubr.f32.mxu0 %v18053_v12 }
 0xa74   :  { %8353 = vmatmul.mubr.msk.f32.gmra.mrb[190].mxu0 %vm653_vm2, %v18104_v21  ;;  %v14021_v21 = vpop.trf.xlu0 }
 0xa75   :  { %4727 = vmatprep.mubr.f32.mxu0 %v18053_v12  ;;  %18138 = vst [vmem:[#allocation146_spill] sm:$0xff] %v14021_v21 }
 0xa78   :  { %8354 = vmatmul.mubr.msk.f32.gmra.mrb[192].mxu0 %vm653_vm2, %v18106_v23  ;;  %v18139_v23 = vld [vmem:[#allocation65_spill] sm:$0xff] }
 0xa79   :  { %4733 = vmatprep.mubr.f32.mxu0 %v18053_v12 }
 0xa7c   :  { %8355 = vmatmul.mubr.msk.f32.gmra.mrb[194].mxu0 %vm653_vm2, %v18109_v62  ;;  %v14025_v62 = vpop.trf.xlu1 }
 0xa7d   :  { %4739 = vmatprep.mubr.f32.mxu0 %v18053_v12  ;;  %18140 = vst [vmem:[#allocation148_spill] sm:$0xff] %v14025_v62 }
 0xa80   :  { %8356 = vmatmul.mubr.msk.f32.gmra.mrb[196].mxu0 %vm653_vm2, %v18111_v5  ;;  %v18141_v5 = vld [vmem:[#allocation89_spill] sm:$0xff] }
 0xa81   :  { %4745 = vmatprep.mubr.f32.mxu0 %v18053_v12 }
 0xa84   :  { %8357 = vmatmul.mubr.msk.f32.gmra.mrb[198].mxu0 %vm653_vm2, %v18113_v17  ;;  %v14028_v17 = vpop.trf.xlu0 }
 0xa85   :  { %4751 = vmatprep.mubr.f32.mxu0 %v18053_v12  ;;  %18142 = vst [vmem:[#allocation150_spill] sm:$0xff] %v14028_v17 }
 0xa88   :  { %8358 = vmatmul.mubr.msk.f32.gmra.mrb[200].mxu0 %vm653_vm2, %v18116_v52  ;;  %v14030_v52 = vpop.trf.xlu1 }
 0xa89   :  { %4757 = vmatprep.mubr.f32.mxu0 %v18053_v12  ;;  %18143 = vst [vmem:[#allocation152_spill] sm:$0xff] %v14030_v52 }
 0xa8c   :  { %8359 = vmatmul.mubr.msk.f32.gmra.mrb[202].mxu0 %vm653_vm2, %v18118_v61  ;;  %v14032_v61 = vpop.trf.xlu0 }
 0xa8d   :  { %4763 = vmatprep.mubr.f32.mxu0 %v18053_v12  ;;  %18144 = vst [vmem:[#allocation154_spill] sm:$0xff] %v14032_v61 }
 0xa90   :  { %8360 = vmatmul.mubr.msk.f32.gmra.mrb[204].mxu0 %vm653_vm2, %v18120_v41  ;;  %v14034_v41 = vpop.trf.xlu1 }
 0xa91   :  { %4769 = vmatprep.mubr.f32.mxu0 %v18053_v12  ;;  %18145 = vst [vmem:[#allocation156_spill] sm:$0xff] %v14034_v41 }
 0xa94   :  { %8361 = vmatmul.mubr.msk.f32.gmra.mrb[206].mxu0 %vm653_vm2, %v18123_v51  ;;  %v14036_v51 = vpop.trf.xlu0 }
 0xa95   :  { %4775 = vmatprep.mubr.f32.mxu0 %v18053_v12  ;;  %18146 = vst [vmem:[#allocation90_spill] sm:$0xff] %v14036_v51 }
 0xa98   :  { %8362 = vmatmul.mubr.msk.f32.gmra.mrb[208].mxu0 %vm653_vm2, %v18125_v27  ;;  %v14038_v27 = vpop.trf.xlu1 }
 0xa99   :  { %4781 = vmatprep.mubr.f32.mxu0 %v18053_v12  ;;  %18147 = vst [vmem:[#allocation92_spill] sm:$0xff] %v14038_v27 }
 0xa9c   :  { %8363 = vmatmul.mubr.msk.f32.gmra.mrb[210].mxu0 %vm653_vm2, %v18127_v4  ;;  %v14040_v4 = vpop.trf.xlu0 }
 0xa9d   :  { %4787 = vmatprep.mubr.f32.mxu0 %v18053_v12  ;;  %18148 = vst [vmem:[#allocation94_spill] sm:$0xff] %v14040_v4 }
 0xaa0   :  { %8364 = vmatmul.mubr.msk.f32.gmra.mrb[212].mxu0 %vm653_vm2, %v18130_v49  ;;  %v14042_v49 = vpop.trf.xlu1 }
 0xaa1   :  { %4793 = vmatprep.mubr.f32.mxu0 %v18053_v12  ;;  %18149 = vst [vmem:[#allocation95_spill] sm:$0xff] %v14042_v49 }
 0xaa4   :  { %8365 = vmatmul.mubr.msk.f32.gmra.mrb[214].mxu0 %vm653_vm2, %v18132_v47  ;;  %v14044_v47 = vpop.trf.xlu0 }
 0xaa5   :  { %4799 = vmatprep.mubr.f32.mxu0 %v18053_v12  ;;  %18150 = vst [vmem:[#allocation99_spill] sm:$0xff] %v14044_v47 }
 0xaa8   :  { %8366 = vmatmul.mubr.msk.f32.gmra.mrb[216].mxu0 %vm653_vm2, %v18134_v32  ;;  %v14046_v32 = vpop.trf.xlu1 }
 0xaa9   :  { %4805 = vmatprep.mubr.f32.mxu0 %v18053_v12  ;;  %18151 = vst [vmem:[#allocation104_spill] sm:$0xff] %v14046_v32 }
 0xaac   :  { %8367 = vmatmul.mubr.msk.f32.gmra.mrb[218].mxu0 %vm653_vm2, %v18137_v0  ;;  %v14048_v0 = vpop.trf.xlu0 }
 0xaad   :  { %4811 = vmatprep.mubr.f32.mxu0 %v18053_v12  ;;  %18152 = vst [vmem:[#allocation106_spill] sm:$0xff] %v14048_v0 }
 0xab0   :  { %8368 = vmatmul.mubr.msk.f32.gmra.mrb[220].mxu0 %vm653_vm2, %v18139_v23  ;;  %v14050_v23 = vpop.trf.xlu1 }
 0xab1   :  { %6190 = vmatprep.mubr.f32.mxu0 %v18141_v5  ;;  %18153 = vst [vmem:[#allocation124_spill] sm:$0xff] %v14050_v23  ;;  %v14052_v5 = vpop.trf.xlu0 }
 0xab2   :  { %18154 = vst [vmem:[#allocation130_spill] sm:$0xff] %v14052_v5 }
 0xab4   :  { %v14054_v61 = vpop.trf.xlu1 }
 0xab5   :  { %18155 = vst [vmem:[#allocation133_spill] sm:$0xff] %v14054_v61  ;;  %v14056_v41 = vpop.trf.xlu0 }
 0xab6   :  { %18156 = vst [vmem:[#allocation139_spill] sm:$0xff] %v14056_v41 }
 0xab8   :  { %v14058_v51 = vpop.trf.xlu1 }
 0xab9   :  { %18157 = vst [vmem:[#allocation157_spill] sm:$0xff] %v14058_v51  ;;  %v14060_v27 = vpop.trf.xlu0 }
 0xaba   :  { %18158 = vst [vmem:[#allocation43_spill] sm:$0xff] %v14060_v27 }
 0xabc   :  { %v14062_v4 = vpop.trf.xlu1 }
 0xabd   :  { %18159 = vst [vmem:[#allocation81_spill] sm:$0xff] %v14062_v4  ;;  %v14064_v49 = vpop.trf.xlu0 }
 0xabe   :  { %18160 = vst [vmem:[#allocation100_spill] sm:$0xff] %v14064_v49 }
 0xac0   :  { %v14066_v47 = vpop.trf.xlu1 }
 0xac1   :  { %18161 = vst [vmem:[#allocation102_spill] sm:$0xff] %v14066_v47  ;;  %v14068_v32 = vpop.trf.xlu0 }
 0xac2   :  { %18162 = vst [vmem:[#allocation105_spill] sm:$0xff] %v14068_v32 }
 0xac4   :  { %v14070_v0 = vpop.trf.xlu1 }
 0xac5   :  { %18163 = vst [vmem:[#allocation108_spill] sm:$0xff] %v14070_v0  ;;  %v14072_v23 = vpop.trf.xlu0 }
 0xac6   :  { %18164 = vst [vmem:[#allocation111_spill] sm:$0xff] %v14072_v23 }
 0xac8   :  { %v14074_v5 = vpop.trf.xlu1 }
 0xac9   :  { %18165 = vst [vmem:[#allocation113_spill] sm:$0xff] %v14074_v5  ;;  %v14076_v61 = vpop.trf.xlu0 }
 0xaca   :  { %18166 = vst [vmem:[#allocation115_spill] sm:$0xff] %v14076_v61 }
 0xacc   :  { %v14078_v41 = vpop.trf.xlu1 }
 0xacd   :  { %18167 = vst [vmem:[#allocation118_spill] sm:$0xff] %v14078_v41  ;;  %v14080_v51 = vpop.trf.xlu0 }
 0xace   :  { %18168 = vst [vmem:[#allocation122_spill] sm:$0xff] %v14080_v51 }
 0xad0   :  { %v14082_v52 = vpop.trf.xlu1 }
 0xad1   :  { %18169 = vst [vmem:[#allocation126_spill] sm:$0xff] %v14082_v52  ;;  %v14084_v62 = vpop.trf.xlu0 }
 0xad2   :  { %18170 = vst [vmem:[#allocation129_spill] sm:$0xff] %v14084_v62 }
 0xad4   :  { %v14086_v32 = vpop.trf.xlu1 }
 0xad5   :  { %18171 = vst [vmem:[#allocation143_spill] sm:$0xff] %v14086_v32  ;;  %v14088_v33 = vpop.trf.xlu0 }
 0xad6   :  { %18172 = vst [vmem:[#allocation145_spill] sm:$0xff] %v14088_v33 }
 0xad8   :  { %v14094_v30 = vpop.trf.xlu1 }
 0xad9   :  { %18173 = vst [vmem:[#allocation147_spill] sm:$0xff] %v14094_v30  ;;  %v14108_v21 = vpop.trf.xlu0 }
 0xada   :  { %18174 = vst [vmem:[#allocation149_spill] sm:$0xff] %v14108_v21 }
 0xadc   :  { %v14116_v30 = vpop.trf.xlu1 }
 0xadd   :  { %18175 = vst [vmem:[#allocation151_spill] sm:$0xff] %v14116_v30 }
 0xae0   :  { %v14131_v44 = vpop.trf.xlu1 }
 0xae1   :  { %18177 = vst [vmem:[#allocation138_spill] sm:$0xff] %v14131_v44 }
 0xb03   :  { %v4322_v27 = vpop.f32.mrb[156].mxu0 }
 0xb04   :  { %v4324_v4 = vpop.f32.mrb[157].mxu0 }
 0xb07   :  { %v4627_v49 = vpop.f32.mrb[158].mxu0 }
 0xb08   :  { %v4629_v47 = vpop.f32.mrb[159].mxu0  ;;  %v14090_v61 = vmul.f32 0.35355338, %v4627_v49 }
 0xb09   :  { %v14096_v48 = vmul.f32 0.35355338, %v4629_v47 }
 0xb0b   :  { %v4633_v0 = vpop.f32.mrb[160].mxu0 }
 0xb0c   :  { %v4635_v23 = vpop.f32.mrb[161].mxu0  ;;  %v14104_v33 = vmul.f32 0.35355338, %v4633_v0 }
 0xb0d   :  { %v14110_v22 = vmul.f32 0.35355338, %v4635_v23  ;;  %v14125_v23 = vpop.permute.xlu0 %4249 }
 0xb0e   :  { %18176 = vst [vmem:[#allocation132_spill] sm:$0xff] %v14125_v23  ;;  %v4323_v25 = vadd.f32 %v4322_v27, %v14125_v23 }
 0xb0f   :  { %v4639_v5 = vpop.f32.mrb[162].mxu0 }
 0xb10   :  { %v14092_v41 = vmul.f32 0.35355338, %v4639_v5  ;;  %v4641_v51 = vpop.f32.mrb[163].mxu0  ;;  %v14138_v26 = vadd.f32 %v10074_v10, %v4323_v25 }
 0xb11   :  { %v14098_v52 = vmul.f32 0.35355338, %v4641_v51 }
 0xb12   :  { %v4882_v62 = vmax.f32 %v14090_v61, %v14092_v41  ;;  %v4346_v10 = vmul.f32 %v14138_v26, %v14138_v26 }
 0xb13   :  { %v4919_v32 = vmax.f32 %v14096_v48, %v14098_v52  ;;  %v4645_v17 = vpop.f32.mrb[164].mxu0 }
 0xb14   :  { %v14106_v49 = vmul.f32 0.35355338, %v4645_v17  ;;  %v4647_v5 = vpop.f32.mrb[165].mxu0  ;;  %v4348_v20 = vsel %vm239_vm0, %v4346_v10, 0.0 }
 0xb15   :  { %v14112_v47 = vmul.f32 0.35355338, %v4647_v5 }
 0xb16   :  { %v4883_v51 = vmax.f32 %v14104_v33, %v14106_v49 }
 0xb17   :  { %v4920_v3 = vmax.f32 %v14110_v22, %v14112_v47  ;;  %v4651_v9 = vpop.f32.mrb[166].mxu0 }
 0xb18   :  { %v14120_v0 = vmul.f32 0.35355338, %v4651_v9  ;;  %v4653_v17 = vpop.f32.mrb[167].mxu0  ;;  %v4325_v9 = vadd.f32 %v4324_v4, %v14125_v23 }
 0xb19   :  { %v14122_v59 = vmul.f32 0.35355338, %v4653_v17 }
 0xb1a   :  { %v4884_v21 = vmax.f32 %v4882_v62, %v14120_v0 }
 0xb1b   :  { %v4921_v5 = vmax.f32 %v4919_v32, %v14122_v59  ;;  %v4657_v11 = vpop.f32.mrb[168].mxu0 }
 0xb1c   :  { %v14129_v42 = vmul.f32 0.35355338, %v4657_v11  ;;  %v4659_v30 = vpop.f32.mrb[169].mxu0  ;;  %v18178_v11 = vld [vmem:[#allocation22_spill] sm:$0xff] }
 0xb1d   :  { %v14134_v1 = vmul.f32 0.35355338, %v4659_v30  ;;  %v14143_v19 = vadd.f32 %v4325_v9, %v18178_v11  ;;  %v14148_v30 = vpop.trf.xlu1 }
 0xb1e   :  { %v4885_v17 = vmax.f32 %v4883_v51, %v14129_v42  ;;  %18179 = vst [vmem:[#allocation135_spill] sm:$0xff] %v14148_v30 }
 0xb1f   :  { %v4922_v62 = vmax.f32 %v4920_v3, %v14134_v1  ;;  %v4663_v56 = vpop.f32.mrb[170].mxu0  ;;  %v4330_v3 = vsel %vm239_vm0, %v14138_v26, 0.0  ;;  %v4337_v9 = vsel %vm239_vm0, %v14143_v19, 0.0 }
 0xb20   :  { %v14140_v32 = vmul.f32 0.35355338, %v4663_v56  ;;  %v4665_v27 = vpop.f32.mrb[171].mxu0  ;;  %v4331_v11 = vrot.slane %v4330_v3, 4  ;;  %v4338_v37 = vrot.slane %v4337_v9, 4 }
 0xb21   :  { %v14145_v29 = vmul.f32 0.35355338, %v4665_v27  ;;  %v14168_v6 = vpop.trf.xlu1 }
 0xb22   :  { %v4886_v4 = vmax.f32 %v4884_v21, %v14140_v32  ;;  %v4347_v21 = vmul.f32 %v14143_v19, %v14143_v19  ;;  %18180 = vst [vmem:[#allocation141_spill] sm:$0xff] %v14168_v6  ;;  %v4332_v58 = vadd.f32 %v4331_v11, %v4330_v3  ;;  %v4339_v39 = vadd.f32 %v4338_v37, %v4337_v9 }
 0xb23   :  { %v4923_v51 = vmax.f32 %v4921_v5, %v14145_v29  ;;  %v4669_v23 = vpop.f32.mrb[172].mxu0 }
 0xb24   :  { %v14155_v56 = vmul.f32 0.35355338, %v4669_v23  ;;  %v4671_v25 = vpop.f32.mrb[173].mxu0  ;;  %v4355_v60 = vsel %vm239_vm0, %v4347_v21, 0.0  ;;  %v4340_v11 = vrot.slane %v4339_v39, 2 }
 0xb25   :  { %v14161_v27 = vmul.f32 0.35355338, %v4671_v25  ;;  %v4356_v55 = vrot.slane %v4355_v60, 4  ;;  %v14180_v7 = vpop.trf.xlu1 }
 0xb26   :  { %v4887_v5 = vmax.f32 %v4885_v17, %v14155_v56  ;;  %v4349_v17 = vrot.slane %v4348_v20, 4  ;;  %18181 = vst [vmem:[#allocation69_spill] sm:$0xff] %v14180_v7  ;;  %v4341_v7 = vadd.f32 %v4340_v11, %v4339_v39 }
 0xb27   :  { %v4924_v30 = vmax.f32 %v4922_v62, %v14161_v27  ;;  %v4675_v44 = vpop.f32.mrb[174].mxu0  ;;  %v4357_v28 = vadd.f32 %v4356_v55, %v4355_v60 }
 0xb28   :  { %v14166_v23 = vmul.f32 0.35355338, %v4675_v44  ;;  %v4677_v38 = vpop.f32.mrb[175].mxu0  ;;  %v4350_v21 = vadd.f32 %v4349_v17, %v4348_v20 }
 0xb29   :  { %v14171_v8 = vmul.f32 0.35355338, %v4677_v38  ;;  %v4333_v38 = vrot.slane %v4332_v58, 2  ;;  %v4358_v45 = vrot.slane %v4357_v28, 2  ;;  %v14191_v17 = vpop.trf.xlu1 }
 0xb2a   :  { %v4888_v25 = vmax.f32 %v4886_v4, %v14166_v23  ;;  %v4351_v53 = vrot.slane %v4350_v21, 2  ;;  %18182 = vst [vmem:[#allocation67_spill] sm:$0xff] %v14191_v17 }
 0xb2b   :  { %v4925_v24 = vmax.f32 %v4923_v51, %v14171_v8  ;;  %v4681_v62 = vpop.f32.mrb[176].mxu0  ;;  %v4359_v35 = vadd.f32 %v4358_v45, %v4357_v28 }
 0xb2c   :  { %v14175_v10 = vmul.f32 0.35355338, %v4681_v62  ;;  %v4683_v44 = vpop.f32.mrb[177].mxu0 }
 0xb2d   :  { %v14177_v40 = vmul.f32 0.35355338, %v4683_v44  ;;  %v4334_v44 = vadd.f32 %v4333_v38, %v4332_v58  ;;  %v4342_v38 = vrot.slane %v4341_v7, 1  ;;  %v14202_v54 = vpop.trf.xlu1 }
 0xb2e   :  { %v4889_v6 = vmax.f32 %v4887_v5, %v14175_v10  ;;  %18185 = vst [vmem:[#allocation66_spill] sm:$0xff] %v14202_v54 }
 0xb2f   :  { %v4926_v4 = vmax.f32 %v4924_v30, %v14177_v40  ;;  %v4687_v3 = vpop.f32.mrb[178].mxu0 }
 0xb30   :  { %v14183_v51 = vmul.f32 0.35355338, %v4687_v3  ;;  %v4689_v37 = vpop.f32.mrb[179].mxu0  ;;  %v4335_v3 = vrot.slane %v4334_v44, 1 }
 0xb31   :  { %v14185_v9 = vmul.f32 0.35355338, %v4689_v37  ;;  %v4352_v37 = vadd.f32 %v4351_v53, %v4350_v21  ;;  %v4343_v53 = vadd.f32 %v4342_v38, %v4341_v7  ;;  %v4360_v21 = vrot.slane %v4359_v35, 1  ;;  %v14217_v38 = vpop.trf.xlu1 }
 0xb32   :  { %v4890_v62 = vmax.f32 %v4888_v25, %v14183_v51  ;;  %18187 = vst [vmem:[#allocation98_spill] sm:$0xff] %v14217_v38 }
 0xb33   :  { %v4927_v5 = vmax.f32 %v4925_v24, %v14185_v9  ;;  %v4693_v13 = vpop.f32.mrb[180].mxu0  ;;  %v4353_v17 = vrot.slane %v4352_v37, 1 }
 0xb34   :  { %v14189_v20 = vmul.f32 0.35355338, %v4693_v13  ;;  %v4695_v30 = vpop.f32.mrb[181].mxu0 }
 0xb35   :  { %v14193_v55 = vmul.f32 0.35355338, %v4695_v30  ;;  %v4336_v30 = vadd.f32 %v4335_v3, %v4334_v44  ;;  %v14213_v44 = vmul.f32 0.25, %v4343_v53  ;;  %v4361_v3 = vadd.f32 %v4360_v21, %v4359_v35 }
 0xb36   :  { %v4891_v60 = vmax.f32 %v4889_v6, %v14189_v20 }
 0xb37   :  { %18183 = vst [vmem:[#allocation116_spill] sm:$0xff] %v14193_v55  ;;  %v4928_v25 = vmax.f32 %v4926_v4, %v14193_v55  ;;  %v4699_v58 = vpop.f32.mrb[182].mxu0  ;;  %v4365_v35 = vmul.f32 %v14213_v44, %v14213_v44 }
 0xb38   :  { %v14197_v24 = vmul.f32 0.35355338, %v4699_v58  ;;  %v4701_v39 = vpop.f32.mrb[183].mxu0  ;;  %v14210_v58 = vmul.f32 0.25, %v4336_v30 }
 0xb39   :  { %v14199_v11 = vmul.f32 0.35355338, %v4701_v39  ;;  %v4354_v39 = vadd.f32 %v4353_v17, %v4352_v37 }
 0xb3a   :  { %v4892_v13 = vmax.f32 %v4890_v62, %v14197_v24 }
 0xb3b   :  { %18184 = vst [vmem:[#allocation68_spill] sm:$0xff] %v14199_v11  ;;  %v4929_v6 = vmax.f32 %v4927_v5, %v14199_v11  ;;  %v4705_v31 = vpop.f32.mrb[184].mxu0  ;;  %v4362_v16 = vmul.f32 0.25, %v4354_v39 }
 0xb3c   :  { %v14205_v4 = vmul.f32 0.35355338, %v4705_v31  ;;  %v4707_v46 = vpop.f32.mrb[185].mxu0 }
 0xb3d   :  { %v14207_v45 = vmul.f32 0.35355338, %v4707_v46 }
 0xb3e   :  { %v4893_v28 = vmax.f32 %v4891_v60, %v14205_v4  ;;  %v4364_v60 = vmul.f32 %v14210_v58, %v14210_v58 }
 0xb3f   :  { %18186 = vst [vmem:[#allocation85_spill] sm:$0xff] %v14207_v45  ;;  %v4930_v62 = vmax.f32 %v4928_v25, %v14207_v45  ;;  %v4711_v54 = vpop.f32.mrb[186].mxu0  ;;  %v4363_v25 = vmul.f32 0.25, %v4361_v3 }
 0xb40   :  { %v14215_v5 = vmul.f32 0.35355338, %v4711_v54  ;;  %v4713_v7 = vpop.f32.mrb[187].mxu0 }
 0xb41   :  { %v14219_v31 = vmul.f32 0.35355338, %v4713_v7  ;;  %v14232_v7 = vpop.trf.xlu1  ;;  %v4367_v34 = vsub.f32 %v4363_v25, %v4365_v35 }
 0xb42   :  { %v4894_v46 = vmax.f32 %v4892_v13, %v14215_v5  ;;  %18190 = vst [vmem:[#allocation25_spill] sm:$0xff] %v14232_v7  ;;  %v4366_v13 = vsub.f32 %v4362_v16, %v4364_v60 }
 0xb43   :  { %18188 = vst [vmem:[#allocation24_spill] sm:$0xff] %v14219_v31  ;;  %v4931_v17 = vmax.f32 %v4929_v6, %v14219_v31  ;;  %v4717_v37 = vpop.f32.mrb[188].mxu0  ;;  %v4371_v50 = vadd.f32 1e-05, %v4367_v34 }
 0xb44   :  { %v14227_v54 = vmul.f32 0.35355338, %v4717_v37  ;;  %v4719_v30 = vpop.f32.mrb[189].mxu0  ;;  %v4370_v14 = vadd.f32 1e-05, %v4366_v13 }
 0xb45   :  { %v14229_v53 = vmul.f32 0.35355338, %v4719_v30  ;;  %v14243_v16 = vpop.trf.xlu1 }
 0xb46   :  { %v4895_v21 = vmax.f32 %v4893_v28, %v14227_v54  ;;  %18192 = vst [vmem:[#allocation120_spill] sm:$0xff] %v14243_v16  ;;  %9538 = vrsqrt.f32 %v4370_v14 }
 0xb47   :  { %18189 = vst [vmem:[#allocation26_spill] sm:$0xff] %v14229_v53  ;;  %v4932_v39 = vmax.f32 %v4930_v62, %v14229_v53  ;;  %v4723_v38 = vpop.f32.mrb[190].mxu0  ;;  %9540 = vrsqrt.f32 %v4371_v50 }
 0xb48   :  { %v14235_v6 = vmul.f32 0.35355338, %v4723_v38  ;;  %v4725_v3 = vpop.f32.mrb[191].mxu0 }
 0xb49   :  { %v14237_v36 = vmul.f32 0.35355338, %v4725_v3  ;;  %v14254_v34 = vpop.trf.xlu1 }
 0xb4a   :  { %v4896_v37 = vmax.f32 %v4894_v46, %v14235_v6  ;;  %18195 = vst [vmem:[#allocation123_spill] sm:$0xff] %v14254_v34 }
 0xb4b   :  { %18191 = vst [vmem:[#allocation159_spill] sm:$0xff] %v14237_v36  ;;  %v4933_v30 = vmax.f32 %v4931_v17, %v14237_v36  ;;  %v4729_v18 = vpop.f32.mrb[192].mxu0 }
 0xb4c   :  { %v14241_v28 = vmul.f32 0.35355338, %v4729_v18  ;;  %v4731_v7 = vpop.f32.mrb[193].mxu0 }
 0xb4d   :  { %v14245_v62 = vmul.f32 0.35355338, %v4731_v7  ;;  %v14263_v43 = vpop.trf.xlu1 }
 0xb4e   :  { %v4897_v38 = vmax.f32 %v4895_v21, %v14241_v28  ;;  %18197 = vst [vmem:[#allocation161_spill] sm:$0xff] %v14263_v43 }
 0xb4f   :  { %18193 = vst [vmem:[#allocation61_spill] sm:$0xff] %v14245_v62  ;;  %v4934_v60 = vmax.f32 %v4932_v39, %v14245_v62  ;;  %v4735_v25 = vpop.f32.mrb[194].mxu0 }
 0xb50   :  { %v14249_v46 = vmul.f32 0.35355338, %v4735_v25  ;;  %v4737_v35 = vpop.f32.mrb[195].mxu0 }
 0xb51   :  { %v14251_v17 = vmul.f32 0.35355338, %v4737_v35  ;;  %v9539_v35 = vpop.eup %9538  ;;  %v14279_v12 = vpop.permute.xlu1 %4378 }
 0xb52   :  { %v4898_v18 = vmax.f32 %v4896_v37, %v14249_v46  ;;  %v9541_v34 = vpop.eup %9540  ;;  %18200 = vst [vmem:[#allocation164_spill] sm:$0xff] %v14279_v12 }
 0xb53   :  { %18194 = vst [vmem:[#allocation62_spill] sm:$0xff] %v14251_v17  ;;  %v4935_v13 = vmax.f32 %v4933_v30, %v14251_v17  ;;  %v4741_v7 = vpop.f32.mrb[196].mxu0  ;;  %v4368_v30 = vsub.f32 %v14138_v26, %v14210_v58 }
 0xb54   :  { %v14257_v3 = vmul.f32 0.35355338, %v4741_v7  ;;  %v4743_v21 = vpop.f32.mrb[197].mxu0  ;;  %v4369_v7 = vsub.f32 %v14143_v19, %v14213_v44 }
 0xb55   :  { %v14259_v14 = vmul.f32 0.35355338, %v4743_v21 }
 0xb56   :  { %v4899_v39 = vmax.f32 %v4897_v38, %v14257_v3  ;;  %v4374_v38 = vmul.f32 %v9539_v35, %v4368_v30  ;;  %v4375_v2 = vmul.f32 %v9541_v34, %v4369_v7 }
 0xb57   :  { %18196 = vst [vmem:[#allocation160_spill] sm:$0xff] %v14259_v14  ;;  %v4936_v50 = vmax.f32 %v4934_v60, %v14259_v14  ;;  %v4747_v25 = vpop.f32.mrb[198].mxu0 }
 0xb58   :  { %v4749_v16 = vpop.f32.mrb[199].mxu0  ;;  %v14272_v63 = vmul.f32 0.35355338, %v4747_v25  ;;  %v4381_v25 = vmul.f32 %v14279_v12, %v4374_v38  ;;  %v4382_v34 = vmul.f32 %v14279_v12, %v4375_v2 }
 0xb59   :  { %v14265_v37 = vmul.f32 0.35355338, %v4749_v16 }
 0xb5a   :  { %v4900_v19 = vmax.f32 %v4898_v18, %v14272_v63 }
 0xb5b   :  { %18198 = vst [vmem:[#allocation162_spill] sm:$0xff] %v14265_v37  ;;  %v4937_v21 = vmax.f32 %v4935_v13, %v14265_v37  ;;  %v4753_v15 = vpop.f32.mrb[200].mxu0 }
 0xb5c   :  { %v14274_v60 = vmul.f32 0.35355338, %v4753_v15  ;;  %v4755_v57 = vpop.f32.mrb[201].mxu0  ;;  %v14286_v15 = vpop.permute.xlu0 %4385 }
 0xb5d   :  { %v14276_v43 = vmul.f32 0.35355338, %v4755_v57  ;;  %18201 = vst [vmem:[#allocation82_spill] sm:$0xff] %v14286_v15  ;;  %v4389_v30 = vadd.f32 %v14286_v15, %v4382_v34 }
 0xb5e   :  { %v4901_v16 = vmax.f32 %v4899_v39, %v14274_v60  ;;  %v4388_v39 = vadd.f32 %v14286_v15, %v4381_v25 }
 0xb5f   :  { %18199 = vst [vmem:[#allocation163_spill] sm:$0xff] %v14276_v43  ;;  %v4938_v26 = vmax.f32 %v4936_v50, %v14276_v43  ;;  %v4759_v58 = vpop.f32.mrb[202].mxu0 }
 0xb60   :  { %v14283_v44 = vmul.f32 0.35355338, %v4759_v58  ;;  %v4761_v13 = vpop.f32.mrb[203].mxu0  ;;  %v4392_v18 = vcombine.low %v4388_v39, %v4389_v30 }
 0xb61   :  { %v14298_v12 = vmul.f32 0.35355338, %v4761_v13 }
 0xb62   :  { %v4902_v57 = vmax.f32 %v4900_v19, %v14283_v44  ;;  %4394 = vst [vmem:[#allocation16] sm:$0xff] %v4392_v18 }
 0xb63   :  { %v4765_v35 = vpop.f32.mrb[204].mxu0  ;;  %18202 = vst [vmem:[#allocation29_spill] sm:$0xff] %v14298_v12  ;;  %v4939_v39 = vmax.f32 %v4937_v21, %v14298_v12 }
 0xb64   :  { %v14292_v50 = vmul.f32 0.35355338, %v4765_v35  ;;  %v4767_v7 = vpop.f32.mrb[205].mxu0 }
 0xb66   :  { %v4903_v58 = vmax.f32 %v4901_v16, %v14292_v50  ;;  %v14306_v16 = vmul.f32 0.35355338, %v4767_v7 }
 0xb67   :  { %v4771_v43 = vpop.f32.mrb[206].mxu0 }
 0xb68   :  { %v14295_v38 = vmul.f32 0.35355338, %v4771_v43  ;;  %v4773_v37 = vpop.f32.mrb[207].mxu0  ;;  %18204 = vst [vmem:[#allocation45_spill] sm:$0xff] %v14306_v16 }
 0xb69   :  { %v14302_v34 = vmul.f32 0.35355338, %v4773_v37  ;;  %v4940_v37 = vmax.f32 %v4938_v26, %v14306_v16 }
 0xb6a   :  { %v4904_v2 = vmax.f32 %v4902_v57, %v14295_v38 }
 0xb6b   :  { %v4777_v19 = vpop.f32.mrb[208].mxu0  ;;  %18203 = vst [vmem:[#allocation27_spill] sm:$0xff] %v14302_v34  ;;  %v4941_v57 = vmax.f32 %v4939_v39, %v14302_v34 }
 0xb6c   :  { %v14300_v25 = vmul.f32 0.35355338, %v4777_v19  ;;  %v4779_v14 = vpop.f32.mrb[209].mxu0 }
 0xb6d   :  { %v14311_v13 = vmul.f32 0.35355338, %v4779_v14 }
 0xb6e   :  { %v4905_v35 = vmax.f32 %v4903_v58, %v14300_v25 }
 0xb6f   :  { %v4783_v30 = vpop.f32.mrb[210].mxu0  ;;  %18205 = vst [vmem:[#allocation46_spill] sm:$0xff] %v14311_v13 }
 0xb70   :  { %v14308_v43 = vmul.f32 0.35355338, %v4783_v30  ;;  %v4785_v18 = vpop.f32.mrb[211].mxu0  ;;  %v4942_v30 = vmax.f32 %v4940_v37, %v14311_v13 }
 0xb71   :  { %v14313_v15 = vmul.f32 0.35355338, %v4785_v18 }
 0xb72   :  { %v4906_v19 = vmax.f32 %v4904_v2, %v14308_v43 }
 0xb73   :  { %18206 = vst [vmem:[#allocation88_spill] sm:$0xff] %v14313_v15  ;;  %v4943_v58 = vmax.f32 %v4941_v57, %v14313_v15  ;;  %v4789_v17 = vpop.f32.mrb[212].mxu0 }
 0xb74   :  { %v14318_v21 = vmul.f32 0.35355338, %v4789_v17  ;;  %v4791_v7 = vpop.f32.mrb[213].mxu0 }
 0xb75   :  { %v14321_v12 = vmul.f32 0.35355338, %v4791_v7 }
 0xb76   :  { %v4907_v39 = vmax.f32 %v4905_v35, %v14318_v21 }
 0xb77   :  { %18207 = vst [vmem:[#allocation41_spill] sm:$0xff] %v14321_v12  ;;  %v4944_v14 = vmax.f32 %v4942_v30, %v14321_v12  ;;  %v4795_v18 = vpop.f32.mrb[214].mxu0 }
 0xb78   :  { %v14325_v34 = vmul.f32 0.35355338, %v4795_v18  ;;  %v4797_v2 = vpop.f32.mrb[215].mxu0 }
 0xb79   :  { %v14327_v62 = vmul.f32 0.35355338, %v4797_v2 }
 0xb7a   :  { %v4908_v26 = vmax.f32 %v4906_v19, %v14325_v34 }
 0xb7b   :  { %18208 = vst [vmem:[#allocation165_spill] sm:$0xff] %v14327_v62  ;;  %v4945_v17 = vmax.f32 %v4943_v58, %v14327_v62  ;;  %v4801_v57 = vpop.f32.mrb[216].mxu0 }
 0xb7c   :  { %v14331_v16 = vmul.f32 0.35355338, %v4801_v57  ;;  %v4803_v37 = vpop.f32.mrb[217].mxu0 }
 0xb7d   :  { %v14333_v7 = vmul.f32 0.35355338, %v4803_v37 }
 0xb7e   :  { %v4909_v35 = vmax.f32 %v4907_v39, %v14331_v16 }
 0xb7f   :  { %18209 = vst [vmem:[#allocation166_spill] sm:$0xff] %v14333_v7  ;;  %v4946_v30 = vmax.f32 %v4944_v14, %v14333_v7  ;;  %v4807_v13 = vpop.f32.mrb[218].mxu0 }
 0xb80   :  { %v14337_v18 = vmul.f32 0.35355338, %v4807_v13  ;;  %v4809_v12 = vpop.f32.mrb[219].mxu0 }
 0xb81   :  { %v14339_v2 = vmul.f32 0.35355338, %v4809_v12 }
 0xb82   :  { %v4910_v19 = vmax.f32 %v4908_v26, %v14337_v18 }
 0xb83   :  { %18210 = vst [vmem:[#allocation87_spill] sm:$0xff] %v14339_v2  ;;  %v4947_v58 = vmax.f32 %v4945_v17, %v14339_v2  ;;  %v4813_v62 = vpop.f32.mrb[220].mxu0 }
 0xb84   :  { %v14343_v57 = vmul.f32 0.35355338, %v4813_v62  ;;  %v4815_v15 = vpop.f32.mrb[221].mxu0 }
 0xb85   :  { %v14345_v37 = vmul.f32 0.35355338, %v4815_v15 }
 0xb86   :  { %v4911_v39 = vmax.f32 %v4909_v35, %v14343_v57 }
 0xb87   :  { %v4948_v14 = vmax.f32 %v4946_v30, %v14345_v37 }
 0xb88   :  { %v4912_v7 = vmax.f32 %v4910_v19, %v4911_v39 }
 0xb89   :  { %v4949_v13 = vmax.f32 %v4947_v58, %v4948_v14 }
 0xb8a   :  { %v4913_v36 = vrot.slane %v4912_v7, 4 }
 0xb8b   :  { %v4950_v53 = vrot.slane %v4949_v13, 4 }
 0xb8c   :  { %v4914_v12 = vmax.f32 %v4912_v7, %v4913_v36 }
 0xb8d   :  { %v4951_v31 = vmax.f32 %v4949_v13, %v4950_v53 }
 0xb8e   :  { %v4915_v45 = vrot.slane %v4914_v12, 2 }
 0xb8f   :  { %v4952_v26 = vrot.slane %v4951_v31, 2 }
 0xb90   :  { %v4916_v11 = vmax.f32 %v4914_v12, %v4915_v45 }
 0xb91   :  { %v4953_v17 = vmax.f32 %v4951_v31, %v4952_v26 }
 0xb92   :  { %v4917_v2 = vrot.slane %v4916_v11, 1 }
 0xb93   :  { %v4954_v62 = vrot.slane %v4953_v17, 1 }
 0xb94   :  { %v14349_v55 = vmax.f32 %v4916_v11, %v4917_v2 }
 0xb95   :  { %v14351_v15 = vmax.f32 %v4953_v17, %v4954_v62 }
 0xb96   :  { %v4956_v35 = vsub.f32 %v14090_v61, %v14349_v55  ;;  %v4958_v30 = vsub.f32 %v14104_v33, %v14349_v55  ;;  %v4960_v36 = vsub.f32 %v14092_v41, %v14349_v55  ;;  %v4962_v53 = vsub.f32 %v14106_v49, %v14349_v55 }
 0xb97   :  { %v4964_v45 = vsub.f32 %v14120_v0, %v14349_v55  ;;  %v4966_v11 = vsub.f32 %v14129_v42, %v14349_v55  ;;  %v4968_v31 = vsub.f32 %v14140_v32, %v14349_v55  ;;  %v4970_v61 = vsub.f32 %v14155_v56, %v14349_v55 }
 0xb98   :  { %v4972_v33 = vsub.f32 %v14166_v23, %v14349_v55  ;;  %v4974_v41 = vsub.f32 %v14175_v10, %v14349_v55  ;;  %v4976_v49 = vsub.f32 %v14183_v51, %v14349_v55  ;;  %v4978_v0 = vsub.f32 %v14189_v20, %v14349_v55 }
 0xb99   :  { %v4980_v42 = vsub.f32 %v14197_v24, %v14349_v55  ;;  %v4982_v32 = vsub.f32 %v14205_v4, %v14349_v55  ;;  %v4984_v56 = vsub.f32 %v14215_v5, %v14349_v55  ;;  %v4986_v23 = vsub.f32 %v14227_v54, %v14349_v55 }
 0xb9a   :  { %v4988_v10 = vsub.f32 %v14235_v6, %v14349_v55  ;;  %v4990_v51 = vsub.f32 %v14241_v28, %v14349_v55  ;;  %v4992_v20 = vsub.f32 %v14249_v46, %v14349_v55  ;;  %v4994_v24 = vsub.f32 %v14257_v3, %v14349_v55 }
 0xb9b   :  { %v4998_v4 = vsub.f32 %v14274_v60, %v14349_v55  ;;  %v5000_v5 = vsub.f32 %v14283_v44, %v14349_v55  ;;  %v5002_v54 = vsub.f32 %v14292_v50, %v14349_v55  ;;  %v5004_v6 = vsub.f32 %v14295_v38, %v14349_v55  ;;  %v18225_v50 = vld [vmem:[#allocation166_spill] sm:$0xff] }
 0xb9c   :  { %v5006_v28 = vsub.f32 %v14300_v25, %v14349_v55  ;;  %v5008_v46 = vsub.f32 %v14308_v43, %v14349_v55  ;;  %v5020_v39 = vmul.f32 1.442695, %v4956_v35  ;;  %v5024_v14 = vmul.f32 1.442695, %v4958_v30 }
 0xb9d   :  { %v5028_v13 = vmul.f32 1.442695, %v4960_v36  ;;  %v5032_v26 = vmul.f32 1.442695, %v4962_v53  ;;  %v5036_v62 = vmul.f32 1.442695, %v4964_v45  ;;  %v4996_v35 = vsub.f32 %v14272_v63, %v14349_v55 }
 0xb9e   :  { %9542 = vpow2.f32 %v5020_v39  ;;  %v5040_v2 = vmul.f32 1.442695, %v4966_v11  ;;  %v5044_v7 = vmul.f32 1.442695, %v4968_v31  ;;  %v5048_v19 = vmul.f32 1.442695, %v4970_v61 }
 0xb9f   :  { %9544 = vpow2.f32 %v5024_v14  ;;  %v5052_v30 = vmul.f32 1.442695, %v4972_v33  ;;  %v5056_v36 = vmul.f32 1.442695, %v4974_v41  ;;  %v5060_v12 = vmul.f32 1.442695, %v4976_v49 }
 0xba0   :  { %9546 = vpow2.f32 %v5028_v13  ;;  %v5064_v53 = vmul.f32 1.442695, %v4978_v0  ;;  %v5068_v58 = vmul.f32 1.442695, %v4980_v42  ;;  %v5072_v17 = vmul.f32 1.442695, %v4982_v32 }
 0xba1   :  { %9548 = vpow2.f32 %v5032_v26  ;;  %v5076_v39 = vmul.f32 1.442695, %v4984_v56  ;;  %v5080_v45 = vmul.f32 1.442695, %v4986_v23  ;;  %v5084_v11 = vmul.f32 1.442695, %v4988_v10 }
 0xba2   :  { %9550 = vpow2.f32 %v5036_v62  ;;  %v5088_v14 = vmul.f32 1.442695, %v4990_v51  ;;  %v5092_v31 = vmul.f32 1.442695, %v4992_v20  ;;  %v5096_v61 = vmul.f32 1.442695, %v4994_v24 }
 0xba3   :  { %9552 = vpow2.f32 %v5040_v2  ;;  %v18211_v20 = vld [vmem:[#allocation116_spill] sm:$0xff]  ;;  %v18217_v56 = vld [vmem:[#allocation61_spill] sm:$0xff]  ;;  %v18218_v32 = vld [vmem:[#allocation62_spill] sm:$0xff]  ;;  %v5108_v51 = vmul.f32 1.442695, %v5000_v5  ;;  %v18228_v25 = vsub.f32 %v14325_v34, %v14349_v55 }
 0xba4   :  { %9554 = vpow2.f32 %v5044_v7  ;;  %v18220_v49 = vld [vmem:[#allocation162_spill] sm:$0xff]  ;;  %v18221_v41 = vld [vmem:[#allocation163_spill] sm:$0xff] }
 0xba5   :  { %9556 = vpow2.f32 %v5048_v19  ;;  %v18212_v19 = vld [vmem:[#allocation68_spill] sm:$0xff] }
 0xba6   :  { %9558 = vpow2.f32 %v5052_v30  ;;  %v18214_v30 = vld [vmem:[#allocation24_spill] sm:$0xff] }
 0xba7   :  { %9560 = vpow2.f32 %v5056_v36  ;;  %v18219_v36 = vld [vmem:[#allocation160_spill] sm:$0xff] }
 0xba8   :  { %v14429_v0 = vpop.eup %9542  ;;  %9562 = vpow2.f32 %v5060_v12  ;;  %v18213_v12 = vld [vmem:[#allocation85_spill] sm:$0xff] }
 0xba9   :  { %v14437_v23 = vpop.eup %9544  ;;  %9564 = vpow2.f32 %v5064_v53  ;;  %v18215_v53 = vld [vmem:[#allocation26_spill] sm:$0xff] }
 0xbaa   :  { %v14445_v7 = vpop.eup %9546  ;;  %9566 = vpow2.f32 %v5068_v58  ;;  %v5148_v2 = vadd.f32 %v14437_v23, %v14429_v0  ;;  %v18216_v58 = vld [vmem:[#allocation159_spill] sm:$0xff] }
 0xbab   :  { %v14453_v62 = vpop.eup %9548  ;;  %9568 = vpow2.f32 %v5072_v17  ;;  %v5104_v17 = vmul.f32 1.442695, %v4998_v4  ;;  %v18223_v4 = vld [vmem:[#allocation41_spill] sm:$0xff] }
 0xbac   :  { %v14461_v10 = vpop.eup %9550  ;;  %9570 = vpow2.f32 %v5076_v39  ;;  %v5149_v13 = vadd.f32 %v14445_v7, %v5148_v2  ;;  %v5100_v2 = vmul.f32 1.442695, %v4996_v35  ;;  %v5112_v39 = vmul.f32 1.442695, %v5002_v54  ;;  %v18226_v54 = vld [vmem:[#allocation87_spill] sm:$0xff] }
 0xbad   :  { %v14468_v42 = vpop.eup %9552  ;;  %9572 = vpow2.f32 %v5080_v45 }
 0xbae   :  { %v14476_v33 = vpop.eup %9554  ;;  %9574 = vpow2.f32 %v5084_v11  ;;  %v5150_v26 = vadd.f32 %v14453_v62, %v5149_v13  ;;  %v18222_v11 = vld [vmem:[#allocation88_spill] sm:$0xff] }
 0xbaf   :  { %v14482_v45 = vpop.eup %9556  ;;  %9576 = vpow2.f32 %v5088_v14  ;;  %v18224_v14 = vld [vmem:[#allocation165_spill] sm:$0xff] }
 0xbb0   :  { %v14492_v24 = vpop.eup %9558  ;;  %9578 = vpow2.f32 %v5092_v31  ;;  %v5151_v60 = vadd.f32 %v14461_v10, %v5150_v26  ;;  %v5116_v26 = vmul.f32 1.442695, %v5004_v6  ;;  %v18227_v6 = vsub.f32 %v14318_v21, %v14349_v55 }
 0xbb1   :  { %v14499_v44 = vpop.eup %9560  ;;  %9580 = vpow2.f32 %v5096_v61  ;;  %v5120_v61 = vmul.f32 1.442695, %v5006_v28  ;;  %v5132_v28 = vmul.f32 1.442695, %v18228_v25  ;;  %v18230_v21 = vsub.f32 %v14337_v18, %v14349_v55 }
 0xbb2   :  { %v14507_v3 = vpop.eup %9562  ;;  %9582 = vpow2.f32 %v5100_v2  ;;  %v5152_v63 = vadd.f32 %v14468_v42, %v5151_v60  ;;  %v5124_v2 = vmul.f32 1.442695, %v5008_v46  ;;  %v18229_v46 = vsub.f32 %v14331_v16, %v14349_v55 }
 0xbb3   :  { %v14513_v13 = vpop.eup %9564  ;;  %9584 = vpow2.f32 %v5104_v17  ;;  %v5128_v17 = vmul.f32 1.442695, %v18227_v6 }
 0xbb4   :  { %v14518_v35 = vpop.eup %9566  ;;  %9586 = vpow2.f32 %v5108_v51  ;;  %v5153_v31 = vadd.f32 %v14476_v33, %v5152_v63  ;;  %v5136_v63 = vmul.f32 1.442695, %v18229_v46 }
 0xbb5   :  { %v14524_v38 = vpop.eup %9568  ;;  %9588 = vpow2.f32 %v5112_v39 }
 0xbb6   :  { %v14529_v60 = vpop.eup %9570  ;;  %9590 = vpow2.f32 %v5116_v26  ;;  %v5154_v51 = vadd.f32 %v14482_v45, %v5153_v31  ;;  %v5140_v26 = vmul.f32 1.442695, %v18230_v21  ;;  %v18231_v31 = vsub.f32 %v14343_v57, %v14349_v55 }
 0xbb7   :  { %v14535_v43 = vpop.eup %9572  ;;  %9592 = vpow2.f32 %v5120_v61  ;;  %v18234_v55 = vsub.f32 %v14098_v52, %v14351_v15 }
 0xbb8   :  { %v14540_v39 = vpop.eup %9574  ;;  %9594 = vpow2.f32 %v5124_v2  ;;  %v5155_v6 = vadd.f32 %v14492_v24, %v5154_v51  ;;  %v5144_v61 = vmul.f32 1.442695, %v18231_v31  ;;  %v18232_v2 = vsub.f32 %v14096_v48, %v14351_v15 }
 0xbb9   :  { %v14546_v34 = vpop.eup %9576  ;;  %9596 = vpow2.f32 %v5128_v17  ;;  %v18233_v51 = vsub.f32 %v14110_v22, %v14351_v15  ;;  %v5030_v57 = vmul.f32 1.442695, %v18234_v55  ;;  %v18235_v48 = vsub.f32 %v14112_v47, %v14351_v15 }
 0xbba   :  { %v14551_v25 = vpop.eup %9578  ;;  %9598 = vpow2.f32 %v5132_v28  ;;  %v5156_v16 = vadd.f32 %v14499_v44, %v5155_v6  ;;  %v5022_v46 = vmul.f32 1.442695, %v18232_v2  ;;  %v18237_v22 = vsub.f32 %v14134_v1, %v14351_v15 }
 0xbbb   :  { %v14557_v18 = vpop.eup %9580  ;;  %9600 = vpow2.f32 %v5136_v63  ;;  %v5026_v17 = vmul.f32 1.442695, %v18233_v51  ;;  %v5034_v6 = vmul.f32 1.442695, %v18235_v48  ;;  %v18236_v63 = vsub.f32 %v14122_v59, %v14351_v15 }
 0xbbc   :  { %v14565_v21 = vpop.eup %9582  ;;  %9602 = vpow2.f32 %v5140_v26  ;;  %v5157_v28 = vadd.f32 %v14507_v3, %v5156_v16  ;;  %v5042_v52 = vmul.f32 1.442695, %v18237_v22  ;;  %v18238_v26 = vsub.f32 %v14145_v29, %v14351_v15 }
 0xbbd   :  { %v5038_v31 = vmul.f32 1.442695, %v18236_v63  ;;  %v14574_v2 = vpop.eup %9584  ;;  %9604 = vpow2.f32 %v5144_v61  ;;  %v18239_v16 = vsub.f32 %v14161_v27, %v14351_v15  ;;  %v18240_v61 = vsub.f32 %v14171_v8, %v14351_v15 }
 0xbbe   :  { %v5046_v51 = vmul.f32 1.442695, %v18238_v26  ;;  %v14585_v55 = vpop.eup %9586  ;;  %v5158_v59 = vadd.f32 %v14513_v13, %v5157_v28  ;;  %9606 = vpow2.f32 %v5022_v46  ;;  %v18241_v1 = vsub.f32 %v14177_v40, %v14351_v15 }
 0xbbf   :  { %v5050_v47 = vmul.f32 1.442695, %v18239_v16  ;;  %v5054_v48 = vmul.f32 1.442695, %v18240_v61  ;;  %v14594_v22 = vpop.eup %9588  ;;  %9608 = vpow2.f32 %v5026_v17 }
 0xbc0   :  { %v5058_v63 = vmul.f32 1.442695, %v18241_v1  ;;  %v14602_v28 = vpop.eup %9590  ;;  %v5159_v8 = vadd.f32 %v14518_v35, %v5158_v59  ;;  %9610 = vpow2.f32 %v5030_v57  ;;  %v18243_v1 = vsub.f32 %v18211_v20, %v14351_v15 }
 0xbc1   :  { %v14609_v26 = vpop.eup %9592  ;;  %9612 = vpow2.f32 %v5034_v6  ;;  %v18242_v6 = vsub.f32 %v14185_v9, %v14351_v15 }
 0xbc2   :  { %v14617_v59 = vpop.eup %9594  ;;  %v5160_v57 = vadd.f32 %v14524_v38, %v5159_v8  ;;  %9614 = vpow2.f32 %v5038_v31  ;;  %v5066_v61 = vmul.f32 1.442695, %v18243_v1 }
 0xbc3   :  { %v14624_v40 = vpop.eup %9596  ;;  %9616 = vpow2.f32 %v5042_v52  ;;  %v5062_v17 = vmul.f32 1.442695, %v18242_v6 }
 0xbc4   :  { %v14632_v8 = vpop.eup %9598  ;;  %v5161_v31 = vadd.f32 %v14529_v60, %v5160_v57  ;;  %9618 = vpow2.f32 %v5046_v51  ;;  %v18244_v51 = vsub.f32 %v18212_v19, %v14351_v15  ;;  %v18249_v19 = vsub.f32 %v18217_v56, %v14351_v15 }
 0xbc5   :  { %v14640_v5 = vpop.eup %9600  ;;  %9620 = vpow2.f32 %v5050_v47  ;;  %v18245_v47 = vsub.f32 %v18213_v12, %v14351_v15  ;;  %v18248_v12 = vsub.f32 %v18216_v58, %v14351_v15  ;;  %v18252_v56 = vsub.f32 %v18220_v49, %v14351_v15 }
 0xbc6   :  { %v14645_v16 = vpop.eup %9602  ;;  %v5162_v46 = vadd.f32 %v14535_v43, %v5161_v31  ;;  %9622 = vpow2.f32 %v5054_v48  ;;  %v5070_v9 = vmul.f32 1.442695, %v18244_v51  ;;  %v18246_v48 = vsub.f32 %v18214_v30, %v14351_v15 }
 0xbc7   :  { %v14653_v6 = vpop.eup %9604  ;;  %9624 = vpow2.f32 %v5058_v63  ;;  %v5074_v20 = vmul.f32 1.442695, %v18245_v47  ;;  %v18247_v63 = vsub.f32 %v18215_v53, %v14351_v15  ;;  %v5086_v47 = vmul.f32 1.442695, %v18248_v12 }
 0xbc8   :  { %v9607_v1 = vpop.eup %9606  ;;  %v5163_v52 = vadd.f32 %v14540_v39, %v5162_v46  ;;  %9626 = vpow2.f32 %v5062_v17  ;;  %v5078_v31 = vmul.f32 1.442695, %v18246_v48  ;;  %v18250_v53 = vsub.f32 %v18218_v32, %v14351_v15 }
 0xbc9   :  { %v9609_v51 = vpop.eup %9608  ;;  %9628 = vpow2.f32 %v5066_v61  ;;  %v5082_v57 = vmul.f32 1.442695, %v18247_v63  ;;  %v5090_v61 = vmul.f32 1.442695, %v18249_v19  ;;  %v5102_v19 = vmul.f32 1.442695, %v18252_v56 }
 0xbca   :  { %v9611_v27 = vpop.eup %9610  ;;  %v5164_v46 = vadd.f32 %v14546_v34, %v5163_v52  ;;  %9630 = vpow2.f32 %v5070_v9  ;;  %v5185_v17 = vadd.f32 %v9609_v51, %v9607_v1  ;;  %v8730_v30 = vpack.c.bf16 %v9609_v51, %v9607_v1 }
 0xbcb   :  { %v9613_v48 = vpop.eup %9612  ;;  %9632 = vpow2.f32 %v5074_v20  ;;  %v5094_v63 = vmul.f32 1.442695, %v18250_v53  ;;  %v18251_v20 = vsub.f32 %v18219_v36, %v14351_v15  ;;  %v18253_v32 = vpack.c.bf16 %v14437_v23, %v14429_v0 }
 0xbcc   :  { %v9615_v29 = vpop.eup %9614  ;;  %v5165_v58 = vadd.f32 %v14551_v25, %v5164_v46  ;;  %9634 = vpow2.f32 %v5078_v31  ;;  %v5186_v12 = vadd.f32 %v9611_v27, %v5185_v17  ;;  %8731 = vmatprep.subr.bf16.mxu1 %v8730_v30  ;;  %v8734_v52 = vpack.c.bf16 %v9613_v48, %v9611_v27 }
 0xbcd   :  { %v9617_v9 = vpop.eup %9616  ;;  %9636 = vpow2.f32 %v5082_v57  ;;  %v5098_v1 = vmul.f32 1.442695, %v18251_v20  ;;  %8733 = vmatpush1.bf16.msra.mxu1 %v18253_v32  ;;  %v18254_v36 = vsub.f32 %v18221_v41, %v14351_v15 }
 0xbce   :  { %v9619_v51 = vpop.eup %9618  ;;  %v5166_v31 = vadd.f32 %v14557_v18, %v5165_v58  ;;  %9638 = vpow2.f32 %v5086_v47  ;;  %v5187_v46 = vadd.f32 %v9613_v48, %v5186_v12  ;;  %8735 = vmatprep.subr.bf16.mxu1 %v8734_v52  ;;  %v8738_v27 = vpack.c.bf16 %v9617_v9, %v9615_v29 }
 0xbcf   :  { %v9621_v57 = vpop.eup %9620  ;;  %9640 = vpow2.f32 %v5090_v61  ;;  %v5106_v17 = vmul.f32 1.442695, %v18254_v36  ;;  %v18255_v47 = vpack.c.bf16 %v14453_v62, %v14445_v7  ;;  %v18257_v62 = vsub.f32 %v18223_v4, %v14351_v15 }
 0xbd0   :  { %v9623_v30 = vpop.eup %9622  ;;  %v5167_v49 = vadd.f32 %v14565_v21, %v5166_v31  ;;  %9642 = vpow2.f32 %v5094_v63  ;;  %v5188_v53 = vadd.f32 %v9615_v29, %v5187_v46  ;;  %v8742_v0 = vpack.c.bf16 %v9621_v57, %v9619_v51 }
 0xbd1   :  { %v9625_v23 = vpop.eup %9624  ;;  %9644 = vpow2.f32 %v5098_v1  ;;  %8737 = vmatpush1.bf16.msra.mxu1 %v18255_v47  ;;  %v18256_v29 = vsub.f32 %v18222_v11, %v14351_v15  ;;  %v5130_v32 = vmul.f32 1.442695, %v18257_v62  ;;  %v18259_v46 = vsub.f32 %v18224_v14, %v14351_v15 }
 0xbd2   :  { %v9627_v48 = vpop.eup %9626  ;;  %v5168_v58 = vadd.f32 %v14574_v2, %v5167_v49  ;;  %9646 = vpow2.f32 %v5102_v19  ;;  %v5189_v61 = vadd.f32 %v9617_v9, %v5188_v53  ;;  %8739 = vmatprep.subr.bf16.mxu1 %v8738_v27  ;;  %v8746_v41 = vpack.c.bf16 %v9625_v23, %v9623_v30 }
 0xbd3   :  { %v9629_v12 = vpop.eup %9628  ;;  %9648 = vpow2.f32 %v5106_v17  ;;  %v5126_v20 = vmul.f32 1.442695, %v18256_v29  ;;  %v18258_v9 = vpack.c.bf16 %v14468_v42, %v14461_v10  ;;  %v5134_v11 = vmul.f32 1.442695, %v18259_v46  ;;  %v18266_v46 = vld [vmem:[#allocation45_spill] sm:$0xff] }
 0xbd4   :  { %v9631_v52 = vpop.eup %9630  ;;  %v5169_v63 = vadd.f32 %v14585_v55, %v5168_v58  ;;  %v5190_v1 = vadd.f32 %v9619_v51, %v5189_v61  ;;  %v8750_v56 = vpack.c.bf16 %v9629_v12, %v9627_v48  ;;  %v18260_v4 = vsub.f32 %v18225_v50, %v14351_v15 }
 0xbd5   :  { %v9633_v7 = vpop.eup %9632  ;;  %8741 = vmatpush1.bf16.msra.mxu1 %v18258_v9  ;;  %v18261_v42 = vsub.f32 %v18226_v54, %v14351_v15  ;;  %9650 = vpow2.f32 %v5126_v20  ;;  %v18263_v50 = vpack.c.bf16 %v14482_v45, %v14476_v33  ;;  %v18264_v33 = vpack.c.bf16 %v14499_v44, %v14492_v24 }
 0xbd6   :  { %v14706_v19 = vpop.eup %9634  ;;  %v5170_v31 = vadd.f32 %v14594_v22, %v5169_v63  ;;  %v5191_v27 = vadd.f32 %v9621_v57, %v5190_v1  ;;  %8743 = vmatprep.subr.bf16.mxu1 %v8742_v0  ;;  %v8754_v51 = vpack.c.bf16 %v9633_v7, %v9631_v52  ;;  %v5138_v17 = vmul.f32 1.442695, %v18260_v4  ;;  %v18267_v4 = vld [vmem:[#allocation27_spill] sm:$0xff] }
 0xbd7   :  { %v9637_v36 = vpop.eup %9636  ;;  %v5142_v10 = vmul.f32 1.442695, %v18261_v42  ;;  %9652 = vpow2.f32 %v5130_v32  ;;  %v18262_v0 = vsub.f32 %v14345_v37, %v14351_v15  ;;  %v18268_v24 = vpack.c.bf16 %v14513_v13, %v14507_v3 }
 0xbd8   :  { %v14718_v49 = vpop.eup %9638  ;;  %v5171_v53 = vadd.f32 %v14602_v28, %v5170_v31  ;;  %v5192_v47 = vadd.f32 %v9623_v30, %v5191_v27  ;;  %v8758_v14 = vpack.c.bf16 %v9637_v36, %v14706_v19  ;;  %9654 = vpow2.f32 %v5134_v11 }
 0xbd9   :  { %v9641_v57 = vpop.eup %9640  ;;  %v5146_v58 = vmul.f32 1.442695, %v18262_v0  ;;  %8745 = vmatpush1.bf16.msra.mxu1 %v18263_v50  ;;  %9656 = vpow2.f32 %v5138_v17  ;;  %v5003_v11 = vsub.f32 %v18266_v46, %v14351_v15  ;;  %v5005_v17 = vsub.f32 %v18267_v4, %v14351_v15 }
 0xbda   :  { %v9643_v54 = vpop.eup %9642  ;;  %v5172_v61 = vadd.f32 %v14609_v26, %v5171_v53  ;;  %v5193_v63 = vadd.f32 %v9625_v23, %v5192_v47  ;;  %8747 = vmatprep.subr.bf16.mxu1 %v8746_v41  ;;  %v8762_v30 = vpack.c.bf16 %v9641_v57, %v14718_v49  ;;  %9658 = vpow2.f32 %v5142_v10  ;;  %v18265_v23 = vld [vmem:[#allocation29_spill] sm:$0xff]  ;;  %v18269_v53 = vld [vmem:[#allocation46_spill] sm:$0xff] }
 0xbdb   :  { %v9645_v29 = vpop.eup %9644  ;;  %9660 = vpow2.f32 %v5146_v58  ;;  %v5001_v41 = vsub.f32 %v18265_v23, %v14351_v15  ;;  %v5007_v47 = vsub.f32 %v18269_v53, %v14351_v15  ;;  %v5114_v0 = vmul.f32 1.442695, %v5003_v11  ;;  %v18293_v53 = vld [vmem:[#allocation109_spill] sm:$0xff] }
 0xbdc   :  { %v9647_v20 = vpop.eup %9646  ;;  %v5173_v1 = vadd.f32 %v14617_v59, %v5172_v61  ;;  %v5194_v37 = vadd.f32 %v9627_v48, %v5193_v63  ;;  %v8766_v62 = vpack.c.bf16 %v9645_v29, %v9643_v54  ;;  %v5118_v3 = vmul.f32 1.442695, %v5005_v17  ;;  %v18282_v17 = vld [vmem:[#allocation40_spill] sm:$0xff] }
 0xbdd   :  { %v9649_v32 = vpop.eup %9648  ;;  %8749 = vmatpush1.bf16.msra.mxu1 %v18264_v33  ;;  %v5110_v10 = vmul.f32 1.442695, %v5001_v41  ;;  %v18270_v13 = vpack.c.bf16 %v14524_v38, %v14518_v35  ;;  %v5122_v33 = vmul.f32 1.442695, %v5007_v47  ;;  %v18271_v23 = vpack.c.bf16 %v14535_v43, %v14529_v60  ;;  %v18294_v47 = vld [vmem:[#allocation127_spill] sm:$0xff] }
 0xbde   :  { %v5174_v45 = vadd.f32 %v14624_v40, %v5173_v1  ;;  %v5195_v9 = vadd.f32 %v9629_v12, %v5194_v37  ;;  %8751 = vmatprep.subr.bf16.mxu1 %v8750_v56  ;;  %v8770_v31 = vpack.c.bf16 %v9649_v32, %v9647_v20  ;;  %v18281_v4 = vpack.c.bf16 %v14653_v6, %v14645_v16 }
 0xbdf   :  { %v9651_v44 = vpop.eup %9650  ;;  %9662 = vpow2.f32 %v5110_v10  ;;  %v18290_v10 = vld [vmem:[#allocation93_spill] sm:$0xff] }
 0xbe0   :  { %v5175_v48 = vadd.f32 %v14632_v8, %v5174_v45  ;;  %v5196_v27 = vadd.f32 %v9631_v52, %v5195_v9  ;;  %9664 = vpow2.f32 %v5114_v0  ;;  %v18295_v0 = vld [vmem:[#allocation136_spill] sm:$0xff] }
 0xbe1   :  { %8753 = vmatpush1.bf16.msra.mxu1 %v18268_v24  ;;  %v9653_v56 = vpop.eup %9652  ;;  %9666 = vpow2.f32 %v5118_v3  ;;  %v18284_v24 = vld [vmem:[#allocation28_spill] sm:$0xff] }
 0xbe2   :  { %v5176_v42 = vadd.f32 %v14640_v5, %v5175_v48  ;;  %v5197_v12 = vadd.f32 %v9633_v7, %v5196_v27  ;;  %8755 = vmatprep.subr.bf16.mxu1 %v8754_v51  ;;  %v9655_v58 = vpop.eup %9654  ;;  %v8782_v61 = vpack.c.bf16 %v9653_v56, %v9651_v44  ;;  %9668 = vpow2.f32 %v5122_v33  ;;  %v18279_v27 = vld [vmem:[#allocation44_spill] sm:$0xff] }
 0xbe3   :  { %v9657_v63 = vpop.eup %9656  ;;  %v18301_v3 = vld [vmem:[#allocation76_spill] sm:$0xff] }
 0xbe4   :  { %v5177_v52 = vadd.f32 %v14645_v16, %v5176_v42  ;;  %v5198_v50 = vadd.f32 %v14706_v19, %v5197_v12  ;;  %v9659_v1 = vpop.eup %9658  ;;  %v8786_v15 = vpack.c.bf16 %v9657_v63, %v9655_v58  ;;  %v18287_v42 = vld [vmem:[#allocation153_spill] sm:$0xff]  ;;  %v18288_v16 = vld [vmem:[#allocation155_spill] sm:$0xff]  ;;  %v18307_v33 = vld [vmem:[#allocation84_spill] sm:$0xff] }
 0xbe5   :  { %8757 = vmatpush1.bf16.msra.mxu1 %v18270_v13  ;;  %v9661_v37 = vpop.eup %9660  ;;  %v18291_v12 = vld [vmem:[#allocation97_spill] sm:$0xff]  ;;  %v18302_v13 = vld [vmem:[#allocation119_spill] sm:$0xff] }
 0xbe6   :  { %v14754_v7 = vadd.f32 %v14653_v6, %v5177_v52  ;;  %v5199_v51 = vadd.f32 %v9637_v36, %v5198_v50  ;;  %8759 = vmatprep.subr.bf16.mxu1 %v8758_v14  ;;  %v8790_v45 = vpack.c.bf16 %v9661_v37, %v9659_v1  ;;  %v18272_v36 = vpack.c.bf16 %v14546_v34, %v14540_v39  ;;  %v18289_v6 = vld [vmem:[#allocation91_spill] sm:$0xff]  ;;  %v18297_v52 = vld [vmem:[#allocation158_spill] sm:$0xff] }
 0xbe7   :  { %v18298_v50 = vld [vmem:[#allocation70_spill] sm:$0xff] }
 0xbe8   :  { %v5200_v19 = vadd.f32 %v14718_v49, %v5199_v51  ;;  %v18273_v49 = vpack.c.bf16 %v14557_v18, %v14551_v25  ;;  %v18304_v51 = vld [vmem:[#allocation73_spill] sm:$0xff] }
 0xbe9   :  { %8761 = vmatpush1.bf16.msra.mxu1 %v18271_v23  ;;  %v9663_v41 = vpop.eup %9662  ;;  %v18310_v23 = vld [vmem:[#allocation31_spill] sm:$0xff] }
 0xbea   :  { %v5201_v35 = vadd.f32 %v9641_v57, %v5200_v19  ;;  %8763 = vmatprep.subr.bf16.mxu1 %v8762_v30  ;;  %v9665_v46 = vpop.eup %9664  ;;  %v18308_v19 = vld [vmem:[#allocation83_spill] sm:$0xff] }
 0xbeb   :  { %v9667_v43 = vpop.eup %9666  ;;  %v8774_v30 = vpack.c.bf16 %v9665_v46, %v9663_v41 }
 0xbec   :  { %v5202_v38 = vadd.f32 %v9643_v54, %v5201_v35  ;;  %v9669_v11 = vpop.eup %9668  ;;  %v18274_v54 = vpack.c.bf16 %v14574_v2, %v14565_v21  ;;  %v18277_v21 = vpack.c.bf16 %v14624_v40, %v14617_v59  ;;  %v18283_v40 = vld [vmem:[#allocation42_spill] sm:$0xff]  ;;  %v18311_v35 = vld [vmem:[#allocation172_spill] sm:$0xff] }
 0xbed   :  { %8765 = vmatpush1.bf16.msra.mxu1 %v18272_v36  ;;  %v500_v59 = vadd.f32 %v18283_v40, %v18282_v17  ;;  %v18313_v36 = vld [vmem:[#allocation55_spill] sm:$0xff] }
 0xbee   :  { %v5203_v14 = vadd.f32 %v9645_v29, %v5202_v38  ;;  %8767 = vmatprep.subr.bf16.mxu1 %v8766_v62  ;;  %v8778_v29 = vpack.c.bf16 %v9669_v11, %v9667_v43  ;;  %v18276_v62 = vpack.c.bf16 %v14609_v26, %v14602_v28  ;;  %v18280_v28 = vld [vmem:[#allocation30_spill] sm:$0xff]  ;;  %v18312_v38 = vld [vmem:[#allocation79_spill] sm:$0xff] }
 0xbef   :  { %v460_v26 = vadd.f32 %v18280_v28, %v18279_v27 }
 0xbf0   :  { %v5204_v9 = vadd.f32 %v9647_v20, %v5203_v14  ;;  %v18275_v20 = vpack.c.bf16 %v14594_v22, %v14585_v55  ;;  %v18278_v55 = vpack.c.bf16 %v14640_v5, %v14632_v8  ;;  %v18285_v5 = vmov 0.0   ;;  %v18286_v8 = vld [vmem:[#allocation64_spill] sm:$0xff]  ;;  %v18314_v14 = vld [vmem:[#allocation110_spill] sm:$0xff] }
 0xbf1   :  { %8769 = vmatpush1.bf16.msra.mxu1 %v18273_v49  ;;  %v18318_v49 = vld [vmem:[#allocation59_spill] sm:$0xff] }
 0xbf2   :  { %v5205_v60 = vadd.f32 %v9649_v32, %v5204_v9  ;;  %8771 = vmatprep.subr.bf16.mxu1 %v8770_v31  ;;  %v18316_v9 = vld [vmem:[#allocation121_spill] sm:$0xff] }
 0xbf4   :  { %v5206_v57 = vadd.f32 %v9663_v41, %v5205_v60  ;;  %v18315_v41 = vld [vmem:[#allocation114_spill] sm:$0xff] }
 0xbf5   :  { %8773 = vmatpush1.bf16.msra.mxu1 %v18274_v54 }
 0xbf6   :  { %v5207_v39 = vadd.f32 %v9665_v46, %v5206_v57  ;;  %8775 = vmatprep.subr.bf16.mxu1 %v8774_v30  ;;  %v18317_v46 = vld [vmem:[#allocation103_spill] sm:$0xff]  ;;  %v5179_v57 = vrot.slane %v14754_v7, 4 }
 0xbf7   :  { %v514_v60 = vadd.f32 %v18318_v49, %v18317_v46 }
 0xbf8   :  { %v5208_v34 = vadd.f32 %v9667_v43, %v5207_v39  ;;  %v18319_v43 = vld [vmem:[#allocation128_spill] sm:$0xff] }
 0xbf9   :  { %8777 = vmatpush1.bf16.msra.mxu1 %v18275_v20 }
 0xbfa   :  { %v5209_v25 = vadd.f32 %v9669_v11, %v5208_v34  ;;  %8779 = vmatprep.subr.bf16.mxu1 %v8778_v29  ;;  %v5180_v11 = vadd.f32 %v5179_v57, %v14754_v7 }
 0xbfc   :  { %v5210_v18 = vadd.f32 %v9651_v44, %v5209_v25  ;;  %v458_v44 = vadd.f32 %v18284_v24, %v18279_v27  ;;  %v5181_v39 = vrot.slane %v5180_v11, 2 }
 0xbfd   :  { %8781 = vmatpush1.bf16.msra.mxu1 %v18276_v62 }
 0xbfe   :  { %v5211_v32 = vadd.f32 %v9653_v56, %v5210_v18  ;;  %8783 = vmatprep.subr.bf16.mxu1 %v8782_v61  ;;  %v18292_v56 = vld [vmem:[#allocation101_spill] sm:$0xff]  ;;  %v18299_v61 = vld [vmem:[#allocation72_spill] sm:$0xff]  ;;  %v5182_v29 = vadd.f32 %v5181_v39, %v5180_v11 }
 0xc00   :  { %v5212_v31 = vadd.f32 %v9655_v58, %v5211_v32  ;;  %v18296_v58 = vld [vmem:[#allocation39_spill] sm:$0xff]  ;;  %v5183_v25 = vrot.slane %v5182_v29, 1 }
 0xc01   :  { %8785 = vmatpush1.bf16.msra.mxu1 %v18277_v21 }
 0xc02   :  { %v5213_v2 = vadd.f32 %v9657_v63, %v5212_v31  ;;  %8787 = vmatprep.subr.bf16.mxu1 %v8786_v15  ;;  %v18300_v63 = vld [vmem:[#allocation74_spill] sm:$0xff]  ;;  %v18305_v15 = vld [vmem:[#allocation75_spill] sm:$0xff]  ;;  %v5184_v62 = vadd.f32 %v5183_v25, %v5182_v29 }
 0xc04   :  { %v5214_v48 = vadd.f32 %v9659_v1, %v5213_v2  ;;  %v18303_v1 = vld [vmem:[#allocation71_spill] sm:$0xff]  ;;  %9670 = vrcp.f32 %v5184_v62 }
 0xc05   :  { %8789 = vmatpush1.bf16.msra.mxu1 %v18278_v55 }
 0xc06   :  { %v14781_v22 = vadd.f32 %v9661_v37, %v5214_v48  ;;  %8791 = vmatprep.subr.bf16.mxu1 %v8790_v45  ;;  %v18306_v37 = vld [vmem:[#allocation77_spill] sm:$0xff]  ;;  %v18309_v45 = vld [vmem:[#allocation58_spill] sm:$0xff] }
 0xc08   :  { %v5216_v30 = vrot.slane %v14781_v22, 4 }
 0xc09   :  { %8793 = vmatpush1.bf16.msra.mxu1 %v18281_v4 }
 0xc0a   :  { %5465 = vmatprep.subr.mxu1 %v460_v26  ;;  %v5217_v54 = vadd.f32 %v5216_v30, %v14781_v22 }
 0xc0c   :  { %5287 = vmatmul.mubr.f32.vlgmr.msra.gmra.mrb[156].mxu1 %v500_v59  ;;  %v5218_v34 = vrot.slane %v5217_v54, 2 }
 0xc0d   :  { %5466 = vmatpush1.msra.mxu1 %v458_v44  ;;  %5529 = vmatprep.mubr.f32.mxu1 %v18285_v5 }
 0xc0e   :  { %v5219_v20 = vadd.f32 %v5218_v34, %v5217_v54  ;;  %v9671_v31 = vpop.eup %9670 }
 0xc10   :  { %8369 = vmatmul.mubr.msk.f32.vlgmr.msra.gmra.mrb[158].mxu1 %vm653_vm2, %v18286_v8  ;;  %v5220_v18 = vrot.slane %v5219_v20, 1 }
 0xc11   :  { %5535 = vmatprep.mubr.f32.mxu1 %v18285_v5 }
 0xc12   :  { %v5221_v32 = vadd.f32 %v5220_v18, %v5219_v20 }
 0xc14   :  { %8370 = vmatmul.mubr.msk.f32.gmra.mrb[160].mxu1 %vm653_vm2, %v18287_v42  ;;  %9672 = vrcp.f32 %v5221_v32 }
 0xc15   :  { %5541 = vmatprep.mubr.f32.mxu1 %v18285_v5 }
 0xc18   :  { %8371 = vmatmul.mubr.msk.f32.gmra.mrb[162].mxu1 %vm653_vm2, %v18288_v16 }
 0xc19   :  { %5547 = vmatprep.mubr.f32.mxu1 %v18285_v5 }
 0xc1c   :  { %8372 = vmatmul.mubr.msk.f32.gmra.mrb[164].mxu1 %vm653_vm2, %v18289_v6 }
 0xc1d   :  { %5553 = vmatprep.mubr.f32.mxu1 %v18285_v5 }
 0xc1e   :  { %v9673_v2 = vpop.eup %9672 }
 0xc20   :  { %8373 = vmatmul.mubr.msk.f32.gmra.mrb[166].mxu1 %vm653_vm2, %v18290_v10 }
 0xc21   :  { %5559 = vmatprep.mubr.f32.mxu1 %v18285_v5 }
 0xc24   :  { %8374 = vmatmul.mubr.msk.f32.gmra.mrb[168].mxu1 %vm653_vm2, %v18291_v12 }
 0xc25   :  { %5565 = vmatprep.mubr.f32.mxu1 %v18285_v5 }
 0xc28   :  { %8375 = vmatmul.mubr.msk.f32.gmra.mrb[170].mxu1 %vm653_vm2, %v18292_v56 }
 0xc29   :  { %5571 = vmatprep.mubr.f32.mxu1 %v18285_v5 }
 0xc2c   :  { %8376 = vmatmul.mubr.msk.f32.gmra.mrb[172].mxu1 %vm653_vm2, %v18293_v53 }
 0xc2d   :  { %5577 = vmatprep.mubr.f32.mxu1 %v18285_v5 }
 0xc30   :  { %8377 = vmatmul.mubr.msk.f32.gmra.mrb[174].mxu1 %vm653_vm2, %v18294_v47 }
 0xc31   :  { %5583 = vmatprep.mubr.f32.mxu1 %v18285_v5 }
 0xc34   :  { %8378 = vmatmul.mubr.msk.f32.gmra.mrb[176].mxu1 %vm653_vm2, %v18295_v0 }
 0xc35   :  { %5589 = vmatprep.mubr.f32.mxu1 %v18285_v5 }
 0xc38   :  { %8379 = vmatmul.mubr.msk.f32.gmra.mrb[178].mxu1 %vm653_vm2, %v18296_v58 }
 0xc39   :  { %5595 = vmatprep.mubr.f32.mxu1 %v18285_v5 }
 0xc3c   :  { %8380 = vmatmul.mubr.msk.f32.gmra.mrb[180].mxu1 %vm653_vm2, %v18297_v52 }
 0xc3d   :  { %5601 = vmatprep.mubr.f32.mxu1 %v18285_v5 }
 0xc40   :  { %8381 = vmatmul.mubr.msk.f32.gmra.mrb[182].mxu1 %vm653_vm2, %v18298_v50 }
 0xc41   :  { %5607 = vmatprep.mubr.f32.mxu1 %v18285_v5 }
 0xc44   :  { %8382 = vmatmul.mubr.msk.f32.gmra.mrb[184].mxu1 %vm653_vm2, %v18299_v61 }
 0xc45   :  { %5613 = vmatprep.mubr.f32.mxu1 %v18285_v5 }
 0xc48   :  { %8383 = vmatmul.mubr.msk.f32.gmra.mrb[186].mxu1 %vm653_vm2, %v18300_v63 }
 0xc49   :  { %5619 = vmatprep.mubr.f32.mxu1 %v18285_v5 }
 0xc4c   :  { %8384 = vmatmul.mubr.msk.f32.gmra.mrb[188].mxu1 %vm653_vm2, %v18301_v3 }
 0xc4d   :  { %5625 = vmatprep.mubr.f32.mxu1 %v18285_v5 }
 0xc50   :  { %8385 = vmatmul.mubr.msk.f32.gmra.mrb[190].mxu1 %vm653_vm2, %v18302_v13 }
 0xc51   :  { %5631 = vmatprep.mubr.f32.mxu1 %v18285_v5 }
 0xc54   :  { %8386 = vmatmul.mubr.msk.f32.gmra.mrb[192].mxu1 %vm653_vm2, %v18303_v1 }
 0xc55   :  { %5637 = vmatprep.mubr.f32.mxu1 %v18285_v5 }
 0xc58   :  { %8387 = vmatmul.mubr.msk.f32.gmra.mrb[194].mxu1 %vm653_vm2, %v18304_v51 }
 0xc59   :  { %5643 = vmatprep.mubr.f32.mxu1 %v18285_v5 }
 0xc5c   :  { %8388 = vmatmul.mubr.msk.f32.gmra.mrb[196].mxu1 %vm653_vm2, %v18305_v15 }
 0xc5d   :  { %5649 = vmatprep.mubr.f32.mxu1 %v18285_v5 }
 0xc60   :  { %8389 = vmatmul.mubr.msk.f32.gmra.mrb[198].mxu1 %vm653_vm2, %v18306_v37 }
 0xc61   :  { %5655 = vmatprep.mubr.f32.mxu1 %v18285_v5 }
 0xc64   :  { %8390 = vmatmul.mubr.msk.f32.gmra.mrb[200].mxu1 %vm653_vm2, %v18307_v33 }
 0xc65   :  { %5661 = vmatprep.mubr.f32.mxu1 %v18285_v5 }
 0xc68   :  { %8391 = vmatmul.mubr.msk.f32.gmra.mrb[202].mxu1 %vm653_vm2, %v18308_v19 }
 0xc69   :  { %5667 = vmatprep.mubr.f32.mxu1 %v18285_v5 }
 0xc6c   :  { %8392 = vmatmul.mubr.msk.f32.gmra.mrb[204].mxu1 %vm653_vm2, %v18309_v45 }
 0xc6d   :  { %5673 = vmatprep.mubr.f32.mxu1 %v18285_v5 }
 0xc70   :  { %8393 = vmatmul.mubr.msk.f32.gmra.mrb[206].mxu1 %vm653_vm2, %v18310_v23 }
 0xc71   :  { %5679 = vmatprep.mubr.f32.mxu1 %v18285_v5 }
 0xc74   :  { %8394 = vmatmul.mubr.msk.f32.gmra.mrb[208].mxu1 %vm653_vm2, %v18311_v35 }
 0xc75   :  { %5685 = vmatprep.mubr.f32.mxu1 %v18285_v5 }
 0xc78   :  { %8395 = vmatmul.mubr.msk.f32.gmra.mrb[210].mxu1 %vm653_vm2, %v18312_v38 }
 0xc79   :  { %5691 = vmatprep.mubr.f32.mxu1 %v18285_v5 }
 0xc7c   :  { %8396 = vmatmul.mubr.msk.f32.gmra.mrb[212].mxu1 %vm653_vm2, %v18313_v36 }
 0xc7d   :  { %5697 = vmatprep.mubr.f32.mxu1 %v18285_v5 }
 0xc80   :  { %8397 = vmatmul.mubr.msk.f32.gmra.mrb[214].mxu1 %vm653_vm2, %v18314_v14 }
 0xc81   :  { %5703 = vmatprep.mubr.f32.mxu1 %v18285_v5 }
 0xc84   :  { %8398 = vmatmul.mubr.msk.f32.gmra.mrb[216].mxu1 %vm653_vm2, %v18315_v41 }
 0xc85   :  { %5709 = vmatprep.mubr.f32.mxu1 %v18285_v5 }
 0xc88   :  { %8399 = vmatmul.mubr.msk.f32.gmra.mrb[218].mxu1 %vm653_vm2, %v18316_v9 }
 0xc89   :  { %5715 = vmatprep.mubr.f32.mxu1 %v18285_v5 }
 0xc8c   :  { %8400 = vmatmul.mubr.msk.f32.gmra.mrb[220].mxu1 %vm653_vm2, %v18319_v43 }
 0xc8d   :  { %7094 = vmatprep.mubr.f32.mxu1 %v514_v60 }
 0xcdf   :  { %v5288_v21 = vpop.f32.mrb[156].mxu1 }
 0xce0   :  { %v14894_v48 = vmul.f32 %v9671_v31, %v5288_v21  ;;  %v5290_v55 = vpop.f32.mrb[157].mxu1 }
 0xce1   :  { %v14896_v27 = vmul.f32 %v9673_v2, %v5290_v55 }
 0xce2   :  { %18320 = vst [vmem:[#allocation47_spill] sm:$0xff] %v14894_v48 }
 0xce3   :  { %18321 = vst [vmem:[#allocation48_spill] sm:$0xff] %v14896_v27  ;;  %v5531_v7 = vpop.f32.mrb[158].mxu1 }
 0xce4   :  { %v5533_v22 = vpop.f32.mrb[159].mxu1  ;;  %v14898_v17 = vmul.f32 0.35355338, %v5531_v7 }
 0xce5   :  { %v14902_v24 = vmul.f32 0.35355338, %v5533_v22 }
 0xce7   :  { %v5537_v28 = vpop.f32.mrb[160].mxu1 }
 0xce8   :  { %v5539_v26 = vpop.f32.mrb[161].mxu1  ;;  %v14910_v6 = vmul.f32 0.35355338, %v5537_v28 }
 0xce9   :  { %v14914_v56 = vmul.f32 0.35355338, %v5539_v26 }
 0xceb   :  { %v5543_v4 = vpop.f32.mrb[162].mxu1 }
 0xcec   :  { %v14900_v40 = vmul.f32 0.35355338, %v5543_v4  ;;  %v5545_v59 = vpop.f32.mrb[163].mxu1 }
 0xced   :  { %v14904_v44 = vmul.f32 0.35355338, %v5545_v59 }
 0xcee   :  { %v5786_v8 = vmax.f32 %v14898_v17, %v14900_v40 }
 0xcef   :  { %v5823_v42 = vmax.f32 %v14902_v24, %v14904_v44  ;;  %v5549_v16 = vpop.f32.mrb[164].mxu1 }
 0xcf0   :  { %v14912_v10 = vmul.f32 0.35355338, %v5549_v16  ;;  %v5551_v12 = vpop.f32.mrb[165].mxu1 }
 0xcf1   :  { %v14916_v53 = vmul.f32 0.35355338, %v5551_v12 }
 0xcf2   :  { %v5787_v47 = vmax.f32 %v14910_v6, %v14912_v10 }
 0xcf3   :  { %v5824_v0 = vmax.f32 %v14914_v56, %v14916_v53  ;;  %v5555_v58 = vpop.f32.mrb[166].mxu1 }
 0xcf4   :  { %v14922_v52 = vmul.f32 0.35355338, %v5555_v58  ;;  %v5557_v50 = vpop.f32.mrb[167].mxu1 }
 0xcf5   :  { %v14924_v61 = vmul.f32 0.35355338, %v5557_v50 }
 0xcf6   :  { %v5788_v63 = vmax.f32 %v5786_v8, %v14922_v52 }
 0xcf7   :  { %v5825_v3 = vmax.f32 %v5823_v42, %v14924_v61  ;;  %v5561_v13 = vpop.f32.mrb[168].mxu1 }
 0xcf8   :  { %v14928_v1 = vmul.f32 0.35355338, %v5561_v13  ;;  %v5563_v51 = vpop.f32.mrb[169].mxu1 }
 0xcf9   :  { %v14930_v15 = vmul.f32 0.35355338, %v5563_v51 }
 0xcfa   :  { %v5789_v37 = vmax.f32 %v5787_v47, %v14928_v1 }
 0xcfb   :  { %v5826_v33 = vmax.f32 %v5824_v0, %v14930_v15  ;;  %v5567_v19 = vpop.f32.mrb[170].mxu1 }
 0xcfc   :  { %v14934_v45 = vmul.f32 0.35355338, %v5567_v19  ;;  %v5569_v23 = vpop.f32.mrb[171].mxu1 }
 0xcfd   :  { %v14936_v35 = vmul.f32 0.35355338, %v5569_v23 }
 0xcfe   :  { %v5790_v38 = vmax.f32 %v5788_v63, %v14934_v45 }
 0xcff   :  { %v5827_v36 = vmax.f32 %v5825_v3, %v14936_v35  ;;  %v5573_v14 = vpop.f32.mrb[172].mxu1 }
 0xd00   :  { %v14940_v41 = vmul.f32 0.35355338, %v5573_v14  ;;  %v5575_v9 = vpop.f32.mrb[173].mxu1 }
 0xd01   :  { %v14942_v49 = vmul.f32 0.35355338, %v5575_v9 }
 0xd02   :  { %v5791_v60 = vmax.f32 %v5789_v37, %v14940_v41 }
 0xd03   :  { %v5828_v43 = vmax.f32 %v5826_v33, %v14942_v49  ;;  %v5579_v57 = vpop.f32.mrb[174].mxu1 }
 0xd04   :  { %v14946_v30 = vmul.f32 0.35355338, %v5579_v57  ;;  %v5581_v11 = vpop.f32.mrb[175].mxu1 }
 0xd05   :  { %v14948_v54 = vmul.f32 0.35355338, %v5581_v11 }
 0xd06   :  { %v5792_v39 = vmax.f32 %v5790_v38, %v14946_v30 }
 0xd07   :  { %v5829_v34 = vmax.f32 %v5827_v36, %v14948_v54  ;;  %v5585_v29 = vpop.f32.mrb[176].mxu1 }
 0xd08   :  { %v14952_v20 = vmul.f32 0.35355338, %v5585_v29  ;;  %v5587_v25 = vpop.f32.mrb[177].mxu1 }
 0xd09   :  { %v14954_v18 = vmul.f32 0.35355338, %v5587_v25 }
 0xd0a   :  { %v5793_v62 = vmax.f32 %v5791_v60, %v14952_v20 }
 0xd0b   :  { %v5830_v32 = vmax.f32 %v5828_v43, %v14954_v18  ;;  %v5591_v31 = vpop.f32.mrb[178].mxu1 }
 0xd0c   :  { %v14958_v21 = vmul.f32 0.35355338, %v5591_v31  ;;  %v5593_v2 = vpop.f32.mrb[179].mxu1 }
 0xd0d   :  { %v14960_v55 = vmul.f32 0.35355338, %v5593_v2 }
 0xd0e   :  { %v5794_v7 = vmax.f32 %v5792_v39, %v14958_v21 }
 0xd0f   :  { %v5831_v22 = vmax.f32 %v5829_v34, %v14960_v55  ;;  %v5597_v28 = vpop.f32.mrb[180].mxu1 }
 0xd10   :  { %v14964_v26 = vmul.f32 0.35355338, %v5597_v28  ;;  %v5599_v4 = vpop.f32.mrb[181].mxu1 }
 0xd11   :  { %v14966_v59 = vmul.f32 0.35355338, %v5599_v4 }
 0xd12   :  { %v5795_v8 = vmax.f32 %v5793_v62, %v14964_v26 }
 0xd13   :  { %18322 = vst [vmem:[#allocation168_spill] sm:$0xff] %v14966_v59  ;;  %v5832_v42 = vmax.f32 %v5830_v32, %v14966_v59  ;;  %v5603_v16 = vpop.f32.mrb[182].mxu1 }
 0xd14   :  { %v14970_v12 = vmul.f32 0.35355338, %v5603_v16  ;;  %v5605_v47 = vpop.f32.mrb[183].mxu1 }
 0xd15   :  { %v14972_v0 = vmul.f32 0.35355338, %v5605_v47 }
 0xd16   :  { %v5796_v58 = vmax.f32 %v5794_v7, %v14970_v12 }
 0xd17   :  { %18323 = vst [vmem:[#allocation50_spill] sm:$0xff] %v14972_v0  ;;  %v5833_v50 = vmax.f32 %v5831_v22, %v14972_v0  ;;  %v5609_v63 = vpop.f32.mrb[184].mxu1 }
 0xd18   :  { %v14976_v3 = vmul.f32 0.35355338, %v5609_v63  ;;  %v5611_v13 = vpop.f32.mrb[185].mxu1 }
 0xd19   :  { %v14978_v51 = vmul.f32 0.35355338, %v5611_v13 }
 0xd1a   :  { %v5797_v37 = vmax.f32 %v5795_v8, %v14976_v3 }
 0xd1b   :  { %18324 = vst [vmem:[#allocation51_spill] sm:$0xff] %v14978_v51  ;;  %v5834_v33 = vmax.f32 %v5832_v42, %v14978_v51  ;;  %v5615_v19 = vpop.f32.mrb[186].mxu1 }
 0xd1c   :  { %v14982_v23 = vmul.f32 0.35355338, %v5615_v19  ;;  %v5617_v38 = vpop.f32.mrb[187].mxu1 }
 0xd1d   :  { %v14984_v36 = vmul.f32 0.35355338, %v5617_v38 }
 0xd1e   :  { %v5798_v14 = vmax.f32 %v5796_v58, %v14982_v23 }
 0xd1f   :  { %18325 = vst [vmem:[#allocation52_spill] sm:$0xff] %v14984_v36  ;;  %v5835_v9 = vmax.f32 %v5833_v50, %v14984_v36  ;;  %v5621_v60 = vpop.f32.mrb[188].mxu1 }
 0xd20   :  { %v14988_v43 = vmul.f32 0.35355338, %v5621_v60  ;;  %v5623_v57 = vpop.f32.mrb[189].mxu1 }
 0xd21   :  { %v14990_v11 = vmul.f32 0.35355338, %v5623_v57 }
 0xd22   :  { %v5799_v39 = vmax.f32 %v5797_v37, %v14988_v43 }
 0xd23   :  { %18326 = vst [vmem:[#allocation53_spill] sm:$0xff] %v14990_v11  ;;  %v5836_v34 = vmax.f32 %v5834_v33, %v14990_v11  ;;  %v5627_v29 = vpop.f32.mrb[190].mxu1 }
 0xd24   :  { %v14994_v25 = vmul.f32 0.35355338, %v5627_v29  ;;  %v5629_v62 = vpop.f32.mrb[191].mxu1 }
 0xd25   :  { %v14996_v32 = vmul.f32 0.35355338, %v5629_v62 }
 0xd26   :  { %v5800_v31 = vmax.f32 %v5798_v14, %v14994_v25 }
 0xd27   :  { %18327 = vst [vmem:[#allocation54_spill] sm:$0xff] %v14996_v32  ;;  %v5837_v2 = vmax.f32 %v5835_v9, %v14996_v32  ;;  %v5633_v7 = vpop.f32.mrb[192].mxu1 }
 0xd28   :  { %v15000_v22 = vmul.f32 0.35355338, %v5633_v7  ;;  %v5635_v28 = vpop.f32.mrb[193].mxu1 }
 0xd29   :  { %v15002_v4 = vmul.f32 0.35355338, %v5635_v28 }
 0xd2a   :  { %v5801_v8 = vmax.f32 %v5799_v39, %v15000_v22 }
 0xd2b   :  { %18328 = vst [vmem:[#allocation57_spill] sm:$0xff] %v15002_v4  ;;  %v5838_v42 = vmax.f32 %v5836_v34, %v15002_v4  ;;  %v5639_v16 = vpop.f32.mrb[194].mxu1 }
 0xd2c   :  { %v15006_v47 = vmul.f32 0.35355338, %v5639_v16  ;;  %v5641_v58 = vpop.f32.mrb[195].mxu1 }
 0xd2d   :  { %v15008_v50 = vmul.f32 0.35355338, %v5641_v58 }
 0xd2e   :  { %v5802_v63 = vmax.f32 %v5800_v31, %v15006_v47 }
 0xd2f   :  { %18329 = vst [vmem:[#allocation60_spill] sm:$0xff] %v15008_v50  ;;  %v5839_v13 = vmax.f32 %v5837_v2, %v15008_v50  ;;  %v5645_v37 = vpop.f32.mrb[196].mxu1 }
 0xd30   :  { %v15012_v33 = vmul.f32 0.35355338, %v5645_v37  ;;  %v5647_v19 = vpop.f32.mrb[197].mxu1 }
 0xd31   :  { %v15014_v38 = vmul.f32 0.35355338, %v5647_v19 }
 0xd32   :  { %v5803_v14 = vmax.f32 %v5801_v8, %v15012_v33 }
 0xd33   :  { %18330 = vst [vmem:[#allocation63_spill] sm:$0xff] %v15014_v38  ;;  %v5840_v9 = vmax.f32 %v5838_v42, %v15014_v38  ;;  %v5651_v60 = vpop.f32.mrb[198].mxu1 }
 0xd34   :  { %v5653_v57 = vpop.f32.mrb[199].mxu1  ;;  %v15021_v62 = vmul.f32 0.35355338, %v5651_v60 }
 0xd35   :  { %v15018_v39 = vmul.f32 0.35355338, %v5653_v57 }
 0xd36   :  { %v5804_v42 = vmax.f32 %v5802_v63, %v15021_v62 }
 0xd37   :  { %18331 = vst [vmem:[#allocation65_spill] sm:$0xff] %v15018_v39  ;;  %v5841_v34 = vmax.f32 %v5839_v13, %v15018_v39  ;;  %v5657_v29 = vpop.f32.mrb[200].mxu1 }
 0xd38   :  { %v15023_v31 = vmul.f32 0.35355338, %v5657_v29  ;;  %v5659_v2 = vpop.f32.mrb[201].mxu1 }
 0xd39   :  { %v15025_v7 = vmul.f32 0.35355338, %v5659_v2 }
 0xd3a   :  { %v5805_v28 = vmax.f32 %v5803_v14, %v15023_v31 }
 0xd3b   :  { %18332 = vst [vmem:[#allocation89_spill] sm:$0xff] %v15025_v7  ;;  %v5842_v8 = vmax.f32 %v5840_v9, %v15025_v7  ;;  %v5663_v16 = vpop.f32.mrb[202].mxu1 }
 0xd3c   :  { %v15030_v58 = vmul.f32 0.35355338, %v5663_v16  ;;  %v5665_v37 = vpop.f32.mrb[203].mxu1 }
 0xd3d   :  { %v15039_v27 = vmul.f32 0.35355338, %v5665_v37 }
 0xd3e   :  { %v5806_v13 = vmax.f32 %v5804_v42, %v15030_v58 }
 0xd3f   :  { %v5669_v19 = vpop.f32.mrb[204].mxu1  ;;  %18333 = vst [vmem:[#allocation22_spill] sm:$0xff] %v15039_v27 }
 0xd40   :  { %v15033_v60 = vmul.f32 0.35355338, %v5669_v19  ;;  %v5671_v57 = vpop.f32.mrb[205].mxu1  ;;  %v5843_v19 = vmax.f32 %v5841_v34, %v15039_v27 }
 0xd41   :  { %v15047_v7 = vmul.f32 0.35355338, %v5671_v57 }
 0xd42   :  { %v5807_v29 = vmax.f32 %v5805_v28, %v15033_v60 }
 0xd43   :  { %v5675_v2 = vpop.f32.mrb[206].mxu1  ;;  %18335 = vst [vmem:[#allocation68_spill] sm:$0xff] %v15047_v7 }
 0xd44   :  { %v15036_v46 = vmul.f32 0.35355338, %v5675_v2  ;;  %v5677_v14 = vpop.f32.mrb[207].mxu1 }
 0xd45   :  { %v15043_v5 = vmul.f32 0.35355338, %v5677_v14  ;;  %v5844_v14 = vmax.f32 %v5842_v8, %v15047_v7 }
 0xd46   :  { %v5808_v9 = vmax.f32 %v5806_v13, %v15036_v46 }
 0xd47   :  { %v5681_v63 = vpop.f32.mrb[208].mxu1  ;;  %18334 = vst [vmem:[#allocation116_spill] sm:$0xff] %v15043_v5  ;;  %v5845_v13 = vmax.f32 %v5843_v19, %v15043_v5 }
 0xd48   :  { %v15041_v16 = vmul.f32 0.35355338, %v5681_v63  ;;  %v5683_v48 = vpop.f32.mrb[209].mxu1 }
 0xd49   :  { %v15052_v37 = vmul.f32 0.35355338, %v5683_v48 }
 0xd4a   :  { %v5809_v42 = vmax.f32 %v5807_v29, %v15041_v16 }
 0xd4b   :  { %v5687_v28 = vpop.f32.mrb[210].mxu1  ;;  %18336 = vst [vmem:[#allocation85_spill] sm:$0xff] %v15052_v37 }
 0xd4c   :  { %v15049_v2 = vmul.f32 0.35355338, %v5687_v28  ;;  %v5689_v39 = vpop.f32.mrb[211].mxu1  ;;  %v5846_v28 = vmax.f32 %v5844_v14, %v15052_v37 }
 0xd4d   :  { %v15054_v38 = vmul.f32 0.35355338, %v5689_v39 }
 0xd4e   :  { %v5810_v63 = vmax.f32 %v5808_v9, %v15049_v2 }
 0xd4f   :  { %18337 = vst [vmem:[#allocation24_spill] sm:$0xff] %v15054_v38  ;;  %v5847_v29 = vmax.f32 %v5845_v13, %v15054_v38  ;;  %v5693_v50 = vpop.f32.mrb[212].mxu1 }
 0xd50   :  { %v15059_v34 = vmul.f32 0.35355338, %v5693_v50  ;;  %v5695_v57 = vpop.f32.mrb[213].mxu1 }
 0xd51   :  { %v15062_v27 = vmul.f32 0.35355338, %v5695_v57 }
 0xd52   :  { %v5811_v19 = vmax.f32 %v5809_v42, %v15059_v34 }
 0xd53   :  { %18338 = vst [vmem:[#allocation26_spill] sm:$0xff] %v15062_v27  ;;  %v5848_v48 = vmax.f32 %v5846_v28, %v15062_v27  ;;  %v5699_v39 = vpop.f32.mrb[214].mxu1 }
 0xd54   :  { %v15066_v5 = vmul.f32 0.35355338, %v5699_v39  ;;  %v5701_v9 = vpop.f32.mrb[215].mxu1 }
 0xd55   :  { %v15068_v4 = vmul.f32 0.35355338, %v5701_v9 }
 0xd56   :  { %v5812_v8 = vmax.f32 %v5810_v63, %v15066_v5 }
 0xd57   :  { %18339 = vst [vmem:[#allocation159_spill] sm:$0xff] %v15068_v4  ;;  %v5849_v50 = vmax.f32 %v5847_v29, %v15068_v4  ;;  %v5705_v13 = vpop.f32.mrb[216].mxu1 }
 0xd58   :  { %v15072_v7 = vmul.f32 0.35355338, %v5705_v13  ;;  %v5707_v14 = vpop.f32.mrb[217].mxu1 }
 0xd59   :  { %v15074_v57 = vmul.f32 0.35355338, %v5707_v14 }
 0xd5a   :  { %v5813_v42 = vmax.f32 %v5811_v19, %v15072_v7 }
 0xd5b   :  { %18340 = vst [vmem:[#allocation61_spill] sm:$0xff] %v15074_v57  ;;  %v5850_v28 = vmax.f32 %v5848_v48, %v15074_v57  ;;  %v5711_v37 = vpop.f32.mrb[218].mxu1 }
 0xd5c   :  { %v15078_v39 = vmul.f32 0.35355338, %v5711_v37  ;;  %v5713_v27 = vpop.f32.mrb[219].mxu1 }
 0xd5d   :  { %v15080_v9 = vmul.f32 0.35355338, %v5713_v27 }
 0xd5e   :  { %v5814_v63 = vmax.f32 %v5812_v8, %v15078_v39 }
 0xd5f   :  { %18341 = vst [vmem:[#allocation62_spill] sm:$0xff] %v15080_v9  ;;  %v5851_v29 = vmax.f32 %v5849_v50, %v15080_v9  ;;  %v5717_v4 = vpop.f32.mrb[220].mxu1 }
 0xd60   :  { %v15084_v13 = vmul.f32 0.35355338, %v5717_v4  ;;  %v5719_v38 = vpop.f32.mrb[221].mxu1 }
 0xd61   :  { %v15086_v14 = vmul.f32 0.35355338, %v5719_v38 }
 0xd62   :  { %v5815_v19 = vmax.f32 %v5813_v42, %v15084_v13 }
 0xd63   :  { %v5852_v48 = vmax.f32 %v5850_v28, %v15086_v14 }
 0xd64   :  { %v5816_v57 = vmax.f32 %v5814_v63, %v5815_v19 }
 0xd65   :  { %v5853_v37 = vmax.f32 %v5851_v29, %v5852_v48 }
 0xd66   :  { %v5817_v32 = vrot.slane %v5816_v57, 4 }
 0xd67   :  { %v5854_v11 = vrot.slane %v5853_v37, 4 }
 0xd68   :  { %v5818_v27 = vmax.f32 %v5816_v57, %v5817_v32 }
 0xd69   :  { %v5855_v36 = vmax.f32 %v5853_v37, %v5854_v11 }
 0xd6a   :  { %v5819_v51 = vrot.slane %v5818_v27, 2 }
 0xd6b   :  { %v5856_v8 = vrot.slane %v5855_v36, 2 }
 0xd6c   :  { %v5820_v0 = vmax.f32 %v5818_v27, %v5819_v51 }
 0xd6d   :  { %v5857_v50 = vmax.f32 %v5855_v36, %v5856_v8 }
 0xd6e   :  { %v5821_v9 = vrot.slane %v5820_v0, 1 }
 0xd6f   :  { %v5858_v4 = vrot.slane %v5857_v50, 1 }
 0xd70   :  { %v15090_v59 = vmax.f32 %v5820_v0, %v5821_v9 }
 0xd71   :  { %v15092_v38 = vmax.f32 %v5857_v50, %v5858_v4 }
 0xd72   :  { %v5860_v42 = vsub.f32 %v14898_v17, %v15090_v59  ;;  %v5862_v28 = vsub.f32 %v14910_v6, %v15090_v59  ;;  %v5864_v32 = vsub.f32 %v14900_v40, %v15090_v59  ;;  %v5866_v11 = vsub.f32 %v14912_v10, %v15090_v59 }
 0xd73   :  { %v5868_v51 = vsub.f32 %v14922_v52, %v15090_v59  ;;  %v5870_v0 = vsub.f32 %v14928_v1, %v15090_v59  ;;  %v5872_v36 = vsub.f32 %v14934_v45, %v15090_v59  ;;  %v5874_v17 = vsub.f32 %v14940_v41, %v15090_v59 }
 0xd74   :  { %v5876_v6 = vsub.f32 %v14946_v30, %v15090_v59  ;;  %v5878_v40 = vsub.f32 %v14952_v20, %v15090_v59  ;;  %v5880_v10 = vsub.f32 %v14958_v21, %v15090_v59  ;;  %v5882_v52 = vsub.f32 %v14964_v26, %v15090_v59 }
 0xd75   :  { %v5884_v1 = vsub.f32 %v14970_v12, %v15090_v59  ;;  %v5886_v45 = vsub.f32 %v14976_v3, %v15090_v59  ;;  %v5888_v41 = vsub.f32 %v14982_v23, %v15090_v59  ;;  %v5890_v30 = vsub.f32 %v14988_v43, %v15090_v59 }
 0xd76   :  { %v5892_v20 = vsub.f32 %v14994_v25, %v15090_v59  ;;  %v5894_v21 = vsub.f32 %v15000_v22, %v15090_v59  ;;  %v5896_v26 = vsub.f32 %v15006_v47, %v15090_v59  ;;  %v5898_v12 = vsub.f32 %v15012_v33, %v15090_v59 }
 0xd77   :  { %v5902_v3 = vsub.f32 %v15023_v31, %v15090_v59  ;;  %v5904_v23 = vsub.f32 %v15030_v58, %v15090_v59  ;;  %v5906_v43 = vsub.f32 %v15033_v60, %v15090_v59  ;;  %v5908_v25 = vsub.f32 %v15036_v46, %v15090_v59  ;;  %v18356_v60 = vld [vmem:[#allocation61_spill] sm:$0xff] }
 0xd78   :  { %v5910_v22 = vsub.f32 %v15041_v16, %v15090_v59  ;;  %v5912_v47 = vsub.f32 %v15049_v2, %v15090_v59  ;;  %v5924_v19 = vmul.f32 1.442695, %v5860_v42  ;;  %v5928_v48 = vmul.f32 1.442695, %v5862_v28 }
 0xd79   :  { %v5932_v37 = vmul.f32 1.442695, %v5864_v32  ;;  %v5936_v8 = vmul.f32 1.442695, %v5866_v11  ;;  %v5940_v4 = vmul.f32 1.442695, %v5868_v51  ;;  %v5900_v42 = vsub.f32 %v15021_v62, %v15090_v59 }
 0xd7a   :  { %9674 = vpow2.f32 %v5924_v19  ;;  %v5944_v9 = vmul.f32 1.442695, %v5870_v0  ;;  %v5948_v57 = vmul.f32 1.442695, %v5872_v36  ;;  %v5952_v63 = vmul.f32 1.442695, %v5874_v17 }
 0xd7b   :  { %9676 = vpow2.f32 %v5928_v48  ;;  %v5956_v28 = vmul.f32 1.442695, %v5876_v6  ;;  %v5960_v32 = vmul.f32 1.442695, %v5878_v40  ;;  %v5964_v27 = vmul.f32 1.442695, %v5880_v10 }
 0xd7c   :  { %9678 = vpow2.f32 %v5932_v37  ;;  %v5968_v11 = vmul.f32 1.442695, %v5882_v52  ;;  %v5972_v29 = vmul.f32 1.442695, %v5884_v1  ;;  %v5976_v50 = vmul.f32 1.442695, %v5886_v45 }
 0xd7d   :  { %9680 = vpow2.f32 %v5936_v8  ;;  %v5980_v19 = vmul.f32 1.442695, %v5888_v41  ;;  %v5984_v51 = vmul.f32 1.442695, %v5890_v30  ;;  %v5988_v0 = vmul.f32 1.442695, %v5892_v20 }
 0xd7e   :  { %9682 = vpow2.f32 %v5940_v4  ;;  %v5992_v48 = vmul.f32 1.442695, %v5894_v21  ;;  %v5996_v36 = vmul.f32 1.442695, %v5896_v26  ;;  %v6000_v17 = vmul.f32 1.442695, %v5898_v12 }
 0xd7f   :  { %9684 = vpow2.f32 %v5944_v9  ;;  %v18342_v26 = vld [vmem:[#allocation168_spill] sm:$0xff]  ;;  %v18348_v41 = vld [vmem:[#allocation57_spill] sm:$0xff]  ;;  %v6012_v21 = vmul.f32 1.442695, %v5904_v23  ;;  %v18359_v16 = vsub.f32 %v15066_v5, %v15090_v59 }
 0xd80   :  { %9686 = vpow2.f32 %v5948_v57  ;;  %v18349_v45 = vld [vmem:[#allocation60_spill] sm:$0xff]  ;;  %v18351_v10 = vld [vmem:[#allocation65_spill] sm:$0xff] }
 0xd81   :  { %9688 = vpow2.f32 %v5952_v63  ;;  %v18343_v63 = vld [vmem:[#allocation50_spill] sm:$0xff]  ;;  %v18352_v40 = vld [vmem:[#allocation89_spill] sm:$0xff] }
 0xd82   :  { %9690 = vpow2.f32 %v5956_v28  ;;  %v18345_v28 = vld [vmem:[#allocation52_spill] sm:$0xff] }
 0xd83   :  { %9692 = vpow2.f32 %v5960_v32  ;;  %v18350_v32 = vld [vmem:[#allocation63_spill] sm:$0xff] }
 0xd84   :  { %v15170_v52 = vpop.eup %9674  ;;  %9694 = vpow2.f32 %v5964_v27  ;;  %v18344_v27 = vld [vmem:[#allocation51_spill] sm:$0xff] }
 0xd85   :  { %v15178_v30 = vpop.eup %9676  ;;  %9696 = vpow2.f32 %v5968_v11  ;;  %v18346_v11 = vld [vmem:[#allocation53_spill] sm:$0xff] }
 0xd86   :  { %v15186_v57 = vpop.eup %9678  ;;  %9698 = vpow2.f32 %v5972_v29  ;;  %v6052_v9 = vadd.f32 %v15178_v30, %v15170_v52  ;;  %v18347_v29 = vld [vmem:[#allocation54_spill] sm:$0xff] }
 0xd87   :  { %v15194_v4 = vpop.eup %9680  ;;  %9700 = vpow2.f32 %v5976_v50  ;;  %v6008_v50 = vmul.f32 1.442695, %v5902_v3  ;;  %v18354_v3 = vld [vmem:[#allocation26_spill] sm:$0xff] }
 0xd88   :  { %v15202_v20 = vpop.eup %9682  ;;  %9702 = vpow2.f32 %v5980_v19  ;;  %v6053_v37 = vadd.f32 %v15186_v57, %v6052_v9  ;;  %v6004_v9 = vmul.f32 1.442695, %v5900_v42  ;;  %v6016_v19 = vmul.f32 1.442695, %v5906_v43  ;;  %v18357_v43 = vld [vmem:[#allocation62_spill] sm:$0xff] }
 0xd89   :  { %v15209_v1 = vpop.eup %9684  ;;  %9704 = vpow2.f32 %v5984_v51 }
 0xd8a   :  { %v15217_v6 = vpop.eup %9686  ;;  %9706 = vpow2.f32 %v5988_v0  ;;  %v6054_v8 = vadd.f32 %v15194_v4, %v6053_v37  ;;  %v18353_v0 = vld [vmem:[#allocation24_spill] sm:$0xff] }
 0xd8b   :  { %v15223_v51 = vpop.eup %9688  ;;  %9708 = vpow2.f32 %v5992_v48  ;;  %v18355_v48 = vld [vmem:[#allocation159_spill] sm:$0xff] }
 0xd8c   :  { %v15233_v12 = vpop.eup %9690  ;;  %9710 = vpow2.f32 %v5996_v36  ;;  %v6055_v31 = vadd.f32 %v15202_v20, %v6054_v8  ;;  %v6020_v8 = vmul.f32 1.442695, %v5908_v25  ;;  %v18358_v25 = vsub.f32 %v15059_v34, %v15090_v59 }
 0xd8d   :  { %v15240_v58 = vpop.eup %9692  ;;  %9712 = vpow2.f32 %v6000_v17  ;;  %v6024_v17 = vmul.f32 1.442695, %v5910_v22  ;;  %v6036_v22 = vmul.f32 1.442695, %v18359_v16  ;;  %v18361_v34 = vsub.f32 %v15078_v39, %v15090_v59 }
 0xd8e   :  { %v15248_v33 = vpop.eup %9694  ;;  %9714 = vpow2.f32 %v6004_v9  ;;  %v6056_v62 = vadd.f32 %v15209_v1, %v6055_v31  ;;  %v6028_v9 = vmul.f32 1.442695, %v5912_v47  ;;  %v18360_v47 = vsub.f32 %v15072_v7, %v15090_v59 }
 0xd8f   :  { %v15254_v37 = vpop.eup %9696  ;;  %9716 = vpow2.f32 %v6008_v50  ;;  %v6032_v50 = vmul.f32 1.442695, %v18358_v25 }
 0xd90   :  { %v15259_v42 = vpop.eup %9698  ;;  %9718 = vpow2.f32 %v6012_v21  ;;  %v6057_v36 = vadd.f32 %v15217_v6, %v6056_v62  ;;  %v6040_v62 = vmul.f32 1.442695, %v18360_v47 }
 0xd91   :  { %v15265_v46 = vpop.eup %9700  ;;  %9720 = vpow2.f32 %v6016_v19 }
 0xd92   :  { %v15270_v31 = vpop.eup %9702  ;;  %9722 = vpow2.f32 %v6020_v8  ;;  %v6058_v21 = vadd.f32 %v15223_v51, %v6057_v36  ;;  %v6044_v8 = vmul.f32 1.442695, %v18361_v34  ;;  %v18362_v36 = vsub.f32 %v15084_v13, %v15090_v59 }
 0xd93   :  { %v15276_v2 = vpop.eup %9704  ;;  %9724 = vpow2.f32 %v6024_v17  ;;  %v18365_v59 = vsub.f32 %v14904_v44, %v15092_v38  ;;  %v18368_v44 = vsub.f32 %v14930_v15, %v15092_v38  ;;  %v18372_v15 = vsub.f32 %v14954_v18, %v15092_v38 }
 0xd94   :  { %v15281_v19 = vpop.eup %9706  ;;  %9726 = vpow2.f32 %v6028_v9  ;;  %v6059_v25 = vadd.f32 %v15233_v12, %v6058_v21  ;;  %v6048_v17 = vmul.f32 1.442695, %v18362_v36  ;;  %v18363_v9 = vsub.f32 %v14902_v24, %v15092_v38 }
 0xd95   :  { %v15287_v5 = vpop.eup %9708  ;;  %9728 = vpow2.f32 %v6032_v50  ;;  %v18364_v21 = vsub.f32 %v14914_v56, %v15092_v38  ;;  %v5934_v13 = vmul.f32 1.442695, %v18365_v59  ;;  %v18366_v24 = vsub.f32 %v14916_v53, %v15092_v38 }
 0xd96   :  { %v15292_v16 = vpop.eup %9710  ;;  %9730 = vpow2.f32 %v6036_v22  ;;  %v6060_v7 = vadd.f32 %v15240_v58, %v6059_v25  ;;  %v5926_v47 = vmul.f32 1.442695, %v18363_v9  ;;  %v5946_v56 = vmul.f32 1.442695, %v18368_v44 }
 0xd97   :  { %v15298_v39 = vpop.eup %9712  ;;  %9732 = vpow2.f32 %v6040_v62  ;;  %v5930_v50 = vmul.f32 1.442695, %v18364_v21  ;;  %v5938_v25 = vmul.f32 1.442695, %v18366_v24  ;;  %v18367_v62 = vsub.f32 %v14924_v61, %v15092_v38 }
 0xd98   :  { %v15306_v34 = vpop.eup %9714  ;;  %9734 = vpow2.f32 %v6044_v8  ;;  %v6061_v22 = vadd.f32 %v15248_v33, %v6060_v7  ;;  %v18369_v8 = vsub.f32 %v14936_v35, %v15092_v38  ;;  %v18370_v7 = vsub.f32 %v14942_v49, %v15092_v38 }
 0xd99   :  { %v5942_v36 = vmul.f32 1.442695, %v18367_v62  ;;  %v15315_v9 = vpop.eup %9716  ;;  %9736 = vpow2.f32 %v6048_v17  ;;  %v18371_v17 = vsub.f32 %v14948_v54, %v15092_v38  ;;  %v5962_v62 = vmul.f32 1.442695, %v18372_v15 }
 0xd9a   :  { %v5950_v21 = vmul.f32 1.442695, %v18369_v8  ;;  %v5954_v53 = vmul.f32 1.442695, %v18370_v7  ;;  %v15326_v59 = vpop.eup %9718  ;;  %v6062_v61 = vadd.f32 %v15254_v37, %v6061_v22  ;;  %9738 = vpow2.f32 %v5926_v47 }
 0xd9b   :  { %v5958_v24 = vmul.f32 1.442695, %v18371_v17  ;;  %v15335_v44 = vpop.eup %9720  ;;  %9740 = vpow2.f32 %v5930_v50  ;;  %v18374_v15 = vsub.f32 %v18342_v26, %v15092_v38 }
 0xd9c   :  { %v15343_v22 = vpop.eup %9722  ;;  %v6063_v54 = vadd.f32 %v15259_v42, %v6062_v61  ;;  %9742 = vpow2.f32 %v5934_v13 }
 0xd9d   :  { %v15350_v8 = vpop.eup %9724  ;;  %9744 = vpow2.f32 %v5938_v25  ;;  %v18373_v25 = vsub.f32 %v14960_v55, %v15092_v38  ;;  %v5970_v17 = vmul.f32 1.442695, %v18374_v15 }
 0xd9e   :  { %v15358_v61 = vpop.eup %9726  ;;  %v6064_v13 = vadd.f32 %v15265_v46, %v6063_v54  ;;  %9746 = vpow2.f32 %v5942_v36 }
 0xd9f   :  { %v15365_v18 = vpop.eup %9728  ;;  %9748 = vpow2.f32 %v5946_v56  ;;  %v5966_v50 = vmul.f32 1.442695, %v18373_v25 }
 0xda0   :  { %v15373_v54 = vpop.eup %9730  ;;  %v6065_v36 = vadd.f32 %v15270_v31, %v6064_v13  ;;  %9750 = vpow2.f32 %v5950_v21  ;;  %v18375_v21 = vsub.f32 %v18343_v63, %v15092_v38  ;;  %v18380_v63 = vsub.f32 %v18348_v41, %v15092_v38 }
 0xda1   :  { %v15381_v23 = vpop.eup %9732  ;;  %9752 = vpow2.f32 %v5954_v53  ;;  %v18376_v53 = vsub.f32 %v18344_v27, %v15092_v38  ;;  %v18379_v27 = vsub.f32 %v18347_v29, %v15092_v38  ;;  %v18383_v41 = vsub.f32 %v18351_v10, %v15092_v38 }
 0xda2   :  { %v15386_v7 = vpop.eup %9734  ;;  %v6066_v47 = vadd.f32 %v15276_v2, %v6065_v36  ;;  %9754 = vpow2.f32 %v5958_v24  ;;  %v5974_v55 = vmul.f32 1.442695, %v18375_v21  ;;  %v18377_v24 = vsub.f32 %v18345_v28, %v15092_v38 }
 0xda3   :  { %v15394_v25 = vpop.eup %9736  ;;  %9756 = vpow2.f32 %v5962_v62  ;;  %v5978_v26 = vmul.f32 1.442695, %v18376_v53  ;;  %v18378_v62 = vsub.f32 %v18346_v11, %v15092_v38  ;;  %v5990_v53 = vmul.f32 1.442695, %v18379_v27 }
 0xda4   :  { %v9739_v15 = vpop.eup %9738  ;;  %v6067_v56 = vadd.f32 %v15281_v19, %v6066_v47  ;;  %9758 = vpow2.f32 %v5966_v50  ;;  %v5982_v36 = vmul.f32 1.442695, %v18377_v24  ;;  %v18381_v11 = vsub.f32 %v18349_v45, %v15092_v38 }
 0xda5   :  { %v9741_v21 = vpop.eup %9740  ;;  %9760 = vpow2.f32 %v5970_v17  ;;  %v5986_v13 = vmul.f32 1.442695, %v18378_v62  ;;  %v5994_v17 = vmul.f32 1.442695, %v18380_v63  ;;  %v6006_v63 = vmul.f32 1.442695, %v18383_v41 }
 0xda6   :  { %v9743_v49 = vpop.eup %9742  ;;  %v6068_v47 = vadd.f32 %v15287_v5, %v6067_v56  ;;  %9762 = vpow2.f32 %v5974_v55  ;;  %v6089_v50 = vadd.f32 %v9741_v21, %v9739_v15  ;;  %v8794_v28 = vpack.c.bf16 %v9741_v21, %v9739_v15 }
 0xda7   :  { %v9745_v24 = vpop.eup %9744  ;;  %9764 = vpow2.f32 %v5978_v26  ;;  %v5998_v62 = vmul.f32 1.442695, %v18381_v11  ;;  %v18382_v26 = vsub.f32 %v18350_v32, %v15092_v38  ;;  %v18384_v45 = vpack.c.bf16 %v15178_v30, %v15170_v52 }
 0xda8   :  { %v9747_v35 = vpop.eup %9746  ;;  %v6069_v29 = vadd.f32 %v15292_v16, %v6068_v47  ;;  %9766 = vpow2.f32 %v5982_v36  ;;  %v6090_v27 = vadd.f32 %v9743_v49, %v6089_v50  ;;  %8795 = vmatprep.subr.bf16.mxu0 %v8794_v28  ;;  %v8798_v56 = vpack.c.bf16 %v9745_v24, %v9743_v49 }
 0xda9   :  { %v9749_v55 = vpop.eup %9748  ;;  %9768 = vpow2.f32 %v5986_v13  ;;  %v6002_v15 = vmul.f32 1.442695, %v18382_v26  ;;  %8797 = vmatpush1.bf16.msra.mxu0 %v18384_v45  ;;  %v18385_v32 = vsub.f32 %v18352_v40, %v15092_v38 }
 0xdaa   :  { %v9751_v21 = vpop.eup %9750  ;;  %v6070_v36 = vadd.f32 %v15298_v39, %v6069_v29  ;;  %9770 = vpow2.f32 %v5990_v53  ;;  %v6091_v47 = vadd.f32 %v9745_v24, %v6090_v27  ;;  %8799 = vmatprep.subr.bf16.mxu0 %v8798_v56  ;;  %v8802_v49 = vpack.c.bf16 %v9749_v55, %v9747_v35 }
 0xdab   :  { %v9753_v13 = vpop.eup %9752  ;;  %9772 = vpow2.f32 %v5994_v17  ;;  %v6010_v50 = vmul.f32 1.442695, %v18385_v32  ;;  %v18386_v53 = vpack.c.bf16 %v15194_v4, %v15186_v57  ;;  %v18388_v4 = vsub.f32 %v18354_v3, %v15092_v38 }
 0xdac   :  { %v9755_v28 = vpop.eup %9754  ;;  %v6071_v10 = vadd.f32 %v15306_v34, %v6070_v36  ;;  %9774 = vpow2.f32 %v5998_v62  ;;  %v6092_v11 = vadd.f32 %v9747_v35, %v6091_v47  ;;  %v8806_v52 = vpack.c.bf16 %v9753_v13, %v9751_v21 }
 0xdad   :  { %v9757_v30 = vpop.eup %9756  ;;  %9776 = vpow2.f32 %v6002_v15  ;;  %8801 = vmatpush1.bf16.msra.mxu0 %v18386_v53  ;;  %v18387_v35 = vsub.f32 %v18353_v0, %v15092_v38  ;;  %v6034_v45 = vmul.f32 1.442695, %v18388_v4  ;;  %v18390_v47 = vsub.f32 %v18355_v48, %v15092_v38 }
 0xdae   :  { %v9759_v24 = vpop.eup %9758  ;;  %v6072_v29 = vadd.f32 %v15315_v9, %v6071_v10  ;;  %9778 = vpow2.f32 %v6006_v63  ;;  %v6093_v17 = vadd.f32 %v9749_v55, %v6092_v11  ;;  %8803 = vmatprep.subr.bf16.mxu0 %v8802_v49  ;;  %v8810_v40 = vpack.c.bf16 %v9757_v30, %v9755_v28 }
 0xdaf   :  { %v9761_v27 = vpop.eup %9760  ;;  %9780 = vpow2.f32 %v6010_v50  ;;  %v6030_v26 = vmul.f32 1.442695, %v18387_v35  ;;  %v18389_v55 = vpack.c.bf16 %v15209_v1, %v15202_v20  ;;  %v6038_v0 = vmul.f32 1.442695, %v18390_v47  ;;  %v18397_v47 = vld [vmem:[#allocation68_spill] sm:$0xff] }
 0xdb0   :  { %v9763_v56 = vpop.eup %9762  ;;  %v6073_v62 = vadd.f32 %v15326_v59, %v6072_v29  ;;  %v6094_v15 = vadd.f32 %v9751_v21, %v6093_v17  ;;  %v8814_v41 = vpack.c.bf16 %v9761_v27, %v9759_v24  ;;  %v18391_v3 = vsub.f32 %v18356_v60, %v15092_v38 }
 0xdb1   :  { %v9765_v57 = vpop.eup %9764  ;;  %8805 = vmatpush1.bf16.msra.mxu0 %v18389_v55  ;;  %v18392_v1 = vsub.f32 %v18357_v43, %v15092_v38  ;;  %9782 = vpow2.f32 %v6030_v26  ;;  %v18394_v60 = vpack.c.bf16 %v15223_v51, %v15217_v6  ;;  %v18395_v6 = vpack.c.bf16 %v15240_v58, %v15233_v12 }
 0xdb2   :  { %v15447_v63 = vpop.eup %9766  ;;  %v6074_v36 = vadd.f32 %v15335_v44, %v6073_v62  ;;  %v6095_v49 = vadd.f32 %v9753_v13, %v6094_v15  ;;  %8807 = vmatprep.subr.bf16.mxu0 %v8806_v52  ;;  %v8818_v21 = vpack.c.bf16 %v9765_v57, %v9763_v56  ;;  %v6042_v50 = vmul.f32 1.442695, %v18391_v3  ;;  %v18398_v3 = vld [vmem:[#allocation116_spill] sm:$0xff] }
 0xdb3   :  { %v9769_v32 = vpop.eup %9768  ;;  %v6046_v20 = vmul.f32 1.442695, %v18392_v1  ;;  %9784 = vpow2.f32 %v6034_v45  ;;  %v18393_v52 = vsub.f32 %v15086_v14, %v15092_v38  ;;  %v18399_v12 = vpack.c.bf16 %v15254_v37, %v15248_v33 }
 0xdb4   :  { %v15459_v10 = vpop.eup %9770  ;;  %v6075_v11 = vadd.f32 %v15343_v22, %v6074_v36  ;;  %v6096_v53 = vadd.f32 %v9755_v28, %v6095_v49  ;;  %v8822_v48 = vpack.c.bf16 %v9769_v32, %v15447_v63  ;;  %9786 = vpow2.f32 %v6038_v0 }
 0xdb5   :  { %v9773_v13 = vpop.eup %9772  ;;  %v6050_v29 = vmul.f32 1.442695, %v18393_v52  ;;  %8809 = vmatpush1.bf16.msra.mxu0 %v18394_v60  ;;  %9788 = vpow2.f32 %v6042_v50  ;;  %v5907_v0 = vsub.f32 %v18397_v47, %v15092_v38  ;;  %v5909_v50 = vsub.f32 %v18398_v3, %v15092_v38 }
 0xdb6   :  { %v9775_v43 = vpop.eup %9774  ;;  %v6076_v17 = vadd.f32 %v15350_v8, %v6075_v11  ;;  %v6097_v62 = vadd.f32 %v9757_v30, %v6096_v53  ;;  %8811 = vmatprep.subr.bf16.mxu0 %v8810_v40  ;;  %v8826_v28 = vpack.c.bf16 %v9773_v13, %v15459_v10  ;;  %9790 = vpow2.f32 %v6046_v20  ;;  %v18396_v30 = vld [vmem:[#allocation22_spill] sm:$0xff]  ;;  %v18400_v11 = vld [vmem:[#allocation85_spill] sm:$0xff] }
 0xdb7   :  { %v9777_v35 = vpop.eup %9776  ;;  %9792 = vpow2.f32 %v6050_v29  ;;  %v5905_v40 = vsub.f32 %v18396_v30, %v15092_v38  ;;  %v5911_v53 = vsub.f32 %v18400_v11, %v15092_v38  ;;  %v6018_v52 = vmul.f32 1.442695, %v5907_v0  ;;  %v18425_v11 = vld [vmem:[#allocation117_spill] sm:$0xff] }
 0xdb8   :  { %v9779_v26 = vpop.eup %9778  ;;  %v6077_v15 = vadd.f32 %v15358_v61, %v6076_v17  ;;  %v6098_v14 = vadd.f32 %v9759_v24, %v6097_v62  ;;  %v8830_v4 = vpack.c.bf16 %v9777_v35, %v9775_v43  ;;  %v6022_v33 = vmul.f32 1.442695, %v5909_v50  ;;  %v18414_v50 = vld [vmem:[#allocation86_spill] sm:$0xff] }
 0xdb9   :  { %v9781_v45 = vpop.eup %9780  ;;  %8813 = vmatpush1.bf16.msra.mxu0 %v18395_v6  ;;  %v6014_v20 = vmul.f32 1.442695, %v5905_v40  ;;  %v18401_v37 = vpack.c.bf16 %v15265_v46, %v15259_v42  ;;  %v6026_v6 = vmul.f32 1.442695, %v5911_v53  ;;  %v18402_v30 = vpack.c.bf16 %v15276_v2, %v15270_v31  ;;  %v18426_v53 = vld [vmem:[#allocation125_spill] sm:$0xff] }
 0xdba   :  { %v6078_v51 = vadd.f32 %v15365_v18, %v6077_v15  ;;  %v6099_v55 = vadd.f32 %v9761_v27, %v6098_v14  ;;  %8815 = vmatprep.subr.bf16.mxu0 %v8814_v41  ;;  %v8834_v36 = vpack.c.bf16 %v9781_v45, %v9779_v26  ;;  %v18412_v3 = vpack.c.bf16 %v15394_v25, %v15386_v7 }
 0xdbb   :  { %v9783_v58 = vpop.eup %9782  ;;  %9794 = vpow2.f32 %v6014_v20  ;;  %v18422_v20 = vld [vmem:[#allocation37_spill] sm:$0xff] }
 0xdbc   :  { %v6079_v24 = vadd.f32 %v15373_v54, %v6078_v51  ;;  %v6100_v49 = vadd.f32 %v9763_v56, %v6099_v55  ;;  %9796 = vpow2.f32 %v6018_v52  ;;  %v18427_v52 = vld [vmem:[#allocation131_spill] sm:$0xff] }
 0xdbd   :  { %8817 = vmatpush1.bf16.msra.mxu0 %v18399_v12  ;;  %v9785_v41 = vpop.eup %9784  ;;  %9798 = vpow2.f32 %v6022_v33  ;;  %v18415_v12 = vmov 0.0   ;;  %v18433_v33 = vld [vmem:[#allocation140_spill] sm:$0xff] }
 0xdbe   :  { %v6080_v1 = vadd.f32 %v15381_v23, %v6079_v24  ;;  %v6101_v27 = vadd.f32 %v9765_v57, %v6100_v49  ;;  %8819 = vmatprep.subr.bf16.mxu0 %v8818_v21  ;;  %v9787_v29 = vpop.eup %9786  ;;  %v8846_v17 = vpack.c.bf16 %v9785_v41, %v9783_v58  ;;  %9800 = vpow2.f32 %v6026_v6  ;;  %v18410_v49 = vld [vmem:[#allocation96_spill] sm:$0xff]  ;;  %v18439_v6 = vld [vmem:[#allocation95_spill] sm:$0xff] }
 0xdbf   :  { %v9789_v62 = vpop.eup %9788 }
 0xdc0   :  { %v6081_v56 = vadd.f32 %v15386_v7, %v6080_v1  ;;  %v6102_v60 = vadd.f32 %v15447_v63, %v6101_v27  ;;  %v9791_v15 = vpop.eup %9790  ;;  %v8850_v38 = vpack.c.bf16 %v9789_v62, %v9787_v29  ;;  %v18418_v7 = vld [vmem:[#allocation80_spill] sm:$0xff]  ;;  %v18421_v1 = vld [vmem:[#allocation171_spill] sm:$0xff] }
 0xdc1   :  { %8821 = vmatpush1.bf16.msra.mxu0 %v18401_v37  ;;  %v9793_v14 = vpop.eup %9792  ;;  %v18423_v27 = vld [vmem:[#allocation35_spill] sm:$0xff]  ;;  %v18434_v37 = vld [vmem:[#allocation144_spill] sm:$0xff] }
 0xdc2   :  { %v15495_v57 = vadd.f32 %v15394_v25, %v6081_v56  ;;  %v6103_v21 = vadd.f32 %v9769_v32, %v6102_v60  ;;  %8823 = vmatprep.subr.bf16.mxu0 %v8822_v48  ;;  %v8854_v51 = vpack.c.bf16 %v9793_v14, %v9791_v15  ;;  %v18403_v32 = vpack.c.bf16 %v15287_v5, %v15281_v19  ;;  %v18419_v25 = vld [vmem:[#allocation33_spill] sm:$0xff]  ;;  %v18429_v56 = vld [vmem:[#allocation142_spill] sm:$0xff] }
 0xdc3   :  { %v18430_v60 = vld [vmem:[#allocation146_spill] sm:$0xff] }
 0xdc4   :  { %v6104_v63 = vadd.f32 %v15459_v10, %v6103_v21  ;;  %v18404_v10 = vpack.c.bf16 %v15298_v39, %v15292_v16  ;;  %v18436_v21 = vld [vmem:[#allocation152_spill] sm:$0xff] }
 0xdc5   :  { %8825 = vmatpush1.bf16.msra.mxu0 %v18402_v30  ;;  %v9795_v40 = vpop.eup %9794  ;;  %v18442_v30 = vld [vmem:[#allocation133_spill] sm:$0xff] }
 0xdc6   :  { %v6105_v42 = vadd.f32 %v9773_v13, %v6104_v63  ;;  %8827 = vmatprep.subr.bf16.mxu0 %v8826_v28  ;;  %v9797_v47 = vpop.eup %9796  ;;  %v18440_v63 = vld [vmem:[#allocation104_spill] sm:$0xff] }
 0xdc7   :  { %v9799_v2 = vpop.eup %9798  ;;  %v8838_v28 = vpack.c.bf16 %v9797_v47, %v9795_v40 }
 0xdc8   :  { %v6106_v46 = vadd.f32 %v9775_v43, %v6105_v42  ;;  %v9801_v0 = vpop.eup %9800  ;;  %v18405_v43 = vpack.c.bf16 %v15315_v9, %v15306_v34  ;;  %v18408_v34 = vpack.c.bf16 %v15365_v18, %v15358_v61  ;;  %v18413_v18 = vld [vmem:[#allocation32_spill] sm:$0xff]  ;;  %v18443_v42 = vld [vmem:[#allocation157_spill] sm:$0xff] }
 0xdc9   :  { %8829 = vmatpush1.bf16.msra.mxu0 %v18403_v32  ;;  %v464_v61 = vadd.f32 %v18413_v18, %v18410_v49  ;;  %v18445_v32 = vld [vmem:[#allocation102_spill] sm:$0xff] }
 0xdca   :  { %v6107_v48 = vadd.f32 %v9777_v35, %v6106_v46  ;;  %8831 = vmatprep.subr.bf16.mxu0 %v8830_v4  ;;  %v8842_v35 = vpack.c.bf16 %v9801_v0, %v9799_v2  ;;  %v18407_v4 = vpack.c.bf16 %v15350_v8, %v15343_v22  ;;  %v18411_v22 = vld [vmem:[#allocation34_spill] sm:$0xff]  ;;  %v18444_v46 = vld [vmem:[#allocation81_spill] sm:$0xff] }
 0xdcb   :  { %v466_v8 = vadd.f32 %v18411_v22, %v18410_v49 }
 0xdcc   :  { %v6108_v55 = vadd.f32 %v9779_v26, %v6107_v48  ;;  %v18406_v26 = vpack.c.bf16 %v15335_v44, %v15326_v59  ;;  %v18409_v59 = vpack.c.bf16 %v15381_v23, %v15373_v54  ;;  %v18416_v23 = vld [vmem:[#allocation78_spill] sm:$0xff]  ;;  %v18417_v54 = vld [vmem:[#allocation169_spill] sm:$0xff]  ;;  %v18446_v48 = vld [vmem:[#allocation108_spill] sm:$0xff] }
 0xdcd   :  { %8833 = vmatpush1.bf16.msra.mxu0 %v18404_v10 }
 0xdce   :  { %v6109_v31 = vadd.f32 %v9781_v45, %v6108_v55  ;;  %8835 = vmatprep.subr.bf16.mxu0 %v8834_v36  ;;  %v18448_v55 = vld [vmem:[#allocation49_spill] sm:$0xff] }
 0xdd0   :  { %v6110_v13 = vadd.f32 %v9795_v40, %v6109_v31  ;;  %v18447_v40 = vld [vmem:[#allocation113_spill] sm:$0xff] }
 0xdd1   :  { %8837 = vmatpush1.bf16.msra.mxu0 %v18405_v43 }
 0xdd2   :  { %v6111_v19 = vadd.f32 %v9797_v47, %v6110_v13  ;;  %8839 = vmatprep.subr.bf16.mxu0 %v8838_v28  ;;  %v6083_v47 = vrot.slane %v15495_v57, 4 }
 0xdd4   :  { %v6112_v5 = vadd.f32 %v9799_v2, %v6111_v19  ;;  %v6084_v31 = vadd.f32 %v6083_v47, %v15495_v57 }
 0xdd5   :  { %8841 = vmatpush1.bf16.msra.mxu0 %v18406_v26 }
 0xdd6   :  { %v6113_v16 = vadd.f32 %v9801_v0, %v6112_v5  ;;  %8843 = vmatprep.subr.bf16.mxu0 %v8842_v35  ;;  %v6085_v13 = vrot.slane %v6084_v31, 2 }
 0xdd8   :  { %v6114_v39 = vadd.f32 %v9783_v58, %v6113_v16  ;;  %v18420_v58 = vld [vmem:[#allocation170_spill] sm:$0xff]  ;;  %v6086_v0 = vadd.f32 %v6085_v13, %v6084_v31 }
 0xdd9   :  { %8845 = vmatpush1.bf16.msra.mxu0 %v18407_v4 }
 0xdda   :  { %v6115_v45 = vadd.f32 %v9785_v41, %v6114_v39  ;;  %8847 = vmatprep.subr.bf16.mxu0 %v8846_v17  ;;  %v18424_v41 = vld [vmem:[#allocation112_spill] sm:$0xff]  ;;  %v18431_v17 = vld [vmem:[#allocation150_spill] sm:$0xff]  ;;  %v6087_v19 = vrot.slane %v6086_v0, 1 }
 0xddc   :  { %v6116_v36 = vadd.f32 %v9787_v29, %v6115_v45  ;;  %v18428_v29 = vld [vmem:[#allocation137_spill] sm:$0xff]  ;;  %v6088_v35 = vadd.f32 %v6087_v19, %v6086_v0 }
 0xddd   :  { %8849 = vmatpush1.bf16.msra.mxu0 %v18408_v34 }
 0xdde   :  { %v6117_v9 = vadd.f32 %v9789_v62, %v6116_v36  ;;  %8851 = vmatprep.subr.bf16.mxu0 %v8850_v38  ;;  %v18432_v62 = vld [vmem:[#allocation134_spill] sm:$0xff]  ;;  %v18437_v38 = vld [vmem:[#allocation156_spill] sm:$0xff]  ;;  %9802 = vrcp.f32 %v6088_v35 }
 0xde0   :  { %v6118_v24 = vadd.f32 %v9791_v15, %v6117_v9  ;;  %v18435_v15 = vld [vmem:[#allocation148_spill] sm:$0xff] }
 0xde1   :  { %8853 = vmatpush1.bf16.msra.mxu0 %v18409_v59 }
 0xde2   :  { %v15522_v44 = vadd.f32 %v9793_v14, %v6118_v24  ;;  %8855 = vmatprep.subr.bf16.mxu0 %v8854_v51  ;;  %v18438_v14 = vld [vmem:[#allocation92_spill] sm:$0xff] }
 0xde3   :  { %v18441_v51 = vld [vmem:[#allocation124_spill] sm:$0xff] }
 0xde4   :  { %v6120_v10 = vrot.slane %v15522_v44, 4 }
 0xde5   :  { %8857 = vmatpush1.bf16.msra.mxu0 %v18412_v3 }
 0xde6   :  { %6369 = vmatprep.subr.mxu0 %v466_v8  ;;  %v6121_v2 = vadd.f32 %v6120_v10, %v15522_v44 }
 0xde8   :  { %6191 = vmatmul.mubr.f32.vlgmr.msra.gmra.mrb[222].mxu0 %v18414_v50  ;;  %v6122_v28 = vrot.slane %v6121_v2, 2  ;;  %v9803_v16 = vpop.eup %9802 }
 0xde9   :  { %6370 = vmatpush1.msra.mxu0 %v464_v61  ;;  %6433 = vmatprep.mubr.f32.mxu0 %v18415_v12 }
 0xdea   :  { %v6123_v43 = vadd.f32 %v6122_v28, %v6121_v2 }
 0xdec   :  { %8401 = vmatmul.mubr.msk.f32.vlgmr.msra.gmra.mrb[224].mxu0 %vm653_vm2, %v18416_v23  ;;  %v6124_v5 = vrot.slane %v6123_v43, 1 }
 0xded   :  { %6439 = vmatprep.mubr.f32.mxu0 %v18415_v12 }
 0xdee   :  { %v6125_v26 = vadd.f32 %v6124_v5, %v6123_v43 }
 0xdf0   :  { %8402 = vmatmul.mubr.msk.f32.gmra.mrb[226].mxu0 %vm653_vm2, %v18417_v54  ;;  %9804 = vrcp.f32 %v6125_v26 }
 0xdf1   :  { %6445 = vmatprep.mubr.f32.mxu0 %v18415_v12 }
 0xdf4   :  { %8403 = vmatmul.mubr.msk.f32.gmra.mrb[228].mxu0 %vm653_vm2, %v18418_v7 }
 0xdf5   :  { %6451 = vmatprep.mubr.f32.mxu0 %v18415_v12 }
 0xdf8   :  { %8404 = vmatmul.mubr.msk.f32.gmra.mrb[230].mxu0 %vm653_vm2, %v18419_v25 }
 0xdf9   :  { %6457 = vmatprep.mubr.f32.mxu0 %v18415_v12 }
 0xdfa   :  { %v9805_v4 = vpop.eup %9804 }
 0xdfc   :  { %8405 = vmatmul.mubr.msk.f32.gmra.mrb[232].mxu0 %vm653_vm2, %v18420_v58 }
 0xdfd   :  { %6463 = vmatprep.mubr.f32.mxu0 %v18415_v12 }
 0xe00   :  { %8406 = vmatmul.mubr.msk.f32.gmra.mrb[234].mxu0 %vm653_vm2, %v18421_v1 }
 0xe01   :  { %6469 = vmatprep.mubr.f32.mxu0 %v18415_v12 }
 0xe04   :  { %8407 = vmatmul.mubr.msk.f32.gmra.mrb[236].mxu0 %vm653_vm2, %v18422_v20 }
 0xe05   :  { %6475 = vmatprep.mubr.f32.mxu0 %v18415_v12 }
 0xe08   :  { %8408 = vmatmul.mubr.msk.f32.gmra.mrb[238].mxu0 %vm653_vm2, %v18423_v27 }
 0xe09   :  { %6481 = vmatprep.mubr.f32.mxu0 %v18415_v12 }
 0xe0c   :  { %8409 = vmatmul.mubr.msk.f32.gmra.mrb[240].mxu0 %vm653_vm2, %v18424_v41 }
 0xe0d   :  { %6487 = vmatprep.mubr.f32.mxu0 %v18415_v12 }
 0xe10   :  { %8410 = vmatmul.mubr.msk.f32.gmra.mrb[242].mxu0 %vm653_vm2, %v18425_v11 }
 0xe11   :  { %6493 = vmatprep.mubr.f32.mxu0 %v18415_v12 }
 0xe14   :  { %8411 = vmatmul.mubr.msk.f32.gmra.mrb[244].mxu0 %vm653_vm2, %v18426_v53 }
 0xe15   :  { %6499 = vmatprep.mubr.f32.mxu0 %v18415_v12 }
 0xe18   :  { %8412 = vmatmul.mubr.msk.f32.gmra.mrb[246].mxu0 %vm653_vm2, %v18427_v52 }
 0xe19   :  { %6505 = vmatprep.mubr.f32.mxu0 %v18415_v12 }
 0xe1c   :  { %8413 = vmatmul.mubr.msk.f32.gmra.mrb[248].mxu0 %vm653_vm2, %v18428_v29 }
 0xe1d   :  { %6511 = vmatprep.mubr.f32.mxu0 %v18415_v12 }
 0xe20   :  { %8414 = vmatmul.mubr.msk.f32.gmra.mrb[250].mxu0 %vm653_vm2, %v18429_v56 }
 0xe21   :  { %6517 = vmatprep.mubr.f32.mxu0 %v18415_v12 }
 0xe24   :  { %8415 = vmatmul.mubr.msk.f32.gmra.mrb[252].mxu0 %vm653_vm2, %v18430_v60 }
 0xe25   :  { %6523 = vmatprep.mubr.f32.mxu0 %v18415_v12 }
 0xe28   :  { %8416 = vmatmul.mubr.msk.f32.gmra.mrb[254].mxu0 %vm653_vm2, %v18431_v17 }
 0xe29   :  { %6529 = vmatprep.mubr.f32.mxu0 %v18415_v12 }
 0xe2c   :  { %8417 = vmatmul.mubr.msk.f32.gmra.mrb[0].mxu0 %vm653_vm2, %v18432_v62 }
 0xe2d   :  { %6535 = vmatprep.mubr.f32.mxu0 %v18415_v12 }
 0xe30   :  { %8418 = vmatmul.mubr.msk.f32.gmra.mrb[2].mxu0 %vm653_vm2, %v18433_v33 }
 0xe31   :  { %6541 = vmatprep.mubr.f32.mxu0 %v18415_v12 }
 0xe34   :  { %8419 = vmatmul.mubr.msk.f32.gmra.mrb[4].mxu0 %vm653_vm2, %v18434_v37 }
 0xe35   :  { %6547 = vmatprep.mubr.f32.mxu0 %v18415_v12 }
 0xe38   :  { %8420 = vmatmul.mubr.msk.f32.gmra.mrb[6].mxu0 %vm653_vm2, %v18435_v15 }
 0xe39   :  { %6553 = vmatprep.mubr.f32.mxu0 %v18415_v12 }
 0xe3c   :  { %8421 = vmatmul.mubr.msk.f32.gmra.mrb[8].mxu0 %vm653_vm2, %v18436_v21 }
 0xe3d   :  { %6559 = vmatprep.mubr.f32.mxu0 %v18415_v12 }
 0xe40   :  { %8422 = vmatmul.mubr.msk.f32.gmra.mrb[10].mxu0 %vm653_vm2, %v18437_v38 }
 0xe41   :  { %6565 = vmatprep.mubr.f32.mxu0 %v18415_v12 }
 0xe44   :  { %8423 = vmatmul.mubr.msk.f32.gmra.mrb[12].mxu0 %vm653_vm2, %v18438_v14 }
 0xe45   :  { %6571 = vmatprep.mubr.f32.mxu0 %v18415_v12 }
 0xe48   :  { %8424 = vmatmul.mubr.msk.f32.gmra.mrb[14].mxu0 %vm653_vm2, %v18439_v6 }
 0xe49   :  { %6577 = vmatprep.mubr.f32.mxu0 %v18415_v12 }
 0xe4c   :  { %8425 = vmatmul.mubr.msk.f32.gmra.mrb[16].mxu0 %vm653_vm2, %v18440_v63 }
 0xe4d   :  { %6583 = vmatprep.mubr.f32.mxu0 %v18415_v12 }
 0xe50   :  { %8426 = vmatmul.mubr.msk.f32.gmra.mrb[18].mxu0 %vm653_vm2, %v18441_v51 }
 0xe51   :  { %6589 = vmatprep.mubr.f32.mxu0 %v18415_v12 }
 0xe54   :  { %8427 = vmatmul.mubr.msk.f32.gmra.mrb[20].mxu0 %vm653_vm2, %v18442_v30 }
 0xe55   :  { %6595 = vmatprep.mubr.f32.mxu0 %v18415_v12 }
 0xe58   :  { %8428 = vmatmul.mubr.msk.f32.gmra.mrb[22].mxu0 %vm653_vm2, %v18443_v42 }
 0xe59   :  { %6601 = vmatprep.mubr.f32.mxu0 %v18415_v12 }
 0xe5c   :  { %8429 = vmatmul.mubr.msk.f32.gmra.mrb[24].mxu0 %vm653_vm2, %v18444_v46 }
 0xe5d   :  { %6607 = vmatprep.mubr.f32.mxu0 %v18415_v12 }
 0xe60   :  { %8430 = vmatmul.mubr.msk.f32.gmra.mrb[26].mxu0 %vm653_vm2, %v18445_v32 }
 0xe61   :  { %6613 = vmatprep.mubr.f32.mxu0 %v18415_v12 }
 0xe64   :  { %8431 = vmatmul.mubr.msk.f32.gmra.mrb[28].mxu0 %vm653_vm2, %v18446_v48 }
 0xe65   :  { %6619 = vmatprep.mubr.f32.mxu0 %v18415_v12 }
 0xe68   :  { %8432 = vmatmul.mubr.msk.f32.gmra.mrb[30].mxu0 %vm653_vm2, %v18447_v40 }
 0xe69   :  { %7998 = vmatprep.mubr.f32.mxu0 %v18448_v55 }
 0xebb   :  { %v6192_v39 = vpop.f32.mrb[222].mxu0 }
 0xebc   :  { %v15633_v45 = vmul.f32 %v9803_v16, %v6192_v39  ;;  %v6194_v36 = vpop.f32.mrb[223].mxu0 }
 0xebd   :  { %v15635_v34 = vmul.f32 %v9805_v4, %v6194_v36 }
 0xebe   :  { %18449 = vst [vmem:[#allocation160_spill] sm:$0xff] %v15633_v45 }
 0xebf   :  { %18450 = vst [vmem:[#allocation162_spill] sm:$0xff] %v15635_v34  ;;  %v6435_v44 = vpop.f32.mrb[224].mxu0 }
 0xec0   :  { %v6437_v49 = vpop.f32.mrb[225].mxu0  ;;  %v15641_v18 = vmul.f32 0.35355338, %v6435_v44 }
 0xec1   :  { %v15645_v23 = vmul.f32 0.35355338, %v6437_v49 }
 0xec3   :  { %v6441_v22 = vpop.f32.mrb[226].mxu0 }
 0xec4   :  { %v6443_v8 = vpop.f32.mrb[227].mxu0  ;;  %v15653_v1 = vmul.f32 0.35355338, %v6441_v22 }
 0xec5   :  { %v15657_v41 = vmul.f32 0.35355338, %v6443_v8 }
 0xec7   :  { %v6447_v3 = vpop.f32.mrb[228].mxu0 }
 0xec8   :  { %v15643_v61 = vmul.f32 0.35355338, %v6447_v3  ;;  %v6449_v50 = vpop.f32.mrb[229].mxu0 }
 0xec9   :  { %v15647_v54 = vmul.f32 0.35355338, %v6449_v50 }
 0xeca   :  { %v6690_v7 = vmax.f32 %v15641_v18, %v15643_v61 }
 0xecb   :  { %v6727_v25 = vmax.f32 %v15645_v23, %v15647_v54  ;;  %v6453_v58 = vpop.f32.mrb[230].mxu0 }
 0xecc   :  { %v15655_v20 = vmul.f32 0.35355338, %v6453_v58  ;;  %v6455_v27 = vpop.f32.mrb[231].mxu0 }
 0xecd   :  { %v15659_v11 = vmul.f32 0.35355338, %v6455_v27 }
 0xece   :  { %v6691_v53 = vmax.f32 %v15653_v1, %v15655_v20 }
 0xecf   :  { %v6728_v52 = vmax.f32 %v15657_v41, %v15659_v11  ;;  %v6459_v29 = vpop.f32.mrb[232].mxu0 }
 0xed0   :  { %v15665_v56 = vmul.f32 0.35355338, %v6459_v29  ;;  %v6461_v60 = vpop.f32.mrb[233].mxu0 }
 0xed1   :  { %v15667_v17 = vmul.f32 0.35355338, %v6461_v60 }
 0xed2   :  { %v6692_v62 = vmax.f32 %v6690_v7, %v15665_v56 }
 0xed3   :  { %v6729_v33 = vmax.f32 %v6727_v25, %v15667_v17  ;;  %v6465_v37 = vpop.f32.mrb[234].mxu0 }
 0xed4   :  { %v15671_v15 = vmul.f32 0.35355338, %v6465_v37  ;;  %v6467_v21 = vpop.f32.mrb[235].mxu0 }
 0xed5   :  { %v15673_v38 = vmul.f32 0.35355338, %v6467_v21 }
 0xed6   :  { %v6693_v14 = vmax.f32 %v6691_v53, %v15671_v15 }
 0xed7   :  { %v6730_v6 = vmax.f32 %v6728_v52, %v15673_v38  ;;  %v6471_v63 = vpop.f32.mrb[236].mxu0 }
 0xed8   :  { %v15677_v51 = vmul.f32 0.35355338, %v6471_v63  ;;  %v6473_v30 = vpop.f32.mrb[237].mxu0 }
 0xed9   :  { %v15679_v42 = vmul.f32 0.35355338, %v6473_v30 }
 0xeda   :  { %v6694_v46 = vmax.f32 %v6692_v62, %v15677_v51 }
 0xedb   :  { %v6731_v32 = vmax.f32 %v6729_v33, %v15679_v42  ;;  %v6477_v48 = vpop.f32.mrb[238].mxu0 }
 0xedc   :  { %v15683_v40 = vmul.f32 0.35355338, %v6477_v48  ;;  %v6479_v55 = vpop.f32.mrb[239].mxu0 }
 0xedd   :  { %v15685_v47 = vmul.f32 0.35355338, %v6479_v55 }
 0xede   :  { %v6695_v10 = vmax.f32 %v6693_v14, %v15683_v40 }
 0xedf   :  { %v6732_v31 = vmax.f32 %v6730_v6, %v15685_v47  ;;  %v6483_v2 = vpop.f32.mrb[240].mxu0 }
 0xee0   :  { %v15689_v13 = vmul.f32 0.35355338, %v6483_v2  ;;  %v6485_v28 = vpop.f32.mrb[241].mxu0 }
 0xee1   :  { %v15691_v0 = vmul.f32 0.35355338, %v6485_v28 }
 0xee2   :  { %v6696_v43 = vmax.f32 %v6694_v46, %v15689_v13 }
 0xee3   :  { %v6733_v19 = vmax.f32 %v6731_v32, %v15691_v0  ;;  %v6489_v5 = vpop.f32.mrb[242].mxu0 }
 0xee4   :  { %v15695_v35 = vmul.f32 0.35355338, %v6489_v5  ;;  %v6491_v26 = vpop.f32.mrb[243].mxu0 }
 0xee5   :  { %v15697_v16 = vmul.f32 0.35355338, %v6491_v26 }
 0xee6   :  { %v6697_v39 = vmax.f32 %v6695_v10, %v15695_v35 }
 0xee7   :  { %v6734_v4 = vmax.f32 %v6732_v31, %v15697_v16  ;;  %v6495_v36 = vpop.f32.mrb[244].mxu0 }
 0xee8   :  { %v15701_v44 = vmul.f32 0.35355338, %v6495_v36  ;;  %v6497_v49 = vpop.f32.mrb[245].mxu0 }
 0xee9   :  { %v15703_v22 = vmul.f32 0.35355338, %v6497_v49 }
 0xeea   :  { %v6698_v8 = vmax.f32 %v6696_v43, %v15701_v44 }
 0xeeb   :  { %v6735_v3 = vmax.f32 %v6733_v19, %v15703_v22  ;;  %v6501_v50 = vpop.f32.mrb[246].mxu0 }
 0xeec   :  { %v15707_v7 = vmul.f32 0.35355338, %v6501_v50  ;;  %v6503_v25 = vpop.f32.mrb[247].mxu0 }
 0xeed   :  { %v15709_v58 = vmul.f32 0.35355338, %v6503_v25 }
 0xeee   :  { %v6699_v27 = vmax.f32 %v6697_v39, %v15707_v7 }
 0xeef   :  { %18453 = vst [vmem:[#allocation163_spill] sm:$0xff] %v15709_v58  ;;  %v6736_v53 = vmax.f32 %v6734_v4, %v15709_v58  ;;  %v6507_v52 = vpop.f32.mrb[248].mxu0 }
 0xef0   :  { %v15713_v29 = vmul.f32 0.35355338, %v6507_v52  ;;  %v6509_v60 = vpop.f32.mrb[249].mxu0 }
 0xef1   :  { %v15715_v62 = vmul.f32 0.35355338, %v6509_v60 }
 0xef2   :  { %v6700_v33 = vmax.f32 %v6698_v8, %v15713_v29 }
 0xef3   :  { %18454 = vst [vmem:[#allocation88_spill] sm:$0xff] %v15715_v62  ;;  %v6737_v37 = vmax.f32 %v6735_v3, %v15715_v62  ;;  %v6513_v21 = vpop.f32.mrb[250].mxu0 }
 0xef4   :  { %v15719_v14 = vmul.f32 0.35355338, %v6513_v21  ;;  %v6515_v6 = vpop.f32.mrb[251].mxu0 }
 0xef5   :  { %v15721_v63 = vmul.f32 0.35355338, %v6515_v6 }
 0xef6   :  { %v6701_v30 = vmax.f32 %v6699_v27, %v15719_v14 }
 0xef7   :  { %18455 = vst [vmem:[#allocation41_spill] sm:$0xff] %v15721_v63  ;;  %v6738_v46 = vmax.f32 %v6736_v53, %v15721_v63  ;;  %v6519_v32 = vpop.f32.mrb[252].mxu0 }
 0xef8   :  { %v15725_v48 = vmul.f32 0.35355338, %v6519_v32  ;;  %v6521_v55 = vpop.f32.mrb[253].mxu0 }
 0xef9   :  { %v15727_v10 = vmul.f32 0.35355338, %v6521_v55 }
 0xefa   :  { %v6702_v31 = vmax.f32 %v6700_v33, %v15725_v48 }
 0xefb   :  { %18456 = vst [vmem:[#allocation165_spill] sm:$0xff] %v15727_v10  ;;  %v6739_v2 = vmax.f32 %v6737_v37, %v15727_v10  ;;  %v6525_v28 = vpop.f32.mrb[254].mxu0 }
 0xefc   :  { %v15731_v43 = vmul.f32 0.35355338, %v6525_v28  ;;  %v6527_v19 = vpop.f32.mrb[255].mxu0 }
 0xefd   :  { %v15733_v5 = vmul.f32 0.35355338, %v6527_v19 }
 0xefe   :  { %v6703_v26 = vmax.f32 %v6701_v30, %v15731_v43 }
 0xeff   :  { %18457 = vst [vmem:[#allocation166_spill] sm:$0xff] %v15733_v5  ;;  %v6740_v39 = vmax.f32 %v6738_v46, %v15733_v5  ;;  %v6531_v4 = vpop.f32.mrb[0].mxu0 }
 0xf00   :  { %v15737_v36 = vmul.f32 0.35355338, %v6531_v4  ;;  %v6533_v49 = vpop.f32.mrb[1].mxu0 }
 0xf01   :  { %v15739_v8 = vmul.f32 0.35355338, %v6533_v49 }
 0xf02   :  { %v6704_v3 = vmax.f32 %v6702_v31, %v15737_v36 }
 0xf03   :  { %18458 = vst [vmem:[#allocation87_spill] sm:$0xff] %v15739_v8  ;;  %v6741_v50 = vmax.f32 %v6739_v2, %v15739_v8  ;;  %v6537_v25 = vpop.f32.mrb[2].mxu0 }
 0xf04   :  { %v15743_v27 = vmul.f32 0.35355338, %v6537_v25  ;;  %v6539_v53 = vpop.f32.mrb[3].mxu0 }
 0xf05   :  { %v15745_v52 = vmul.f32 0.35355338, %v6539_v53 }
 0xf06   :  { %v6705_v60 = vmax.f32 %v6703_v26, %v15743_v27 }
 0xf07   :  { %18459 = vst [vmem:[#allocation29_spill] sm:$0xff] %v15745_v52  ;;  %v6742_v33 = vmax.f32 %v6740_v39, %v15745_v52  ;;  %v6543_v37 = vpop.f32.mrb[4].mxu0 }
 0xf08   :  { %v15749_v21 = vmul.f32 0.35355338, %v6543_v37  ;;  %v6545_v6 = vpop.f32.mrb[5].mxu0 }
 0xf09   :  { %v15751_v30 = vmul.f32 0.35355338, %v6545_v6 }
 0xf0a   :  { %v6706_v46 = vmax.f32 %v6704_v3, %v15749_v21 }
 0xf0b   :  { %18460 = vst [vmem:[#allocation45_spill] sm:$0xff] %v15751_v30  ;;  %v6743_v32 = vmax.f32 %v6741_v50, %v15751_v30  ;;  %v6549_v55 = vpop.f32.mrb[6].mxu0 }
 0xf0c   :  { %v15755_v31 = vmul.f32 0.35355338, %v6549_v55  ;;  %v6551_v2 = vpop.f32.mrb[7].mxu0 }
 0xf0d   :  { %v15757_v28 = vmul.f32 0.35355338, %v6551_v2 }
 0xf0e   :  { %v6707_v19 = vmax.f32 %v6705_v60, %v15755_v31 }
 0xf0f   :  { %18461 = vst [vmem:[#allocation27_spill] sm:$0xff] %v15757_v28  ;;  %v6744_v26 = vmax.f32 %v6742_v33, %v15757_v28  ;;  %v6555_v39 = vpop.f32.mrb[8].mxu0 }
 0xf10   :  { %v6557_v4 = vpop.f32.mrb[9].mxu0  ;;  %v15764_v3 = vmul.f32 0.35355338, %v6555_v39 }
 0xf11   :  { %v15761_v49 = vmul.f32 0.35355338, %v6557_v4 }
 0xf12   :  { %v6708_v33 = vmax.f32 %v6706_v46, %v15764_v3 }
 0xf13   :  { %18462 = vst [vmem:[#allocation46_spill] sm:$0xff] %v15761_v49  ;;  %v6745_v25 = vmax.f32 %v6743_v32, %v15761_v49  ;;  %v6561_v53 = vpop.f32.mrb[10].mxu0 }
 0xf14   :  { %v15766_v50 = vmul.f32 0.35355338, %v6561_v53  ;;  %v6563_v37 = vpop.f32.mrb[11].mxu0 }
 0xf15   :  { %v15768_v6 = vmul.f32 0.35355338, %v6563_v37 }
 0xf16   :  { %v6709_v55 = vmax.f32 %v6707_v19, %v15766_v50 }
 0xf17   :  { %18463 = vst [vmem:[#allocation44_spill] sm:$0xff] %v15768_v6  ;;  %v6746_v60 = vmax.f32 %v6744_v26, %v15768_v6  ;;  %v6567_v2 = vpop.f32.mrb[12].mxu0 }
 0xf18   :  { %v15773_v9 = vmul.f32 0.35355338, %v6567_v2  ;;  %v6569_v4 = vpop.f32.mrb[13].mxu0 }
 0xf19   :  { %v15782_v24 = vmul.f32 0.35355338, %v6569_v4 }
 0xf1a   :  { %v6710_v32 = vmax.f32 %v6708_v33, %v15773_v9 }
 0xf1b   :  { %v6573_v59 = vpop.f32.mrb[14].mxu0  ;;  %18464 = vst [vmem:[#allocation30_spill] sm:$0xff] %v15782_v24  ;;  %v6747_v33 = vmax.f32 %v6745_v25, %v15782_v24 }
 0xf1c   :  { %v15776_v39 = vmul.f32 0.35355338, %v6573_v59  ;;  %v6575_v53 = vpop.f32.mrb[15].mxu0 }
 0xf1d   :  { %v15790_v6 = vmul.f32 0.35355338, %v6575_v53 }
 0xf1e   :  { %v6711_v57 = vmax.f32 %v6709_v55, %v15776_v39 }
 0xf1f   :  { %v6579_v37 = vpop.f32.mrb[16].mxu0  ;;  %18466 = vst [vmem:[#allocation42_spill] sm:$0xff] %v15790_v6 }
 0xf20   :  { %v15779_v45 = vmul.f32 0.35355338, %v6579_v37  ;;  %v6581_v19 = vpop.f32.mrb[17].mxu0 }
 0xf21   :  { %v15786_v12 = vmul.f32 0.35355338, %v6581_v19  ;;  %v6748_v19 = vmax.f32 %v6746_v60, %v15790_v6 }
 0xf22   :  { %v6712_v26 = vmax.f32 %v6710_v32, %v15779_v45 }
 0xf23   :  { %v6585_v46 = vpop.f32.mrb[18].mxu0  ;;  %18465 = vst [vmem:[#allocation40_spill] sm:$0xff] %v15786_v12  ;;  %v6749_v32 = vmax.f32 %v6747_v33, %v15786_v12 }
 0xf24   :  { %v15784_v2 = vmul.f32 0.35355338, %v6585_v46  ;;  %v6587_v34 = vpop.f32.mrb[19].mxu0 }
 0xf25   :  { %v15795_v4 = vmul.f32 0.35355338, %v6587_v34 }
 0xf26   :  { %v6713_v59 = vmax.f32 %v6711_v57, %v15784_v2 }
 0xf27   :  { %v6591_v55 = vpop.f32.mrb[20].mxu0  ;;  %18467 = vst [vmem:[#allocation28_spill] sm:$0xff] %v15795_v4 }
 0xf28   :  { %v15792_v37 = vmul.f32 0.35355338, %v6591_v55  ;;  %v6593_v49 = vpop.f32.mrb[21].mxu0  ;;  %v6750_v55 = vmax.f32 %v6748_v19, %v15795_v4 }
 0xf29   :  { %v15797_v28 = vmul.f32 0.35355338, %v6593_v49 }
 0xf2a   :  { %v6714_v46 = vmax.f32 %v6712_v26, %v15792_v37 }
 0xf2b   :  { %18468 = vst [vmem:[#allocation64_spill] sm:$0xff] %v15797_v28  ;;  %v6751_v57 = vmax.f32 %v6749_v32, %v15797_v28  ;;  %v6597_v30 = vpop.f32.mrb[22].mxu0 }
 0xf2c   :  { %v15802_v25 = vmul.f32 0.35355338, %v6597_v30  ;;  %v6599_v53 = vpop.f32.mrb[23].mxu0 }
 0xf2d   :  { %v15805_v24 = vmul.f32 0.35355338, %v6599_v53 }
 0xf2e   :  { %v6715_v33 = vmax.f32 %v6713_v59, %v15802_v25 }
 0xf2f   :  { %18469 = vst [vmem:[#allocation153_spill] sm:$0xff] %v15805_v24  ;;  %v6752_v34 = vmax.f32 %v6750_v55, %v15805_v24  ;;  %v6603_v49 = vpop.f32.mrb[24].mxu0 }
 0xf30   :  { %v15809_v12 = vmul.f32 0.35355338, %v6603_v49  ;;  %v6605_v26 = vpop.f32.mrb[25].mxu0 }
 0xf31   :  { %v15811_v52 = vmul.f32 0.35355338, %v6605_v26 }
 0xf32   :  { %v6716_v60 = vmax.f32 %v6714_v46, %v15809_v12 }
 0xf33   :  { %18470 = vst [vmem:[#allocation155_spill] sm:$0xff] %v15811_v52  ;;  %v6753_v30 = vmax.f32 %v6751_v57, %v15811_v52  ;;  %v6609_v32 = vpop.f32.mrb[26].mxu0 }
 0xf34   :  { %v15815_v6 = vmul.f32 0.35355338, %v6609_v32  ;;  %v6611_v19 = vpop.f32.mrb[27].mxu0 }
 0xf35   :  { %v15817_v53 = vmul.f32 0.35355338, %v6611_v19 }
 0xf36   :  { %v6717_v59 = vmax.f32 %v6715_v33, %v15815_v6 }
 0xf37   :  { %18471 = vst [vmem:[#allocation91_spill] sm:$0xff] %v15817_v53  ;;  %v6754_v55 = vmax.f32 %v6752_v34, %v15817_v53  ;;  %v6615_v4 = vpop.f32.mrb[28].mxu0 }
 0xf38   :  { %v15821_v49 = vmul.f32 0.35355338, %v6615_v4  ;;  %v6617_v24 = vpop.f32.mrb[29].mxu0 }
 0xf39   :  { %v15823_v26 = vmul.f32 0.35355338, %v6617_v24 }
 0xf3a   :  { %v6718_v46 = vmax.f32 %v6716_v60, %v15821_v49 }
 0xf3b   :  { %18472 = vst [vmem:[#allocation93_spill] sm:$0xff] %v15823_v26  ;;  %v6755_v57 = vmax.f32 %v6753_v30, %v15823_v26  ;;  %v6621_v52 = vpop.f32.mrb[30].mxu0 }
 0xf3c   :  { %v15827_v32 = vmul.f32 0.35355338, %v6621_v52  ;;  %v6623_v28 = vpop.f32.mrb[31].mxu0 }
 0xf3d   :  { %v15829_v19 = vmul.f32 0.35355338, %v6623_v28 }
 0xf3e   :  { %v6719_v33 = vmax.f32 %v6717_v59, %v15827_v32 }
 0xf3f   :  { %v6756_v34 = vmax.f32 %v6754_v55, %v15829_v19 }
 0xf40   :  { %v6720_v53 = vmax.f32 %v6718_v46, %v6719_v33 }
 0xf41   :  { %v6757_v4 = vmax.f32 %v6755_v57, %v6756_v34 }
 0xf42   :  { %v6721_v8 = vrot.slane %v6720_v53, 4 }
 0xf43   :  { %v6758_v5 = vrot.slane %v6757_v4, 4 }
 0xf44   :  { %v6722_v24 = vmax.f32 %v6720_v53, %v6721_v8 }
 0xf45   :  { %v6759_v10 = vmax.f32 %v6757_v4, %v6758_v5 }
 0xf46   :  { %v6723_v63 = vrot.slane %v6722_v24, 2 }
 0xf47   :  { %v6760_v60 = vrot.slane %v6759_v10, 2 }
 0xf48   :  { %v6724_v62 = vmax.f32 %v6722_v24, %v6723_v63 }
 0xf49   :  { %v6761_v30 = vmax.f32 %v6759_v10, %v6760_v60 }
 0xf4a   :  { %v6725_v26 = vrot.slane %v6724_v62, 1 }
 0xf4b   :  { %v6762_v52 = vrot.slane %v6761_v30, 1 }
 0xf4c   :  { %v15833_v58 = vmax.f32 %v6724_v62, %v6725_v26 }
 0xf4d   :  { %v15835_v28 = vmax.f32 %v6761_v30, %v6762_v52 }
 0xf4e   :  { %v6764_v59 = vsub.f32 %v15641_v18, %v15833_v58  ;;  %v6766_v55 = vsub.f32 %v15653_v1, %v15833_v58  ;;  %v6768_v8 = vsub.f32 %v15643_v61, %v15833_v58  ;;  %v6770_v5 = vsub.f32 %v15655_v20, %v15833_v58 }
 0xf4f   :  { %v6772_v63 = vsub.f32 %v15665_v56, %v15833_v58  ;;  %v6774_v62 = vsub.f32 %v15671_v15, %v15833_v58  ;;  %v6776_v10 = vsub.f32 %v15677_v51, %v15833_v58  ;;  %v6778_v18 = vsub.f32 %v15683_v40, %v15833_v58 }
 0xf50   :  { %v6780_v1 = vsub.f32 %v15689_v13, %v15833_v58  ;;  %v6782_v61 = vsub.f32 %v15695_v35, %v15833_v58  ;;  %v6784_v20 = vsub.f32 %v15701_v44, %v15833_v58  ;;  %v6786_v56 = vsub.f32 %v15707_v7, %v15833_v58 }
 0xf51   :  { %v6788_v15 = vsub.f32 %v15713_v29, %v15833_v58  ;;  %v6790_v51 = vsub.f32 %v15719_v14, %v15833_v58  ;;  %v6792_v40 = vsub.f32 %v15725_v48, %v15833_v58  ;;  %v6794_v13 = vsub.f32 %v15731_v43, %v15833_v58 }
 0xf52   :  { %v6796_v35 = vsub.f32 %v15737_v36, %v15833_v58  ;;  %v6798_v44 = vsub.f32 %v15743_v27, %v15833_v58  ;;  %v6800_v7 = vsub.f32 %v15749_v21, %v15833_v58  ;;  %v6802_v29 = vsub.f32 %v15755_v31, %v15833_v58 }
 0xf53   :  { %v6806_v14 = vsub.f32 %v15766_v50, %v15833_v58  ;;  %v6808_v48 = vsub.f32 %v15773_v9, %v15833_v58  ;;  %v6810_v43 = vsub.f32 %v15776_v39, %v15833_v58  ;;  %v6812_v36 = vsub.f32 %v15779_v45, %v15833_v58  ;;  %v18487_v39 = vld [vmem:[#allocation91_spill] sm:$0xff] }
 0xf54   :  { %v6814_v27 = vsub.f32 %v15784_v2, %v15833_v58  ;;  %v6816_v21 = vsub.f32 %v15792_v37, %v15833_v58  ;;  %v6828_v33 = vmul.f32 1.442695, %v6764_v59  ;;  %v6832_v34 = vmul.f32 1.442695, %v6766_v55 }
 0xf55   :  { %v6836_v4 = vmul.f32 1.442695, %v6768_v8  ;;  %v6840_v60 = vmul.f32 1.442695, %v6770_v5  ;;  %v6844_v52 = vmul.f32 1.442695, %v6772_v63  ;;  %v6804_v59 = vsub.f32 %v15764_v3, %v15833_v58 }
 0xf56   :  { %9806 = vpow2.f32 %v6828_v33  ;;  %v6848_v26 = vmul.f32 1.442695, %v6774_v62  ;;  %v6852_v53 = vmul.f32 1.442695, %v6776_v10  ;;  %v6856_v46 = vmul.f32 1.442695, %v6778_v18 }
 0xf57   :  { %9808 = vpow2.f32 %v6832_v34  ;;  %v6860_v55 = vmul.f32 1.442695, %v6780_v1  ;;  %v6864_v8 = vmul.f32 1.442695, %v6782_v61  ;;  %v6868_v24 = vmul.f32 1.442695, %v6784_v20 }
 0xf58   :  { %9810 = vpow2.f32 %v6836_v4  ;;  %v6872_v5 = vmul.f32 1.442695, %v6786_v56  ;;  %v6876_v57 = vmul.f32 1.442695, %v6788_v15  ;;  %v6880_v30 = vmul.f32 1.442695, %v6790_v51 }
 0xf59   :  { %9812 = vpow2.f32 %v6840_v60  ;;  %v6884_v33 = vmul.f32 1.442695, %v6792_v40  ;;  %v6888_v63 = vmul.f32 1.442695, %v6794_v13  ;;  %v6892_v62 = vmul.f32 1.442695, %v6796_v35 }
 0xf5a   :  { %9814 = vpow2.f32 %v6844_v52  ;;  %v6896_v34 = vmul.f32 1.442695, %v6798_v44  ;;  %v6900_v10 = vmul.f32 1.442695, %v6800_v7  ;;  %v6904_v18 = vmul.f32 1.442695, %v6802_v29 }
 0xf5b   :  { %9816 = vpow2.f32 %v6848_v26  ;;  %v18473_v7 = vld [vmem:[#allocation163_spill] sm:$0xff]  ;;  %v18479_v40 = vld [vmem:[#allocation29_spill] sm:$0xff]  ;;  %v18482_v20 = vld [vmem:[#allocation46_spill] sm:$0xff]  ;;  %v6916_v44 = vmul.f32 1.442695, %v6808_v48  ;;  %v18490_v2 = vsub.f32 %v15809_v12, %v15833_v58 }
 0xf5c   :  { %9818 = vpow2.f32 %v6852_v53  ;;  %v18480_v51 = vld [vmem:[#allocation45_spill] sm:$0xff]  ;;  %v18483_v61 = vld [vmem:[#allocation44_spill] sm:$0xff] }
 0xf5d   :  { %9820 = vpow2.f32 %v6856_v46  ;;  %v18474_v46 = vld [vmem:[#allocation88_spill] sm:$0xff] }
 0xf5e   :  { %9822 = vpow2.f32 %v6860_v55  ;;  %v18476_v55 = vld [vmem:[#allocation165_spill] sm:$0xff] }
 0xf5f   :  { %9824 = vpow2.f32 %v6864_v8  ;;  %v18481_v8 = vld [vmem:[#allocation27_spill] sm:$0xff] }
 0xf60   :  { %v15913_v56 = vpop.eup %9806  ;;  %9826 = vpow2.f32 %v6868_v24  ;;  %v18475_v24 = vld [vmem:[#allocation41_spill] sm:$0xff] }
 0xf61   :  { %v15921_v13 = vpop.eup %9808  ;;  %9828 = vpow2.f32 %v6872_v5  ;;  %v18477_v5 = vld [vmem:[#allocation166_spill] sm:$0xff] }
 0xf62   :  { %v15929_v53 = vpop.eup %9810  ;;  %9830 = vpow2.f32 %v6876_v57  ;;  %v6956_v26 = vadd.f32 %v15921_v13, %v15913_v56  ;;  %v18478_v57 = vld [vmem:[#allocation87_spill] sm:$0xff] }
 0xf63   :  { %v15937_v52 = vpop.eup %9812  ;;  %9832 = vpow2.f32 %v6880_v30  ;;  %v6912_v30 = vmul.f32 1.442695, %v6806_v14  ;;  %v18485_v14 = vld [vmem:[#allocation153_spill] sm:$0xff] }
 0xf64   :  { %v15945_v35 = vpop.eup %9814  ;;  %9834 = vpow2.f32 %v6884_v33  ;;  %v6957_v4 = vadd.f32 %v15929_v53, %v6956_v26  ;;  %v6908_v26 = vmul.f32 1.442695, %v6804_v59  ;;  %v6920_v33 = vmul.f32 1.442695, %v6810_v43  ;;  %v18488_v43 = vld [vmem:[#allocation93_spill] sm:$0xff] }
 0xf65   :  { %v15952_v15 = vpop.eup %9816  ;;  %9836 = vpow2.f32 %v6888_v63 }
 0xf66   :  { %v15960_v1 = vpop.eup %9818  ;;  %9838 = vpow2.f32 %v6892_v62  ;;  %v6958_v60 = vadd.f32 %v15937_v52, %v6957_v4  ;;  %v18484_v62 = vld [vmem:[#allocation64_spill] sm:$0xff] }
 0xf67   :  { %v15966_v63 = vpop.eup %9820  ;;  %9840 = vpow2.f32 %v6896_v34  ;;  %v18486_v34 = vld [vmem:[#allocation155_spill] sm:$0xff] }
 0xf68   :  { %v15976_v29 = vpop.eup %9822  ;;  %9842 = vpow2.f32 %v6900_v10  ;;  %v6959_v50 = vadd.f32 %v15945_v35, %v6958_v60  ;;  %v6924_v60 = vmul.f32 1.442695, %v6812_v36  ;;  %v18489_v36 = vsub.f32 %v15802_v25, %v15833_v58 }
 0xf69   :  { %v15983_v9 = vpop.eup %9824  ;;  %9844 = vpow2.f32 %v6904_v18  ;;  %v6928_v18 = vmul.f32 1.442695, %v6814_v27  ;;  %v6940_v27 = vmul.f32 1.442695, %v18490_v2  ;;  %v18492_v25 = vsub.f32 %v15821_v49, %v15833_v58 }
 0xf6a   :  { %v15991_v31 = vpop.eup %9826  ;;  %9846 = vpow2.f32 %v6908_v26  ;;  %v6960_v3 = vadd.f32 %v15952_v15, %v6959_v50  ;;  %v6932_v26 = vmul.f32 1.442695, %v6816_v21  ;;  %v18491_v21 = vsub.f32 %v15815_v6, %v15833_v58 }
 0xf6b   :  { %v15997_v4 = vpop.eup %9828  ;;  %9848 = vpow2.f32 %v6912_v30  ;;  %v6936_v30 = vmul.f32 1.442695, %v18489_v36 }
 0xf6c   :  { %v16002_v59 = vpop.eup %9830  ;;  %9850 = vpow2.f32 %v6916_v44  ;;  %v6961_v10 = vadd.f32 %v15960_v1, %v6960_v3  ;;  %v6944_v3 = vmul.f32 1.442695, %v18491_v21 }
 0xf6d   :  { %v16008_v45 = vpop.eup %9832  ;;  %9852 = vpow2.f32 %v6920_v33 }
 0xf6e   :  { %v16013_v50 = vpop.eup %9834  ;;  %9854 = vpow2.f32 %v6924_v60  ;;  %v6962_v44 = vadd.f32 %v15966_v63, %v6961_v10  ;;  %v6948_v60 = vmul.f32 1.442695, %v18492_v25  ;;  %v18493_v10 = vsub.f32 %v15827_v32, %v15833_v58 }
 0xf6f   :  { %v16019_v37 = vpop.eup %9836  ;;  %9856 = vpow2.f32 %v6928_v18  ;;  %v18496_v58 = vsub.f32 %v15647_v54, %v15835_v28  ;;  %v18499_v54 = vsub.f32 %v15673_v38, %v15835_v28  ;;  %v18503_v38 = vsub.f32 %v15697_v16, %v15835_v28 }
 0xf70   :  { %v16024_v33 = vpop.eup %9838  ;;  %9858 = vpow2.f32 %v6932_v26  ;;  %v6963_v36 = vadd.f32 %v15976_v29, %v6962_v44  ;;  %v6952_v18 = vmul.f32 1.442695, %v18493_v10  ;;  %v18494_v26 = vsub.f32 %v15645_v23, %v15835_v28 }
 0xf71   :  { %v16030_v12 = vpop.eup %9840  ;;  %9860 = vpow2.f32 %v6936_v30  ;;  %v18495_v44 = vsub.f32 %v15657_v41, %v15835_v28  ;;  %v6838_v32 = vmul.f32 1.442695, %v18496_v58  ;;  %v18497_v23 = vsub.f32 %v15659_v11, %v15835_v28 }
 0xf72   :  { %v16035_v2 = vpop.eup %9842  ;;  %9862 = vpow2.f32 %v6940_v27  ;;  %v6964_v6 = vadd.f32 %v15983_v9, %v6963_v36  ;;  %v6830_v21 = vmul.f32 1.442695, %v18494_v26  ;;  %v6850_v41 = vmul.f32 1.442695, %v18499_v54 }
 0xf73   :  { %v16041_v49 = vpop.eup %9844  ;;  %9864 = vpow2.f32 %v6944_v3  ;;  %v6834_v30 = vmul.f32 1.442695, %v18495_v44  ;;  %v6842_v36 = vmul.f32 1.442695, %v18497_v23  ;;  %v18498_v3 = vsub.f32 %v15667_v17, %v15835_v28 }
 0xf74   :  { %v16049_v25 = vpop.eup %9846  ;;  %9866 = vpow2.f32 %v6948_v60  ;;  %v6965_v27 = vadd.f32 %v15991_v31, %v6964_v6  ;;  %v18500_v60 = vsub.f32 %v15679_v42, %v15835_v28  ;;  %v18501_v6 = vsub.f32 %v15685_v47, %v15835_v28 }
 0xf75   :  { %v6846_v10 = vmul.f32 1.442695, %v18498_v3  ;;  %v16058_v26 = vpop.eup %9848  ;;  %9868 = vpow2.f32 %v6952_v18  ;;  %v18502_v18 = vsub.f32 %v15691_v0, %v15835_v28  ;;  %v6866_v3 = vmul.f32 1.442695, %v18503_v38 }
 0xf76   :  { %v6854_v44 = vmul.f32 1.442695, %v18500_v60  ;;  %v6858_v11 = vmul.f32 1.442695, %v18501_v6  ;;  %v16069_v58 = vpop.eup %9850  ;;  %v6966_v17 = vadd.f32 %v15997_v4, %v6965_v27  ;;  %9870 = vpow2.f32 %v6830_v21 }
 0xf77   :  { %v6862_v23 = vmul.f32 1.442695, %v18502_v18  ;;  %v16078_v54 = vpop.eup %9852  ;;  %9872 = vpow2.f32 %v6834_v30  ;;  %v18505_v38 = vsub.f32 %v18473_v7, %v15835_v28 }
 0xf78   :  { %v16086_v27 = vpop.eup %9854  ;;  %v6967_v0 = vadd.f32 %v16002_v59, %v6966_v17  ;;  %9874 = vpow2.f32 %v6838_v32 }
 0xf79   :  { %v16093_v60 = vpop.eup %9856  ;;  %9876 = vpow2.f32 %v6842_v36  ;;  %v18504_v36 = vsub.f32 %v15703_v22, %v15835_v28  ;;  %v6874_v18 = vmul.f32 1.442695, %v18505_v38 }
 0xf7a   :  { %v16101_v17 = vpop.eup %9858  ;;  %v6968_v32 = vadd.f32 %v16008_v45, %v6967_v0  ;;  %9878 = vpow2.f32 %v6846_v10 }
 0xf7b   :  { %v16108_v16 = vpop.eup %9860  ;;  %9880 = vpow2.f32 %v6850_v41  ;;  %v6870_v30 = vmul.f32 1.442695, %v18504_v36 }
 0xf7c   :  { %v16116_v0 = vpop.eup %9862  ;;  %v6969_v10 = vadd.f32 %v16013_v50, %v6968_v32  ;;  %9882 = vpow2.f32 %v6854_v44  ;;  %v18506_v44 = vsub.f32 %v18474_v46, %v15835_v28  ;;  %v18511_v46 = vsub.f32 %v18479_v40, %v15835_v28 }
 0xf7d   :  { %v16124_v48 = vpop.eup %9864  ;;  %9884 = vpow2.f32 %v6858_v11  ;;  %v18507_v11 = vsub.f32 %v18475_v24, %v15835_v28  ;;  %v18510_v24 = vsub.f32 %v18478_v57, %v15835_v28  ;;  %v18514_v40 = vsub.f32 %v18482_v20, %v15835_v28 }
 0xf7e   :  { %v16129_v6 = vpop.eup %9866  ;;  %v6970_v21 = vadd.f32 %v16019_v37, %v6969_v10  ;;  %9886 = vpow2.f32 %v6862_v23  ;;  %v6878_v22 = vmul.f32 1.442695, %v18506_v44  ;;  %v18508_v23 = vsub.f32 %v18476_v55, %v15835_v28 }
 0xf7f   :  { %v16137_v36 = vpop.eup %9868  ;;  %9888 = vpow2.f32 %v6866_v3  ;;  %v6882_v7 = vmul.f32 1.442695, %v18507_v11  ;;  %v18509_v3 = vsub.f32 %v18477_v5, %v15835_v28  ;;  %v6894_v11 = vmul.f32 1.442695, %v18510_v24 }
 0xf80   :  { %v9871_v38 = vpop.eup %9870  ;;  %v6971_v41 = vadd.f32 %v16024_v33, %v6970_v21  ;;  %9890 = vpow2.f32 %v6870_v30  ;;  %v6886_v10 = vmul.f32 1.442695, %v18508_v23  ;;  %v18512_v5 = vsub.f32 %v18480_v51, %v15835_v28 }
 0xf81   :  { %v9873_v44 = vpop.eup %9872  ;;  %9892 = vpow2.f32 %v6874_v18  ;;  %v6890_v32 = vmul.f32 1.442695, %v18509_v3  ;;  %v6898_v18 = vmul.f32 1.442695, %v18511_v46  ;;  %v6910_v46 = vmul.f32 1.442695, %v18514_v40 }
 0xf82   :  { %v9875_v47 = vpop.eup %9874  ;;  %v6972_v21 = vadd.f32 %v16030_v12, %v6971_v41  ;;  %9894 = vpow2.f32 %v6878_v22  ;;  %v6993_v30 = vadd.f32 %v9873_v44, %v9871_v38  ;;  %v8858_v55 = vpack.c.bf16 %v9873_v44, %v9871_v38 }
 0xf83   :  { %v9877_v23 = vpop.eup %9876  ;;  %9896 = vpow2.f32 %v6882_v7  ;;  %v6902_v3 = vmul.f32 1.442695, %v18512_v5  ;;  %v18513_v7 = vsub.f32 %v18481_v8, %v15835_v28  ;;  %v18515_v51 = vpack.c.bf16 %v15921_v13, %v15913_v56 }
 0xf84   :  { %v9879_v42 = vpop.eup %9878  ;;  %v6973_v57 = vadd.f32 %v16035_v2, %v6972_v21  ;;  %9898 = vpow2.f32 %v6886_v10  ;;  %v6994_v24 = vadd.f32 %v9875_v47, %v6993_v30  ;;  %8859 = vmatprep.subr.bf16.mxu1 %v8858_v55  ;;  %v8862_v41 = vpack.c.bf16 %v9877_v23, %v9875_v47 }
 0xf85   :  { %v9881_v22 = vpop.eup %9880  ;;  %9900 = vpow2.f32 %v6890_v32  ;;  %v6906_v38 = vmul.f32 1.442695, %v18513_v7  ;;  %8861 = vmatpush1.bf16.msra.mxu1 %v18515_v51  ;;  %v18516_v8 = vsub.f32 %v18483_v61, %v15835_v28 }
 0xf86   :  { %v9883_v44 = vpop.eup %9882  ;;  %v6974_v10 = vadd.f32 %v16041_v49, %v6973_v57  ;;  %9902 = vpow2.f32 %v6894_v11  ;;  %v6995_v21 = vadd.f32 %v9877_v23, %v6994_v24  ;;  %8863 = vmatprep.subr.bf16.mxu1 %v8862_v41  ;;  %v8866_v47 = vpack.c.bf16 %v9881_v22, %v9879_v42 }
 0xf87   :  { %v9885_v32 = vpop.eup %9884  ;;  %9904 = vpow2.f32 %v6898_v18  ;;  %v6914_v30 = vmul.f32 1.442695, %v18516_v8  ;;  %v18517_v11 = vpack.c.bf16 %v15937_v52, %v15929_v53  ;;  %v18519_v52 = vsub.f32 %v18485_v14, %v15835_v28 }
 0xf88   :  { %v9887_v55 = vpop.eup %9886  ;;  %v6975_v20 = vadd.f32 %v16049_v25, %v6974_v10  ;;  %9906 = vpow2.f32 %v6902_v3  ;;  %v6996_v5 = vadd.f32 %v9879_v42, %v6995_v21  ;;  %v8870_v56 = vpack.c.bf16 %v9885_v32, %v9883_v44 }
 0xf89   :  { %v9889_v13 = vpop.eup %9888  ;;  %9908 = vpow2.f32 %v6906_v38  ;;  %8865 = vmatpush1.bf16.msra.mxu1 %v18517_v11  ;;  %v18518_v42 = vsub.f32 %v18484_v62, %v15835_v28  ;;  %v6938_v51 = vmul.f32 1.442695, %v18519_v52  ;;  %v18521_v21 = vsub.f32 %v18486_v34, %v15835_v28 }
 0xf8a   :  { %v9891_v23 = vpop.eup %9890  ;;  %v6976_v57 = vadd.f32 %v16058_v26, %v6975_v20  ;;  %9910 = vpow2.f32 %v6910_v46  ;;  %v6997_v18 = vadd.f32 %v9881_v22, %v6996_v5  ;;  %8867 = vmatprep.subr.bf16.mxu1 %v8866_v47  ;;  %v8874_v61 = vpack.c.bf16 %v9889_v13, %v9887_v55 }
 0xf8b   :  { %v9893_v24 = vpop.eup %9892  ;;  %9912 = vpow2.f32 %v6914_v30  ;;  %v6934_v7 = vmul.f32 1.442695, %v18518_v42  ;;  %v18520_v22 = vpack.c.bf16 %v15952_v15, %v15945_v35  ;;  %v6942_v62 = vmul.f32 1.442695, %v18521_v21  ;;  %v18528_v21 = vld [vmem:[#allocation42_spill] sm:$0xff] }
 0xf8c   :  { %v9895_v41 = vpop.eup %9894  ;;  %v6977_v3 = vadd.f32 %v16069_v58, %v6976_v57  ;;  %v6998_v38 = vadd.f32 %v9883_v44, %v6997_v18  ;;  %v8878_v40 = vpack.c.bf16 %v9893_v24, %v9891_v23  ;;  %v18522_v14 = vsub.f32 %v18487_v39, %v15835_v28 }
 0xf8d   :  { %v9897_v53 = vpop.eup %9896  ;;  %8869 = vmatpush1.bf16.msra.mxu1 %v18520_v22  ;;  %v18523_v15 = vsub.f32 %v18488_v43, %v15835_v28  ;;  %9914 = vpow2.f32 %v6934_v7  ;;  %v18525_v39 = vpack.c.bf16 %v15966_v63, %v15960_v1  ;;  %v18526_v1 = vpack.c.bf16 %v15983_v9, %v15976_v29 }
 0xf8e   :  { %v16190_v46 = vpop.eup %9898  ;;  %v6978_v10 = vadd.f32 %v16078_v54, %v6977_v3  ;;  %v6999_v47 = vadd.f32 %v9885_v32, %v6998_v38  ;;  %8871 = vmatprep.subr.bf16.mxu1 %v8870_v56  ;;  %v8882_v44 = vpack.c.bf16 %v9897_v53, %v9895_v41  ;;  %v6946_v30 = vmul.f32 1.442695, %v18522_v14  ;;  %v18529_v14 = vld [vmem:[#allocation40_spill] sm:$0xff] }
 0xf8f   :  { %v9901_v8 = vpop.eup %9900  ;;  %v6950_v35 = vmul.f32 1.442695, %v18523_v15  ;;  %9916 = vpow2.f32 %v6938_v51  ;;  %v18524_v56 = vsub.f32 %v15829_v19, %v15835_v28  ;;  %v18530_v29 = vpack.c.bf16 %v15997_v4, %v15991_v31 }
 0xf90   :  { %v16202_v20 = vpop.eup %9902  ;;  %v6979_v5 = vadd.f32 %v16086_v27, %v6978_v10  ;;  %v7000_v11 = vadd.f32 %v9887_v55, %v6999_v47  ;;  %v8886_v34 = vpack.c.bf16 %v9901_v8, %v16190_v46  ;;  %9918 = vpow2.f32 %v6942_v62 }
 0xf91   :  { %v9905_v32 = vpop.eup %9904  ;;  %v6954_v57 = vmul.f32 1.442695, %v18524_v56  ;;  %8873 = vmatpush1.bf16.msra.mxu1 %v18525_v39  ;;  %9920 = vpow2.f32 %v6946_v30  ;;  %v6811_v62 = vsub.f32 %v18528_v21, %v15835_v28  ;;  %v6813_v30 = vsub.f32 %v18529_v14, %v15835_v28 }
 0xf92   :  { %v9907_v43 = vpop.eup %9906  ;;  %v6980_v18 = vadd.f32 %v16093_v60, %v6979_v5  ;;  %v7001_v3 = vadd.f32 %v9889_v13, %v7000_v11  ;;  %8875 = vmatprep.subr.bf16.mxu1 %v8874_v61  ;;  %v8890_v55 = vpack.c.bf16 %v9905_v32, %v16202_v20  ;;  %9922 = vpow2.f32 %v6950_v35  ;;  %v18527_v13 = vld [vmem:[#allocation30_spill] sm:$0xff]  ;;  %v18531_v5 = vld [vmem:[#allocation28_spill] sm:$0xff] }
 0xf93   :  { %v9909_v42 = vpop.eup %9908  ;;  %9924 = vpow2.f32 %v6954_v57  ;;  %v6809_v61 = vsub.f32 %v18527_v13, %v15835_v28  ;;  %v6815_v11 = vsub.f32 %v18531_v5, %v15835_v28  ;;  %v6922_v56 = vmul.f32 1.442695, %v6811_v62  ;;  %v18555_v5 = vld [vmem:[#allocation43_spill] sm:$0xff] }
 0xf94   :  { %v9911_v7 = vpop.eup %9910  ;;  %v6981_v38 = vadd.f32 %v16101_v17, %v6980_v18  ;;  %v7002_v19 = vadd.f32 %v9891_v23, %v7001_v3  ;;  %v8894_v52 = vpack.c.bf16 %v9909_v42, %v9907_v43  ;;  %v6926_v31 = vmul.f32 1.442695, %v6813_v30  ;;  %v18544_v30 = vld [vmem:[#allocation103_spill] sm:$0xff] }
 0xf95   :  { %v9913_v51 = vpop.eup %9912  ;;  %8877 = vmatpush1.bf16.msra.mxu1 %v18526_v1  ;;  %v6918_v35 = vmul.f32 1.442695, %v6809_v61  ;;  %v18532_v4 = vpack.c.bf16 %v16008_v45, %v16002_v59  ;;  %v6930_v1 = vmul.f32 1.442695, %v6815_v11  ;;  %v18533_v13 = vpack.c.bf16 %v16019_v37, %v16013_v50  ;;  %v18556_v11 = vld [vmem:[#allocation100_spill] sm:$0xff] }
 0xf96   :  { %v6982_v63 = vadd.f32 %v16108_v16, %v6981_v38  ;;  %v7003_v22 = vadd.f32 %v9893_v24, %v7002_v19  ;;  %8879 = vmatprep.subr.bf16.mxu1 %v8878_v40  ;;  %v8898_v10 = vpack.c.bf16 %v9913_v51, %v9911_v7  ;;  %v18543_v14 = vpack.c.bf16 %v16137_v36, %v16129_v6 }
 0xf97   :  { %v9915_v9 = vpop.eup %9914  ;;  %9926 = vpow2.f32 %v6918_v35  ;;  %v18552_v35 = vld [vmem:[#allocation106_spill] sm:$0xff] }
 0xf98   :  { %v6983_v23 = vadd.f32 %v16116_v0, %v6982_v63  ;;  %v7004_v47 = vadd.f32 %v9895_v41, %v7003_v22  ;;  %9928 = vpow2.f32 %v6922_v56  ;;  %v18557_v56 = vld [vmem:[#allocation105_spill] sm:$0xff] }
 0xf99   :  { %8881 = vmatpush1.bf16.msra.mxu1 %v18530_v29  ;;  %v9917_v40 = vpop.eup %9916  ;;  %9930 = vpow2.f32 %v6926_v31  ;;  %v18546_v29 = vld [vmem:[#allocation36_spill] sm:$0xff]  ;;  %v18563_v31 = vld [vmem:[#allocation149_spill] sm:$0xff] }
 0xf9a   :  { %v6984_v15 = vadd.f32 %v16124_v48, %v6983_v23  ;;  %v7005_v24 = vadd.f32 %v9897_v53, %v7004_v47  ;;  %8883 = vmatprep.subr.bf16.mxu1 %v8882_v44  ;;  %v9919_v57 = vpop.eup %9918  ;;  %v8910_v18 = vpack.c.bf16 %v9917_v40, %v9915_v9  ;;  %9932 = vpow2.f32 %v6930_v1  ;;  %v18541_v47 = vld [vmem:[#allocation107_spill] sm:$0xff]  ;;  %v18569_v1 = vld [vmem:[#allocation138_spill] sm:$0xff] }
 0xf9b   :  { %v9921_v3 = vpop.eup %9920 }
 0xf9c   :  { %v6985_v41 = vadd.f32 %v16129_v6, %v6984_v15  ;;  %v7006_v39 = vadd.f32 %v16190_v46, %v7005_v24  ;;  %v9923_v38 = vpop.eup %9922  ;;  %v8914_v28 = vpack.c.bf16 %v9921_v3, %v9919_v57  ;;  %v18549_v15 = vld [vmem:[#allocation90_spill] sm:$0xff] }
 0xf9d   :  { %8885 = vmatpush1.bf16.msra.mxu1 %v18532_v4  ;;  %v9925_v19 = vpop.eup %9924  ;;  %v18550_v6 = vld [vmem:[#allocation94_spill] sm:$0xff] }
 0xf9e   :  { %v16238_v53 = vadd.f32 %v16137_v36, %v6985_v41  ;;  %v7007_v44 = vadd.f32 %v9901_v8, %v7006_v39  ;;  %8887 = vmatprep.subr.bf16.mxu1 %v8886_v34  ;;  %v8918_v63 = vpack.c.bf16 %v9925_v19, %v9923_v38  ;;  %v18534_v8 = vpack.c.bf16 %v16030_v12, %v16024_v33  ;;  %v18551_v36 = vld [vmem:[#allocation99_spill] sm:$0xff]  ;;  %v18553_v24 = vld [vmem:[#allocation130_spill] sm:$0xff] }
 0xf9f   :  { %v18559_v41 = vld [vmem:[#allocation115_spill] sm:$0xff]  ;;  %v18560_v39 = vld [vmem:[#allocation122_spill] sm:$0xff] }
 0xfa0   :  { %v7008_v46 = vadd.f32 %v16202_v20, %v7007_v44  ;;  %v18535_v20 = vpack.c.bf16 %v16041_v49, %v16035_v2  ;;  %v18564_v4 = vld [vmem:[#allocation118_spill] sm:$0xff]  ;;  %v18566_v44 = vld [vmem:[#allocation143_spill] sm:$0xff] }
 0xfa1   :  { %8889 = vmatpush1.bf16.msra.mxu1 %v18533_v13  ;;  %v9927_v61 = vpop.eup %9926  ;;  %v18572_v13 = vld [vmem:[#allocation69_spill] sm:$0xff] }
 0xfa2   :  { %v7009_v59 = vadd.f32 %v9905_v32, %v7008_v46  ;;  %8891 = vmatprep.subr.bf16.mxu1 %v8890_v55  ;;  %v9929_v21 = vpop.eup %9928  ;;  %v18570_v46 = vld [vmem:[#allocation135_spill] sm:$0xff] }
 0xfa3   :  { %v9931_v37 = vpop.eup %9930  ;;  %v8902_v55 = vpack.c.bf16 %v9929_v21, %v9927_v61 }
 0xfa4   :  { %v7010_v45 = vadd.f32 %v9907_v43, %v7009_v59  ;;  %v9933_v62 = vpop.eup %9932  ;;  %v18536_v43 = vpack.c.bf16 %v16058_v26, %v16049_v25  ;;  %v18539_v25 = vpack.c.bf16 %v16108_v16, %v16101_v17  ;;  %v18545_v16 = vld [vmem:[#allocation56_spill] sm:$0xff]  ;;  %v18573_v59 = vld [vmem:[#allocation67_spill] sm:$0xff] }
 0xfa5   :  { %8893 = vmatpush1.bf16.msra.mxu1 %v18534_v8  ;;  %v512_v17 = vadd.f32 %v18545_v16, %v18544_v30  ;;  %v18575_v8 = vld [vmem:[#allocation98_spill] sm:$0xff] }
 0xfa6   :  { %v7011_v34 = vadd.f32 %v9909_v42, %v7010_v45  ;;  %8895 = vmatprep.subr.bf16.mxu1 %v8894_v52  ;;  %v8906_v42 = vpack.c.bf16 %v9933_v62, %v9931_v37  ;;  %v18538_v52 = vpack.c.bf16 %v16093_v60, %v16086_v27  ;;  %v18542_v27 = vld [vmem:[#allocation38_spill] sm:$0xff] }
 0xfa7   :  { %v472_v60 = vadd.f32 %v18542_v27, %v18541_v47  ;;  %v18574_v45 = vld [vmem:[#allocation66_spill] sm:$0xff] }
 0xfa8   :  { %v7012_v22 = vadd.f32 %v9911_v7, %v7011_v34  ;;  %v18537_v7 = vpack.c.bf16 %v16078_v54, %v16069_v58  ;;  %v18540_v58 = vpack.c.bf16 %v16124_v48, %v16116_v0  ;;  %v18547_v48 = vmov 0.0   ;;  %v18548_v0 = vld [vmem:[#allocation154_spill] sm:$0xff]  ;;  %v18576_v34 = vld [vmem:[#allocation25_spill] sm:$0xff] }
 0xfa9   :  { %8897 = vmatpush1.bf16.msra.mxu1 %v18535_v20  ;;  %v6987_v20 = vrot.slane %v16238_v53, 4 }
 0xfaa   :  { %v7013_v50 = vadd.f32 %v9913_v51, %v7012_v22  ;;  %8899 = vmatprep.subr.bf16.mxu1 %v8898_v10  ;;  %v18578_v22 = vld [vmem:[#allocation123_spill] sm:$0xff] }
 0xfac   :  { %v7014_v32 = vadd.f32 %v9927_v61, %v7013_v50  ;;  %v18577_v61 = vld [vmem:[#allocation120_spill] sm:$0xff] }
 0xfad   :  { %8901 = vmatpush1.bf16.msra.mxu1 %v18536_v43 }
 0xfae   :  { %v7015_v33 = vadd.f32 %v9929_v21, %v7014_v32  ;;  %8903 = vmatprep.subr.bf16.mxu1 %v8902_v55  ;;  %v18579_v21 = vld [vmem:[#allocation161_spill] sm:$0xff] }
 0xfb0   :  { %v7016_v12 = vadd.f32 %v9931_v37, %v7015_v33  ;;  %v6988_v37 = vadd.f32 %v6987_v20, %v16238_v53 }
 0xfb1   :  { %8905 = vmatpush1.bf16.msra.mxu1 %v18537_v7 }
 0xfb2   :  { %v7017_v2 = vadd.f32 %v9933_v62, %v7016_v12  ;;  %8907 = vmatprep.subr.bf16.mxu1 %v8906_v42  ;;  %v6989_v55 = vrot.slane %v6988_v37, 2 }
 0xfb4   :  { %v7018_v49 = vadd.f32 %v9915_v9, %v7017_v2  ;;  %v470_v9 = vadd.f32 %v18546_v29, %v18541_v47  ;;  %v6990_v43 = vadd.f32 %v6989_v55, %v6988_v37 }
 0xfb5   :  { %8909 = vmatpush1.bf16.msra.mxu1 %v18538_v52 }
 0xfb6   :  { %v7019_v51 = vadd.f32 %v9917_v40, %v7018_v49  ;;  %8911 = vmatprep.subr.bf16.mxu1 %v8910_v18  ;;  %v18554_v40 = vld [vmem:[#allocation139_spill] sm:$0xff]  ;;  %v18561_v18 = vld [vmem:[#allocation129_spill] sm:$0xff]  ;;  %v6991_v12 = vrot.slane %v6990_v43, 1 }
 0xfb8   :  { %v7020_v10 = vadd.f32 %v9919_v57, %v7019_v51  ;;  %v18558_v57 = vld [vmem:[#allocation111_spill] sm:$0xff]  ;;  %v6992_v7 = vadd.f32 %v6991_v12, %v6990_v43 }
 0xfb9   :  { %8913 = vmatpush1.bf16.msra.mxu1 %v18539_v25 }
 0xfba   :  { %v7021_v26 = vadd.f32 %v9921_v3, %v7020_v10  ;;  %8915 = vmatprep.subr.bf16.mxu1 %v8914_v28  ;;  %v18562_v3 = vld [vmem:[#allocation145_spill] sm:$0xff]  ;;  %v18567_v28 = vld [vmem:[#allocation147_spill] sm:$0xff]  ;;  %9934 = vrcp.f32 %v6992_v7 }
 0xfbc   :  { %v7022_v23 = vadd.f32 %v9923_v38, %v7021_v26  ;;  %v18565_v38 = vld [vmem:[#allocation126_spill] sm:$0xff] }
 0xfbd   :  { %8917 = vmatpush1.bf16.msra.mxu1 %v18540_v58 }
 0xfbe   :  { %v16265_v54 = vadd.f32 %v9925_v19, %v7022_v23  ;;  %8919 = vmatprep.subr.bf16.mxu1 %v8918_v63  ;;  %v18568_v19 = vld [vmem:[#allocation151_spill] sm:$0xff]  ;;  %v18571_v63 = vld [vmem:[#allocation141_spill] sm:$0xff] }
 0xfc0   :  { %v7024_v50 = vrot.slane %v16265_v54, 4 }
 0xfc1   :  { %8921 = vmatpush1.bf16.msra.mxu1 %v18543_v14 }
 0xfc2   :  { %7273 = vmatprep.subr.mxu1 %v472_v60  ;;  %v7025_v32 = vadd.f32 %v7024_v50, %v16265_v54 }
 0xfc4   :  { %7095 = vmatmul.mubr.f32.vlgmr.msra.gmra.mrb[222].mxu1 %v512_v17  ;;  %v7026_v62 = vrot.slane %v7025_v32, 2  ;;  %v9935_v49 = vpop.eup %9934 }
 0xfc5   :  { %7274 = vmatpush1.msra.mxu1 %v470_v9  ;;  %7337 = vmatprep.mubr.f32.mxu1 %v18547_v48 }
 0xfc6   :  { %v7027_v33 = vadd.f32 %v7026_v62, %v7025_v32 }
 0xfc8   :  { %8433 = vmatmul.mubr.msk.f32.vlgmr.msra.gmra.mrb[224].mxu1 %vm653_vm2, %v18548_v0  ;;  %v7028_v42 = vrot.slane %v7027_v33, 1 }
 0xfc9   :  { %7343 = vmatprep.mubr.f32.mxu1 %v18547_v48 }
 0xfca   :  { %v7029_v2 = vadd.f32 %v7028_v42, %v7027_v33 }
 0xfcc   :  { %8434 = vmatmul.mubr.msk.f32.gmra.mrb[226].mxu1 %vm653_vm2, %v18549_v15  ;;  %9936 = vrcp.f32 %v7029_v2 }
 0xfcd   :  { %7349 = vmatprep.mubr.f32.mxu1 %v18547_v48 }
 0xfd0   :  { %8435 = vmatmul.mubr.msk.f32.gmra.mrb[228].mxu1 %vm653_vm2, %v18550_v6 }
 0xfd1   :  { %7355 = vmatprep.mubr.f32.mxu1 %v18547_v48 }
 0xfd4   :  { %8436 = vmatmul.mubr.msk.f32.gmra.mrb[230].mxu1 %vm653_vm2, %v18551_v36 }
 0xfd5   :  { %7361 = vmatprep.mubr.f32.mxu1 %v18547_v48 }
 0xfd6   :  { %v9937_v51 = vpop.eup %9936 }
 0xfd8   :  { %8437 = vmatmul.mubr.msk.f32.gmra.mrb[232].mxu1 %vm653_vm2, %v18552_v35 }
 0xfd9   :  { %7367 = vmatprep.mubr.f32.mxu1 %v18547_v48 }
 0xfdc   :  { %8438 = vmatmul.mubr.msk.f32.gmra.mrb[234].mxu1 %vm653_vm2, %v18553_v24 }
 0xfdd   :  { %7373 = vmatprep.mubr.f32.mxu1 %v18547_v48 }
 0xfe0   :  { %8439 = vmatmul.mubr.msk.f32.gmra.mrb[236].mxu1 %vm653_vm2, %v18554_v40 }
 0xfe1   :  { %7379 = vmatprep.mubr.f32.mxu1 %v18547_v48 }
 0xfe4   :  { %8440 = vmatmul.mubr.msk.f32.gmra.mrb[238].mxu1 %vm653_vm2, %v18555_v5 }
 0xfe5   :  { %7385 = vmatprep.mubr.f32.mxu1 %v18547_v48 }
 0xfe8   :  { %8441 = vmatmul.mubr.msk.f32.gmra.mrb[240].mxu1 %vm653_vm2, %v18556_v11 }
 0xfe9   :  { %7391 = vmatprep.mubr.f32.mxu1 %v18547_v48 }
 0xfec   :  { %8442 = vmatmul.mubr.msk.f32.gmra.mrb[242].mxu1 %vm653_vm2, %v18557_v56 }
 0xfed   :  { %7397 = vmatprep.mubr.f32.mxu1 %v18547_v48 }
 0xff0   :  { %8443 = vmatmul.mubr.msk.f32.gmra.mrb[244].mxu1 %vm653_vm2, %v18558_v57 }
 0xff1   :  { %7403 = vmatprep.mubr.f32.mxu1 %v18547_v48 }
 0xff4   :  { %8444 = vmatmul.mubr.msk.f32.gmra.mrb[246].mxu1 %vm653_vm2, %v18559_v41 }
 0xff5   :  { %7409 = vmatprep.mubr.f32.mxu1 %v18547_v48 }
 0xff8   :  { %8445 = vmatmul.mubr.msk.f32.gmra.mrb[248].mxu1 %vm653_vm2, %v18560_v39 }
 0xff9   :  { %7415 = vmatprep.mubr.f32.mxu1 %v18547_v48 }
 0xffc   :  { %8446 = vmatmul.mubr.msk.f32.gmra.mrb[250].mxu1 %vm653_vm2, %v18561_v18 }
 0xffd   :  { %7421 = vmatprep.mubr.f32.mxu1 %v18547_v48 }
0x1000   :  { %8447 = vmatmul.mubr.msk.f32.gmra.mrb[252].mxu1 %vm653_vm2, %v18562_v3 }
0x1001   :  { %7427 = vmatprep.mubr.f32.mxu1 %v18547_v48 }
0x1004   :  { %8448 = vmatmul.mubr.msk.f32.gmra.mrb[254].mxu1 %vm653_vm2, %v18563_v31 }
0x1005   :  { %7433 = vmatprep.mubr.f32.mxu1 %v18547_v48 }
0x1008   :  { %8449 = vmatmul.mubr.msk.f32.gmra.mrb[0].mxu1 %vm653_vm2, %v18564_v4 }
0x1009   :  { %7439 = vmatprep.mubr.f32.mxu1 %v18547_v48 }
0x100c   :  { %8450 = vmatmul.mubr.msk.f32.gmra.mrb[2].mxu1 %vm653_vm2, %v18565_v38 }
0x100d   :  { %7445 = vmatprep.mubr.f32.mxu1 %v18547_v48 }
0x1010   :  { %8451 = vmatmul.mubr.msk.f32.gmra.mrb[4].mxu1 %vm653_vm2, %v18566_v44 }
0x1011   :  { %7451 = vmatprep.mubr.f32.mxu1 %v18547_v48 }
0x1014   :  { %8452 = vmatmul.mubr.msk.f32.gmra.mrb[6].mxu1 %vm653_vm2, %v18567_v28 }
0x1015   :  { %7457 = vmatprep.mubr.f32.mxu1 %v18547_v48 }
0x1018   :  { %8453 = vmatmul.mubr.msk.f32.gmra.mrb[8].mxu1 %vm653_vm2, %v18568_v19 }
0x1019   :  { %7463 = vmatprep.mubr.f32.mxu1 %v18547_v48 }
0x101c   :  { %8454 = vmatmul.mubr.msk.f32.gmra.mrb[10].mxu1 %vm653_vm2, %v18569_v1 }
0x101d   :  { %7469 = vmatprep.mubr.f32.mxu1 %v18547_v48 }
0x1020   :  { %8455 = vmatmul.mubr.msk.f32.gmra.mrb[12].mxu1 %vm653_vm2, %v18570_v46 }
0x1021   :  { %7475 = vmatprep.mubr.f32.mxu1 %v18547_v48 }
0x1024   :  { %8456 = vmatmul.mubr.msk.f32.gmra.mrb[14].mxu1 %vm653_vm2, %v18571_v63 }
0x1025   :  { %7481 = vmatprep.mubr.f32.mxu1 %v18547_v48 }
0x1028   :  { %8457 = vmatmul.mubr.msk.f32.gmra.mrb[16].mxu1 %vm653_vm2, %v18572_v13 }
0x1029   :  { %7487 = vmatprep.mubr.f32.mxu1 %v18547_v48 }
0x102c   :  { %8458 = vmatmul.mubr.msk.f32.gmra.mrb[18].mxu1 %vm653_vm2, %v18573_v59 }
0x102d   :  { %7493 = vmatprep.mubr.f32.mxu1 %v18547_v48 }
0x1030   :  { %8459 = vmatmul.mubr.msk.f32.gmra.mrb[20].mxu1 %vm653_vm2, %v18574_v45 }
0x1031   :  { %7499 = vmatprep.mubr.f32.mxu1 %v18547_v48 }
0x1034   :  { %8460 = vmatmul.mubr.msk.f32.gmra.mrb[22].mxu1 %vm653_vm2, %v18575_v8 }
0x1035   :  { %7505 = vmatprep.mubr.f32.mxu1 %v18547_v48 }
0x1038   :  { %8461 = vmatmul.mubr.msk.f32.gmra.mrb[24].mxu1 %vm653_vm2, %v18576_v34 }
0x1039   :  { %7511 = vmatprep.mubr.f32.mxu1 %v18547_v48 }
0x103c   :  { %8462 = vmatmul.mubr.msk.f32.gmra.mrb[26].mxu1 %vm653_vm2, %v18577_v61 }
0x103d   :  { %7517 = vmatprep.mubr.f32.mxu1 %v18547_v48 }
0x1040   :  { %8463 = vmatmul.mubr.msk.f32.gmra.mrb[28].mxu1 %vm653_vm2, %v18578_v22 }
0x1041   :  { %7523 = vmatprep.mubr.f32.mxu1 %v18547_v48 }
0x1044   :  { %8464 = vmatmul.mubr.msk.f32.gmra.mrb[30].mxu1 %vm653_vm2, %v18579_v21 }
0x1097   :  { %v7096_v52 = vpop.f32.mrb[222].mxu1 }
0x1098   :  { %v16376_v10 = vmul.f32 %v9935_v49, %v7096_v52  ;;  %v7098_v25 = vpop.f32.mrb[223].mxu1 }
0x1099   :  { %v16378_v26 = vmul.f32 %v9937_v51, %v7098_v25 }
0x109a   :  { %18580 = vst [vmem:[#allocation97_spill] sm:$0xff] %v16376_v10 }
0x109b   :  { %18581 = vst [vmem:[#allocation101_spill] sm:$0xff] %v16378_v26  ;;  %v7339_v53 = vpop.f32.mrb[224].mxu1 }
0x109c   :  { %v7341_v23 = vpop.f32.mrb[225].mxu1  ;;  %v16380_v27 = vmul.f32 0.35355338, %v7339_v53 }
0x109d   :  { %v16384_v30 = vmul.f32 0.35355338, %v7341_v23 }
0x109f   :  { %v7345_v58 = vpop.f32.mrb[226].mxu1 }
0x10a0   :  { %v7347_v54 = vpop.f32.mrb[227].mxu1  ;;  %v16392_v0 = vmul.f32 0.35355338, %v7345_v58 }
0x10a1   :  { %v16396_v36 = vmul.f32 0.35355338, %v7347_v54 }
0x10a3   :  { %v7351_v47 = vpop.f32.mrb[228].mxu1 }
0x10a4   :  { %v16382_v60 = vmul.f32 0.35355338, %v7351_v47  ;;  %v7353_v14 = vpop.f32.mrb[229].mxu1 }
0x10a5   :  { %v16386_v16 = vmul.f32 0.35355338, %v7353_v14 }
0x10a6   :  { %v7594_v17 = vmax.f32 %v16380_v27, %v16382_v60 }
0x10a7   :  { %v7631_v29 = vmax.f32 %v16384_v30, %v16386_v16  ;;  %v7357_v9 = vpop.f32.mrb[230].mxu1 }
0x10a8   :  { %v16394_v15 = vmul.f32 0.35355338, %v7357_v9  ;;  %v7359_v6 = vpop.f32.mrb[231].mxu1 }
0x10a9   :  { %v16398_v35 = vmul.f32 0.35355338, %v7359_v6 }
0x10aa   :  { %v7595_v24 = vmax.f32 %v16392_v0, %v16394_v15 }
0x10ab   :  { %v7632_v40 = vmax.f32 %v16396_v36, %v16398_v35  ;;  %v7363_v5 = vpop.f32.mrb[232].mxu1 }
0x10ac   :  { %v16404_v11 = vmul.f32 0.35355338, %v7363_v5  ;;  %v7365_v56 = vpop.f32.mrb[233].mxu1 }
0x10ad   :  { %v16406_v57 = vmul.f32 0.35355338, %v7365_v56 }
0x10ae   :  { %v7596_v41 = vmax.f32 %v7594_v17, %v16404_v11 }
0x10af   :  { %v7633_v39 = vmax.f32 %v7631_v29, %v16406_v57  ;;  %v7369_v18 = vpop.f32.mrb[234].mxu1 }
0x10b0   :  { %v16410_v3 = vmul.f32 0.35355338, %v7369_v18  ;;  %v7371_v31 = vpop.f32.mrb[235].mxu1 }
0x10b1   :  { %v16412_v4 = vmul.f32 0.35355338, %v7371_v31 }
0x10b2   :  { %v7597_v38 = vmax.f32 %v7595_v24, %v16410_v3 }
0x10b3   :  { %v7634_v44 = vmax.f32 %v7632_v40, %v16412_v4  ;;  %v7375_v28 = vpop.f32.mrb[236].mxu1 }
0x10b4   :  { %v16416_v19 = vmul.f32 0.35355338, %v7375_v28  ;;  %v7377_v1 = vpop.f32.mrb[237].mxu1 }
0x10b5   :  { %v16418_v46 = vmul.f32 0.35355338, %v7377_v1 }
0x10b6   :  { %v7598_v63 = vmax.f32 %v7596_v41, %v16416_v19 }
0x10b7   :  { %v7635_v13 = vmax.f32 %v7633_v39, %v16418_v46  ;;  %v7381_v59 = vpop.f32.mrb[238].mxu1 }
0x10b8   :  { %v16422_v45 = vmul.f32 0.35355338, %v7381_v59  ;;  %v7383_v8 = vpop.f32.mrb[239].mxu1 }
0x10b9   :  { %v16424_v34 = vmul.f32 0.35355338, %v7383_v8 }
0x10ba   :  { %v7599_v61 = vmax.f32 %v7597_v38, %v16422_v45 }
0x10bb   :  { %v7636_v22 = vmax.f32 %v7634_v44, %v16424_v34  ;;  %v7387_v21 = vpop.f32.mrb[240].mxu1 }
0x10bc   :  { %v16428_v20 = vmul.f32 0.35355338, %v7387_v21  ;;  %v7389_v50 = vpop.f32.mrb[241].mxu1 }
0x10bd   :  { %v16430_v37 = vmul.f32 0.35355338, %v7389_v50 }
0x10be   :  { %v7600_v32 = vmax.f32 %v7598_v63, %v16428_v20 }
0x10bf   :  { %v7637_v55 = vmax.f32 %v7635_v13, %v16430_v37  ;;  %v7393_v62 = vpop.f32.mrb[242].mxu1 }
0x10c0   :  { %v16434_v43 = vmul.f32 0.35355338, %v7393_v62  ;;  %v7395_v33 = vpop.f32.mrb[243].mxu1 }
0x10c1   :  { %v16436_v12 = vmul.f32 0.35355338, %v7395_v33 }
0x10c2   :  { %v7601_v42 = vmax.f32 %v7599_v61, %v16434_v43 }
0x10c3   :  { %v7638_v7 = vmax.f32 %v7636_v22, %v16436_v12  ;;  %v7399_v2 = vpop.f32.mrb[244].mxu1 }
0x10c4   :  { %v16440_v49 = vmul.f32 0.35355338, %v7399_v2  ;;  %v7401_v52 = vpop.f32.mrb[245].mxu1 }
0x10c5   :  { %v16442_v51 = vmul.f32 0.35355338, %v7401_v52 }
0x10c6   :  { %v7602_v25 = vmax.f32 %v7600_v32, %v16440_v49 }
0x10c7   :  { %v7639_v53 = vmax.f32 %v7637_v55, %v16442_v51  ;;  %v7405_v23 = vpop.f32.mrb[246].mxu1 }
0x10c8   :  { %v16446_v58 = vmul.f32 0.35355338, %v7405_v23  ;;  %v7407_v54 = vpop.f32.mrb[247].mxu1 }
0x10c9   :  { %v16448_v47 = vmul.f32 0.35355338, %v7407_v54 }
0x10ca   :  { %v7603_v14 = vmax.f32 %v7601_v42, %v16446_v58 }
0x10cb   :  { %18582 = vst [vmem:[#allocation109_spill] sm:$0xff] %v16448_v47  ;;  %v7640_v17 = vmax.f32 %v7638_v7, %v16448_v47  ;;  %v7411_v29 = vpop.f32.mrb[248].mxu1 }
0x10cc   :  { %v16452_v9 = vmul.f32 0.35355338, %v7411_v29  ;;  %v7413_v6 = vpop.f32.mrb[249].mxu1 }
0x10cd   :  { %v16454_v24 = vmul.f32 0.35355338, %v7413_v6 }
0x10ce   :  { %v7604_v40 = vmax.f32 %v7602_v25, %v16452_v9 }
0x10cf   :  { %18583 = vst [vmem:[#allocation127_spill] sm:$0xff] %v16454_v24  ;;  %v7641_v5 = vmax.f32 %v7639_v53, %v16454_v24  ;;  %v7417_v56 = vpop.f32.mrb[250].mxu1 }
0x10d0   :  { %v16458_v41 = vmul.f32 0.35355338, %v7417_v56  ;;  %v7419_v39 = vpop.f32.mrb[251].mxu1 }
0x10d1   :  { %v16460_v18 = vmul.f32 0.35355338, %v7419_v39 }
0x10d2   :  { %v7605_v31 = vmax.f32 %v7603_v14, %v16458_v41 }
0x10d3   :  { %18584 = vst [vmem:[#allocation136_spill] sm:$0xff] %v16460_v18  ;;  %v7642_v38 = vmax.f32 %v7640_v17, %v16460_v18  ;;  %v7423_v44 = vpop.f32.mrb[252].mxu1 }
0x10d4   :  { %v16464_v28 = vmul.f32 0.35355338, %v7423_v44  ;;  %v7425_v1 = vpop.f32.mrb[253].mxu1 }
0x10d5   :  { %v16466_v63 = vmul.f32 0.35355338, %v7425_v1 }
0x10d6   :  { %v7606_v13 = vmax.f32 %v7604_v40, %v16464_v28 }
0x10d7   :  { %18585 = vst [vmem:[#allocation39_spill] sm:$0xff] %v16466_v63  ;;  %v7643_v59 = vmax.f32 %v7641_v5, %v16466_v63  ;;  %v7429_v8 = vpop.f32.mrb[254].mxu1 }
0x10d8   :  { %v16470_v61 = vmul.f32 0.35355338, %v7429_v8  ;;  %v7431_v22 = vpop.f32.mrb[255].mxu1 }
0x10d9   :  { %v16472_v21 = vmul.f32 0.35355338, %v7431_v22 }
0x10da   :  { %v7607_v50 = vmax.f32 %v7605_v31, %v16470_v61 }
0x10db   :  { %18586 = vst [vmem:[#allocation158_spill] sm:$0xff] %v16472_v21  ;;  %v7644_v32 = vmax.f32 %v7642_v38, %v16472_v21  ;;  %v7435_v55 = vpop.f32.mrb[0].mxu1 }
0x10dc   :  { %v16476_v62 = vmul.f32 0.35355338, %v7435_v55  ;;  %v7437_v33 = vpop.f32.mrb[1].mxu1 }
0x10dd   :  { %v16478_v42 = vmul.f32 0.35355338, %v7437_v33 }
0x10de   :  { %v7608_v7 = vmax.f32 %v7606_v13, %v16476_v62 }
0x10df   :  { %18587 = vst [vmem:[#allocation70_spill] sm:$0xff] %v16478_v42  ;;  %v7645_v2 = vmax.f32 %v7643_v59, %v16478_v42  ;;  %v7441_v52 = vpop.f32.mrb[2].mxu1 }
0x10e0   :  { %v16482_v25 = vmul.f32 0.35355338, %v7441_v52  ;;  %v7443_v53 = vpop.f32.mrb[3].mxu1 }
0x10e1   :  { %v16484_v23 = vmul.f32 0.35355338, %v7443_v53 }
0x10e2   :  { %v7609_v54 = vmax.f32 %v7607_v50, %v16482_v25 }
0x10e3   :  { %18588 = vst [vmem:[#allocation72_spill] sm:$0xff] %v16484_v23  ;;  %v7646_v14 = vmax.f32 %v7644_v32, %v16484_v23  ;;  %v7447_v17 = vpop.f32.mrb[4].mxu1 }
0x10e4   :  { %v16488_v29 = vmul.f32 0.35355338, %v7447_v17  ;;  %v7449_v6 = vpop.f32.mrb[5].mxu1 }
0x10e5   :  { %v16490_v40 = vmul.f32 0.35355338, %v7449_v6 }
0x10e6   :  { %v7610_v5 = vmax.f32 %v7608_v7, %v16488_v29 }
0x10e7   :  { %18589 = vst [vmem:[#allocation74_spill] sm:$0xff] %v16490_v40  ;;  %v7647_v56 = vmax.f32 %v7645_v2, %v16490_v40  ;;  %v7453_v39 = vpop.f32.mrb[6].mxu1 }
0x10e8   :  { %v16494_v31 = vmul.f32 0.35355338, %v7453_v39  ;;  %v7455_v38 = vpop.f32.mrb[7].mxu1 }
0x10e9   :  { %v16496_v44 = vmul.f32 0.35355338, %v7455_v38 }
0x10ea   :  { %v7611_v1 = vmax.f32 %v7609_v54, %v16494_v31 }
0x10eb   :  { %18590 = vst [vmem:[#allocation76_spill] sm:$0xff] %v16496_v44  ;;  %v7648_v13 = vmax.f32 %v7646_v14, %v16496_v44  ;;  %v7459_v59 = vpop.f32.mrb[8].mxu1 }
0x10ec   :  { %v7461_v8 = vpop.f32.mrb[9].mxu1  ;;  %v16503_v55 = vmul.f32 0.35355338, %v7459_v59 }
0x10ed   :  { %v16500_v22 = vmul.f32 0.35355338, %v7461_v8 }
0x10ee   :  { %v7612_v14 = vmax.f32 %v7610_v5, %v16503_v55 }
0x10ef   :  { %18591 = vst [vmem:[#allocation119_spill] sm:$0xff] %v16500_v22  ;;  %v7649_v50 = vmax.f32 %v7647_v56, %v16500_v22  ;;  %v7465_v32 = vpop.f32.mrb[10].mxu1 }
0x10f0   :  { %v16505_v33 = vmul.f32 0.35355338, %v7465_v32  ;;  %v7467_v7 = vpop.f32.mrb[11].mxu1 }
0x10f1   :  { %v16507_v2 = vmul.f32 0.35355338, %v7467_v7 }
0x10f2   :  { %v7613_v52 = vmax.f32 %v7611_v1, %v16505_v33 }
0x10f3   :  { %18592 = vst [vmem:[#allocation71_spill] sm:$0xff] %v16507_v2  ;;  %v7650_v53 = vmax.f32 %v7648_v13, %v16507_v2  ;;  %v7471_v54 = vpop.f32.mrb[12].mxu1 }
0x10f4   :  { %v16512_v17 = vmul.f32 0.35355338, %v7471_v54  ;;  %v7473_v6 = vpop.f32.mrb[13].mxu1 }
0x10f5   :  { %v16521_v26 = vmul.f32 0.35355338, %v7473_v6 }
0x10f6   :  { %v7614_v56 = vmax.f32 %v7612_v14, %v16512_v17 }
0x10f7   :  { %v7477_v39 = vpop.f32.mrb[14].mxu1  ;;  %18593 = vst [vmem:[#allocation73_spill] sm:$0xff] %v16521_v26 }
0x10f8   :  { %v16515_v38 = vmul.f32 0.35355338, %v7477_v39  ;;  %v7479_v59 = vpop.f32.mrb[15].mxu1  ;;  %v7651_v39 = vmax.f32 %v7649_v50, %v16521_v26 }
0x10f9   :  { %v16529_v2 = vmul.f32 0.35355338, %v7479_v59 }
0x10fa   :  { %v7615_v8 = vmax.f32 %v7613_v52, %v16515_v38 }
0x10fb   :  { %v7483_v32 = vpop.f32.mrb[16].mxu1  ;;  %18595 = vst [vmem:[#allocation77_spill] sm:$0xff] %v16529_v2 }
0x10fc   :  { %v16518_v7 = vmul.f32 0.35355338, %v7483_v32  ;;  %v7485_v1 = vpop.f32.mrb[17].mxu1 }
0x10fd   :  { %v16525_v48 = vmul.f32 0.35355338, %v7485_v1  ;;  %v7652_v1 = vmax.f32 %v7650_v53, %v16529_v2 }
0x10fe   :  { %v7616_v13 = vmax.f32 %v7614_v56, %v16518_v7 }
0x10ff   :  { %v7489_v5 = vpop.f32.mrb[18].mxu1  ;;  %18594 = vst [vmem:[#allocation75_spill] sm:$0xff] %v16525_v48  ;;  %v7653_v56 = vmax.f32 %v7651_v39, %v16525_v48 }
0x1100   :  { %v16523_v54 = vmul.f32 0.35355338, %v7489_v5  ;;  %v7491_v10 = vpop.f32.mrb[19].mxu1 }
0x1101   :  { %v16534_v6 = vmul.f32 0.35355338, %v7491_v10 }
0x1102   :  { %v7617_v14 = vmax.f32 %v7615_v8, %v16523_v54 }
0x1103   :  { %v7495_v52 = vpop.f32.mrb[20].mxu1  ;;  %18596 = vst [vmem:[#allocation84_spill] sm:$0xff] %v16534_v6 }
0x1104   :  { %v16531_v32 = vmul.f32 0.35355338, %v7495_v52  ;;  %v7497_v22 = vpop.f32.mrb[21].mxu1  ;;  %v7654_v52 = vmax.f32 %v7652_v1, %v16534_v6 }
0x1105   :  { %v16536_v44 = vmul.f32 0.35355338, %v7497_v22 }
0x1106   :  { %v7618_v5 = vmax.f32 %v7616_v13, %v16531_v32 }
0x1107   :  { %18597 = vst [vmem:[#allocation83_spill] sm:$0xff] %v16536_v44  ;;  %v7655_v8 = vmax.f32 %v7653_v56, %v16536_v44  ;;  %v7501_v40 = vpop.f32.mrb[22].mxu1 }
0x1108   :  { %v16541_v50 = vmul.f32 0.35355338, %v7501_v40  ;;  %v7503_v59 = vpop.f32.mrb[23].mxu1 }
0x1109   :  { %v16544_v26 = vmul.f32 0.35355338, %v7503_v59 }
0x110a   :  { %v7619_v39 = vmax.f32 %v7617_v14, %v16541_v50 }
0x110b   :  { %18598 = vst [vmem:[#allocation58_spill] sm:$0xff] %v16544_v26  ;;  %v7656_v10 = vmax.f32 %v7654_v52, %v16544_v26  ;;  %v7507_v22 = vpop.f32.mrb[24].mxu1 }
0x110c   :  { %v16548_v48 = vmul.f32 0.35355338, %v7507_v22  ;;  %v7509_v13 = vpop.f32.mrb[25].mxu1 }
0x110d   :  { %v16550_v23 = vmul.f32 0.35355338, %v7509_v13 }
0x110e   :  { %v7620_v53 = vmax.f32 %v7618_v5, %v16548_v48 }
0x110f   :  { %18599 = vst [vmem:[#allocation31_spill] sm:$0xff] %v16550_v23  ;;  %v7657_v40 = vmax.f32 %v7655_v8, %v16550_v23  ;;  %v7513_v56 = vpop.f32.mrb[26].mxu1 }
0x1110   :  { %v16554_v2 = vmul.f32 0.35355338, %v7513_v56  ;;  %v7515_v1 = vpop.f32.mrb[27].mxu1 }
0x1111   :  { %v16556_v59 = vmul.f32 0.35355338, %v7515_v1 }
0x1112   :  { %v7621_v14 = vmax.f32 %v7619_v39, %v16554_v2 }
0x1113   :  { %18600 = vst [vmem:[#allocation172_spill] sm:$0xff] %v16556_v59  ;;  %v7658_v52 = vmax.f32 %v7656_v10, %v16556_v59  ;;  %v7519_v6 = vpop.f32.mrb[28].mxu1 }
0x1114   :  { %v16560_v22 = vmul.f32 0.35355338, %v7519_v6  ;;  %v7521_v26 = vpop.f32.mrb[29].mxu1 }
0x1115   :  { %v16562_v13 = vmul.f32 0.35355338, %v7521_v26 }
0x1116   :  { %v7622_v5 = vmax.f32 %v7620_v53, %v16560_v22 }
0x1117   :  { %18601 = vst [vmem:[#allocation79_spill] sm:$0xff] %v16562_v13  ;;  %v7659_v8 = vmax.f32 %v7657_v40, %v16562_v13  ;;  %v7525_v23 = vpop.f32.mrb[30].mxu1 }
0x1118   :  { %v16566_v56 = vmul.f32 0.35355338, %v7525_v23  ;;  %v7527_v44 = vpop.f32.mrb[31].mxu1 }
0x1119   :  { %v16568_v1 = vmul.f32 0.35355338, %v7527_v44 }
0x111a   :  { %v7623_v39 = vmax.f32 %v7621_v14, %v16566_v56 }
0x111b   :  { %v7660_v10 = vmax.f32 %v7658_v52, %v16568_v1 }
0x111c   :  { %v7624_v59 = vmax.f32 %v7622_v5, %v7623_v39 }
0x111d   :  { %v7661_v6 = vmax.f32 %v7659_v8, %v7660_v10 }
0x111e   :  { %v7625_v42 = vrot.slane %v7624_v59, 4 }
0x111f   :  { %v7662_v21 = vrot.slane %v7661_v6, 4 }
0x1120   :  { %v7626_v26 = vmax.f32 %v7624_v59, %v7625_v42 }
0x1121   :  { %v7663_v63 = vmax.f32 %v7661_v6, %v7662_v21 }
0x1122   :  { %v7627_v18 = vrot.slane %v7626_v26, 2 }
0x1123   :  { %v7664_v53 = vrot.slane %v7663_v63, 2 }
0x1124   :  { %v7628_v24 = vmax.f32 %v7626_v26, %v7627_v18 }
0x1125   :  { %v7665_v40 = vmax.f32 %v7663_v63, %v7664_v53 }
0x1126   :  { %v7629_v13 = vrot.slane %v7628_v24, 1 }
0x1127   :  { %v7666_v23 = vrot.slane %v7665_v40, 1 }
0x1128   :  { %v16572_v47 = vmax.f32 %v7628_v24, %v7629_v13 }
0x1129   :  { %v16574_v44 = vmax.f32 %v7665_v40, %v7666_v23 }
0x112a   :  { %v7668_v14 = vsub.f32 %v16380_v27, %v16572_v47  ;;  %v7670_v52 = vsub.f32 %v16392_v0, %v16572_v47  ;;  %v7672_v42 = vsub.f32 %v16382_v60, %v16572_v47  ;;  %v7674_v21 = vsub.f32 %v16394_v15, %v16572_v47 }
0x112b   :  { %v7676_v18 = vsub.f32 %v16404_v11, %v16572_v47  ;;  %v7678_v24 = vsub.f32 %v16410_v3, %v16572_v47  ;;  %v7680_v63 = vsub.f32 %v16416_v19, %v16572_v47  ;;  %v7682_v27 = vsub.f32 %v16422_v45, %v16572_v47 }
0x112c   :  { %v7684_v0 = vsub.f32 %v16428_v20, %v16572_v47  ;;  %v7686_v60 = vsub.f32 %v16434_v43, %v16572_v47  ;;  %v7688_v15 = vsub.f32 %v16440_v49, %v16572_v47  ;;  %v7690_v11 = vsub.f32 %v16446_v58, %v16572_v47 }
0x112d   :  { %v7692_v3 = vsub.f32 %v16452_v9, %v16572_v47  ;;  %v7694_v19 = vsub.f32 %v16458_v41, %v16572_v47  ;;  %v7696_v45 = vsub.f32 %v16464_v28, %v16572_v47  ;;  %v7698_v20 = vsub.f32 %v16470_v61, %v16572_v47 }
0x112e   :  { %v7700_v43 = vsub.f32 %v16476_v62, %v16572_v47  ;;  %v7702_v49 = vsub.f32 %v16482_v25, %v16572_v47  ;;  %v7704_v58 = vsub.f32 %v16488_v29, %v16572_v47  ;;  %v7706_v9 = vsub.f32 %v16494_v31, %v16572_v47 }
0x112f   :  { %v7710_v41 = vsub.f32 %v16505_v33, %v16572_v47  ;;  %v7712_v28 = vsub.f32 %v16512_v17, %v16572_v47  ;;  %v7714_v61 = vsub.f32 %v16515_v38, %v16572_v47  ;;  %v7716_v62 = vsub.f32 %v16518_v7, %v16572_v47  ;;  %v18616_v38 = vld [vmem:[#allocation172_spill] sm:$0xff] }
0x1130   :  { %v7718_v25 = vsub.f32 %v16523_v54, %v16572_v47  ;;  %v7720_v29 = vsub.f32 %v16531_v32, %v16572_v47  ;;  %v7732_v39 = vmul.f32 1.442695, %v7668_v14  ;;  %v7736_v10 = vmul.f32 1.442695, %v7670_v52 }
0x1131   :  { %v7740_v6 = vmul.f32 1.442695, %v7672_v42  ;;  %v7744_v53 = vmul.f32 1.442695, %v7674_v21  ;;  %v7748_v23 = vmul.f32 1.442695, %v7676_v18  ;;  %v7708_v14 = vsub.f32 %v16503_v55, %v16572_v47 }
0x1132   :  { %9938 = vpow2.f32 %v7732_v39  ;;  %v7752_v13 = vmul.f32 1.442695, %v7678_v24  ;;  %v7756_v59 = vmul.f32 1.442695, %v7680_v63  ;;  %v7760_v5 = vmul.f32 1.442695, %v7682_v27 }
0x1133   :  { %9940 = vpow2.f32 %v7736_v10  ;;  %v7764_v52 = vmul.f32 1.442695, %v7684_v0  ;;  %v7768_v42 = vmul.f32 1.442695, %v7686_v60  ;;  %v7772_v26 = vmul.f32 1.442695, %v7688_v15 }
0x1134   :  { %9942 = vpow2.f32 %v7740_v6  ;;  %v7776_v21 = vmul.f32 1.442695, %v7690_v11  ;;  %v7780_v8 = vmul.f32 1.442695, %v7692_v3  ;;  %v7784_v40 = vmul.f32 1.442695, %v7694_v19 }
0x1135   :  { %9944 = vpow2.f32 %v7744_v53  ;;  %v7788_v39 = vmul.f32 1.442695, %v7696_v45  ;;  %v7792_v18 = vmul.f32 1.442695, %v7698_v20  ;;  %v7796_v24 = vmul.f32 1.442695, %v7700_v43 }
0x1136   :  { %9946 = vpow2.f32 %v7748_v23  ;;  %v7800_v10 = vmul.f32 1.442695, %v7702_v49  ;;  %v7804_v63 = vmul.f32 1.442695, %v7704_v58  ;;  %v7808_v27 = vmul.f32 1.442695, %v7706_v9 }
0x1137   :  { %9948 = vpow2.f32 %v7752_v13  ;;  %v18602_v58 = vld [vmem:[#allocation109_spill] sm:$0xff]  ;;  %v18608_v45 = vld [vmem:[#allocation72_spill] sm:$0xff]  ;;  %v18609_v19 = vld [vmem:[#allocation74_spill] sm:$0xff]  ;;  %v7820_v49 = vmul.f32 1.442695, %v7712_v28  ;;  %v18619_v54 = vsub.f32 %v16548_v48, %v16572_v47 }
0x1138   :  { %9950 = vpow2.f32 %v7756_v59  ;;  %v18611_v15 = vld [vmem:[#allocation119_spill] sm:$0xff] }
0x1139   :  { %9952 = vpow2.f32 %v7760_v5  ;;  %v18603_v5 = vld [vmem:[#allocation127_spill] sm:$0xff] }
0x113a   :  { %9954 = vpow2.f32 %v7764_v52  ;;  %v18605_v52 = vld [vmem:[#allocation39_spill] sm:$0xff] }
0x113b   :  { %9956 = vpow2.f32 %v7768_v42  ;;  %v18610_v42 = vld [vmem:[#allocation76_spill] sm:$0xff]  ;;  %v18612_v60 = vld [vmem:[#allocation71_spill] sm:$0xff] }
0x113c   :  { %v16652_v11 = vpop.eup %9938  ;;  %9958 = vpow2.f32 %v7772_v26  ;;  %v18604_v26 = vld [vmem:[#allocation136_spill] sm:$0xff] }
0x113d   :  { %v16660_v20 = vpop.eup %9940  ;;  %9960 = vpow2.f32 %v7776_v21  ;;  %v18606_v21 = vld [vmem:[#allocation158_spill] sm:$0xff] }
0x113e   :  { %v16668_v59 = vpop.eup %9942  ;;  %9962 = vpow2.f32 %v7780_v8  ;;  %v7860_v13 = vadd.f32 %v16660_v20, %v16652_v11  ;;  %v18607_v8 = vld [vmem:[#allocation70_spill] sm:$0xff] }
0x113f   :  { %v16676_v23 = vpop.eup %9944  ;;  %9964 = vpow2.f32 %v7784_v40  ;;  %v7816_v40 = vmul.f32 1.442695, %v7710_v41  ;;  %v18614_v41 = vld [vmem:[#allocation58_spill] sm:$0xff] }
0x1140   :  { %v16684_v43 = vpop.eup %9946  ;;  %9966 = vpow2.f32 %v7788_v39  ;;  %v7861_v6 = vadd.f32 %v16668_v59, %v7860_v13  ;;  %v7812_v13 = vmul.f32 1.442695, %v7708_v14  ;;  %v7824_v39 = vmul.f32 1.442695, %v7714_v61  ;;  %v18617_v61 = vld [vmem:[#allocation79_spill] sm:$0xff] }
0x1141   :  { %v16691_v3 = vpop.eup %9948  ;;  %9968 = vpow2.f32 %v7792_v18 }
0x1142   :  { %v16699_v0 = vpop.eup %9950  ;;  %9970 = vpow2.f32 %v7796_v24  ;;  %v7862_v53 = vadd.f32 %v16676_v23, %v7861_v6  ;;  %v18613_v24 = vld [vmem:[#allocation83_spill] sm:$0xff] }
0x1143   :  { %v16705_v18 = vpop.eup %9952  ;;  %9972 = vpow2.f32 %v7800_v10  ;;  %v18615_v10 = vld [vmem:[#allocation31_spill] sm:$0xff] }
0x1144   :  { %v16715_v9 = vpop.eup %9954  ;;  %9974 = vpow2.f32 %v7804_v63  ;;  %v7863_v33 = vadd.f32 %v16684_v43, %v7862_v53  ;;  %v7828_v53 = vmul.f32 1.442695, %v7716_v62  ;;  %v18618_v62 = vsub.f32 %v16541_v50, %v16572_v47 }
0x1145   :  { %v16722_v17 = vpop.eup %9956  ;;  %9976 = vpow2.f32 %v7808_v27  ;;  %v7832_v27 = vmul.f32 1.442695, %v7718_v25  ;;  %v7844_v25 = vmul.f32 1.442695, %v18619_v54  ;;  %v18621_v50 = vsub.f32 %v16560_v22, %v16572_v47 }
0x1146   :  { %v16730_v31 = vpop.eup %9958  ;;  %9978 = vpow2.f32 %v7812_v13  ;;  %v7864_v55 = vadd.f32 %v16691_v3, %v7863_v33  ;;  %v7836_v13 = vmul.f32 1.442695, %v7720_v29  ;;  %v18620_v29 = vsub.f32 %v16554_v2, %v16572_v47 }
0x1147   :  { %v16736_v6 = vpop.eup %9960  ;;  %9980 = vpow2.f32 %v7816_v40  ;;  %v7840_v40 = vmul.f32 1.442695, %v18618_v62 }
0x1148   :  { %v16741_v14 = vpop.eup %9962  ;;  %9982 = vpow2.f32 %v7820_v49  ;;  %v7865_v63 = vadd.f32 %v16699_v0, %v7864_v55  ;;  %v7848_v55 = vmul.f32 1.442695, %v18620_v29 }
0x1149   :  { %v16747_v7 = vpop.eup %9964  ;;  %9984 = vpow2.f32 %v7824_v39 }
0x114a   :  { %v16752_v33 = vpop.eup %9966  ;;  %9986 = vpow2.f32 %v7828_v53  ;;  %v7866_v49 = vadd.f32 %v16705_v18, %v7865_v63  ;;  %v7852_v53 = vmul.f32 1.442695, %v18621_v50  ;;  %v18622_v63 = vsub.f32 %v16566_v56, %v16572_v47 }
0x114b   :  { %v16758_v32 = vpop.eup %9968  ;;  %9988 = vpow2.f32 %v7832_v27  ;;  %v18625_v47 = vsub.f32 %v16386_v16, %v16574_v44  ;;  %v18628_v16 = vsub.f32 %v16412_v4, %v16574_v44  ;;  %v18632_v4 = vsub.f32 %v16436_v12, %v16574_v44 }
0x114c   :  { %v16763_v39 = vpop.eup %9970  ;;  %9990 = vpow2.f32 %v7836_v13  ;;  %v7867_v62 = vadd.f32 %v16715_v9, %v7866_v49  ;;  %v7856_v27 = vmul.f32 1.442695, %v18622_v63  ;;  %v18623_v13 = vsub.f32 %v16384_v30, %v16574_v44 }
0x114d   :  { %v16769_v48 = vpop.eup %9972  ;;  %9992 = vpow2.f32 %v7840_v40  ;;  %v18624_v49 = vsub.f32 %v16396_v36, %v16574_v44  ;;  %v7742_v56 = vmul.f32 1.442695, %v18625_v47  ;;  %v18626_v30 = vsub.f32 %v16398_v35, %v16574_v44 }
0x114e   :  { %v16774_v54 = vpop.eup %9974  ;;  %9994 = vpow2.f32 %v7844_v25  ;;  %v7868_v2 = vadd.f32 %v16722_v17, %v7867_v62  ;;  %v7734_v29 = vmul.f32 1.442695, %v18623_v13  ;;  %v7754_v36 = vmul.f32 1.442695, %v18628_v16 }
0x114f   :  { %v16780_v22 = vpop.eup %9976  ;;  %9996 = vpow2.f32 %v7848_v55  ;;  %v7738_v40 = vmul.f32 1.442695, %v18624_v49  ;;  %v7746_v62 = vmul.f32 1.442695, %v18626_v30  ;;  %v18627_v55 = vsub.f32 %v16406_v57, %v16574_v44 }
0x1150   :  { %v16788_v50 = vpop.eup %9978  ;;  %9998 = vpow2.f32 %v7852_v53  ;;  %v7869_v25 = vadd.f32 %v16730_v31, %v7868_v2  ;;  %v18629_v53 = vsub.f32 %v16418_v46, %v16574_v44  ;;  %v18630_v2 = vsub.f32 %v16424_v34, %v16574_v44 }
0x1151   :  { %v7750_v63 = vmul.f32 1.442695, %v18627_v55  ;;  %v16797_v13 = vpop.eup %9980  ;;  %10000 = vpow2.f32 %v7856_v27  ;;  %v18631_v27 = vsub.f32 %v16430_v37, %v16574_v44  ;;  %v7770_v55 = vmul.f32 1.442695, %v18632_v4 }
0x1152   :  { %v7758_v49 = vmul.f32 1.442695, %v18629_v53  ;;  %v7762_v35 = vmul.f32 1.442695, %v18630_v2  ;;  %v16808_v47 = vpop.eup %9982  ;;  %v7870_v57 = vadd.f32 %v16736_v6, %v7869_v25  ;;  %10002 = vpow2.f32 %v7734_v29 }
0x1153   :  { %v7766_v30 = vmul.f32 1.442695, %v18631_v27  ;;  %v16817_v16 = vpop.eup %9984  ;;  %10004 = vpow2.f32 %v7738_v40  ;;  %v18634_v4 = vsub.f32 %v18602_v58, %v16574_v44 }
0x1154   :  { %v16825_v25 = vpop.eup %9986  ;;  %v7871_v37 = vadd.f32 %v16741_v14, %v7870_v57  ;;  %10006 = vpow2.f32 %v7742_v56 }
0x1155   :  { %v16832_v53 = vpop.eup %9988  ;;  %10008 = vpow2.f32 %v7746_v62  ;;  %v18633_v62 = vsub.f32 %v16442_v51, %v16574_v44  ;;  %v7778_v27 = vmul.f32 1.442695, %v18634_v4 }
0x1156   :  { %v16840_v57 = vpop.eup %9990  ;;  %v7872_v56 = vadd.f32 %v16747_v7, %v7871_v37  ;;  %10010 = vpow2.f32 %v7750_v63 }
0x1157   :  { %v16847_v12 = vpop.eup %9992  ;;  %10012 = vpow2.f32 %v7754_v36  ;;  %v7774_v40 = vmul.f32 1.442695, %v18633_v62 }
0x1158   :  { %v16855_v37 = vpop.eup %9994  ;;  %v7873_v63 = vadd.f32 %v16752_v33, %v7872_v56  ;;  %10014 = vpow2.f32 %v7758_v49  ;;  %v18635_v49 = vsub.f32 %v18603_v5, %v16574_v44  ;;  %v18640_v5 = vsub.f32 %v18608_v45, %v16574_v44 }
0x1159   :  { %v16863_v28 = vpop.eup %9996  ;;  %10016 = vpow2.f32 %v7762_v35  ;;  %v18636_v35 = vsub.f32 %v18604_v26, %v16574_v44  ;;  %v18639_v26 = vsub.f32 %v18607_v8, %v16574_v44  ;;  %v18643_v45 = vsub.f32 %v18611_v15, %v16574_v44 }
0x115a   :  { %v16868_v2 = vpop.eup %9998  ;;  %v7874_v29 = vadd.f32 %v16758_v32, %v7873_v63  ;;  %10018 = vpow2.f32 %v7766_v30  ;;  %v7782_v51 = vmul.f32 1.442695, %v18635_v49  ;;  %v18637_v30 = vsub.f32 %v18605_v52, %v16574_v44 }
0x115b   :  { %v16876_v62 = vpop.eup %10000  ;;  %10020 = vpow2.f32 %v7770_v55  ;;  %v7786_v58 = vmul.f32 1.442695, %v18636_v35  ;;  %v18638_v55 = vsub.f32 %v18606_v21, %v16574_v44  ;;  %v7798_v35 = vmul.f32 1.442695, %v18639_v26 }
0x115c   :  { %v10003_v4 = vpop.eup %10002  ;;  %v7875_v36 = vadd.f32 %v16763_v39, %v7874_v29  ;;  %10022 = vpow2.f32 %v7774_v40  ;;  %v7790_v63 = vmul.f32 1.442695, %v18637_v30  ;;  %v18641_v21 = vsub.f32 %v18609_v19, %v16574_v44 }
0x115d   :  { %v10005_v49 = vpop.eup %10004  ;;  %10024 = vpow2.f32 %v7778_v27  ;;  %v7794_v56 = vmul.f32 1.442695, %v18638_v55  ;;  %v7802_v27 = vmul.f32 1.442695, %v18640_v5  ;;  %v7814_v5 = vmul.f32 1.442695, %v18643_v45 }
0x115e   :  { %v10007_v34 = vpop.eup %10006  ;;  %v7876_v29 = vadd.f32 %v16769_v48, %v7875_v36  ;;  %10026 = vpow2.f32 %v7782_v51  ;;  %v7897_v40 = vadd.f32 %v10005_v49, %v10003_v4  ;;  %v8922_v52 = vpack.c.bf16 %v10005_v49, %v10003_v4 }
0x115f   :  { %v10009_v30 = vpop.eup %10008  ;;  %10028 = vpow2.f32 %v7786_v58  ;;  %v7806_v55 = vmul.f32 1.442695, %v18641_v21  ;;  %v18642_v58 = vsub.f32 %v18610_v42, %v16574_v44  ;;  %v18644_v19 = vpack.c.bf16 %v16660_v20, %v16652_v11 }
0x1160   :  { %v10011_v46 = vpop.eup %10010  ;;  %v7877_v8 = vadd.f32 %v16774_v54, %v7876_v29  ;;  %10030 = vpow2.f32 %v7790_v63  ;;  %v7898_v26 = vadd.f32 %v10007_v34, %v7897_v40  ;;  %8923 = vmatprep.subr.bf16.mxu0 %v8922_v52  ;;  %v8926_v36 = vpack.c.bf16 %v10009_v30, %v10007_v34 }
0x1161   :  { %v10013_v51 = vpop.eup %10012  ;;  %10032 = vpow2.f32 %v7794_v56  ;;  %v7810_v4 = vmul.f32 1.442695, %v18642_v58  ;;  %8925 = vmatpush1.bf16.msra.mxu0 %v18644_v19  ;;  %v18645_v42 = vsub.f32 %v18612_v60, %v16574_v44 }
0x1162   :  { %v10015_v49 = vpop.eup %10014  ;;  %v7878_v63 = vadd.f32 %v16780_v22, %v7877_v8  ;;  %10034 = vpow2.f32 %v7798_v35  ;;  %v7899_v29 = vadd.f32 %v10009_v30, %v7898_v26  ;;  %8927 = vmatprep.subr.bf16.mxu0 %v8926_v36  ;;  %v8930_v34 = vpack.c.bf16 %v10013_v51, %v10011_v46 }
0x1163   :  { %v10017_v56 = vpop.eup %10016  ;;  %10036 = vpow2.f32 %v7802_v27  ;;  %v7818_v40 = vmul.f32 1.442695, %v18645_v42  ;;  %v18646_v35 = vpack.c.bf16 %v16676_v23, %v16668_v59  ;;  %v18648_v23 = vsub.f32 %v18614_v41, %v16574_v44 }
0x1164   :  { %v10019_v52 = vpop.eup %10018  ;;  %v7879_v15 = vadd.f32 %v16788_v50, %v7878_v63  ;;  %10038 = vpow2.f32 %v7806_v55  ;;  %v7900_v21 = vadd.f32 %v10011_v46, %v7899_v29  ;;  %v8934_v11 = vpack.c.bf16 %v10017_v56, %v10015_v49 }
0x1165   :  { %v10021_v20 = vpop.eup %10020  ;;  %10040 = vpow2.f32 %v7810_v4  ;;  %8929 = vmatpush1.bf16.msra.mxu0 %v18646_v35  ;;  %v18647_v46 = vsub.f32 %v18613_v24, %v16574_v44  ;;  %v7842_v19 = vmul.f32 1.442695, %v18648_v23  ;;  %v18650_v29 = vsub.f32 %v18615_v10, %v16574_v44 }
0x1166   :  { %v10023_v30 = vpop.eup %10022  ;;  %v7880_v8 = vadd.f32 %v16797_v13, %v7879_v15  ;;  %10042 = vpow2.f32 %v7814_v5  ;;  %v7901_v27 = vadd.f32 %v10013_v51, %v7900_v21  ;;  %8931 = vmatprep.subr.bf16.mxu0 %v8930_v34  ;;  %v8938_v60 = vpack.c.bf16 %v10021_v20, %v10019_v52 }
0x1167   :  { %v10025_v26 = vpop.eup %10024  ;;  %10044 = vpow2.f32 %v7818_v40  ;;  %v7838_v58 = vmul.f32 1.442695, %v18647_v46  ;;  %v18649_v51 = vpack.c.bf16 %v16691_v3, %v16684_v43  ;;  %v7846_v24 = vmul.f32 1.442695, %v18650_v29  ;;  %v18657_v29 = vld [vmem:[#allocation77_spill] sm:$0xff] }
0x1168   :  { %v10027_v36 = vpop.eup %10026  ;;  %v7881_v55 = vadd.f32 %v16808_v47, %v7880_v8  ;;  %v7902_v4 = vadd.f32 %v10015_v49, %v7901_v27  ;;  %v8942_v45 = vpack.c.bf16 %v10025_v26, %v10023_v30  ;;  %v18651_v41 = vsub.f32 %v18616_v38, %v16574_v44 }
0x1169   :  { %v10029_v59 = vpop.eup %10028  ;;  %8933 = vmatpush1.bf16.msra.mxu0 %v18649_v51  ;;  %v18652_v3 = vsub.f32 %v18617_v61, %v16574_v44  ;;  %10046 = vpow2.f32 %v7838_v58  ;;  %v18654_v38 = vpack.c.bf16 %v16705_v18, %v16699_v0  ;;  %v18655_v0 = vpack.c.bf16 %v16722_v17, %v16715_v9 }
0x116a   :  { %v16929_v5 = vpop.eup %10030  ;;  %v7882_v63 = vadd.f32 %v16817_v16, %v7881_v55  ;;  %v7903_v34 = vadd.f32 %v10017_v56, %v7902_v4  ;;  %8935 = vmatprep.subr.bf16.mxu0 %v8934_v11  ;;  %v8946_v49 = vpack.c.bf16 %v10029_v59, %v10027_v36  ;;  %v7850_v40 = vmul.f32 1.442695, %v18651_v41  ;;  %v18658_v41 = vld [vmem:[#allocation75_spill] sm:$0xff] }
0x116b   :  { %v10033_v42 = vpop.eup %10032  ;;  %v7854_v43 = vmul.f32 1.442695, %v18652_v3  ;;  %10048 = vpow2.f32 %v7842_v19  ;;  %v18653_v11 = vsub.f32 %v16568_v1, %v16574_v44  ;;  %v18659_v9 = vpack.c.bf16 %v16736_v6, %v16730_v31 }
0x116c   :  { %v16941_v15 = vpop.eup %10034  ;;  %v7883_v21 = vadd.f32 %v16825_v25, %v7882_v63  ;;  %v7904_v35 = vadd.f32 %v10019_v52, %v7903_v34  ;;  %v8950_v10 = vpack.c.bf16 %v10033_v42, %v16929_v5  ;;  %10050 = vpow2.f32 %v7846_v24 }
0x116d   :  { %v10037_v56 = vpop.eup %10036  ;;  %v7858_v8 = vmul.f32 1.442695, %v18653_v11  ;;  %8937 = vmatpush1.bf16.msra.mxu0 %v18654_v38  ;;  %10052 = vpow2.f32 %v7850_v40  ;;  %v7715_v24 = vsub.f32 %v18657_v29, %v16574_v44  ;;  %v7717_v40 = vsub.f32 %v18658_v41, %v16574_v44 }
0x116e   :  { %v10039_v61 = vpop.eup %10038  ;;  %v7884_v27 = vadd.f32 %v16832_v53, %v7883_v21  ;;  %v7905_v55 = vadd.f32 %v10021_v20, %v7904_v35  ;;  %8939 = vmatprep.subr.bf16.mxu0 %v8938_v60  ;;  %v8954_v52 = vpack.c.bf16 %v10037_v56, %v16941_v15  ;;  %10054 = vpow2.f32 %v7854_v43  ;;  %v18656_v20 = vld [vmem:[#allocation73_spill] sm:$0xff]  ;;  %v18660_v21 = vld [vmem:[#allocation84_spill] sm:$0xff] }
0x116f   :  { %v10041_v46 = vpop.eup %10040  ;;  %10056 = vpow2.f32 %v7858_v8  ;;  %v7713_v60 = vsub.f32 %v18656_v20, %v16574_v44  ;;  %v7719_v35 = vsub.f32 %v18660_v21, %v16574_v44  ;;  %v7826_v11 = vmul.f32 1.442695, %v7715_v24 }
0x1170   :  { %v10043_v58 = vpop.eup %10042  ;;  %v7885_v4 = vadd.f32 %v16840_v57, %v7884_v27  ;;  %v7906_v1 = vadd.f32 %v10023_v30, %v7905_v55  ;;  %v8958_v23 = vpack.c.bf16 %v10041_v46, %v10039_v61  ;;  %v7830_v31 = vmul.f32 1.442695, %v7717_v40  ;;  %v18674_v40 = vld [vmem:[#allocation167_spill] sm:$0xff] }
0x1171   :  { %v10045_v19 = vpop.eup %10044  ;;  %8941 = vmatpush1.bf16.msra.mxu0 %v18655_v0  ;;  %v7822_v43 = vmul.f32 1.442695, %v7713_v60  ;;  %v18661_v6 = vpack.c.bf16 %v16747_v7, %v16741_v14  ;;  %v7834_v0 = vmul.f32 1.442695, %v7719_v35  ;;  %v18662_v20 = vpack.c.bf16 %v16758_v32, %v16752_v33 }
0x1172   :  { %v7886_v18 = vadd.f32 %v16847_v12, %v7885_v4  ;;  %v7907_v51 = vadd.f32 %v10025_v26, %v7906_v1  ;;  %8943 = vmatprep.subr.bf16.mxu0 %v8942_v45  ;;  %v8962_v63 = vpack.c.bf16 %v10045_v19, %v10043_v58 }
0x1173   :  { %v10047_v17 = vpop.eup %10046  ;;  %10058 = vpow2.f32 %v7822_v43 }
0x1174   :  { %v7887_v30 = vadd.f32 %v16855_v37, %v7886_v18  ;;  %v7908_v34 = vadd.f32 %v10027_v36, %v7907_v51  ;;  %10060 = vpow2.f32 %v7826_v11 }
0x1175   :  { %8945 = vmatpush1.bf16.msra.mxu0 %v18659_v9  ;;  %v10049_v45 = vpop.eup %10048  ;;  %10062 = vpow2.f32 %v7830_v31 }
0x1176   :  { %v7888_v3 = vadd.f32 %v16863_v28, %v7887_v30  ;;  %v7909_v26 = vadd.f32 %v10029_v59, %v7908_v34  ;;  %8947 = vmatprep.subr.bf16.mxu0 %v8946_v49  ;;  %v10051_v8 = vpop.eup %10050  ;;  %v8974_v27 = vpack.c.bf16 %v10049_v45, %v10047_v17  ;;  %10064 = vpow2.f32 %v7834_v0  ;;  %v18672_v34 = vld [vmem:[#allocation48_spill] sm:$0xff] }
0x1177   :  { %v10053_v55 = vpop.eup %10052 }
0x1178   :  { %v7889_v36 = vadd.f32 %v16868_v2, %v7888_v3  ;;  %v7910_v38 = vadd.f32 %v16929_v5, %v7909_v26  ;;  %v10055_v4 = vpop.eup %10054  ;;  %v8978_v44 = vpack.c.bf16 %v10053_v55, %v10051_v8 }
0x1179   :  { %8949 = vmatpush1.bf16.msra.mxu0 %v18661_v6  ;;  %v10057_v1 = vpop.eup %10056 }
0x117a   :  { %v7890_v59 = vadd.f32 %v16876_v62, %v7889_v36  ;;  %v7911_v49 = vadd.f32 %v10033_v42, %v7910_v38  ;;  %8951 = vmatprep.subr.bf16.mxu0 %v8950_v10  ;;  %v8982_v5 = vpack.c.bf16 %v10057_v1, %v10055_v4  ;;  %v18663_v42 = vpack.c.bf16 %v16769_v48, %v16763_v39 }
0x117c   :  { %v7912_v18 = vadd.f32 %v16941_v15, %v7911_v49  ;;  %v18664_v15 = vpack.c.bf16 %v16780_v22, %v16774_v54 }
0x117d   :  { %8953 = vmatpush1.bf16.msra.mxu0 %v18662_v20  ;;  %v10059_v60 = vpop.eup %10058 }
0x117e   :  { %v7913_v14 = vadd.f32 %v10037_v56, %v7912_v18  ;;  %8955 = vmatprep.subr.bf16.mxu0 %v8954_v52  ;;  %v10061_v29 = vpop.eup %10060  ;;  %v18681_v18 = vld [vmem:[#allocation132_spill] sm:$0xff] }
0x117f   :  { %v10063_v32 = vpop.eup %10062  ;;  %v8966_v52 = vpack.c.bf16 %v10061_v29, %v10059_v60 }
0x1180   :  { %v7914_v7 = vadd.f32 %v10039_v61, %v7913_v14  ;;  %v10065_v24 = vpop.eup %10064  ;;  %v18665_v61 = vpack.c.bf16 %v16797_v13, %v16788_v50  ;;  %v18668_v50 = vpack.c.bf16 %v16847_v12, %v16840_v57  ;;  %v18675_v12 = vld [vmem:[#allocation160_spill] sm:$0xff]  ;;  %v18676_v57 = vld [vmem:[#allocation47_spill] sm:$0xff] }
0x1181   :  { %8957 = vmatpush1.bf16.msra.mxu0 %v18663_v42  ;;  %v18677_v9 = vpack.c.bf16 %v18675_v12, %v18676_v57 }
0x1182   :  { %v7915_v10 = vadd.f32 %v10041_v46, %v7914_v7  ;;  %8959 = vmatprep.subr.bf16.mxu0 %v8958_v23  ;;  %v8970_v46 = vpack.c.bf16 %v10065_v24, %v10063_v32  ;;  %v18667_v23 = vpack.c.bf16 %v16832_v53, %v16825_v25  ;;  %v18670_v25 = vpack.c.bf16 %v16876_v62, %v16868_v2  ;;  %v18671_v53 = vld [vmem:[#allocation162_spill] sm:$0xff]  ;;  %v10076_v7 = vld [vmem:[#allocation4 + $0x8] sm:$0xff] }
0x1183   :  { %v18673_v41 = vpack.c.bf16 %v18671_v53, %v18672_v34 }
0x1184   :  { %v7916_v51 = vadd.f32 %v10043_v58, %v7915_v10  ;;  %v18666_v58 = vpack.c.bf16 %v16817_v16, %v16808_v47  ;;  %v18669_v47 = vpack.c.bf16 %v16863_v28, %v16855_v37  ;;  %v7891_v28 = vrot.slane %v7890_v59, 4  ;;  %v18682_v10 = vld [vmem:[#allocation23_spill] sm:$0xff] }
0x1185   :  { %8961 = vmatpush1.bf16.msra.mxu0 %v18664_v15 }
0x1186   :  { %v7917_v33 = vadd.f32 %v10045_v19, %v7916_v51  ;;  %8963 = vmatprep.subr.bf16.mxu0 %v8962_v63  ;;  %v7892_v3 = vadd.f32 %v7891_v28, %v7890_v59  ;;  %v18680_v59 = vld [vmem:[#allocation101_spill] sm:$0xff] }
0x1188   :  { %v7918_v56 = vadd.f32 %v10059_v60, %v7917_v33  ;;  %v7893_v26 = vrot.slane %v7892_v3, 2 }
0x1189   :  { %8965 = vmatpush1.bf16.msra.mxu0 %v18665_v61 }
0x118a   :  { %v7919_v39 = vadd.f32 %v10061_v29, %v7918_v56  ;;  %8967 = vmatprep.subr.bf16.mxu0 %v8966_v52  ;;  %v7894_v2 = vadd.f32 %v7893_v26, %v7892_v3 }
0x118c   :  { %v7920_v48 = vadd.f32 %v10063_v32, %v7919_v39  ;;  %v7895_v21 = vrot.slane %v7894_v2, 1 }
0x118d   :  { %8969 = vmatpush1.bf16.msra.mxu0 %v18666_v58 }
0x118e   :  { %v7921_v54 = vadd.f32 %v10065_v24, %v7920_v48  ;;  %8971 = vmatprep.subr.bf16.mxu0 %v8970_v46  ;;  %v7896_v11 = vadd.f32 %v7895_v21, %v7894_v2 }
0x1190   :  { %v7922_v22 = vadd.f32 %v10047_v17, %v7921_v54  ;;  %v18678_v17 = vmov 0.0   ;;  %10066 = vrcp.f32 %v7896_v11 }
0x1191   :  { %8973 = vmatpush1.bf16.msra.mxu0 %v18667_v23 }
0x1192   :  { %v7923_v19 = vadd.f32 %v10049_v45, %v7922_v22  ;;  %8975 = vmatprep.subr.bf16.mxu0 %v8974_v27 }
0x1194   :  { %v7924_v63 = vadd.f32 %v10051_v8, %v7923_v19 }
0x1195   :  { %8977 = vmatpush1.bf16.msra.mxu0 %v18668_v50 }
0x1196   :  { %v7925_v13 = vadd.f32 %v10053_v55, %v7924_v63  ;;  %8979 = vmatprep.subr.bf16.mxu0 %v8978_v44 }
0x1198   :  { %v7926_v30 = vadd.f32 %v10055_v4, %v7925_v13  ;;  %v18679_v4 = vld [vmem:[#allocation97_spill] sm:$0xff] }
0x1199   :  { %8981 = vmatpush1.bf16.msra.mxu0 %v18669_v47 }
0x119a   :  { %v7927_v16 = vadd.f32 %v10057_v1, %v7926_v30  ;;  %8983 = vmatprep.subr.bf16.mxu0 %v8982_v5  ;;  %v10067_v36 = vpop.eup %10066  ;;  %v10075_v1 = vld [vmem:[#allocation10] sm:$0xf] }
0x119c   :  { %v7928_v37 = vrot.slane %v7927_v16, 4 }
0x119d   :  { %8985 = vmatpush1.bf16.msra.mxu0 %v18670_v25 }
0x119e   :  { %8987 = vmatprep.subr.bf16.mxu0 %v18673_v41  ;;  %v7929_v43 = vadd.f32 %v7928_v37, %v7927_v16 }
0x11a0   :  { %7999 = vmatmul.mubr.f32.vlgmr.msra.gmra.mrb[32].mxu0 %v18674_v40  ;;  %v7930_v45 = vrot.slane %v7929_v43, 2 }
0x11a1   :  { %8989 = vmatpush1.bf16.msra.mxu0 %v18677_v9  ;;  %8083 = vmatprep.mubr.f32.mxu0 %v18678_v17 }
0x11a2   :  { %v7931_v62 = vadd.f32 %v7930_v45, %v7929_v43 }
0x11a4   :  { %v7932_v35 = vrot.slane %v7931_v62, 1 }
0x11a6   :  { %v7933_v8 = vadd.f32 %v7932_v35, %v7931_v62 }
0x11a8   :  { %10068 = vrcp.f32 %v7933_v8 }
0x11b2   :  { %v10069_v27 = vpop.eup %10068 }
0x1273   :  { %v8000_v38 = vpop.f32.mrb[32].mxu0 }
0x1274   :  { %v8007_v55 = vmul.f32 %v10067_v36, %v8000_v38  ;;  %v8002_v31 = vpop.f32.mrb[33].mxu0 }
0x1275   :  { %v8008_v6 = vmul.f32 %v10069_v27, %v8002_v31  ;;  %v18683_v27 = vld [vmem:[#allocation164_spill] sm:$0xff] }
0x1276   :  { %v8992_v49 = vpack.c.bf16 %v8007_v55, %v18679_v4 }
0x1277   :  { %v8990_v44 = vpack.c.bf16 %v8008_v6, %v18680_v59  ;;  %v18684_v6 = vld [vmem:[#allocation82_spill] sm:$0xff] }
0x1279   :  { %8991 = vmatprep.subr.bf16.mxu0 %v8990_v44 }
0x127a   :  { %8993 = vmatpush1.bf16.msra.mxu0 %v8992_v49 }
0x127d   :  { %8465 = vmatmul.mubr.msk.f32.vlgmr.msra.gmra.mrb[34].mxu0 %vm4252_vm3, %v10075_v1 }
0x1350   :  { %v8085_v0 = vpop.f32.mrb[34].mxu0 }
0x1351   :  { %v8086_v5 = vadd.f32 %v8085_v0, %v18681_v18  ;;  %v8087_v20 = vpop.f32.mrb[35].mxu0 }
0x1352   :  { %v8088_v14 = vadd.f32 %v8087_v20, %v18681_v18 }
0x1353   :  { %v8091_v42 = vadd.f32 %v10076_v7, %v8086_v5 }
0x1354   :  { %v8092_v60 = vadd.f32 %v8088_v14, %v18682_v10 }
0x1355   :  { %v8093_v51 = vsel %vm239_vm0, %v8091_v42, 0.0  ;;  %v8109_v29 = vmul.f32 %v8091_v42, %v8091_v42 }
0x1356   :  { %v8094_v15 = vrot.slane %v8093_v51, 4  ;;  %v8100_v33 = vsel %vm239_vm0, %v8092_v60, 0.0  ;;  %v8110_v32 = vmul.f32 %v8092_v60, %v8092_v60 }
0x1357   :  { %v8111_v56 = vsel %vm239_vm0, %v8109_v29, 0.0  ;;  %v8101_v52 = vrot.slane %v8100_v33, 4 }
0x1358   :  { %v8095_v24 = vadd.f32 %v8094_v15, %v8093_v51  ;;  %v8112_v61 = vrot.slane %v8111_v56, 4  ;;  %v8118_v39 = vsel %vm239_vm0, %v8110_v32, 0.0 }
0x1359   :  { %v8102_v48 = vadd.f32 %v8101_v52, %v8100_v33  ;;  %v8119_v46 = vrot.slane %v8118_v39, 4 }
0x135a   :  { %v8096_v58 = vrot.slane %v8095_v24, 2  ;;  %v8113_v54 = vadd.f32 %v8112_v61, %v8111_v56 }
0x135b   :  { %v8103_v22 = vrot.slane %v8102_v48, 2  ;;  %v8120_v23 = vadd.f32 %v8119_v46, %v8118_v39 }
0x135c   :  { %v8097_v19 = vadd.f32 %v8096_v58, %v8095_v24  ;;  %v8114_v63 = vrot.slane %v8113_v54, 2 }
0x135d   :  { %v8104_v50 = vadd.f32 %v8103_v22, %v8102_v48  ;;  %v8121_v13 = vrot.slane %v8120_v23, 2 }
0x135e   :  { %v8098_v30 = vrot.slane %v8097_v19, 1  ;;  %v8115_v47 = vadd.f32 %v8114_v63, %v8113_v54 }
0x135f   :  { %v8105_v16 = vrot.slane %v8104_v50, 1  ;;  %v8122_v25 = vadd.f32 %v8121_v13, %v8120_v23 }
0x1360   :  { %v8099_v53 = vadd.f32 %v8098_v30, %v8097_v19  ;;  %v8116_v34 = vrot.slane %v8115_v47, 1 }
0x1361   :  { %v8106_v41 = vadd.f32 %v8105_v16, %v8104_v50  ;;  %v8123_v40 = vrot.slane %v8122_v25, 1 }
0x1362   :  { %v8107_v12 = vmul.f32 0.25, %v8099_v53  ;;  %v8117_v57 = vadd.f32 %v8116_v34, %v8115_v47 }
0x1363   :  { %v8108_v9 = vmul.f32 0.25, %v8106_v41  ;;  %v8124_v17 = vadd.f32 %v8123_v40, %v8122_v25 }
0x1364   :  { %v8125_v28 = vmul.f32 0.25, %v8117_v57  ;;  %v8127_v37 = vmul.f32 %v8107_v12, %v8107_v12  ;;  %v8131_v21 = vsub.f32 %v8091_v42, %v8107_v12 }
0x1365   :  { %v8126_v3 = vmul.f32 0.25, %v8124_v17  ;;  %v8128_v43 = vmul.f32 %v8108_v9, %v8108_v9  ;;  %v8132_v11 = vsub.f32 %v8092_v60, %v8108_v9 }
0x1366   :  { %v8129_v26 = vsub.f32 %v8125_v28, %v8127_v37 }
0x1367   :  { %v8130_v45 = vsub.f32 %v8126_v3, %v8128_v43 }
0x1368   :  { %v8133_v2 = vadd.f32 1e-05, %v8129_v26 }
0x1369   :  { %v8134_v62 = vadd.f32 1e-05, %v8130_v45 }
0x136a   :  { %10070 = vrsqrt.f32 %v8133_v2 }
0x136b   :  { %10072 = vrsqrt.f32 %v8134_v62 }
0x1374   :  { %v10071_v35 = vpop.eup %10070 }
0x1375   :  { %v10073_v8 = vpop.eup %10072  ;;  %v8137_v36 = vmul.f32 %v10071_v35, %v8131_v21 }
0x1376   :  { %v8138_v38 = vmul.f32 %v10073_v8, %v8132_v11 }
0x1377   :  { %v8139_v55 = vmul.f32 %v8137_v36, %v18683_v27 }
0x1378   :  { %v8140_v31 = vmul.f32 %v8138_v38, %v18683_v27 }
0x1379   :  { %v8141_v4 = vadd.f32 %v8139_v55, %v18684_v6 }
0x137a   :  { %v8142_v49 = vadd.f32 %v8140_v31, %v18684_v6 }
0x137c   :  { %v8145_v59 = vcombine.low %v8141_v4, %v8142_v49 }
0x137e   :  { %8147 = vst [vmem:[#allocation16 + $0x8] sm:$0xff] %v8145_v59 }
0x137f   :  { %10242 = shalt.err (!%p10239_p4)
}
0x1380   :  { %s10243_s3 = scalar_lea.hbm %s17046_s7, 256 }
0x1381   :  { %p10244_p5 = scmp.ne.s32.totalorder %s17046_s7, %s10243_s3  ;;  %p10247_p6 = scmp.lt.u32.totalorder %s10243_s3, %s17046_s7 }
0x1383   :  { %p10249_p7 = pnand %p10247_p6, %p10244_p5 }
0x1385   :  { %10252 = shalt.err (!%p10249_p7)
}
0x1386   :  { %8157 = dma.vmem_to_hbm [thread:$0]  %s8155_s10, 256, %s17046_s7, [#allocation6]  }
0x1387   :  { %10261 = dma.done.wait [#allocation6], 256  }
0x1388   :  { %10262 = vsyncadd [#allocation6], 4294967040 }
0x1389   :  { %8161 = vsyncpa [#allocation5], 1 }
0x138a   :  { %8162 = vsyncpa [#allocation8], 1 }
0x138b   :  { %8163 = vsyncpa [#allocation11], 1 }
0x138c   :  { %8164 = vsyncpa [#allocation14], 1 }
0x138d   :  { %8165 = vsyncpa [#allocation6], 1 }

</bundles_post_ra>
